<compile_context>
chip_gen: v5e
topology: v5e:2x2
jax: 0.10.0
libtpu: 0.0.40
codegen_flags: <defaults>
</compile_context>

<pallas_src>
import functools

import jax
import jax.numpy as jnp
from jax.experimental import pallas as pl
from jax.experimental.pallas import tpu as pltpu

_HIGHEST = jax.lax.Precision.HIGHEST   # used only by the pure-JAX reference
_INV_SQRT2 = 0.7071067811865476


def _erf(z):
    """Abramowitz & Stegun 7.1.26 erf approximation (|err| < 1.5e-7).

    Only mul/add/abs/select/exp/reciprocal, so it lowers cleanly in Mosaic.
    The reciprocal is sent to the EUP (approx=True) to free VALU slots.
    """
    a1, a2, a3, a4, a5 = (0.254829592, -0.284496736, 1.421413741,
                          -1.453152027, 1.061405429)
    p = 0.3275911
    sign = jnp.where(z >= 0.0, 1.0, -1.0)
    za = jnp.abs(z)
    t = pl.reciprocal(1.0 + p * za, approx=True)
    poly = ((((a5 * t + a4) * t + a3) * t + a2) * t + a1) * t
    return sign * (1.0 - poly * jnp.exp(-za * za))


def _gelu_exact(x):
    # Matches PyTorch F.gelu default (erf form).
    return 0.5 * x * (1.0 + _erf(x * _INV_SQRT2))


def transformer_block_kernel(
    x_ref, tap_mask_ref,
    w_qkv_ref, b_qkv_ref, w_qdw_ref, b_qdw_ref, temp_ref, attn_mask_ref,
    w_po_ref, b_po_ref,
    w_fi_ref, b_fi_ref, w_fdw_ref, b_fdw_ref, w_fo_ref, b_fo_ref,
    o_ref,
    *, width):
  x_in = x_ref[0]                                  # (C, H*W) lane-dense f32
  C, HW = x_in.shape

  # Host-precomputed boundary masks, hoisted once: tap t -> (1, HW) 0/1 mask.
  # Shared by every depthwise-conv call below (no per-tap compares/selects).
  tap_masks = [tap_mask_ref[t] for t in range(9)]

  def conv1x1(w, y, b):
    # 1x1 conv == channel matmul on the MXU.  Default precision (bf16 operand
    # passes) with f32 accumulation — perf review: no HIGHEST emulation.
    return jnp.dot(w, y, preferred_element_type=jnp.float32) + b

  def dwconv3x3(y, w, b):
    # Depthwise 3x3, pad=1: in-register shift-and-accumulate.
    # 8 lane rolls (XLU slot) + masked VPU multiply-adds, masks hoisted.
    acc = w[:, 4:5] * y                            # centre tap: no roll/mask
    for dy in (-1, 0, 1):
      for dx in (-1, 0, 1):
        if dy == 0 and dx == 0:
          continue
        t = (dy + 1) * 3 + (dx + 1)
        shift = (-(dy * width + dx)) % HW
        shifted = pltpu.roll(y, shift=shift, axis=1)
        acc = acc + (w[:, t:t + 1] * shifted) * tap_masks[t]
    return acc + b

  def l2norm(t):
    return t * jax.lax.rsqrt(jnp.sum(t * t, axis=-1, keepdims=True) + 1e-12)

  def qkv_branch(lo, hi):
    # One third (q / k / v) at a time keeps the dwconv working set small.
    pre = conv1x1(w_qkv_ref[lo:hi, :], x_in, b_qkv_ref[lo:hi, :])
    return dwconv3x3(pre, w_qdw_ref[lo:hi, :], b_qdw_ref[lo:hi, :])

  # ---------------- Attention (transposed / channel attention) --------------
  q = l2norm(qkv_branch(0, C))                     # (C, HW)
  k = l2norm(qkv_branch(C, 2 * C))                 # (C, HW)
  v = qkv_branch(2 * C, 3 * C)                     # (C, HW)

  # Single (C, C) Gram matmul; heads decoupled by a precomputed additive
  # block-diagonal mask (0 / -1e30) applied AFTER the temperature scale, so
  # the per-head softmax / matvec is exact while everything stays 2-D.
  logits = jax.lax.dot_general(
      q, k, dimension_numbers=(((1,), (1,)), ((), ())),
      preferred_element_type=jnp.float32)          # (C, C)
  logits = logits * temp_ref[...] + attn_mask_ref[...]
  logits = logits - jnp.max(logits, axis=-1, keepdims=True)
  p = jnp.exp(logits)
  p = p * pl.reciprocal(jnp.sum(p, axis=-1, keepdims=True), approx=True)

  out = jnp.dot(p, v, preferred_element_type=jnp.float32)         # (C, HW)
  x_mid = x_in + conv1x1(w_po_ref[...], out, b_po_ref[...])       # residual 1

  # ---------------- Gated-DConv FeedForward ----------------
  hidden = w_fo_ref.shape[1]

  def ffn_branch(lo, hi):
    # Half-channel pass: conv1x1 + dwconv on `hidden` rows at a time, which
    # keeps live vregs (y + acc + shifted + residual) near the register file.
    pre = conv1x1(w_fi_ref[lo:hi, :], x_mid, b_fi_ref[lo:hi, :])
    return dwconv3x3(pre, w_fdw_ref[lo:hi, :], b_fdw_ref[lo:hi, :])

  gate = _gelu_exact(ffn_branch(0, hidden))        # (hidden, HW)
  value = ffn_branch(hidden, 2 * hidden)           # (hidden, HW)
  y = x_mid + conv1x1(w_fo_ref[...], gate * value, b_fo_ref[...])  # residual 2

  o_ref[0] = y.astype(o_ref.dtype)                 # one lane-dense store


def transformer_block_forward(x, params, num_heads):
  (w_qkv, b_qkv, w_qdw, b_qdw, temp,
   w_po, b_po, w_fi, b_fi, w_fdw, b_fdw, w_fo, b_fo) = params
  B, C, H, W = x.shape
  HW = H * W
  Ch = C // num_heads

  # Host-precomputed constants (perf-review items):
  #  * tap_mask: (9, 1, HW) 0/1 validity per 3x3 tap at every flattened spatial
  #    position, shared by both depthwise convolutions.
  #  * attn_mask: (C, C) additive block-diagonal mask (0 / -1e30) so heads stay
  #    decoupled inside one Gram matmul without in-kernel iotas/selects.
  lane = jnp.arange(HW, dtype=jnp.int32)
  row, col = lane // W, lane % W
  tap_mask = jnp.stack(
      [((row + dy >= 0) & (row + dy < H) & (col + dx >= 0) & (col + dx < W)
        ).astype(jnp.float32)
       for dy in (-1, 0, 1) for dx in (-1, 0, 1)],
      axis=0).reshape(9, 1, HW)
  head_id = jnp.arange(C, dtype=jnp.int32) // Ch
  attn_mask = jnp.where(head_id[:, None] == head_id[None, :],
                        0.0, -1e30).astype(jnp.float32)

  # Kernel-friendly packing: lane-dense activations, column biases, flattened
  # depthwise taps, per-channel temperature column.
  args = (
      x.reshape(B, C, HW),
      tap_mask,
      w_qkv, b_qkv[:, None], w_qdw.reshape(3 * C, 9), b_qdw[:, None],
      jnp.repeat(temp, Ch)[:, None], attn_mask,
      w_po, b_po[:, None],
      w_fi, b_fi[:, None], w_fdw.reshape(-1, 9), b_fdw[:, None],
      w_fo, b_fo[:, None],
  )

  def resident(a):
    # Full-array block with constant index map: stays VMEM-resident across the
    # batch grid (no re-DMA per step).
    return pl.BlockSpec(a.shape, lambda b, _n=a.ndim: (0,) * _n)

  batch_spec = pl.BlockSpec((1, C, HW), lambda b: (b, 0, 0))
  in_specs = [batch_spec] + [resident(a) for a in args[1:]]

  kernel = functools.partial(transformer_block_kernel, width=W)

  out = pl.pallas_call(
      kernel,
      out_shape=jax.ShapeDtypeStruct((B, C, HW), x.dtype),
      grid_spec=pltpu.PrefetchScalarGridSpec(
          num_scalar_prefetch=0,
          grid=(B,),
          in_specs=in_specs,
          out_specs=batch_spec,
      ),
      # Batch axis stays "parallel": on v7x both TensorCores take one element
      # each; on single-TC v5e/v6e it is a short serial loop (~0.7us overhead
      # total at B=2), kept for a single code path across generations.
      compiler_params=pltpu.CompilerParams(
          dimension_semantics=("parallel",)),
  )(*args)
  return out.reshape(B, C, H, W)


def transformer_block_reference(x, params, num_heads):
  """Pure-JAX reference mirroring the PyTorch forward (full f32 precision)."""
  (w_qkv, b_qkv, w_qdw, b_qdw, temp,
   w_po, b_po, w_fi, b_fi, w_fdw, b_fdw, w_fo, b_fo) = params
  B, C, H, W = x.shape
  HW = H * W
  Ch = C // num_heads

  def conv1x1(y, w, b):
    return (jnp.einsum('oi,bihw->bohw', w, y, precision=_HIGHEST)
            + b[None, :, None, None])

  def dwconv3x3(y, w, b):
    Cn = y.shape[1]
    out = jax.lax.conv_general_dilated(
        y, w[:, None], window_strides=(1, 1), padding=[(1, 1), (1, 1)],
        dimension_numbers=("NCHW", "OIHW", "NCHW"),
        feature_group_count=Cn, precision=_HIGHEST)
    return out + b[None, :, None, None]

  def l2norm(t):
    return t * jax.lax.rsqrt(jnp.sum(t * t, axis=-1, keepdims=True) + 1e-12)

  # Attention
  qkv = dwconv3x3(conv1x1(x, w_qkv, b_qkv), w_qdw, b_qdw)
  q, k, v = jnp.split(qkv, 3, axis=1)
  q = l2norm(q.reshape(B, num_heads, Ch, HW))
  k = l2norm(k.reshape(B, num_heads, Ch, HW))
  v = v.reshape(B, num_heads, Ch, HW)
  attn = jnp.einsum('bhcs,bhds->bhcd', q, k, precision=_HIGHEST)
  attn = attn * temp[None, :, None, None]
  attn = jax.nn.softmax(attn, axis=-1)
  out = jnp.einsum('bhcd,bhds->bhcs', attn, v,
                   precision=_HIGHEST).reshape(B, C, H, W)
  x = x + conv1x1(out, w_po, b_po)

  # FeedForward
  h = dwconv3x3(conv1x1(x, w_fi, b_fi), w_fdw, b_fdw)
  hidden = w_fi.shape[0] // 2
  gated = jax.nn.gelu(h[:, :hidden], approximate=False) * h[:, hidden:]
  x = x + conv1x1(gated, w_fo, b_fo)
  return x


if __name__ == "__main__":
  # TransformerBlock(dim=32, num_heads=4, ffn_expansion_factor=2, bias=True)
  B, C, H, W = 2, 32, 16, 16
  num_heads = 4
  hidden = int(C * 2)          # ffn_expansion_factor = 2

  key = jax.random.PRNGKey(0)
  ks = jax.random.split(key, 14)

  def rnd(k, shape, scale=0.1):
    return scale * jax.random.normal(k, shape, dtype=jnp.float32)

  x = jax.random.normal(ks[0], (B, C, H, W), dtype=jnp.float32)

  params = (
      rnd(ks[1], (3 * C, C)),            # attn.qkv  (1x1 conv) weight
      rnd(ks[2], (3 * C,)),              # attn.qkv  bias
      rnd(ks[3], (3 * C, 3, 3)),         # attn.qkv_dwconv (depthwise 3x3) weight
      rnd(ks[4], (3 * C,)),              # attn.qkv_dwconv bias
      1.0 + rnd(ks[5], (num_heads,)),    # attn.temperature
      rnd(ks[6], (C, C)),                # attn.project_out weight
      rnd(ks[7], (C,)),                  # attn.project_out bias
      rnd(ks[8], (2 * hidden, C)),       # ffn.project_in weight
      rnd(ks[9], (2 * hidden,)),         # ffn.project_in bias
      rnd(ks[10], (2 * hidden, 3, 3)),   # ffn.dwconv weight
      rnd(ks[11], (2 * hidden,)),        # ffn.dwconv bias
      rnd(ks[12], (C, hidden)),          # ffn.project_out weight
      rnd(ks[13], (C,)),                 # ffn.project_out bias
  )

  out = transformer_block_forward(x, params, num_heads)
  out = jax.block_until_ready(out)

  ref = transformer_block_reference(x, params, num_heads)
  assert out.shape == (B, C, H, W)
  # Tolerance budget: the kernel now uses default-precision (bf16-operand,
  # f32-accumulate) MXU matmuls plus EUP approx reciprocals per the perf
  # review, while the reference is full f32 — expected max deviation is a few
  # e-3, well inside 2e-2.
  assert jnp.allclose(out, ref, rtol=2e-2, atol=2e-2), (
      "mismatch vs JAX reference: max abs err = "
      f"{jnp.max(jnp.abs(out - ref))}")
  print("KERNEL_OK")
</pallas_src>

<mosaic_0001>
module attributes {stable_mosaic.version = 11 : i64} {
  func.func @transformer_block_kernel(%arg0: i32, %arg1: memref<1x32x256xf32, #tpu.memory_space<vmem>>, %arg2: memref<9x1x256xf32, #tpu.memory_space<vmem>>, %arg3: memref<96x32xf32, #tpu.memory_space<vmem>>, %arg4: memref<96x1xf32, #tpu.memory_space<vmem>>, %arg5: memref<96x9xf32, #tpu.memory_space<vmem>>, %arg6: memref<96x1xf32, #tpu.memory_space<vmem>>, %arg7: memref<32x1xf32, #tpu.memory_space<vmem>>, %arg8: memref<32x32xf32, #tpu.memory_space<vmem>>, %arg9: memref<32x32xf32, #tpu.memory_space<vmem>>, %arg10: memref<32x1xf32, #tpu.memory_space<vmem>>, %arg11: memref<128x32xf32, #tpu.memory_space<vmem>>, %arg12: memref<128x1xf32, #tpu.memory_space<vmem>>, %arg13: memref<128x9xf32, #tpu.memory_space<vmem>>, %arg14: memref<128x1xf32, #tpu.memory_space<vmem>>, %arg15: memref<32x64xf32, #tpu.memory_space<vmem>>, %arg16: memref<32x1xf32, #tpu.memory_space<vmem>>, %arg17: memref<1x32x256xf32, #tpu.memory_space<vmem>>) attributes {dimension_semantics = [#tpu.dimension_semantics<parallel>], iteration_bounds = array<i64: 2>, scalar_prefetch = 0 : i64, scratch_operands = 0 : i64, tpu.core_type = #tpu.core_type<tc>, window_params = [{transform_indices = @transform_0, window_bounds = array<i64: 1, 32, 256>}, {pipeline_mode = #tpu.pipeline_mode<synchronous>, transform_indices = @transform_1, window_bounds = array<i64: 9, 1, 256>}, {pipeline_mode = #tpu.pipeline_mode<synchronous>, transform_indices = @transform_2, window_bounds = array<i64: 96, 32>}, {pipeline_mode = #tpu.pipeline_mode<synchronous>, transform_indices = @transform_3, window_bounds = array<i64: 96, 1>}, {pipeline_mode = #tpu.pipeline_mode<synchronous>, transform_indices = @transform_4, window_bounds = array<i64: 96, 9>}, {pipeline_mode = #tpu.pipeline_mode<synchronous>, transform_indices = @transform_5, window_bounds = array<i64: 96, 1>}, {pipeline_mode = #tpu.pipeline_mode<synchronous>, transform_indices = @transform_6, window_bounds = array<i64: 32, 1>}, {pipeline_mode = #tpu.pipeline_mode<synchronous>, transform_indices = @transform_7, window_bounds = array<i64: 32, 32>}, {pipeline_mode = #tpu.pipeline_mode<synchronous>, transform_indices = @transform_8, window_bounds = array<i64: 32, 32>}, {pipeline_mode = #tpu.pipeline_mode<synchronous>, transform_indices = @transform_9, window_bounds = array<i64: 32, 1>}, {pipeline_mode = #tpu.pipeline_mode<synchronous>, transform_indices = @transform_10, window_bounds = array<i64: 128, 32>}, {pipeline_mode = #tpu.pipeline_mode<synchronous>, transform_indices = @transform_11, window_bounds = array<i64: 128, 1>}, {pipeline_mode = #tpu.pipeline_mode<synchronous>, transform_indices = @transform_12, window_bounds = array<i64: 128, 9>}, {pipeline_mode = #tpu.pipeline_mode<synchronous>, transform_indices = @transform_13, window_bounds = array<i64: 128, 1>}, {pipeline_mode = #tpu.pipeline_mode<synchronous>, transform_indices = @transform_14, window_bounds = array<i64: 32, 64>}, {pipeline_mode = #tpu.pipeline_mode<synchronous>, transform_indices = @transform_15, window_bounds = array<i64: 32, 1>}, {transform_indices = @transform_16, window_bounds = array<i64: 1, 32, 256>}]} {
    %c0 = arith.constant 0 : index
    %c0_0 = arith.constant 0 : index
    %c0_1 = arith.constant 0 : index
    %0 = vector.load %arg1[%c0, %c0_0, %c0_1] : memref<1x32x256xf32, #tpu.memory_space<vmem>>, vector<1x32x256xf32>
    %1 = vector.shape_cast %0 : vector<1x32x256xf32> to vector<32x256xf32>
    %c0_2 = arith.constant 0 : index
    %c0_3 = arith.constant 0 : index
    %c0_4 = arith.constant 0 : index
    %2 = vector.load %arg2[%c0_2, %c0_3, %c0_4] : memref<9x1x256xf32, #tpu.memory_space<vmem>>, vector<1x1x256xf32>
    %3 = vector.shape_cast %2 : vector<1x1x256xf32> to vector<1x256xf32>
    %c1 = arith.constant 1 : index
    %c0_5 = arith.constant 0 : index
    %c0_6 = arith.constant 0 : index
    %4 = vector.load %arg2[%c1, %c0_5, %c0_6] : memref<9x1x256xf32, #tpu.memory_space<vmem>>, vector<1x1x256xf32>
    %5 = vector.shape_cast %4 : vector<1x1x256xf32> to vector<1x256xf32>
    %c2 = arith.constant 2 : index
    %c0_7 = arith.constant 0 : index
    %c0_8 = arith.constant 0 : index
    %6 = vector.load %arg2[%c2, %c0_7, %c0_8] : memref<9x1x256xf32, #tpu.memory_space<vmem>>, vector<1x1x256xf32>
    %7 = vector.shape_cast %6 : vector<1x1x256xf32> to vector<1x256xf32>
    %c3 = arith.constant 3 : index
    %c0_9 = arith.constant 0 : index
    %c0_10 = arith.constant 0 : index
    %8 = vector.load %arg2[%c3, %c0_9, %c0_10] : memref<9x1x256xf32, #tpu.memory_space<vmem>>, vector<1x1x256xf32>
    %9 = vector.shape_cast %8 : vector<1x1x256xf32> to vector<1x256xf32>
    %c5 = arith.constant 5 : index
    %c0_11 = arith.constant 0 : index
    %c0_12 = arith.constant 0 : index
    %10 = vector.load %arg2[%c5, %c0_11, %c0_12] : memref<9x1x256xf32, #tpu.memory_space<vmem>>, vector<1x1x256xf32>
    %11 = vector.shape_cast %10 : vector<1x1x256xf32> to vector<1x256xf32>
    %c6 = arith.constant 6 : index
    %c0_13 = arith.constant 0 : index
    %c0_14 = arith.constant 0 : index
    %12 = vector.load %arg2[%c6, %c0_13, %c0_14] : memref<9x1x256xf32, #tpu.memory_space<vmem>>, vector<1x1x256xf32>
    %13 = vector.shape_cast %12 : vector<1x1x256xf32> to vector<1x256xf32>
    %c7 = arith.constant 7 : index
    %c0_15 = arith.constant 0 : index
    %c0_16 = arith.constant 0 : index
    %14 = vector.load %arg2[%c7, %c0_15, %c0_16] : memref<9x1x256xf32, #tpu.memory_space<vmem>>, vector<1x1x256xf32>
    %15 = vector.shape_cast %14 : vector<1x1x256xf32> to vector<1x256xf32>
    %c8 = arith.constant 8 : index
    %c0_17 = arith.constant 0 : index
    %c0_18 = arith.constant 0 : index
    %16 = vector.load %arg2[%c8, %c0_17, %c0_18] : memref<9x1x256xf32, #tpu.memory_space<vmem>>, vector<1x1x256xf32>
    %17 = vector.shape_cast %16 : vector<1x1x256xf32> to vector<1x256xf32>
    %c0_19 = arith.constant 0 : index
    %c0_20 = arith.constant 0 : index
    %18 = vector.load %arg3[%c0_19, %c0_20] : memref<96x32xf32, #tpu.memory_space<vmem>>, vector<32x32xf32>
    %c0_21 = arith.constant 0 : index
    %c0_22 = arith.constant 0 : index
    %19 = vector.load %arg4[%c0_21, %c0_22] : memref<96x1xf32, #tpu.memory_space<vmem>>, vector<32x1xf32>
    %cst = arith.constant dense<0.000000e+00> : vector<32x256xf32>
    %20 = tpu.matmul %18, %1, %cst {dimension_numbers = #tpu.dot_dimension_numbers<[1], [0], [0], [1], [0, 0, 1, 1], [], []>} : vector<32x32xf32>, vector<32x256xf32>, vector<32x256xf32> -> vector<32x256xf32>
    %21 = vector.broadcast %19 : vector<32x1xf32> to vector<32x256xf32>
    %22 = arith.addf %20, %21 : vector<32x256xf32>
    %c0_23 = arith.constant 0 : index
    %c0_24 = arith.constant 0 : index
    %23 = vector.load %arg5[%c0_23, %c0_24] : memref<96x9xf32, #tpu.memory_space<vmem>>, vector<32x9xf32>
    %c0_25 = arith.constant 0 : index
    %c0_26 = arith.constant 0 : index
    %24 = vector.load %arg6[%c0_25, %c0_26] : memref<96x1xf32, #tpu.memory_space<vmem>>, vector<32x1xf32>
    %25 = vector.extract_strided_slice %23 {offsets = [0, 4], sizes = [32, 1], strides = [1, 1]} : vector<32x9xf32> to vector<32x1xf32>
    %26 = vector.broadcast %25 : vector<32x1xf32> to vector<32x256xf32>
    %27 = arith.mulf %26, %22 : vector<32x256xf32>
    %c17_i32 = arith.constant 17 : i32
    %28 = tpu.dynamic_rotate %22 by %c17_i32 dim 1 : vector<32x256xf32>, i32 -> vector<32x256xf32>
    %29 = vector.extract_strided_slice %23 {offsets = [0, 0], sizes = [32, 1], strides = [1, 1]} : vector<32x9xf32> to vector<32x1xf32>
    %30 = vector.broadcast %29 : vector<32x1xf32> to vector<32x256xf32>
    %31 = arith.mulf %30, %28 : vector<32x256xf32>
    %32 = vector.broadcast %3 : vector<1x256xf32> to vector<32x256xf32>
    %33 = arith.mulf %31, %32 : vector<32x256xf32>
    %34 = arith.addf %27, %33 : vector<32x256xf32>
    %c16_i32 = arith.constant 16 : i32
    %35 = tpu.dynamic_rotate %22 by %c16_i32 dim 1 : vector<32x256xf32>, i32 -> vector<32x256xf32>
    %36 = vector.extract_strided_slice %23 {offsets = [0, 1], sizes = [32, 1], strides = [1, 1]} : vector<32x9xf32> to vector<32x1xf32>
    %37 = vector.broadcast %36 : vector<32x1xf32> to vector<32x256xf32>
    %38 = arith.mulf %37, %35 : vector<32x256xf32>
    %39 = vector.broadcast %5 : vector<1x256xf32> to vector<32x256xf32>
    %40 = arith.mulf %38, %39 : vector<32x256xf32>
    %41 = arith.addf %34, %40 : vector<32x256xf32>
    %c15_i32 = arith.constant 15 : i32
    %42 = tpu.dynamic_rotate %22 by %c15_i32 dim 1 : vector<32x256xf32>, i32 -> vector<32x256xf32>
    %43 = vector.extract_strided_slice %23 {offsets = [0, 2], sizes = [32, 1], strides = [1, 1]} : vector<32x9xf32> to vector<32x1xf32>
    %44 = vector.broadcast %43 : vector<32x1xf32> to vector<32x256xf32>
    %45 = arith.mulf %44, %42 : vector<32x256xf32>
    %46 = vector.broadcast %7 : vector<1x256xf32> to vector<32x256xf32>
    %47 = arith.mulf %45, %46 : vector<32x256xf32>
    %48 = arith.addf %41, %47 : vector<32x256xf32>
    %c1_i32 = arith.constant 1 : i32
    %49 = tpu.dynamic_rotate %22 by %c1_i32 dim 1 : vector<32x256xf32>, i32 -> vector<32x256xf32>
    %50 = vector.extract_strided_slice %23 {offsets = [0, 3], sizes = [32, 1], strides = [1, 1]} : vector<32x9xf32> to vector<32x1xf32>
    %51 = vector.broadcast %50 : vector<32x1xf32> to vector<32x256xf32>
    %52 = arith.mulf %51, %49 : vector<32x256xf32>
    %53 = vector.broadcast %9 : vector<1x256xf32> to vector<32x256xf32>
    %54 = arith.mulf %52, %53 : vector<32x256xf32>
    %55 = arith.addf %48, %54 : vector<32x256xf32>
    %c255_i32 = arith.constant 255 : i32
    %56 = tpu.dynamic_rotate %22 by %c255_i32 dim 1 : vector<32x256xf32>, i32 -> vector<32x256xf32>
    %57 = vector.extract_strided_slice %23 {offsets = [0, 5], sizes = [32, 1], strides = [1, 1]} : vector<32x9xf32> to vector<32x1xf32>
    %58 = vector.broadcast %57 : vector<32x1xf32> to vector<32x256xf32>
    %59 = arith.mulf %58, %56 : vector<32x256xf32>
    %60 = vector.broadcast %11 : vector<1x256xf32> to vector<32x256xf32>
    %61 = arith.mulf %59, %60 : vector<32x256xf32>
    %62 = arith.addf %55, %61 : vector<32x256xf32>
    %c241_i32 = arith.constant 241 : i32
    %63 = tpu.dynamic_rotate %22 by %c241_i32 dim 1 : vector<32x256xf32>, i32 -> vector<32x256xf32>
    %64 = vector.extract_strided_slice %23 {offsets = [0, 6], sizes = [32, 1], strides = [1, 1]} : vector<32x9xf32> to vector<32x1xf32>
    %65 = vector.broadcast %64 : vector<32x1xf32> to vector<32x256xf32>
    %66 = arith.mulf %65, %63 : vector<32x256xf32>
    %67 = vector.broadcast %13 : vector<1x256xf32> to vector<32x256xf32>
    %68 = arith.mulf %66, %67 : vector<32x256xf32>
    %69 = arith.addf %62, %68 : vector<32x256xf32>
    %c240_i32 = arith.constant 240 : i32
    %70 = tpu.dynamic_rotate %22 by %c240_i32 dim 1 : vector<32x256xf32>, i32 -> vector<32x256xf32>
    %71 = vector.extract_strided_slice %23 {offsets = [0, 7], sizes = [32, 1], strides = [1, 1]} : vector<32x9xf32> to vector<32x1xf32>
    %72 = vector.broadcast %71 : vector<32x1xf32> to vector<32x256xf32>
    %73 = arith.mulf %72, %70 : vector<32x256xf32>
    %74 = vector.broadcast %15 : vector<1x256xf32> to vector<32x256xf32>
    %75 = arith.mulf %73, %74 : vector<32x256xf32>
    %76 = arith.addf %69, %75 : vector<32x256xf32>
    %c239_i32 = arith.constant 239 : i32
    %77 = tpu.dynamic_rotate %22 by %c239_i32 dim 1 : vector<32x256xf32>, i32 -> vector<32x256xf32>
    %78 = vector.extract_strided_slice %23 {offsets = [0, 8], sizes = [32, 1], strides = [1, 1]} : vector<32x9xf32> to vector<32x1xf32>
    %79 = vector.broadcast %78 : vector<32x1xf32> to vector<32x256xf32>
    %80 = arith.mulf %79, %77 : vector<32x256xf32>
    %81 = vector.broadcast %17 : vector<1x256xf32> to vector<32x256xf32>
    %82 = arith.mulf %80, %81 : vector<32x256xf32>
    %83 = arith.addf %76, %82 : vector<32x256xf32>
    %84 = vector.broadcast %24 : vector<32x1xf32> to vector<32x256xf32>
    %85 = arith.addf %83, %84 : vector<32x256xf32>
    %86 = arith.mulf %85, %85 : vector<32x256xf32>
    %cst_27 = arith.constant dense<0.000000e+00> : vector<32xf32>
    %87 = vector.multi_reduction <add>, %86, %cst_27 [1] : vector<32x256xf32> to vector<32xf32>
    %88 = vector.shape_cast %87 : vector<32xf32> to vector<32x1xf32>
    %cst_28 = arith.constant 9.99999996E-13 : f32
    %89 = vector.broadcast %cst_28 : f32 to vector<32x1xf32>
    %90 = arith.addf %88, %89 : vector<32x1xf32>
    %91 = math.rsqrt %90 : vector<32x1xf32>
    %92 = vector.broadcast %91 : vector<32x1xf32> to vector<32x256xf32>
    %93 = arith.mulf %85, %92 : vector<32x256xf32>
    %c32 = arith.constant 32 : index
    %c0_29 = arith.constant 0 : index
    %94 = vector.load %arg3[%c32, %c0_29] : memref<96x32xf32, #tpu.memory_space<vmem>>, vector<32x32xf32>
    %c32_30 = arith.constant 32 : index
    %c0_31 = arith.constant 0 : index
    %95 = vector.load %arg4[%c32_30, %c0_31] : memref<96x1xf32, #tpu.memory_space<vmem>>, vector<32x1xf32>
    %cst_32 = arith.constant dense<0.000000e+00> : vector<32x256xf32>
    %96 = tpu.matmul %94, %1, %cst_32 {dimension_numbers = #tpu.dot_dimension_numbers<[1], [0], [0], [1], [0, 0, 1, 1], [], []>} : vector<32x32xf32>, vector<32x256xf32>, vector<32x256xf32> -> vector<32x256xf32>
    %97 = vector.broadcast %95 : vector<32x1xf32> to vector<32x256xf32>
    %98 = arith.addf %96, %97 : vector<32x256xf32>
    %c32_33 = arith.constant 32 : index
    %c0_34 = arith.constant 0 : index
    %99 = vector.load %arg5[%c32_33, %c0_34] : memref<96x9xf32, #tpu.memory_space<vmem>>, vector<32x9xf32>
    %c32_35 = arith.constant 32 : index
    %c0_36 = arith.constant 0 : index
    %100 = vector.load %arg6[%c32_35, %c0_36] : memref<96x1xf32, #tpu.memory_space<vmem>>, vector<32x1xf32>
    %101 = vector.extract_strided_slice %99 {offsets = [0, 4], sizes = [32, 1], strides = [1, 1]} : vector<32x9xf32> to vector<32x1xf32>
    %102 = vector.broadcast %101 : vector<32x1xf32> to vector<32x256xf32>
    %103 = arith.mulf %102, %98 : vector<32x256xf32>
    %c17_i32_37 = arith.constant 17 : i32
    %104 = tpu.dynamic_rotate %98 by %c17_i32_37 dim 1 : vector<32x256xf32>, i32 -> vector<32x256xf32>
    %105 = vector.extract_strided_slice %99 {offsets = [0, 0], sizes = [32, 1], strides = [1, 1]} : vector<32x9xf32> to vector<32x1xf32>
    %106 = vector.broadcast %105 : vector<32x1xf32> to vector<32x256xf32>
    %107 = arith.mulf %106, %104 : vector<32x256xf32>
    %108 = vector.broadcast %3 : vector<1x256xf32> to vector<32x256xf32>
    %109 = arith.mulf %107, %108 : vector<32x256xf32>
    %110 = arith.addf %103, %109 : vector<32x256xf32>
    %c16_i32_38 = arith.constant 16 : i32
    %111 = tpu.dynamic_rotate %98 by %c16_i32_38 dim 1 : vector<32x256xf32>, i32 -> vector<32x256xf32>
    %112 = vector.extract_strided_slice %99 {offsets = [0, 1], sizes = [32, 1], strides = [1, 1]} : vector<32x9xf32> to vector<32x1xf32>
    %113 = vector.broadcast %112 : vector<32x1xf32> to vector<32x256xf32>
    %114 = arith.mulf %113, %111 : vector<32x256xf32>
    %115 = vector.broadcast %5 : vector<1x256xf32> to vector<32x256xf32>
    %116 = arith.mulf %114, %115 : vector<32x256xf32>
    %117 = arith.addf %110, %116 : vector<32x256xf32>
    %c15_i32_39 = arith.constant 15 : i32
    %118 = tpu.dynamic_rotate %98 by %c15_i32_39 dim 1 : vector<32x256xf32>, i32 -> vector<32x256xf32>
    %119 = vector.extract_strided_slice %99 {offsets = [0, 2], sizes = [32, 1], strides = [1, 1]} : vector<32x9xf32> to vector<32x1xf32>
    %120 = vector.broadcast %119 : vector<32x1xf32> to vector<32x256xf32>
    %121 = arith.mulf %120, %118 : vector<32x256xf32>
    %122 = vector.broadcast %7 : vector<1x256xf32> to vector<32x256xf32>
    %123 = arith.mulf %121, %122 : vector<32x256xf32>
    %124 = arith.addf %117, %123 : vector<32x256xf32>
    %c1_i32_40 = arith.constant 1 : i32
    %125 = tpu.dynamic_rotate %98 by %c1_i32_40 dim 1 : vector<32x256xf32>, i32 -> vector<32x256xf32>
    %126 = vector.extract_strided_slice %99 {offsets = [0, 3], sizes = [32, 1], strides = [1, 1]} : vector<32x9xf32> to vector<32x1xf32>
    %127 = vector.broadcast %126 : vector<32x1xf32> to vector<32x256xf32>
    %128 = arith.mulf %127, %125 : vector<32x256xf32>
    %129 = vector.broadcast %9 : vector<1x256xf32> to vector<32x256xf32>
    %130 = arith.mulf %128, %129 : vector<32x256xf32>
    %131 = arith.addf %124, %130 : vector<32x256xf32>
    %c255_i32_41 = arith.constant 255 : i32
    %132 = tpu.dynamic_rotate %98 by %c255_i32_41 dim 1 : vector<32x256xf32>, i32 -> vector<32x256xf32>
    %133 = vector.extract_strided_slice %99 {offsets = [0, 5], sizes = [32, 1], strides = [1, 1]} : vector<32x9xf32> to vector<32x1xf32>
    %134 = vector.broadcast %133 : vector<32x1xf32> to vector<32x256xf32>
    %135 = arith.mulf %134, %132 : vector<32x256xf32>
    %136 = vector.broadcast %11 : vector<1x256xf32> to vector<32x256xf32>
    %137 = arith.mulf %135, %136 : vector<32x256xf32>
    %138 = arith.addf %131, %137 : vector<32x256xf32>
    %c241_i32_42 = arith.constant 241 : i32
    %139 = tpu.dynamic_rotate %98 by %c241_i32_42 dim 1 : vector<32x256xf32>, i32 -> vector<32x256xf32>
    %140 = vector.extract_strided_slice %99 {offsets = [0, 6], sizes = [32, 1], strides = [1, 1]} : vector<32x9xf32> to vector<32x1xf32>
    %141 = vector.broadcast %140 : vector<32x1xf32> to vector<32x256xf32>
    %142 = arith.mulf %141, %139 : vector<32x256xf32>
    %143 = vector.broadcast %13 : vector<1x256xf32> to vector<32x256xf32>
    %144 = arith.mulf %142, %143 : vector<32x256xf32>
    %145 = arith.addf %138, %144 : vector<32x256xf32>
    %c240_i32_43 = arith.constant 240 : i32
    %146 = tpu.dynamic_rotate %98 by %c240_i32_43 dim 1 : vector<32x256xf32>, i32 -> vector<32x256xf32>
    %147 = vector.extract_strided_slice %99 {offsets = [0, 7], sizes = [32, 1], strides = [1, 1]} : vector<32x9xf32> to vector<32x1xf32>
    %148 = vector.broadcast %147 : vector<32x1xf32> to vector<32x256xf32>
    %149 = arith.mulf %148, %146 : vector<32x256xf32>
    %150 = vector.broadcast %15 : vector<1x256xf32> to vector<32x256xf32>
    %151 = arith.mulf %149, %150 : vector<32x256xf32>
    %152 = arith.addf %145, %151 : vector<32x256xf32>
    %c239_i32_44 = arith.constant 239 : i32
    %153 = tpu.dynamic_rotate %98 by %c239_i32_44 dim 1 : vector<32x256xf32>, i32 -> vector<32x256xf32>
    %154 = vector.extract_strided_slice %99 {offsets = [0, 8], sizes = [32, 1], strides = [1, 1]} : vector<32x9xf32> to vector<32x1xf32>
    %155 = vector.broadcast %154 : vector<32x1xf32> to vector<32x256xf32>
    %156 = arith.mulf %155, %153 : vector<32x256xf32>
    %157 = vector.broadcast %17 : vector<1x256xf32> to vector<32x256xf32>
    %158 = arith.mulf %156, %157 : vector<32x256xf32>
    %159 = arith.addf %152, %158 : vector<32x256xf32>
    %160 = vector.broadcast %100 : vector<32x1xf32> to vector<32x256xf32>
    %161 = arith.addf %159, %160 : vector<32x256xf32>
    %162 = arith.mulf %161, %161 : vector<32x256xf32>
    %cst_45 = arith.constant dense<0.000000e+00> : vector<32xf32>
    %163 = vector.multi_reduction <add>, %162, %cst_45 [1] : vector<32x256xf32> to vector<32xf32>
    %164 = vector.shape_cast %163 : vector<32xf32> to vector<32x1xf32>
    %cst_46 = arith.constant 9.99999996E-13 : f32
    %165 = vector.broadcast %cst_46 : f32 to vector<32x1xf32>
    %166 = arith.addf %164, %165 : vector<32x1xf32>
    %167 = math.rsqrt %166 : vector<32x1xf32>
    %168 = vector.broadcast %167 : vector<32x1xf32> to vector<32x256xf32>
    %169 = arith.mulf %161, %168 : vector<32x256xf32>
    %c64 = arith.constant 64 : index
    %c0_47 = arith.constant 0 : index
    %170 = vector.load %arg3[%c64, %c0_47] : memref<96x32xf32, #tpu.memory_space<vmem>>, vector<32x32xf32>
    %c64_48 = arith.constant 64 : index
    %c0_49 = arith.constant 0 : index
    %171 = vector.load %arg4[%c64_48, %c0_49] : memref<96x1xf32, #tpu.memory_space<vmem>>, vector<32x1xf32>
    %cst_50 = arith.constant dense<0.000000e+00> : vector<32x256xf32>
    %172 = tpu.matmul %170, %1, %cst_50 {dimension_numbers = #tpu.dot_dimension_numbers<[1], [0], [0], [1], [0, 0, 1, 1], [], []>} : vector<32x32xf32>, vector<32x256xf32>, vector<32x256xf32> -> vector<32x256xf32>
    %173 = vector.broadcast %171 : vector<32x1xf32> to vector<32x256xf32>
    %174 = arith.addf %172, %173 : vector<32x256xf32>
    %c64_51 = arith.constant 64 : index
    %c0_52 = arith.constant 0 : index
    %175 = vector.load %arg5[%c64_51, %c0_52] : memref<96x9xf32, #tpu.memory_space<vmem>>, vector<32x9xf32>
    %c64_53 = arith.constant 64 : index
    %c0_54 = arith.constant 0 : index
    %176 = vector.load %arg6[%c64_53, %c0_54] : memref<96x1xf32, #tpu.memory_space<vmem>>, vector<32x1xf32>
    %177 = vector.extract_strided_slice %175 {offsets = [0, 4], sizes = [32, 1], strides = [1, 1]} : vector<32x9xf32> to vector<32x1xf32>
    %178 = vector.broadcast %177 : vector<32x1xf32> to vector<32x256xf32>
    %179 = arith.mulf %178, %174 : vector<32x256xf32>
    %c17_i32_55 = arith.constant 17 : i32
    %180 = tpu.dynamic_rotate %174 by %c17_i32_55 dim 1 : vector<32x256xf32>, i32 -> vector<32x256xf32>
    %181 = vector.extract_strided_slice %175 {offsets = [0, 0], sizes = [32, 1], strides = [1, 1]} : vector<32x9xf32> to vector<32x1xf32>
    %182 = vector.broadcast %181 : vector<32x1xf32> to vector<32x256xf32>
    %183 = arith.mulf %182, %180 : vector<32x256xf32>
    %184 = vector.broadcast %3 : vector<1x256xf32> to vector<32x256xf32>
    %185 = arith.mulf %183, %184 : vector<32x256xf32>
    %186 = arith.addf %179, %185 : vector<32x256xf32>
    %c16_i32_56 = arith.constant 16 : i32
    %187 = tpu.dynamic_rotate %174 by %c16_i32_56 dim 1 : vector<32x256xf32>, i32 -> vector<32x256xf32>
    %188 = vector.extract_strided_slice %175 {offsets = [0, 1], sizes = [32, 1], strides = [1, 1]} : vector<32x9xf32> to vector<32x1xf32>
    %189 = vector.broadcast %188 : vector<32x1xf32> to vector<32x256xf32>
    %190 = arith.mulf %189, %187 : vector<32x256xf32>
    %191 = vector.broadcast %5 : vector<1x256xf32> to vector<32x256xf32>
    %192 = arith.mulf %190, %191 : vector<32x256xf32>
    %193 = arith.addf %186, %192 : vector<32x256xf32>
    %c15_i32_57 = arith.constant 15 : i32
    %194 = tpu.dynamic_rotate %174 by %c15_i32_57 dim 1 : vector<32x256xf32>, i32 -> vector<32x256xf32>
    %195 = vector.extract_strided_slice %175 {offsets = [0, 2], sizes = [32, 1], strides = [1, 1]} : vector<32x9xf32> to vector<32x1xf32>
    %196 = vector.broadcast %195 : vector<32x1xf32> to vector<32x256xf32>
    %197 = arith.mulf %196, %194 : vector<32x256xf32>
    %198 = vector.broadcast %7 : vector<1x256xf32> to vector<32x256xf32>
    %199 = arith.mulf %197, %198 : vector<32x256xf32>
    %200 = arith.addf %193, %199 : vector<32x256xf32>
    %c1_i32_58 = arith.constant 1 : i32
    %201 = tpu.dynamic_rotate %174 by %c1_i32_58 dim 1 : vector<32x256xf32>, i32 -> vector<32x256xf32>
    %202 = vector.extract_strided_slice %175 {offsets = [0, 3], sizes = [32, 1], strides = [1, 1]} : vector<32x9xf32> to vector<32x1xf32>
    %203 = vector.broadcast %202 : vector<32x1xf32> to vector<32x256xf32>
    %204 = arith.mulf %203, %201 : vector<32x256xf32>
    %205 = vector.broadcast %9 : vector<1x256xf32> to vector<32x256xf32>
    %206 = arith.mulf %204, %205 : vector<32x256xf32>
    %207 = arith.addf %200, %206 : vector<32x256xf32>
    %c255_i32_59 = arith.constant 255 : i32
    %208 = tpu.dynamic_rotate %174 by %c255_i32_59 dim 1 : vector<32x256xf32>, i32 -> vector<32x256xf32>
    %209 = vector.extract_strided_slice %175 {offsets = [0, 5], sizes = [32, 1], strides = [1, 1]} : vector<32x9xf32> to vector<32x1xf32>
    %210 = vector.broadcast %209 : vector<32x1xf32> to vector<32x256xf32>
    %211 = arith.mulf %210, %208 : vector<32x256xf32>
    %212 = vector.broadcast %11 : vector<1x256xf32> to vector<32x256xf32>
    %213 = arith.mulf %211, %212 : vector<32x256xf32>
    %214 = arith.addf %207, %213 : vector<32x256xf32>
    %c241_i32_60 = arith.constant 241 : i32
    %215 = tpu.dynamic_rotate %174 by %c241_i32_60 dim 1 : vector<32x256xf32>, i32 -> vector<32x256xf32>
    %216 = vector.extract_strided_slice %175 {offsets = [0, 6], sizes = [32, 1], strides = [1, 1]} : vector<32x9xf32> to vector<32x1xf32>
    %217 = vector.broadcast %216 : vector<32x1xf32> to vector<32x256xf32>
    %218 = arith.mulf %217, %215 : vector<32x256xf32>
    %219 = vector.broadcast %13 : vector<1x256xf32> to vector<32x256xf32>
    %220 = arith.mulf %218, %219 : vector<32x256xf32>
    %221 = arith.addf %214, %220 : vector<32x256xf32>
    %c240_i32_61 = arith.constant 240 : i32
    %222 = tpu.dynamic_rotate %174 by %c240_i32_61 dim 1 : vector<32x256xf32>, i32 -> vector<32x256xf32>
    %223 = vector.extract_strided_slice %175 {offsets = [0, 7], sizes = [32, 1], strides = [1, 1]} : vector<32x9xf32> to vector<32x1xf32>
    %224 = vector.broadcast %223 : vector<32x1xf32> to vector<32x256xf32>
    %225 = arith.mulf %224, %222 : vector<32x256xf32>
    %226 = vector.broadcast %15 : vector<1x256xf32> to vector<32x256xf32>
    %227 = arith.mulf %225, %226 : vector<32x256xf32>
    %228 = arith.addf %221, %227 : vector<32x256xf32>
    %c239_i32_62 = arith.constant 239 : i32
    %229 = tpu.dynamic_rotate %174 by %c239_i32_62 dim 1 : vector<32x256xf32>, i32 -> vector<32x256xf32>
    %230 = vector.extract_strided_slice %175 {offsets = [0, 8], sizes = [32, 1], strides = [1, 1]} : vector<32x9xf32> to vector<32x1xf32>
    %231 = vector.broadcast %230 : vector<32x1xf32> to vector<32x256xf32>
    %232 = arith.mulf %231, %229 : vector<32x256xf32>
    %233 = vector.broadcast %17 : vector<1x256xf32> to vector<32x256xf32>
    %234 = arith.mulf %232, %233 : vector<32x256xf32>
    %235 = arith.addf %228, %234 : vector<32x256xf32>
    %236 = vector.broadcast %176 : vector<32x1xf32> to vector<32x256xf32>
    %237 = arith.addf %235, %236 : vector<32x256xf32>
    %cst_63 = arith.constant dense<0.000000e+00> : vector<32x32xf32>
    %238 = tpu.matmul %93, %169, %cst_63 {dimension_numbers = #tpu.dot_dimension_numbers<[1], [1], [0], [0], [0, 0, 1, 0], [], []>} : vector<32x256xf32>, vector<32x256xf32>, vector<32x32xf32> -> vector<32x32xf32>
    %c0_64 = arith.constant 0 : index
    %c0_65 = arith.constant 0 : index
    %239 = vector.load %arg7[%c0_64, %c0_65] : memref<32x1xf32, #tpu.memory_space<vmem>>, vector<32x1xf32>
    %240 = vector.broadcast %239 : vector<32x1xf32> to vector<32x32xf32>
    %241 = arith.mulf %238, %240 : vector<32x32xf32>
    %c0_66 = arith.constant 0 : index
    %c0_67 = arith.constant 0 : index
    %242 = vector.load %arg8[%c0_66, %c0_67] : memref<32x32xf32, #tpu.memory_space<vmem>>, vector<32x32xf32>
    %243 = arith.addf %241, %242 : vector<32x32xf32>
    %cst_68 = arith.constant dense<0xFF800000> : vector<32xf32>
    %244 = vector.multi_reduction <maximumf>, %243, %cst_68 [1] : vector<32x32xf32> to vector<32xf32>
    %245 = vector.shape_cast %244 : vector<32xf32> to vector<32x1xf32>
    %246 = vector.broadcast %245 : vector<32x1xf32> to vector<32x32xf32>
    %247 = arith.subf %243, %246 : vector<32x32xf32>
    %248 = math.exp %247 : vector<32x32xf32>
    %cst_69 = arith.constant dense<0.000000e+00> : vector<32xf32>
    %249 = vector.multi_reduction <add>, %248, %cst_69 [1] : vector<32x32xf32> to vector<32xf32>
    %250 = vector.shape_cast %249 : vector<32xf32> to vector<32x1xf32>
    %251 = tpu.reciprocal %250 {approx = true} : vector<32x1xf32> -> vector<32x1xf32>
    %252 = vector.broadcast %251 : vector<32x1xf32> to vector<32x32xf32>
    %253 = arith.mulf %248, %252 : vector<32x32xf32>
    %cst_70 = arith.constant dense<0.000000e+00> : vector<32x256xf32>
    %254 = tpu.matmul %253, %237, %cst_70 {dimension_numbers = #tpu.dot_dimension_numbers<[1], [0], [0], [1], [0, 0, 1, 1], [], []>} : vector<32x32xf32>, vector<32x256xf32>, vector<32x256xf32> -> vector<32x256xf32>
    %c0_71 = arith.constant 0 : index
    %c0_72 = arith.constant 0 : index
    %255 = vector.load %arg9[%c0_71, %c0_72] : memref<32x32xf32, #tpu.memory_space<vmem>>, vector<32x32xf32>
    %c0_73 = arith.constant 0 : index
    %c0_74 = arith.constant 0 : index
    %256 = vector.load %arg10[%c0_73, %c0_74] : memref<32x1xf32, #tpu.memory_space<vmem>>, vector<32x1xf32>
    %cst_75 = arith.constant dense<0.000000e+00> : vector<32x256xf32>
    %257 = tpu.matmul %255, %254, %cst_75 {dimension_numbers = #tpu.dot_dimension_numbers<[1], [0], [0], [1], [0, 0, 1, 1], [], []>} : vector<32x32xf32>, vector<32x256xf32>, vector<32x256xf32> -> vector<32x256xf32>
    %258 = vector.broadcast %256 : vector<32x1xf32> to vector<32x256xf32>
    %259 = arith.addf %257, %258 : vector<32x256xf32>
    %260 = arith.addf %1, %259 : vector<32x256xf32>
    %c0_76 = arith.constant 0 : index
    %c0_77 = arith.constant 0 : index
    %261 = vector.load %arg11[%c0_76, %c0_77] : memref<128x32xf32, #tpu.memory_space<vmem>>, vector<64x32xf32>
    %c0_78 = arith.constant 0 : index
    %c0_79 = arith.constant 0 : index
    %262 = vector.load %arg12[%c0_78, %c0_79] : memref<128x1xf32, #tpu.memory_space<vmem>>, vector<64x1xf32>
    %cst_80 = arith.constant dense<0.000000e+00> : vector<64x256xf32>
    %263 = tpu.matmul %261, %260, %cst_80 {dimension_numbers = #tpu.dot_dimension_numbers<[1], [0], [0], [1], [0, 0, 1, 1], [], []>} : vector<64x32xf32>, vector<32x256xf32>, vector<64x256xf32> -> vector<64x256xf32>
    %264 = vector.broadcast %262 : vector<64x1xf32> to vector<64x256xf32>
    %265 = arith.addf %263, %264 : vector<64x256xf32>
    %c0_81 = arith.constant 0 : index
    %c0_82 = arith.constant 0 : index
    %266 = vector.load %arg13[%c0_81, %c0_82] : memref<128x9xf32, #tpu.memory_space<vmem>>, vector<64x9xf32>
    %c0_83 = arith.constant 0 : index
    %c0_84 = arith.constant 0 : index
    %267 = vector.load %arg14[%c0_83, %c0_84] : memref<128x1xf32, #tpu.memory_space<vmem>>, vector<64x1xf32>
    %268 = vector.extract_strided_slice %266 {offsets = [0, 4], sizes = [64, 1], strides = [1, 1]} : vector<64x9xf32> to vector<64x1xf32>
    %269 = vector.broadcast %268 : vector<64x1xf32> to vector<64x256xf32>
    %270 = arith.mulf %269, %265 : vector<64x256xf32>
    %c17_i32_85 = arith.constant 17 : i32
    %271 = tpu.dynamic_rotate %265 by %c17_i32_85 dim 1 : vector<64x256xf32>, i32 -> vector<64x256xf32>
    %272 = vector.extract_strided_slice %266 {offsets = [0, 0], sizes = [64, 1], strides = [1, 1]} : vector<64x9xf32> to vector<64x1xf32>
    %273 = vector.broadcast %272 : vector<64x1xf32> to vector<64x256xf32>
    %274 = arith.mulf %273, %271 : vector<64x256xf32>
    %275 = vector.broadcast %3 : vector<1x256xf32> to vector<64x256xf32>
    %276 = arith.mulf %274, %275 : vector<64x256xf32>
    %277 = arith.addf %270, %276 : vector<64x256xf32>
    %c16_i32_86 = arith.constant 16 : i32
    %278 = tpu.dynamic_rotate %265 by %c16_i32_86 dim 1 : vector<64x256xf32>, i32 -> vector<64x256xf32>
    %279 = vector.extract_strided_slice %266 {offsets = [0, 1], sizes = [64, 1], strides = [1, 1]} : vector<64x9xf32> to vector<64x1xf32>
    %280 = vector.broadcast %279 : vector<64x1xf32> to vector<64x256xf32>
    %281 = arith.mulf %280, %278 : vector<64x256xf32>
    %282 = vector.broadcast %5 : vector<1x256xf32> to vector<64x256xf32>
    %283 = arith.mulf %281, %282 : vector<64x256xf32>
    %284 = arith.addf %277, %283 : vector<64x256xf32>
    %c15_i32_87 = arith.constant 15 : i32
    %285 = tpu.dynamic_rotate %265 by %c15_i32_87 dim 1 : vector<64x256xf32>, i32 -> vector<64x256xf32>
    %286 = vector.extract_strided_slice %266 {offsets = [0, 2], sizes = [64, 1], strides = [1, 1]} : vector<64x9xf32> to vector<64x1xf32>
    %287 = vector.broadcast %286 : vector<64x1xf32> to vector<64x256xf32>
    %288 = arith.mulf %287, %285 : vector<64x256xf32>
    %289 = vector.broadcast %7 : vector<1x256xf32> to vector<64x256xf32>
    %290 = arith.mulf %288, %289 : vector<64x256xf32>
    %291 = arith.addf %284, %290 : vector<64x256xf32>
    %c1_i32_88 = arith.constant 1 : i32
    %292 = tpu.dynamic_rotate %265 by %c1_i32_88 dim 1 : vector<64x256xf32>, i32 -> vector<64x256xf32>
    %293 = vector.extract_strided_slice %266 {offsets = [0, 3], sizes = [64, 1], strides = [1, 1]} : vector<64x9xf32> to vector<64x1xf32>
    %294 = vector.broadcast %293 : vector<64x1xf32> to vector<64x256xf32>
    %295 = arith.mulf %294, %292 : vector<64x256xf32>
    %296 = vector.broadcast %9 : vector<1x256xf32> to vector<64x256xf32>
    %297 = arith.mulf %295, %296 : vector<64x256xf32>
    %298 = arith.addf %291, %297 : vector<64x256xf32>
    %c255_i32_89 = arith.constant 255 : i32
    %299 = tpu.dynamic_rotate %265 by %c255_i32_89 dim 1 : vector<64x256xf32>, i32 -> vector<64x256xf32>
    %300 = vector.extract_strided_slice %266 {offsets = [0, 5], sizes = [64, 1], strides = [1, 1]} : vector<64x9xf32> to vector<64x1xf32>
    %301 = vector.broadcast %300 : vector<64x1xf32> to vector<64x256xf32>
    %302 = arith.mulf %301, %299 : vector<64x256xf32>
    %303 = vector.broadcast %11 : vector<1x256xf32> to vector<64x256xf32>
    %304 = arith.mulf %302, %303 : vector<64x256xf32>
    %305 = arith.addf %298, %304 : vector<64x256xf32>
    %c241_i32_90 = arith.constant 241 : i32
    %306 = tpu.dynamic_rotate %265 by %c241_i32_90 dim 1 : vector<64x256xf32>, i32 -> vector<64x256xf32>
    %307 = vector.extract_strided_slice %266 {offsets = [0, 6], sizes = [64, 1], strides = [1, 1]} : vector<64x9xf32> to vector<64x1xf32>
    %308 = vector.broadcast %307 : vector<64x1xf32> to vector<64x256xf32>
    %309 = arith.mulf %308, %306 : vector<64x256xf32>
    %310 = vector.broadcast %13 : vector<1x256xf32> to vector<64x256xf32>
    %311 = arith.mulf %309, %310 : vector<64x256xf32>
    %312 = arith.addf %305, %311 : vector<64x256xf32>
    %c240_i32_91 = arith.constant 240 : i32
    %313 = tpu.dynamic_rotate %265 by %c240_i32_91 dim 1 : vector<64x256xf32>, i32 -> vector<64x256xf32>
    %314 = vector.extract_strided_slice %266 {offsets = [0, 7], sizes = [64, 1], strides = [1, 1]} : vector<64x9xf32> to vector<64x1xf32>
    %315 = vector.broadcast %314 : vector<64x1xf32> to vector<64x256xf32>
    %316 = arith.mulf %315, %313 : vector<64x256xf32>
    %317 = vector.broadcast %15 : vector<1x256xf32> to vector<64x256xf32>
    %318 = arith.mulf %316, %317 : vector<64x256xf32>
    %319 = arith.addf %312, %318 : vector<64x256xf32>
    %c239_i32_92 = arith.constant 239 : i32
    %320 = tpu.dynamic_rotate %265 by %c239_i32_92 dim 1 : vector<64x256xf32>, i32 -> vector<64x256xf32>
    %321 = vector.extract_strided_slice %266 {offsets = [0, 8], sizes = [64, 1], strides = [1, 1]} : vector<64x9xf32> to vector<64x1xf32>
    %322 = vector.broadcast %321 : vector<64x1xf32> to vector<64x256xf32>
    %323 = arith.mulf %322, %320 : vector<64x256xf32>
    %324 = vector.broadcast %17 : vector<1x256xf32> to vector<64x256xf32>
    %325 = arith.mulf %323, %324 : vector<64x256xf32>
    %326 = arith.addf %319, %325 : vector<64x256xf32>
    %327 = vector.broadcast %267 : vector<64x1xf32> to vector<64x256xf32>
    %328 = arith.addf %326, %327 : vector<64x256xf32>
    %cst_93 = arith.constant 5.000000e-01 : f32
    %329 = vector.broadcast %cst_93 : f32 to vector<64x256xf32>
    %330 = arith.mulf %329, %328 : vector<64x256xf32>
    %cst_94 = arith.constant 0.707106769 : f32
    %331 = vector.broadcast %cst_94 : f32 to vector<64x256xf32>
    %332 = arith.mulf %328, %331 : vector<64x256xf32>
    %cst_95 = arith.constant 0.000000e+00 : f32
    %333 = vector.broadcast %cst_95 : f32 to vector<64x256xf32>
    %334 = arith.cmpf oge, %332, %333 : vector<64x256xf32>
    %cst_96 = arith.constant 1.000000e+00 : f32
    %cst_97 = arith.constant -1.000000e+00 : f32
    %335 = vector.broadcast %cst_96 : f32 to vector<64x256xf32>
    %336 = vector.broadcast %cst_97 : f32 to vector<64x256xf32>
    %337 = arith.select %334, %335, %336 : vector<64x256xi1>, vector<64x256xf32>
    %338 = math.absf %332 : vector<64x256xf32>
    %cst_98 = arith.constant 0.327591091 : f32
    %339 = vector.broadcast %cst_98 : f32 to vector<64x256xf32>
    %340 = arith.mulf %339, %338 : vector<64x256xf32>
    %cst_99 = arith.constant 1.000000e+00 : f32
    %341 = vector.broadcast %cst_99 : f32 to vector<64x256xf32>
    %342 = arith.addf %341, %340 : vector<64x256xf32>
    %343 = tpu.reciprocal %342 {approx = true} : vector<64x256xf32> -> vector<64x256xf32>
    %cst_100 = arith.constant 1.06140542 : f32
    %344 = vector.broadcast %cst_100 : f32 to vector<64x256xf32>
    %345 = arith.mulf %344, %343 : vector<64x256xf32>
    %cst_101 = arith.constant -1.45315206 : f32
    %346 = vector.broadcast %cst_101 : f32 to vector<64x256xf32>
    %347 = arith.addf %345, %346 : vector<64x256xf32>
    %348 = arith.mulf %347, %343 : vector<64x256xf32>
    %cst_102 = arith.constant 1.42141378 : f32
    %349 = vector.broadcast %cst_102 : f32 to vector<64x256xf32>
    %350 = arith.addf %348, %349 : vector<64x256xf32>
    %351 = arith.mulf %350, %343 : vector<64x256xf32>
    %cst_103 = arith.constant -0.284496725 : f32
    %352 = vector.broadcast %cst_103 : f32 to vector<64x256xf32>
    %353 = arith.addf %351, %352 : vector<64x256xf32>
    %354 = arith.mulf %353, %343 : vector<64x256xf32>
    %cst_104 = arith.constant 0.254829586 : f32
    %355 = vector.broadcast %cst_104 : f32 to vector<64x256xf32>
    %356 = arith.addf %354, %355 : vector<64x256xf32>
    %357 = arith.mulf %356, %343 : vector<64x256xf32>
    %cst_105 = arith.constant 0.000000e+00 : f32
    %358 = vector.broadcast %cst_105 : f32 to vector<64x256xf32>
    %359 = arith.subf %358, %338 : vector<64x256xf32>
    %360 = arith.mulf %359, %338 : vector<64x256xf32>
    %361 = math.exp %360 : vector<64x256xf32>
    %362 = arith.mulf %357, %361 : vector<64x256xf32>
    %cst_106 = arith.constant 1.000000e+00 : f32
    %363 = vector.broadcast %cst_106 : f32 to vector<64x256xf32>
    %364 = arith.subf %363, %362 : vector<64x256xf32>
    %365 = arith.mulf %337, %364 : vector<64x256xf32>
    %cst_107 = arith.constant 1.000000e+00 : f32
    %366 = vector.broadcast %cst_107 : f32 to vector<64x256xf32>
    %367 = arith.addf %366, %365 : vector<64x256xf32>
    %368 = arith.mulf %330, %367 : vector<64x256xf32>
    %c64_108 = arith.constant 64 : index
    %c0_109 = arith.constant 0 : index
    %369 = vector.load %arg11[%c64_108, %c0_109] : memref<128x32xf32, #tpu.memory_space<vmem>>, vector<64x32xf32>
    %c64_110 = arith.constant 64 : index
    %c0_111 = arith.constant 0 : index
    %370 = vector.load %arg12[%c64_110, %c0_111] : memref<128x1xf32, #tpu.memory_space<vmem>>, vector<64x1xf32>
    %cst_112 = arith.constant dense<0.000000e+00> : vector<64x256xf32>
    %371 = tpu.matmul %369, %260, %cst_112 {dimension_numbers = #tpu.dot_dimension_numbers<[1], [0], [0], [1], [0, 0, 1, 1], [], []>} : vector<64x32xf32>, vector<32x256xf32>, vector<64x256xf32> -> vector<64x256xf32>
    %372 = vector.broadcast %370 : vector<64x1xf32> to vector<64x256xf32>
    %373 = arith.addf %371, %372 : vector<64x256xf32>
    %c64_113 = arith.constant 64 : index
    %c0_114 = arith.constant 0 : index
    %374 = vector.load %arg13[%c64_113, %c0_114] : memref<128x9xf32, #tpu.memory_space<vmem>>, vector<64x9xf32>
    %c64_115 = arith.constant 64 : index
    %c0_116 = arith.constant 0 : index
    %375 = vector.load %arg14[%c64_115, %c0_116] : memref<128x1xf32, #tpu.memory_space<vmem>>, vector<64x1xf32>
    %376 = vector.extract_strided_slice %374 {offsets = [0, 4], sizes = [64, 1], strides = [1, 1]} : vector<64x9xf32> to vector<64x1xf32>
    %377 = vector.broadcast %376 : vector<64x1xf32> to vector<64x256xf32>
    %378 = arith.mulf %377, %373 : vector<64x256xf32>
    %c17_i32_117 = arith.constant 17 : i32
    %379 = tpu.dynamic_rotate %373 by %c17_i32_117 dim 1 : vector<64x256xf32>, i32 -> vector<64x256xf32>
    %380 = vector.extract_strided_slice %374 {offsets = [0, 0], sizes = [64, 1], strides = [1, 1]} : vector<64x9xf32> to vector<64x1xf32>
    %381 = vector.broadcast %380 : vector<64x1xf32> to vector<64x256xf32>
    %382 = arith.mulf %381, %379 : vector<64x256xf32>
    %383 = vector.broadcast %3 : vector<1x256xf32> to vector<64x256xf32>
    %384 = arith.mulf %382, %383 : vector<64x256xf32>
    %385 = arith.addf %378, %384 : vector<64x256xf32>
    %c16_i32_118 = arith.constant 16 : i32
    %386 = tpu.dynamic_rotate %373 by %c16_i32_118 dim 1 : vector<64x256xf32>, i32 -> vector<64x256xf32>
    %387 = vector.extract_strided_slice %374 {offsets = [0, 1], sizes = [64, 1], strides = [1, 1]} : vector<64x9xf32> to vector<64x1xf32>
    %388 = vector.broadcast %387 : vector<64x1xf32> to vector<64x256xf32>
    %389 = arith.mulf %388, %386 : vector<64x256xf32>
    %390 = vector.broadcast %5 : vector<1x256xf32> to vector<64x256xf32>
    %391 = arith.mulf %389, %390 : vector<64x256xf32>
    %392 = arith.addf %385, %391 : vector<64x256xf32>
    %c15_i32_119 = arith.constant 15 : i32
    %393 = tpu.dynamic_rotate %373 by %c15_i32_119 dim 1 : vector<64x256xf32>, i32 -> vector<64x256xf32>
    %394 = vector.extract_strided_slice %374 {offsets = [0, 2], sizes = [64, 1], strides = [1, 1]} : vector<64x9xf32> to vector<64x1xf32>
    %395 = vector.broadcast %394 : vector<64x1xf32> to vector<64x256xf32>
    %396 = arith.mulf %395, %393 : vector<64x256xf32>
    %397 = vector.broadcast %7 : vector<1x256xf32> to vector<64x256xf32>
    %398 = arith.mulf %396, %397 : vector<64x256xf32>
    %399 = arith.addf %392, %398 : vector<64x256xf32>
    %c1_i32_120 = arith.constant 1 : i32
    %400 = tpu.dynamic_rotate %373 by %c1_i32_120 dim 1 : vector<64x256xf32>, i32 -> vector<64x256xf32>
    %401 = vector.extract_strided_slice %374 {offsets = [0, 3], sizes = [64, 1], strides = [1, 1]} : vector<64x9xf32> to vector<64x1xf32>
    %402 = vector.broadcast %401 : vector<64x1xf32> to vector<64x256xf32>
    %403 = arith.mulf %402, %400 : vector<64x256xf32>
    %404 = vector.broadcast %9 : vector<1x256xf32> to vector<64x256xf32>
    %405 = arith.mulf %403, %404 : vector<64x256xf32>
    %406 = arith.addf %399, %405 : vector<64x256xf32>
    %c255_i32_121 = arith.constant 255 : i32
    %407 = tpu.dynamic_rotate %373 by %c255_i32_121 dim 1 : vector<64x256xf32>, i32 -> vector<64x256xf32>
    %408 = vector.extract_strided_slice %374 {offsets = [0, 5], sizes = [64, 1], strides = [1, 1]} : vector<64x9xf32> to vector<64x1xf32>
    %409 = vector.broadcast %408 : vector<64x1xf32> to vector<64x256xf32>
    %410 = arith.mulf %409, %407 : vector<64x256xf32>
    %411 = vector.broadcast %11 : vector<1x256xf32> to vector<64x256xf32>
    %412 = arith.mulf %410, %411 : vector<64x256xf32>
    %413 = arith.addf %406, %412 : vector<64x256xf32>
    %c241_i32_122 = arith.constant 241 : i32
    %414 = tpu.dynamic_rotate %373 by %c241_i32_122 dim 1 : vector<64x256xf32>, i32 -> vector<64x256xf32>
    %415 = vector.extract_strided_slice %374 {offsets = [0, 6], sizes = [64, 1], strides = [1, 1]} : vector<64x9xf32> to vector<64x1xf32>
    %416 = vector.broadcast %415 : vector<64x1xf32> to vector<64x256xf32>
    %417 = arith.mulf %416, %414 : vector<64x256xf32>
    %418 = vector.broadcast %13 : vector<1x256xf32> to vector<64x256xf32>
    %419 = arith.mulf %417, %418 : vector<64x256xf32>
    %420 = arith.addf %413, %419 : vector<64x256xf32>
    %c240_i32_123 = arith.constant 240 : i32
    %421 = tpu.dynamic_rotate %373 by %c240_i32_123 dim 1 : vector<64x256xf32>, i32 -> vector<64x256xf32>
    %422 = vector.extract_strided_slice %374 {offsets = [0, 7], sizes = [64, 1], strides = [1, 1]} : vector<64x9xf32> to vector<64x1xf32>
    %423 = vector.broadcast %422 : vector<64x1xf32> to vector<64x256xf32>
    %424 = arith.mulf %423, %421 : vector<64x256xf32>
    %425 = vector.broadcast %15 : vector<1x256xf32> to vector<64x256xf32>
    %426 = arith.mulf %424, %425 : vector<64x256xf32>
    %427 = arith.addf %420, %426 : vector<64x256xf32>
    %c239_i32_124 = arith.constant 239 : i32
    %428 = tpu.dynamic_rotate %373 by %c239_i32_124 dim 1 : vector<64x256xf32>, i32 -> vector<64x256xf32>
    %429 = vector.extract_strided_slice %374 {offsets = [0, 8], sizes = [64, 1], strides = [1, 1]} : vector<64x9xf32> to vector<64x1xf32>
    %430 = vector.broadcast %429 : vector<64x1xf32> to vector<64x256xf32>
    %431 = arith.mulf %430, %428 : vector<64x256xf32>
    %432 = vector.broadcast %17 : vector<1x256xf32> to vector<64x256xf32>
    %433 = arith.mulf %431, %432 : vector<64x256xf32>
    %434 = arith.addf %427, %433 : vector<64x256xf32>
    %435 = vector.broadcast %375 : vector<64x1xf32> to vector<64x256xf32>
    %436 = arith.addf %434, %435 : vector<64x256xf32>
    %c0_125 = arith.constant 0 : index
    %c0_126 = arith.constant 0 : index
    %437 = vector.load %arg15[%c0_125, %c0_126] : memref<32x64xf32, #tpu.memory_space<vmem>>, vector<32x64xf32>
    %438 = arith.mulf %368, %436 : vector<64x256xf32>
    %c0_127 = arith.constant 0 : index
    %c0_128 = arith.constant 0 : index
    %439 = vector.load %arg16[%c0_127, %c0_128] : memref<32x1xf32, #tpu.memory_space<vmem>>, vector<32x1xf32>
    %cst_129 = arith.constant dense<0.000000e+00> : vector<32x256xf32>
    %440 = tpu.matmul %437, %438, %cst_129 {dimension_numbers = #tpu.dot_dimension_numbers<[1], [0], [0], [1], [0, 0, 1, 1], [], []>} : vector<32x64xf32>, vector<64x256xf32>, vector<32x256xf32> -> vector<32x256xf32>
    %441 = vector.broadcast %439 : vector<32x1xf32> to vector<32x256xf32>
    %442 = arith.addf %440, %441 : vector<32x256xf32>
    %443 = arith.addf %260, %442 : vector<32x256xf32>
    %c0_130 = arith.constant 0 : index
    %c0_131 = arith.constant 0 : index
    %c0_132 = arith.constant 0 : index
    %444 = vector.load %arg17[%c0_130, %c0_131, %c0_132] : memref<1x32x256xf32, #tpu.memory_space<vmem>>, vector<1x32x256xf32>
    %445 = vector.shape_cast %444 : vector<1x32x256xf32> to vector<32x256xf32>
    %446 = vector.shape_cast %443 : vector<32x256xf32> to vector<1x32x256xf32>
    tpu.vector_store %arg17[%c0_130, %c0_131, %c0_132], %446 {strides = array<i32>} : memref<1x32x256xf32, #tpu.memory_space<vmem>>, vector<1x32x256xf32>,
    return
  }
  func.func @transform_0(%arg0: i32) -> (i32, i32, i32) {
    %c0_i32 = arith.constant 0 : i32
    %c0_i32_0 = arith.constant 0 : i32
    %c0_i32_1 = arith.constant 0 : i32
    return %arg0, %c0_i32, %c0_i32_0 : i32, i32, i32
  }
  func.func @transform_1(%arg0: i32) -> (i32, i32, i32) {
    %c0_i32 = arith.constant 0 : i32
    %c0_i32_0 = arith.constant 0 : i32
    %c0_i32_1 = arith.constant 0 : i32
    %c0_i32_2 = arith.constant 0 : i32
    return %c0_i32, %c0_i32_0, %c0_i32_1 : i32, i32, i32
  }
  func.func @transform_2(%arg0: i32) -> (i32, i32) {
    %c0_i32 = arith.constant 0 : i32
    %c0_i32_0 = arith.constant 0 : i32
    %c0_i32_1 = arith.constant 0 : i32
    return %c0_i32, %c0_i32_0 : i32, i32
  }
  func.func @transform_3(%arg0: i32) -> (i32, i32) {
    %c0_i32 = arith.constant 0 : i32
    %c0_i32_0 = arith.constant 0 : i32
    %c0_i32_1 = arith.constant 0 : i32
    return %c0_i32, %c0_i32_0 : i32, i32
  }
  func.func @transform_4(%arg0: i32) -> (i32, i32) {
    %c0_i32 = arith.constant 0 : i32
    %c0_i32_0 = arith.constant 0 : i32
    %c0_i32_1 = arith.constant 0 : i32
    return %c0_i32, %c0_i32_0 : i32, i32
  }
  func.func @transform_5(%arg0: i32) -> (i32, i32) {
    %c0_i32 = arith.constant 0 : i32
    %c0_i32_0 = arith.constant 0 : i32
    %c0_i32_1 = arith.constant 0 : i32
    return %c0_i32, %c0_i32_0 : i32, i32
  }
  func.func @transform_6(%arg0: i32) -> (i32, i32) {
    %c0_i32 = arith.constant 0 : i32
    %c0_i32_0 = arith.constant 0 : i32
    %c0_i32_1 = arith.constant 0 : i32
    return %c0_i32, %c0_i32_0 : i32, i32
  }
  func.func @transform_7(%arg0: i32) -> (i32, i32) {
    %c0_i32 = arith.constant 0 : i32
    %c0_i32_0 = arith.constant 0 : i32
    %c0_i32_1 = arith.constant 0 : i32
    return %c0_i32, %c0_i32_0 : i32, i32
  }
  func.func @transform_8(%arg0: i32) -> (i32, i32) {
    %c0_i32 = arith.constant 0 : i32
    %c0_i32_0 = arith.constant 0 : i32
    %c0_i32_1 = arith.constant 0 : i32
    return %c0_i32, %c0_i32_0 : i32, i32
  }
  func.func @transform_9(%arg0: i32) -> (i32, i32) {
    %c0_i32 = arith.constant 0 : i32
    %c0_i32_0 = arith.constant 0 : i32
    %c0_i32_1 = arith.constant 0 : i32
    return %c0_i32, %c0_i32_0 : i32, i32
  }
  func.func @transform_10(%arg0: i32) -> (i32, i32) {
    %c0_i32 = arith.constant 0 : i32
    %c0_i32_0 = arith.constant 0 : i32
    %c0_i32_1 = arith.constant 0 : i32
    return %c0_i32, %c0_i32_0 : i32, i32
  }
  func.func @transform_11(%arg0: i32) -> (i32, i32) {
    %c0_i32 = arith.constant 0 : i32
    %c0_i32_0 = arith.constant 0 : i32
    %c0_i32_1 = arith.constant 0 : i32
    return %c0_i32, %c0_i32_0 : i32, i32
  }
  func.func @transform_12(%arg0: i32) -> (i32, i32) {
    %c0_i32 = arith.constant 0 : i32
    %c0_i32_0 = arith.constant 0 : i32
    %c0_i32_1 = arith.constant 0 : i32
    return %c0_i32, %c0_i32_0 : i32, i32
  }
  func.func @transform_13(%arg0: i32) -> (i32, i32) {
    %c0_i32 = arith.constant 0 : i32
    %c0_i32_0 = arith.constant 0 : i32
    %c0_i32_1 = arith.constant 0 : i32
    return %c0_i32, %c0_i32_0 : i32, i32
  }
  func.func @transform_14(%arg0: i32) -> (i32, i32) {
    %c0_i32 = arith.constant 0 : i32
    %c0_i32_0 = arith.constant 0 : i32
    %c0_i32_1 = arith.constant 0 : i32
    return %c0_i32, %c0_i32_0 : i32, i32
  }
  func.func @transform_15(%arg0: i32) -> (i32, i32) {
    %c0_i32 = arith.constant 0 : i32
    %c0_i32_0 = arith.constant 0 : i32
    %c0_i32_1 = arith.constant 0 : i32
    return %c0_i32, %c0_i32_0 : i32, i32
  }
  func.func @transform_16(%arg0: i32) -> (i32, i32, i32) {
    %c0_i32 = arith.constant 0 : i32
    %c0_i32_0 = arith.constant 0 : i32
    %c0_i32_1 = arith.constant 0 : i32
    return %arg0, %c0_i32, %c0_i32_0 : i32, i32, i32
  }
}

</mosaic_0001>

<bundles_post_ra>
// kernel: tpu_custom_call.1
= control target key start
LH: loop header
LB: loop body
LE: loop exit
PB: predicated region body
PF: predicated region fallthrough
CT: control target
= control target key end

     0   :  { %s14745_s0 = inlined_call_operand.vmem [shape: f32[2,32,256], index: 0, kind: input, shape index: {}]   ;;  %s14746_s1 = inlined_call_operand.vmem [shape: f32[9,1,256], index: 1, kind: input, shape index: {}]   ;;  %s14747_s2 = inlined_call_operand.vmem [shape: f32[96,32], index: 2, kind: input, shape index: {}]   ;;  %s14748_s3 = inlined_call_operand.vmem [shape: f32[96,1], index: 3, kind: input, shape index: {}]   ;;  %s14749_s4 = inlined_call_operand.vmem [shape: f32[96,9], index: 4, kind: input, shape index: {}]   ;;  %s14750_s5 = inlined_call_operand.vmem [shape: f32[96,1], index: 5, kind: input, shape index: {}]   ;;  %s14751_s6 = inlined_call_operand.vmem [shape: f32[32,1], index: 6, kind: input, shape index: {}]   ;;  %s14752_s7 = inlined_call_operand.vmem [shape: f32[32,32], index: 7, kind: input, shape index: {}]   ;;  %s14753_s8 = inlined_call_operand.vmem [shape: f32[32,32], index: 8, kind: input, shape index: {}]   ;;  %s14754_s9 = inlined_call_operand.vmem [shape: f32[32,1], index: 9, kind: input, shape index: {}]   ;;  %s14755_s10 = inlined_call_operand.vmem [shape: f32[128,32], index: 10, kind: input, shape index: {}]   ;;  %s14756_s11 = inlined_call_operand.vmem [shape: f32[128,1], index: 11, kind: input, shape index: {}]   ;;  %s14757_s12 = inlined_call_operand.vmem [shape: f32[128,9], index: 12, kind: input, shape index: {}]   ;;  %s14758_s13 = inlined_call_operand.vmem [shape: f32[128,1], index: 13, kind: input, shape index: {}]   ;;  %s14759_s14 = inlined_call_operand.vmem [shape: f32[32,64], index: 14, kind: input, shape index: {}]   ;;  %s14760_s15 = inlined_call_operand.vmem [shape: f32[32,1], index: 15, kind: input, shape index: {}]   ;;  %s14761_s16 = inlined_call_operand.hbm [shape: f32[2,32,256], index: 16, kind: output, shape index: {}]  }
   0x1   :  { %15445 = sst [smem:[#allocation318_spill]] %s14745_s0 }
   0x2   :  { %15446 = sst [smem:[#allocation319_spill]] %s14746_s1 }
   0x3   :  { %15447 = sst [smem:[#allocation320_spill]] %s14747_s2 }
   0x4   :  { %15448 = sst [smem:[#allocation321_spill]] %s14748_s3 }
   0x5   :  { %15449 = sst [smem:[#allocation322_spill]] %s14750_s5 }
   0x6   :  { %15450 = sst [smem:[#allocation323_spill]] %s14761_s16 }
   0x7   :  { %21 = vsyncpa [#allocation3], 0 }
   0x8   :  { %23 = vsyncpa [#allocation3 + $0x1], 0  ;;  %s6933_s21 = smov 0   ;;  %s6935_s22 = smov 0  }
   0x9   :  { %s6937_s23 = smov 0   ;;  %s6939_s24 = smov 0  }
   0xa LB: > { %15451 = sst [smem:[#allocation5_spill]] %s6815_s21  ;;  %s6954_s25 = sadd.s32 4294967295, %s6827_s24   ;;  %s6827_s24 = sphi %s6939_s24, %s17007_s24   ;;  %s6823_s23 = sphi %s6937_s23, %s17009_s23   ;;  %s6819_s22 = sphi %s6935_s22, %s17011_s22   ;;  %s6815_s21 = sphi %s6933_s21, %s17010_s21  }
   0xb   : > { %15452 = sst [smem:[#allocation6_spill]] %s6823_s23  ;;  %s6327_s26 = sadd.s32 4294967294, %s6827_s24  }
   0xc   : > { %15453 = sst [smem:[#allocation7_spill]] %s6827_s24  ;;  %s6958_s27 = sadd.s32 1, %s6827_s24  }
   0xd   : > { %15454 = sst [smem:[#allocation8_spill]] %s6954_s25  ;;  %s377_s28 = sadd.s32 1, %s6823_s23 }
   0xe   : > { %15455 = sst [smem:[#allocation9_spill]] %s6958_s27  ;;  %s374_s29 = ssub.s32 %s6827_s24, %s6958_s27 }
   0xf   : > { %p387_p0 = scmp.ne.s32.totalorder %s6823_s23, %s6819_s22  ;;  %p375_p1 = scmp.eq.s32.totalorder %s374_s29, 0 }
  0x10   : > { %p388_p2 = scmp.eq.s32.totalorder %s6954_s25, 1  ;;  %p393_p3 = scmp.ne.s32.totalorder %s6819_s22, %s6815_s21 }
  0x11   : > { %p394_p4 = scmp.eq.s32.totalorder %s6327_s26, 1  ;;  %p6330_p7 = scmp.ge.s32.totalorder %s6827_s24, 1 }
  0x12   : > { %s6969_s30 = scalar_select %p375_p1, %s6823_s23, %s377_s28  }
  0x13   : > { %p6971_p5 = por %p388_p2, %p387_p0  ;;  %p6975_p6 = por %p394_p4, %p393_p3 }
  0x14   : > { %15456 = sst [smem:[#allocation10_spill]] %s6969_s30  ;;  %p465_p8 = scmp.lt.s32.totalorder %s6827_s24, 3 }
  0x15   : > { %s15457_s0 = scalar_select %p6971_p5, 1, 0 }
  0x16   : > { %s15459_s17 = scalar_select %p6975_p6, 1, 0 }
  0x17   : > { %15458 = sst [smem:[#allocation11_spill]] %s15457_s0  ;;  %p466_p9 = pnand %p6330_p7, %p465_p8 }
  0x18   : > { %15460 = sst [smem:[#allocation12_spill]] %s15459_s17 }
  0x19   : > { %469 = sbr.rel (%p466_p9) target bundleno = 4106 (0x100a), region = 84 }
  0x1e   : > { %p515_p10 = scmp.lt.s32.totalorder %s6954_s25, 1  ;;  %s15461_s3 = sld [smem:[#allocation321_spill]]  ;;  %v14780_v1 = vmov 0   ;;  %v6994_v3 = vld [vmem:[%s14749_s4] sm:$0xff]  ;;  %v14778_v4 = vmov 4   ;;  %vm571_vm0 = vcmask 261120  }
  0x1f   : > { %6494 = vset.pattern.permute.xlu0 %v14780_v1  ;;  %6495 = vset.pattern.permute.xlu1 %v14780_v1  ;;  %s15462_s27 = sld [smem:[#allocation318_spill]]  ;;  %v7028_v17 = vld [vmem:[%s14749_s4 + $0x8] sm:$0xff]  ;;  %v7044_v20 = vld [vmem:[%s14749_s4 + $0x18] sm:$0xff]  ;;  %v7049_v21 = vld [vmem:[%s14749_s4 + $0x10] sm:$0xff]  ;;  %v14776_v22 = vmov 1   ;;  %v14774_v23 = vmov 2  }
  0x20   : > { %s516_s28 = scalar_select %p515_p10, %s6954_s25, 1  ;;  %6496 = vset.pattern.permute.xlu2 %v14778_v4  ;;  %v14772_v24 = vmov 3   ;;  %v14768_v47 = vmov 5   ;;  %v14766_v63 = vmov 6  }
  0x21   : > { %652 = vperm.xlu2 %6496, %v6994_v3   ;;  %s15463_s2 = sld [smem:[#allocation320_spill]]  ;;  %s14843_s23 = smov 15  }
  0x22   : > { %s6426_s18 = sshll.u32 %s516_s28, 6  ;;  %s14845_s30 = smov 16  }
  0x23   : > { %s14841_s20 = smov 1   ;;  %s14839_s26 = smov 127  }
  0x24   : > { %v547_v0 = vld [vmem:[%s15461_s3] sm:$0xff]  ;;  %v549_v2 = vld [vmem:[%s15461_s3 + $0x10] sm:$0xff]  ;;  %v548_v15 = vld [vmem:[%s15461_s3 + $0x8] sm:$0xff]  ;;  %s14804_s28 = smov 113   ;;  %s14782_s29 = smov 112  }
  0x25   : > { %553 = vperm.xlu0 %6494, %v547_v0   ;;  %563 = vperm.xlu1 %6495, %v549_v2   ;;  %s7001_s17 = scalar_lea.vmem %s15462_s27, %s6426_s18  ;;  %v550_v16 = vld [vmem:[%s15461_s3 + $0x18] sm:$0xff]  ;;  %s14847_s27 = smov 17  }
  0x26   : > { %v526_v5 = vld [vmem:[%s7001_s17 + $0x30] sm:$0xff]  ;;  %v527_v6 = vld [vmem:[%s7001_s17 + $0x38] sm:$0xff]  ;;  %v524_v7 = vld [vmem:[%s7001_s17 + $0x20] sm:$0xff]  ;;  %s14802_s18 = smov 111   ;;  %s15481_s5 = sld [smem:[#allocation322_spill]] }
  0x27   : > { %596 = vmatpush.msra.mxu0 %v526_v5  ;;  %625 = vmatpush.msra.mxu1 %v527_v6  ;;  %v525_v8 = vld [vmem:[%s7001_s17 + $0x28] sm:$0xff]  ;;  %v522_v9 = vld [vmem:[%s7001_s17 + $0x10] sm:$0xff]  ;;  %v523_v10 = vld [vmem:[%s7001_s17 + $0x18] sm:$0xff]  ;;  %s15510_s1 = sld [smem:[#allocation319_spill]] }
  0x28   : > { %6432 = vmatpush.msra.mxu3 %v527_v6  ;;  %6428 = vmatpush.msra.mxu2 %v526_v5  ;;  %v520_v11 = vld [vmem:[%s7001_s17] sm:$0xff]  ;;  %v521_v12 = vld [vmem:[%s7001_s17 + $0x8] sm:$0xff]  ;;  %v545_v14 = vld [vmem:[%s15463_s2 + $0x10] sm:$0xff]  ;;  %s16995_s25 = sld [smem:[#allocation8_spill]] }
  0x29   : > { %597 = vmatpush.msra.mxu0 %v524_v7  ;;  %626 = vmatpush.msra.mxu1 %v525_v8  ;;  %v543_v13 = vld [vmem:[%s15463_s2] sm:$0xff]  ;;  %v544_v18 = vld [vmem:[%s15463_s2 + $0x8] sm:$0xff]  ;;  %v546_v19 = vld [vmem:[%s15463_s2 + $0x18] sm:$0xff] }
  0x2a   : > { %6433 = vmatpush.msra.mxu3 %v525_v8  ;;  %6429 = vmatpush.msra.mxu2 %v524_v7 }
  0x2b   : > { %598 = vmatpush.msra.mxu0 %v522_v9  ;;  %627 = vmatpush.msra.mxu1 %v523_v10 }
  0x2c   : > { %6434 = vmatpush.msra.mxu3 %v523_v10  ;;  %6430 = vmatpush.msra.mxu2 %v522_v9 }
  0x2d   : > { %599 = vmatpush.msra.mxu0 %v520_v11  ;;  %628 = vmatpush.msra.mxu1 %v521_v12 }
  0x2e   : > { %6341 = vmatmul.msk.f32.vlgmr.msra.gmra.mxu0 %vm571_vm0, %v543_v13  ;;  %6345 = vmatmul.msk.f32.vlgmr.msra.gmra.mxu1 %vm571_vm0, %v543_v13  ;;  %s6427_s0 = sshll.u32 %s16995_s25, 6 }
  0x2f   : > { %6435 = vmatpush.msra.mxu3 %v521_v12  ;;  %6431 = vmatpush.msra.mxu2 %v520_v11 }
  0x30   : > { %6347 = vmatmul.msk.f32.vlgmr.msra.gmra.mxu3 %vm571_vm0, %v545_v14  ;;  %6343 = vmatmul.msk.f32.vlgmr.msra.gmra.mxu2 %vm571_vm0, %v545_v14  ;;  %v14770_v14 = vmov 7  }
  0x31   : > { %558 = vperm.xlu0 %6494, %v548_v15   ;;  %568 = vperm.xlu1 %6495, %v550_v16  }
  0x32   : > { %657 = vperm.xlu2 %6496, %v7028_v17   ;;  %1392 = vmatpush.msrb.mxu2 %v526_v5 }
  0x33   : > { %1421 = vmatpush.msrb.mxu3 %v527_v6  ;;  %2138 = vmatpush.msrb.mxu0 %v526_v5 }
  0x34   : > { %1393 = vmatpush.msrb.mxu2 %v524_v7  ;;  %2167 = vmatpush.msrb.mxu1 %v527_v6 }
  0x35   : > { %1422 = vmatpush.msrb.mxu3 %v525_v8  ;;  %2139 = vmatpush.msrb.mxu0 %v524_v7 }
  0x36   : > { %6342 = vmatmul.msk.f32.gmra.mxu0 %vm571_vm0, %v544_v18  ;;  %6346 = vmatmul.msk.f32.gmra.mxu1 %vm571_vm0, %v544_v18 }
  0x37   : > { %1394 = vmatpush.msrb.mxu2 %v522_v9  ;;  %1423 = vmatpush.msrb.mxu3 %v523_v10 }
  0x38   : > { %6344 = vmatmul.msk.f32.gmra.mxu2 %vm571_vm0, %v546_v19  ;;  %6348 = vmatmul.msk.f32.gmra.mxu3 %vm571_vm0, %v546_v19 }
  0x39   : > { %6498 = vset.pattern.permute.xlu1 %v14778_v4  ;;  %6497 = vset.pattern.permute.xlu0 %v14778_v4 }
  0x3a   : > { %667 = vperm.xlu1 %6498, %v7044_v20   ;;  %662 = vperm.xlu0 %6497, %v7049_v21  }
  0x3b   : > { %6499 = vset.pattern.permute.xlu2 %v14780_v1  ;;  %1395 = vmatpush.msrb.mxu2 %v520_v11 }
  0x3c   : > { %706 = vperm.xlu2 %6499, %v6994_v3   ;;  %1424 = vmatpush.msrb.mxu3 %v521_v12 }
  0x3d   : > { %2168 = vmatpush.msrb.mxu1 %v525_v8  ;;  %2140 = vmatpush.msrb.mxu0 %v522_v9 }
  0x3f   : > { %2169 = vmatpush.msrb.mxu1 %v523_v10  ;;  %2141 = vmatpush.msrb.mxu0 %v520_v11 }
  0x41   : > { %2170 = vmatpush.msrb.mxu1 %v521_v12 }
  0x42   : > { %6501 = vset.pattern.permute.xlu1 %v14776_v22  ;;  %6500 = vset.pattern.permute.xlu0 %v14776_v22 }
  0x43   : > { %780 = vperm.xlu1 %6501, %v7028_v17   ;;  %776 = vperm.xlu0 %6500, %v6994_v3  }
  0x44   : > { %718 = vperm.xlu2 %6499, %v7044_v20  }
  0x4b   : > { %788 = vperm.xlu1 %6501, %v7044_v20   ;;  %6505 = vset.pattern.permute.xlu0 %v14774_v23 }
  0x4c   : > { %6502 = vset.pattern.permute.xlu2 %v14776_v22  ;;  %854 = vperm.xlu0 %6505, %v7049_v21  }
  0x4d   : > { %784 = vperm.xlu2 %6502, %v7049_v21  }
  0x53   : > { %6503 = vset.pattern.permute.xlu1 %v14774_v23 }
  0x54   : > { %846 = vperm.xlu1 %6503, %v6994_v3   ;;  %6507 = vset.pattern.permute.xlu0 %v14772_v24 }
  0x55   : > { %6504 = vset.pattern.permute.xlu2 %v14774_v23  ;;  %920 = vperm.xlu0 %6507, %v7028_v17  }
  0x56   : > { %850 = vperm.xlu2 %6504, %v7028_v17  }
  0x5c   : > { %858 = vperm.xlu1 %6503, %v7044_v20  }
  0x5d   : > { %6509 = vset.pattern.permute.xlu0 %v14768_v47 }
  0x5e   : > { %6506 = vset.pattern.permute.xlu2 %v14772_v24 }
  0x5f   : > { %916 = vperm.xlu2 %6506, %v6994_v3  }
  0x64   : > { %6508 = vset.pattern.permute.xlu1 %v14772_v24 }
  0x65   : > { %924 = vperm.xlu1 %6508, %v7049_v21  }
  0x67   : > { %928 = vperm.xlu2 %6506, %v7044_v20  }
  0x6d   : > { %6510 = vset.pattern.permute.xlu1 %v14768_v47 }
  0x6f   : > { %6511 = vset.pattern.permute.xlu2 %v14768_v47 }
  0x7b   : > { %v7103_v35 = vpop.permute.xlu2 %652 }
  0x8c   : > { %v7115_v36 = vpop.permute.xlu2 %657 }
  0x96   : > { %v7125_v40 = vpop.permute.xlu2 %706 }
  0x97   : > { %v554_v25 = vpop.permute.xlu0 %553  ;;  %v564_v30 = vpop.permute.xlu1 %563 }
  0x9e   : > { %v7135_v44 = vpop.permute.xlu2 %718 }
  0xa3   : > { %v559_v38 = vpop.permute.xlu0 %558  ;;  %v569_v45 = vpop.permute.xlu1 %568 }
  0xa7   : > { %v7148_v48 = vpop.permute.xlu2 %784 }
  0xa8   : > { %15466 = vst [vmem:[#allocation15_spill] sm:$0xff] %v7148_v48 }
  0xab   : > { %v601_v26 = vpop.f32.mrf.mxu0  ;;  %v630_v27 = vpop.f32.mrf.mxu1 }
  0xac   : > { %v7081_v28 = vadd.f32 %v601_v26, %v554_v25  ;;  %v7083_v29 = vadd.f32 %v630_v27, %v554_v25  ;;  %v7150_v49 = vpop.permute.xlu1 %667  ;;  %v7180_v56 = vpop.permute.xlu0 %662 }
  0xad   : > { %15467 = vst [vmem:[#allocation16_spill] sm:$0xff] %v7180_v56 }
  0xae   : > { %828 = vrot.lane.b32.xlu0 %v7083_v29, %s14843_s23  ;;  %686 = vrot.lane.b32.xlu1 %v7083_v29, %s14847_s27 }
  0xaf   : > { %678 = vrot.lane.b32.xlu2 %v7081_v28, %s14847_s27 }
  0xb0   : > { %v7160_v52 = vpop.permute.xlu2 %850 }
  0xb3   : > { %v636_v31 = vpop.f32.mrf.mxu3  ;;  %v607_v33 = vpop.f32.mrf.mxu2 }
  0xb4   : > { %v7091_v32 = vadd.f32 %v636_v31, %v564_v30  ;;  %v7099_v34 = vadd.f32 %v607_v33, %v564_v30  ;;  %v633_v37 = vpop.f32.mrf.mxu1  ;;  %v604_v41 = vpop.f32.mrf.mxu0  ;;  %v14784_v33 = vmov 8  }
  0xb5   : > { %v7117_v39 = vadd.f32 %v633_v37, %v559_v38  ;;  %v7127_v42 = vadd.f32 %v604_v41, %v559_v38  ;;  %v7164_v53 = vpop.permute.xlu1 %780  ;;  %v7192_v59 = vpop.permute.xlu0 %776 }
  0xb6   : > { %15464 = vst [vmem:[#allocation13_spill] sm:$0xff] %v7091_v32  ;;  %750 = vrot.lane.b32.xlu1 %v7081_v28, %s14845_s30  ;;  %690 = vrot.lane.b32.xlu0 %v7091_v32, %s14847_s27 }
  0xb7   : > { %758 = vrot.lane.b32.xlu2 %v7083_v29, %s14845_s30  ;;  %15465 = vst [vmem:[#allocation14_spill] sm:$0xff] %v7099_v34 }
  0xb9   : > { %v7172_v54 = vpop.permute.xlu2 %916 }
  0xbb   : > { %v610_v43 = vpop.f32.mrf.mxu2  ;;  %v639_v50 = vpop.f32.mrf.mxu3 }
  0xbc   : > { %v7137_v46 = vadd.f32 %v610_v43, %v569_v45  ;;  %v7158_v51 = vadd.f32 %v639_v50, %v569_v45 }
  0xbd   : > { %v7178_v55 = vpop.permute.xlu1 %788 }
  0xbe   : > { %898 = vrot.lane.b32.xlu1 %v7083_v29, %s14841_s20  ;;  %754 = vrot.lane.b32.xlu0 %v7099_v34, %s14845_s30  ;;  %v7203_v62 = vpop.permute.xlu0 %854 }
  0xbf   : > { %820 = vrot.lane.b32.xlu2 %v7081_v28, %s14843_s23  ;;  %15469 = vst [vmem:[#allocation18_spill] sm:$0xff] %v7203_v62 }
  0xc1   : > { %v7188_v57 = vpop.permute.xlu2 %928 }
  0xc2   : > { %15468 = vst [vmem:[#allocation17_spill] sm:$0xff] %v7188_v57 }
  0xc6   : > { %960 = vrot.lane.b32.xlu1 %v7081_v28, %s14839_s26  ;;  %902 = vrot.lane.b32.xlu0 %v7091_v32, %s14841_s20  ;;  %v7190_v58 = vpop.permute.xlu1 %846 }
  0xc7   : > { %890 = vrot.lane.b32.xlu2 %v7081_v28, %s14841_s20  ;;  %v7218_v5 = vpop.permute.xlu0 %920 }
  0xce   : > { %762 = vrot.lane.b32.xlu1 %v7091_v32, %s14845_s30  ;;  %760 = vrot.lane.b32.xlu0 %v7117_v39, %s14845_s30  ;;  %v7201_v61 = vpop.permute.xlu1 %858 }
  0xcf   : > { %682 = vrot.lane.b32.xlu2 %v7099_v34, %s14847_s27 }
  0xd6   : > { %824 = vrot.lane.b32.xlu1 %v7099_v34, %s14843_s23  ;;  %822 = vrot.lane.b32.xlu0 %v7127_v42, %s14843_s23 }
  0xd7   : > { %832 = vrot.lane.b32.xlu2 %v7091_v32, %s14843_s23  ;;  %v7216_v2 = vpop.permute.xlu1 %924 }
  0xd8   : > { %15470 = vst [vmem:[#allocation19_spill] sm:$0xff] %v7216_v2  ;;  %v15482_v2 = vmov 8  }
  0xde   : > { %680 = vrot.lane.b32.xlu1 %v7127_v42, %s14847_s27  ;;  %684 = vrot.lane.b32.xlu0 %v7137_v46, %s14847_s27 }
  0xdf   : > { %894 = vrot.lane.b32.xlu2 %v7099_v34, %s14841_s20 }
  0xe6   : > { %830 = vrot.lane.b32.xlu1 %v7117_v39, %s14843_s23  ;;  %964 = vrot.lane.b32.xlu0 %v7099_v34, %s14839_s26 }
  0xe7   : > { %688 = vrot.lane.b32.xlu2 %v7117_v39, %s14847_s27 }
  0xee   : > { %892 = vrot.lane.b32.xlu1 %v7127_v42, %s14841_s20  ;;  %834 = vrot.lane.b32.xlu0 %v7158_v51, %s14843_s23 }
  0xef   : > { %752 = vrot.lane.b32.xlu2 %v7127_v42, %s14845_s30 }
  0xf6   : > { %692 = vrot.lane.b32.xlu1 %v7158_v51, %s14847_s27  ;;  %896 = vrot.lane.b32.xlu0 %v7137_v46, %s14841_s20  ;;  %s15605_s27 = smov 113  }
  0xf7   : > { %900 = vrot.lane.b32.xlu2 %v7117_v39, %s14841_s20 }
  0xfe   : > { %756 = vrot.lane.b32.xlu1 %v7137_v46, %s14845_s30  ;;  %970 = vrot.lane.b32.xlu0 %v7117_v39, %s14839_s26 }
  0xff   : > { %764 = vrot.lane.b32.xlu2 %v7158_v51, %s14845_s30  ;;  %s15587_s30 = smov 17  }
 0x106   : > { %904 = vrot.lane.b32.xlu1 %v7158_v51, %s14841_s20  ;;  %986 = vperm.xlu0 %6509, %v6994_v3   ;;  %s15597_s20 = smov 15  }
 0x107   : > { %826 = vrot.lane.b32.xlu2 %v7137_v46, %s14843_s23  ;;  %s15599_s23 = smov 1  }
 0x109   : > { %v7199_v60 = vpop.permute.xlu2 %678 }
 0x10e   : > { %966 = vrot.lane.b32.xlu1 %v7137_v46, %s14839_s26  ;;  %1032 = vrot.lane.b32.xlu0 %v7127_v42, %s14804_s28 }
 0x10f   : > { %962 = vrot.lane.b32.xlu2 %v7127_v42, %s14839_s26  ;;  %6514 = vset.pattern.permute.xlu0 %v14766_v63 }
 0x111   : > { %v7212_v0 = vpop.permute.xlu2 %758 }
 0x116   : > { %972 = vrot.lane.b32.xlu1 %v7091_v32, %s14839_s26  ;;  %1038 = vrot.lane.b32.xlu0 %v7083_v29, %s14804_s28 }
 0x117   : > { %968 = vrot.lane.b32.xlu2 %v7083_v29, %s14839_s26 }
 0x119   : > { %v7224_v6 = vpop.permute.xlu2 %820 }
 0x11e   : > { %990 = vperm.xlu1 %6510, %v7028_v17   ;;  %1044 = vrot.lane.b32.xlu0 %v7158_v51, %s14804_s28 }
 0x11f   : > { %974 = vrot.lane.b32.xlu2 %v7158_v51, %s14839_s26  ;;  %s15610_s26 = smov 112  }
 0x120   : > { %v7231_v7 = vpop.permute.xlu0 %828  ;;  %v7233_v8 = vpop.permute.xlu1 %686 }
 0x121   : > { %v7235_v9 = vpop.permute.xlu2 %890 }
 0x126   : > { %998 = vperm.xlu1 %6510, %v7044_v20   ;;  %1064 = vperm.xlu0 %6514, %v7049_v21  }
 0x127   : > { %994 = vperm.xlu2 %6511, %v7049_v21  }
 0x128   : > { %v7240_v10 = vpop.permute.xlu1 %750  ;;  %v7242_v11 = vpop.permute.xlu0 %690 }
 0x129   : > { %15471 = vst [vmem:[#allocation20_spill] sm:$0xff] %v7242_v11  ;;  %v7244_v12 = vpop.permute.xlu2 %682  ;;  %v15493_v11 = vmov 0  }
 0x12a   : > { %15472 = vst [vmem:[#allocation21_spill] sm:$0xff] %v7244_v12 }
 0x12e   : > { %1034 = vrot.lane.b32.xlu1 %v7099_v34, %s14804_s28  ;;  %1106 = vrot.lane.b32.xlu0 %v7137_v46, %s14782_s29 }
 0x12f   : > { %1030 = vrot.lane.b32.xlu2 %v7081_v28, %s14804_s28  ;;  %6516 = vset.pattern.permute.xlu0 %v14770_v14 }
 0x130   : > { %v7252_v13 = vpop.permute.xlu1 %898  ;;  %6512 = vset.pattern.permute.xlu1 %v14766_v63  ;;  %v7256_v15 = vpop.permute.xlu0 %754  ;;  %6513 = vset.pattern.permute.xlu2 %v14766_v63 }
 0x131   : > { %15473 = vst [vmem:[#allocation22_spill] sm:$0xff] %v7256_v15  ;;  %v7258_v16 = vpop.permute.xlu2 %832 }
 0x132   : > { %15474 = vst [vmem:[#allocation23_spill] sm:$0xff] %v7258_v16 }
 0x136   : > { %1040 = vrot.lane.b32.xlu1 %v7117_v39, %s14804_s28  ;;  %1112 = vrot.lane.b32.xlu0 %v7091_v32, %s14782_s29 }
 0x137   : > { %1036 = vrot.lane.b32.xlu2 %v7137_v46, %s14804_s28 }
 0x138   : > { %v7267_v18 = vpop.permute.xlu1 %960  ;;  %v7269_v19 = vpop.permute.xlu0 %902 }
 0x139   : > { %15475 = vst [vmem:[#allocation24_spill] sm:$0xff] %v7269_v19  ;;  %v7271_v25 = vpop.permute.xlu2 %894 }
 0x13a   : > { %15476 = vst [vmem:[#allocation25_spill] sm:$0xff] %v7271_v25 }
 0x13e   : > { %1056 = vperm.xlu1 %6512, %v6994_v3   ;;  %1130 = vperm.xlu0 %6516, %v7028_v17  }
 0x13f   : > { %1042 = vrot.lane.b32.xlu2 %v7091_v32, %s14804_s28 }
 0x140   : > { %v7277_v26 = vpop.permute.xlu1 %762  ;;  %v7279_v27 = vpop.permute.xlu0 %760 }
 0x141   : > { %15477 = vst [vmem:[#allocation26_spill] sm:$0xff] %v7277_v26  ;;  %v7281_v30 = vpop.permute.xlu2 %688  ;;  %v649_v26 = vld [vmem:[%s15481_s5 + $0x18] sm:$0xff] }
 0x146   : > { %1068 = vperm.xlu1 %6512, %v7044_v20   ;;  %1174 = vrot.lane.b32.xlu0 %v7099_v34, %s14802_s18 }
 0x147   : > { %1060 = vperm.xlu2 %6513, %v7028_v17   ;;  %6518 = vset.pattern.permute.xlu0 %v14784_v33  ;;  %v647_v33 = vld [vmem:[%s15481_s5 + $0x8] sm:$0xff] }
 0x148   : > { %v7287_v31 = vpop.permute.xlu1 %824  ;;  %v7290_v37 = vpop.permute.xlu0 %822 }
 0x149   : > { %15478 = vst [vmem:[#allocation27_spill] sm:$0xff] %v7287_v31  ;;  %v7292_v38 = vpop.permute.xlu2 %752 }
 0x14e   : > { %1102 = vrot.lane.b32.xlu1 %v7127_v42, %s14782_s29  ;;  %1180 = vrot.lane.b32.xlu0 %v7117_v39, %s14802_s18 }
 0x14f   : > { %1100 = vrot.lane.b32.xlu2 %v7081_v28, %s14782_s29  ;;  %6517 = vset.pattern.permute.xlu1 %v14770_v14 }
 0x150   : > { %v7300_v41 = vpop.permute.xlu1 %680  ;;  %6515 = vset.pattern.permute.xlu2 %v14770_v14  ;;  %v7304_v43 = vpop.permute.xlu0 %684 }
 0x151   : > { %v7306_v45 = vpop.permute.xlu2 %900 }
 0x156   : > { %1108 = vrot.lane.b32.xlu1 %v7083_v29, %s14782_s29  ;;  %1196 = vperm.xlu0 %6518, %v6994_v3  }
 0x157   : > { %1104 = vrot.lane.b32.xlu2 %v7099_v34, %s14782_s29 }
 0x158   : > { %v7313_v50 = vpop.permute.xlu1 %830  ;;  %v7315_v63 = vpop.permute.xlu0 %964 }
 0x159   : > { %15479 = vst [vmem:[#allocation28_spill] sm:$0xff] %v7315_v63  ;;  %v7317_v47 = vpop.permute.xlu2 %764 }
 0x15e   : > { %1114 = vrot.lane.b32.xlu1 %v7158_v51, %s14782_s29  ;;  %6519 = vset.pattern.permute.xlu0 %v14780_v1 }
 0x15f   : > { %1110 = vrot.lane.b32.xlu2 %v7117_v39, %s14782_s29  ;;  %710 = vperm.xlu0 %6519, %v7028_v17   ;;  %s15613_s29 = smov 111  }
 0x160   : > { %v7325_v14 = vpop.permute.xlu1 %892  ;;  %v7327_v24 = vpop.permute.xlu0 %834 }
 0x161   : > { %v7329_v23 = vpop.permute.xlu2 %826 }
 0x166   : > { %1134 = vperm.xlu1 %6517, %v7049_v21  }
 0x167   : > { %1126 = vperm.xlu2 %6515, %v6994_v3   ;;  %1247 = vperm.xlu0 %6519, %v647_v33  }
 0x168   : > { %v7333_v22 = vpop.permute.xlu1 %692  ;;  %v7335_v4 = vpop.permute.xlu0 %896 }
 0x169   : > { %15480 = vst [vmem:[#allocation29_spill] sm:$0xff] %v7335_v4  ;;  %v7337_v1 = vpop.permute.xlu2 %962 }
 0x16e   : > { %1170 = vrot.lane.b32.xlu1 %v7081_v28, %s14802_s18 }
 0x16f   : > { %1138 = vperm.xlu2 %6515, %v7044_v20   ;;  %6520 = vset.pattern.permute.xlu1 %v15482_v2 }
 0x170   : > { %v7346_v62 = vpop.permute.xlu1 %756  ;;  %v7348_v3 = vpop.permute.xlu0 %970 }
 0x171   : > { %v7350_v56 = vpop.permute.xlu2 %968 }
 0x176   : > { %1176 = vrot.lane.b32.xlu1 %v7137_v46, %s14802_s18 }
 0x177   : > { %1172 = vrot.lane.b32.xlu2 %v7127_v42, %s14802_s18 }
 0x178   : > { %v7356_v33 = vpop.permute.xlu1 %904  ;;  %6521 = vset.pattern.permute.xlu2 %v15482_v2  ;;  %v7359_v34 = vpop.permute.xlu0 %986 }
 0x179   : > { %v7361_v63 = vpop.permute.xlu2 %974 }
 0x17a   : > { %15483 = vst [vmem:[#allocation30_spill] sm:$0xff] %v7361_v63  ;;  %v694_v63 = vlaneseq }
 0x17e   : > { %1182 = vrot.lane.b32.xlu1 %v7091_v32, %s14802_s18 }
 0x17f   : > { %1178 = vrot.lane.b32.xlu2 %v7083_v29, %s14802_s18 }
 0x180   : > { %v7367_v48 = vpop.permute.xlu1 %966  ;;  %v7369_v25 = vpop.permute.xlu0 %1032 }
 0x181   : > { %15484 = vst [vmem:[#allocation31_spill] sm:$0xff] %v7367_v48  ;;  %v7371_v19 = vpop.permute.xlu2 %994 }
 0x182   : > { %15485 = vst [vmem:[#allocation32_spill] sm:$0xff] %v7369_v25 }
 0x183   : > { %15486 = vst [vmem:[#allocation33_spill] sm:$0xff] %v7371_v19 }
 0x186   : > { %1200 = vperm.xlu1 %6520, %v7028_v17   ;;  %v646_v17 = vld [vmem:[%s15481_s5] sm:$0xff] }
 0x187   : > { %1184 = vrot.lane.b32.xlu2 %v7158_v51, %s14802_s18  ;;  %s15595_s18 = smov 16  }
 0x188   : > { %v7376_v2 = vpop.permute.xlu1 %972  ;;  %v7378_v16 = vpop.permute.xlu0 %1038 }
 0x189   : > { %15487 = vst [vmem:[#allocation34_spill] sm:$0xff] %v7376_v2  ;;  %v7380_v31 = vpop.permute.xlu2 %1030 }
 0x18a   : > { %15488 = vst [vmem:[#allocation35_spill] sm:$0xff] %v7378_v16 }
 0x18b   : > { %15489 = vst [vmem:[#allocation36_spill] sm:$0xff] %v7380_v31 }
 0x18e   : > { %1208 = vperm.xlu1 %6520, %v7044_v20  }
 0x18f   : > { %1204 = vperm.xlu2 %6521, %v7049_v21  }
 0x190   : > { %v7384_v32 = vpop.permute.xlu1 %990  ;;  %v7386_v12 = vpop.permute.xlu0 %1044 }
 0x191   : > { %15490 = vst [vmem:[#allocation37_spill] sm:$0xff] %v7384_v32  ;;  %v7388_v19 = vpop.permute.xlu2 %1036 }
 0x192   : > { %15491 = vst [vmem:[#allocation38_spill] sm:$0xff] %v7386_v12 }
 0x193   : > { %15492 = vst [vmem:[#allocation39_spill] sm:$0xff] %v7388_v19 }
 0x196   : > { %6523 = vset.pattern.permute.xlu1 %v15493_v11 }
 0x197   : > { %6522 = vset.pattern.permute.xlu2 %v15493_v11 }
 0x198   : > { %1242 = vperm.xlu2 %6522, %v646_v17   ;;  %v7395_v2 = vpop.permute.xlu1 %998  ;;  %v7397_v20 = vpop.permute.xlu0 %1064 }
 0x199   : > { %15494 = vst [vmem:[#allocation40_spill] sm:$0xff] %v7395_v2  ;;  %v7399_v21 = vpop.permute.xlu2 %1042 }
 0x19a   : > { %15495 = vst [vmem:[#allocation41_spill] sm:$0xff] %v7397_v20 }
 0x19b   : > { %15496 = vst [vmem:[#allocation42_spill] sm:$0xff] %v7399_v21 }
 0x1a0   : > { %1257 = vperm.xlu2 %6522, %v649_v26   ;;  %v7404_v15 = vpop.permute.xlu1 %1034  ;;  %v7406_v19 = vpop.permute.xlu0 %1106 }
 0x1a1   : > { %15497 = vst [vmem:[#allocation43_spill] sm:$0xff] %v7404_v15  ;;  %v7408_v12 = vpop.permute.xlu2 %1060 }
 0x1a2   : > { %15498 = vst [vmem:[#allocation44_spill] sm:$0xff] %v7406_v19  ;;  %v7426_v19 = vand.u32 127, %v694_v63 }
 0x1a3   : > { %15499 = vst [vmem:[#allocation45_spill] sm:$0xff] %v7408_v12 }
 0x1a4   : > { %vm696_vm1 = vcmp.lt.s32.totalorder %v7426_v19, 17  ;;  %vm766_vm2 = vcmp.lt.s32.totalorder %v7426_v19, 16  ;;  %vm836_vm3 = vcmp.lt.s32.totalorder %v7426_v19, 15  ;;  %vm906_vm4 = vcmp.lt.s32.totalorder %v7426_v19, 1 }
 0x1a5   : > { %v697_v63 = vsel %vm696_vm1, %v7199_v60, %v7233_v8  ;;  %vm976_vm5 = vcmp.lt.s32.totalorder %v7426_v19, 127  ;;  %vm1046_vm6 = vcmp.lt.s32.totalorder %v7426_v19, 113  ;;  %vm1116_vm7 = vcmp.lt.s32.totalorder %v7426_v19, 112 }
 0x1a6   : > { %vm1186_vm8 = vcmp.lt.s32.totalorder %v7426_v19, 111 }
 0x1a8   : > { %v7410_v48 = vpop.permute.xlu1 %1040  ;;  %v7412_v17 = vpop.permute.xlu0 %1112 }
 0x1a9   : > { %15500 = vst [vmem:[#allocation46_spill] sm:$0xff] %v7410_v48  ;;  %v7414_v11 = vpop.permute.xlu2 %1100  ;;  %v767_v48 = vsel %vm766_vm2, %v7240_v10, %v7212_v0 }
 0x1aa   : > { %15501 = vst [vmem:[#allocation47_spill] sm:$0xff] %v7412_v17 }
 0x1ab   : > { %15502 = vst [vmem:[#allocation48_spill] sm:$0xff] %v7414_v11  ;;  %v792_v11 = vmul.f32 %v7192_v59, %v767_v48  ;;  %v911_v48 = vsel %vm906_vm4, %v7252_v13, %v7235_v9 }
 0x1b0   : > { %v7416_v20 = vpop.permute.xlu1 %1056  ;;  %v7418_v21 = vpop.permute.xlu0 %1130 }
 0x1b1   : > { %15503 = vst [vmem:[#allocation49_spill] sm:$0xff] %v7416_v20  ;;  %v7420_v2 = vpop.permute.xlu2 %1104 }
 0x1b2   : > { %15504 = vst [vmem:[#allocation50_spill] sm:$0xff] %v7418_v21  ;;  %v528_v21 = vld [vmem:[%s15510_s1] sm:$0x3] }
 0x1b3   : > { %15505 = vst [vmem:[#allocation51_spill] sm:$0xff] %v7420_v2  ;;  %v701_v2 = vsel %vm696_vm1, %v7233_v8, %v7199_v60  ;;  %v7463_v60 = vperm.slane %v528_v21, 1  ;;  %v722_v8 = vmul.f32 %v7125_v40, %v697_v63  ;;  %v837_v63 = vsel %vm836_vm3, %v7224_v6, %v7231_v7 }
 0x1b4   : > { %v721_v25 = vmul.f32 %v7125_v40, %v701_v2  ;;  %v841_v40 = vsel %vm836_vm3, %v7231_v7, %v7224_v6  ;;  %v931_v7 = vmul.f32 %v7172_v54, %v911_v48 }
 0x1b5   : > { %15514 = vst [vmem:[#allocation59_spill] sm:$0xff] %v7463_v60  ;;  %v861_v31 = vmul.f32 %v7190_v58, %v841_v40 }
 0x1b8   : > { %v7422_v26 = vpop.permute.xlu1 %1068  ;;  %v7428_v12 = vpop.permute.xlu0 %1174 }
 0x1b9   : > { %15506 = vst [vmem:[#allocation52_spill] sm:$0xff] %v7422_v26  ;;  %v7424_v15 = vpop.permute.xlu2 %1110 }
 0x1ba   : > { %15507 = vst [vmem:[#allocation53_spill] sm:$0xff] %v7424_v15  ;;  %v7454_v15 = vperm.slane %v528_v21, 0 }
 0x1bb   : > { %15508 = vst [vmem:[#allocation54_spill] sm:$0xff] %v7428_v12  ;;  %v6334_v12 = vld [vmem:[%s15510_s1 + $0x2] sm:$0x3] }
 0x1bc   : > { %15512 = vst [vmem:[#allocation57_spill] sm:$0xff] %v7454_v15  ;;  %v7467_v57 = vperm.slane %v6334_v12, 0  ;;  %v7471_v2 = vperm.slane %v6334_v12, 1  ;;  %v6336_v12 = vld [vmem:[%s15510_s1 + $0x6] sm:$0x3] }
 0x1bd   : > { %v7513_v6 = vperm.slane %v6336_v12, 0 }
 0x1be   : > { %15515 = vst [vmem:[#allocation60_spill] sm:$0xff] %v7467_v57 }
 0x1bf   : > { %15516 = vst [vmem:[#allocation61_spill] sm:$0xff] %v7471_v2  ;;  %v944_v40 = vmul.f32 %v7513_v6, %v931_v7 }
 0x1c0   : > { %v7432_v17 = vpop.permute.xlu1 %1102  ;;  %v7461_v32 = vpop.permute.xlu0 %1180  ;;  %15521 = vst [vmem:[#allocation66_spill] sm:$0xff] %v7513_v6 }
 0x1c1   : > { %15509 = vst [vmem:[#allocation55_spill] sm:$0xff] %v7432_v17  ;;  %v7441_v26 = vpop.permute.xlu2 %1126  ;;  %v771_v17 = vsel %vm766_vm2, %v7212_v0, %v7240_v10  ;;  %v6335_v0 = vld [vmem:[%s15510_s1 + $0x4] sm:$0x3]  ;;  %v734_v10 = vmul.f32 %v7454_v15, %v721_v25  ;;  %v670_v25 = vmul.f32 %v7103_v35, %v7081_v28  ;;  %v805_v28 = vmul.f32 %v7471_v2, %v792_v11 }
 0x1c2   : > { %15511 = vst [vmem:[#allocation56_spill] sm:$0xff] %v7441_v26  ;;  %v791_v26 = vmul.f32 %v7192_v59, %v771_v17  ;;  %v735_v17 = vmul.f32 %v7463_v60, %v722_v8  ;;  %v7507_v20 = vperm.slane %v6335_v0, 0 }
 0x1c3   : > { %15513 = vst [vmem:[#allocation58_spill] sm:$0xff] %v7461_v32  ;;  %v907_v32 = vsel %vm906_vm4, %v7235_v9, %v7252_v13  ;;  %v742_v16 = vadd.f32 %v734_v10, %v670_v25  ;;  %v7517_v9 = vperm.slane %v6336_v12, 1  ;;  %v677_v12 = vmul.f32 %v7150_v49, %v7158_v51 }
 0x1c4   : > { %v804_v8 = vmul.f32 %v7467_v57, %v791_v26  ;;  %15519 = vst [vmem:[#allocation64_spill] sm:$0xff] %v7507_v20  ;;  %v862_v26 = vmul.f32 %v7190_v58, %v837_v63  ;;  %v874_v11 = vmul.f32 %v7507_v20, %v861_v31  ;;  %v772_v58 = vsel %vm766_vm2, %v7279_v27, %v7292_v38 }
 0x1c5   : > { %15522 = vst [vmem:[#allocation67_spill] sm:$0xff] %v7517_v9  ;;  %v7544_v31 = vmul.f32 %v7115_v36, %v7117_v39  ;;  %v838_v39 = vsel %vm836_vm3, %v7290_v37, %v7313_v50  ;;  %v908_v51 = vsel %vm906_vm4, %v7325_v14, %v7306_v45 }
 0x1c8   : > { %v7478_v21 = vpop.permute.xlu1 %1108  ;;  %v7520_v13 = vpop.permute.xlu0 %1196 }
 0x1c9   : > { %15517 = vst [vmem:[#allocation62_spill] sm:$0xff] %v7478_v21  ;;  %v7492_v59 = vpop.permute.xlu2 %1138  ;;  %v671_v21 = vmul.f32 %v7103_v35, %v7083_v29  ;;  %v932_v29 = vmul.f32 %v7172_v54, %v907_v32  ;;  %v812_v35 = vadd.f32 %v804_v8, %v742_v16  ;;  %v7540_v16 = vmul.f32 %v7115_v36, %v7127_v42 }
 0x1ca   : > { %15518 = vst [vmem:[#allocation63_spill] sm:$0xff] %v7492_v59  ;;  %v7509_v59 = vperm.slane %v6335_v0, 1  ;;  %v793_v8 = vmul.f32 %v7164_v53, %v772_v58  ;;  %v704_v42 = vsel %vm696_vm1, %v7333_v22, %v7304_v43  ;;  %v1340_v58 = vld [vmem:[%s15463_s2 + $0x20] sm:$0xff] }
 0x1cb   : > { %v743_v4 = vadd.f32 %v735_v17, %v671_v21  ;;  %v945_v48 = vmul.f32 %v7517_v9, %v932_v29  ;;  %v882_v54 = vadd.f32 %v874_v11, %v812_v35  ;;  %v676_v21 = vmul.f32 %v7150_v49, %v7137_v46  ;;  %v6337_v35 = vld [vmem:[%s15510_s1 + $0xa] sm:$0x3]  ;;  %6349 = vmatmul.msk.f32.vlgmr.msrb.gmra.mxu2 %vm571_vm0, %v1340_v58 }
 0x1cc   : > { %15520 = vst [vmem:[#allocation65_spill] sm:$0xff] %v7509_v59  ;;  %v875_v25 = vmul.f32 %v7509_v59, %v862_v26  ;;  %v700_v46 = vsel %vm696_vm1, %v7304_v43, %v7333_v22  ;;  %v842_v49 = vsel %vm836_vm3, %v7313_v50, %v7290_v37  ;;  %v774_v22 = vsel %vm766_vm2, %v7317_v47, %v7346_v62 }
 0x1cd   : > { %v813_v0 = vadd.f32 %v805_v28, %v743_v4  ;;  %v768_v4 = vsel %vm766_vm2, %v7292_v38, %v7279_v27  ;;  %v7550_v63 = vadd.f32 %v944_v40, %v882_v54  ;;  %v840_v37 = vsel %vm836_vm3, %v7329_v23, %v7327_v24  ;;  %6353 = vmatmul.msk.f32.vlgmr.msrb.gmra.mxu3 %vm571_vm0, %v1340_v58 }
 0x1ce   : > { %v794_v36 = vmul.f32 %v7164_v53, %v768_v4  ;;  %v912_v53 = vsel %vm906_vm4, %v7306_v45, %v7325_v14  ;;  %v844_v38 = vsel %vm836_vm3, %v7327_v24, %v7329_v23  ;;  %v727_v43 = vmul.f32 %v7135_v44, %v704_v42 }
 0x1cf   : > { %v883_v17 = vadd.f32 %v875_v25, %v813_v0  ;;  %v770_v14 = vsel %vm766_vm2, %v7346_v62, %v7317_v47  ;;  %v7598_v45 = vmul.f32 %v7467_v57, %v793_v8  ;;  %v698_v50 = vsel %vm696_vm1, %v7300_v41, %v7281_v30 }
 0x1d0   : > { %v7524_v10 = vpop.permute.xlu1 %1114  ;;  %v702_v23 = vsel %vm696_vm1, %v7281_v30, %v7300_v41  ;;  %v728_v24 = vmul.f32 %v7135_v44, %v700_v46  ;;  %v863_v47 = vmul.f32 %v7160_v52, %v842_v49  ;;  %v864_v62 = vmul.f32 %v7160_v52, %v838_v39 }
 0x1d1   : > { %v7532_v32 = vpop.permute.xlu2 %1172  ;;  %v7557_v27 = vadd.f32 %v945_v48, %v883_v17  ;;  %v711_v28 = vpop.permute.xlu0 %710  ;;  %v933_v26 = vmul.f32 %v7218_v5, %v912_v53  ;;  %v797_v29 = vmul.f32 %v7178_v55, %v774_v22  ;;  %v934_v30 = vmul.f32 %v7218_v5, %v908_v51 }
 0x1d2   : > { %v867_v44 = vmul.f32 %v7201_v61, %v844_v38  ;;  %v868_v41 = vmul.f32 %v7201_v61, %v840_v37  ;;  %v798_v11 = vmul.f32 %v7178_v55, %v770_v14  ;;  %v807_v52 = vmul.f32 %v7471_v2, %v794_v36 }
 0x1d3   : > { %v740_v40 = vmul.f32 %v7454_v15, %v727_v43  ;;  %v723_v25 = vmul.f32 %v711_v28, %v702_v23  ;;  %v724_v48 = vmul.f32 %v711_v28, %v698_v50  ;;  %v741_v54 = vmul.f32 %v7463_v60, %v728_v24 }
 0x1d4   : > { %v7631_v5 = vperm.slane %v6337_v35, 0  ;;  %v7633_v4 = vperm.slane %v6337_v35, 1  ;;  %v7638_v55 = vmul.f32 %v7507_v20, %v863_v47  ;;  %v7641_v61 = vmul.f32 %v7509_v59, %v864_v62  ;;  %v15525_v47 = vld [vmem:[#allocation29_spill] sm:$0xff] }
 0x1d5   : > { %v7644_v17 = vmul.f32 %v7513_v6, %v933_v26  ;;  %v810_v8 = vmul.f32 %v7467_v57, %v797_v29  ;;  %v7648_v42 = vmul.f32 %v7517_v9, %v934_v30  ;;  %v7651_v36 = vmul.f32 %v7507_v20, %v867_v44  ;;  %v1341_v44 = vld [vmem:[%s15463_s2 + $0x28] sm:$0xff] }
 0x1d6   : > { %15523 = vst [vmem:[#allocation68_spill] sm:$0xff] %v7631_v5  ;;  %v7654_v39 = vmul.f32 %v7509_v59, %v868_v41  ;;  %v811_v46 = vmul.f32 %v7471_v2, %v798_v11  ;;  %v748_v49 = vadd.f32 %v740_v40, %v676_v21  ;;  %v736_v51 = vmul.f32 %v7454_v15, %v723_v25  ;;  %v15529_v11 = vld [vmem:[#allocation62_spill] sm:$0xff]  ;;  %v15530_v40 = vld [vmem:[#allocation48_spill] sm:$0xff] }
 0x1d7   : > { %15524 = vst [vmem:[#allocation69_spill] sm:$0xff] %v7633_v4  ;;  %v737_v53 = vmul.f32 %v7463_v60, %v724_v48  ;;  %v749_v22 = vadd.f32 %v741_v54, %v677_v12  ;;  %v978_v37 = vsel %vm976_vm5, %v7337_v1, %v7348_v3  ;;  %v977_v38 = vsel %vm976_vm5, %v7267_v18, %v7350_v56  ;;  %v6339_v54 = vld [vmem:[%s15510_s1 + $0xe] sm:$0x3] }
 0x1d8   : > { %v7609_v7 = vpop.permute.xlu1 %1134  ;;  %v981_v21 = vsel %vm976_vm5, %v7350_v56, %v7267_v18  ;;  %v982_v12 = vsel %vm976_vm5, %v7348_v3, %v7337_v1  ;;  %v818_v14 = vadd.f32 %v810_v8, %v748_v49  ;;  %v1001_v50 = vmul.f32 %v7359_v34, %v977_v38  ;;  %v15526_v56 = vld [vmem:[#allocation35_spill] sm:$0xff]  ;;  %v15527_v18 = vld [vmem:[#allocation36_spill] sm:$0xff]  ;;  %v15528_v3 = vld [vmem:[#allocation49_spill] sm:$0xff]  ;;  %6350 = vmatmul.msk.f32.gmra.mxu2 %vm571_vm0, %v1341_v44 }
 0x1d9   : > { %v7618_v0 = vpop.permute.xlu2 %1178  ;;  %v1002_v23 = vmul.f32 %v7359_v34, %v981_v21  ;;  %v819_v28 = vadd.f32 %v811_v46, %v749_v22  ;;  %v910_v62 = vsel %vm906_vm4, %v15525_v47, %v7356_v33  ;;  %v1047_v26 = vsel %vm1046_vm6, %v15527_v18, %v15526_v56  ;;  %v6338_v34 = vld [vmem:[%s15510_s1 + $0xc] sm:$0x3]  ;;  %6354 = vmatmul.msk.f32.gmra.mxu3 %vm571_vm0, %v1341_v44  ;;  %v6340_v49 = vld [vmem:[%s15510_s1 + $0x10] sm:$0x3]  ;;  %s15601_s1 = smov 127  }
 0x1da   : > { %v1051_v1 = vsel %vm1046_vm6, %v15526_v56, %v15527_v18  ;;  %v1071_v29 = vmul.f32 %v15528_v3, %v1047_v26  ;;  %v744_v35 = vadd.f32 %v736_v51, %v7540_v16  ;;  %v745_v30 = vadd.f32 %v737_v53, %v7544_v31  ;;  %v15533_v53 = vld [vmem:[#allocation56_spill] sm:$0xff] }
 0x1db   : > { %v1072_v41 = vmul.f32 %v15528_v3, %v1051_v1  ;;  %v1117_v25 = vsel %vm1116_vm7, %v15530_v40, %v15529_v11  ;;  %v1121_v48 = vsel %vm1116_vm7, %v15529_v11, %v15530_v40  ;;  %v1014_v16 = vmul.f32 %v7631_v5, %v1001_v50 }
 0x1dc   : > { %v1015_v31 = vmul.f32 %v7633_v4, %v1002_v23  ;;  %v914_v58 = vsel %vm906_vm4, %v7356_v33, %v15525_v47  ;;  %v7723_v8 = vperm.slane %v6338_v34, 0  ;;  %v7725_v46 = vperm.slane %v6338_v34, 1 }
 0x1dd   : > { %v1141_v22 = vmul.f32 %v15533_v53, %v1117_v25  ;;  %v1142_v38 = vmul.f32 %v15533_v53, %v1121_v48  ;;  %v814_v21 = vadd.f32 %v7598_v45, %v744_v35  ;;  %v815_v50 = vadd.f32 %v807_v52, %v745_v30  ;;  %v15539_v25 = vld [vmem:[#allocation37_spill] sm:$0xff] }
 0x1de   : > { %15531 = vst [vmem:[#allocation29_spill] sm:$0xff] %v7723_v8  ;;  %v1084_v23 = vmul.f32 %v7723_v8, %v1071_v29  ;;  %v1085_v47 = vmul.f32 %v7725_v46, %v1072_v41  ;;  %v7741_v56 = vperm.slane %v6339_v54, 0  ;;  %v7743_v18 = vperm.slane %v6339_v54, 1  ;;  %v15538_v29 = vld [vmem:[#allocation17_spill] sm:$0xff]  ;;  %v15540_v54 = vld [vmem:[#allocation46_spill] sm:$0xff] }
 0x1df   : > { %15532 = vst [vmem:[#allocation35_spill] sm:$0xff] %v7725_v46  ;;  %v7747_v1 = vperm.slane %v6340_v49, 0  ;;  %v1022_v52 = vadd.f32 %v1014_v16, %v7550_v63  ;;  %v1023_v3 = vadd.f32 %v1015_v31, %v7557_v27  ;;  %v937_v35 = vmul.f32 %v15538_v29, %v914_v58  ;;  %v15541_v63 = vld [vmem:[#allocation32_spill] sm:$0xff] }
 0x1e0   : > { %v1171_v43 = vpop.permute.xlu1 %1170  ;;  %15534 = vst [vmem:[#allocation36_spill] sm:$0xff] %v7741_v56  ;;  %v938_v30 = vmul.f32 %v15538_v29, %v910_v62  ;;  %v1154_v44 = vmul.f32 %v7741_v56, %v1141_v22  ;;  %v1155_v41 = vmul.f32 %v7743_v18, %v1142_v38  ;;  %v884_v11 = vadd.f32 %v7638_v55, %v814_v21  ;;  %v15542_v21 = vld [vmem:[#allocation45_spill] sm:$0xff] }
 0x1e1   : > { %v7678_v24 = vpop.permute.xlu2 %1184  ;;  %v1187_v51 = vsel %vm1186_vm8, %v1171_v43, %v7618_v0  ;;  %v1191_v33 = vsel %vm1186_vm8, %v7618_v0, %v1171_v43  ;;  %15535 = vst [vmem:[#allocation49_spill] sm:$0xff] %v7743_v18  ;;  %v7749_v0 = vperm.slane %v6340_v49, 1  ;;  %v885_v40 = vadd.f32 %v7641_v61, %v815_v50 }
 0x1e2   : > { %15536 = vst [vmem:[#allocation62_spill] sm:$0xff] %v7747_v1  ;;  %v1211_v43 = vmul.f32 %v7520_v13, %v1187_v51  ;;  %v1212_v34 = vmul.f32 %v7520_v13, %v1191_v33  ;;  %v1003_v13 = vmul.f32 %v15539_v25, %v978_v37  ;;  %v1004_v48 = vmul.f32 %v15539_v25, %v982_v12  ;;  %v1342_v37 = vld [vmem:[%s15463_s2 + $0x30] sm:$0xff]  ;;  %v1343_v25 = vld [vmem:[%s15463_s2 + $0x38] sm:$0xff] }
 0x1e3   : > { %15537 = vst [vmem:[#allocation48_spill] sm:$0xff] %v7749_v0  ;;  %v1048_v27 = vsel %vm1046_vm6, %v15541_v63, %v15540_v54  ;;  %v1052_v62 = vsel %vm1046_vm6, %v15540_v54, %v15541_v63  ;;  %v1092_v16 = vadd.f32 %v1084_v23, %v1022_v52  ;;  %v1093_v31 = vadd.f32 %v1085_v47, %v1023_v3  ;;  %v15545_v52 = vld [vmem:[#allocation53_spill] sm:$0xff]  ;;  %v15546_v3 = vld [vmem:[#allocation55_spill] sm:$0xff] }
 0x1e4   : > { %v1224_v55 = vmul.f32 %v7747_v1, %v1211_v43  ;;  %v1225_v61 = vmul.f32 %v7749_v0, %v1212_v34  ;;  %v888_v12 = vadd.f32 %v7651_v36, %v818_v14  ;;  %v889_v58 = vadd.f32 %v7654_v39, %v819_v28  ;;  %6351 = vmatmul.msk.f32.gmra.mxu2 %vm571_vm0, %v1342_v37  ;;  %v15543_v43 = vld [vmem:[#allocation30_spill] sm:$0xff] }
 0x1e5   : > { %6355 = vmatmul.msk.f32.gmra.mxu3 %vm571_vm0, %v1342_v37  ;;  %v1163_v49 = vadd.f32 %v1155_v41, %v1093_v31  ;;  %v1162_v51 = vadd.f32 %v1154_v44, %v1092_v16  ;;  %v954_v33 = vadd.f32 %v7644_v17, %v884_v11  ;;  %v955_v53 = vadd.f32 %v7648_v42, %v885_v40  ;;  %v15544_v17 = vld [vmem:[#allocation31_spill] sm:$0xff]  ;;  %v15551_v16 = vld [vmem:[#allocation50_spill] sm:$0xff] }
 0x1e6   : > { %v950_v22 = vmul.f32 %v7513_v6, %v937_v35  ;;  %v951_v38 = vmul.f32 %v7517_v9, %v938_v30  ;;  %v1073_v50 = vmul.f32 %v15542_v21, %v1048_v27  ;;  %v1074_v36 = vmul.f32 %v15542_v21, %v1052_v62 }
 0x1e7   : > { %v1016_v39 = vmul.f32 %v7631_v5, %v1003_v13  ;;  %v1017_v28 = vmul.f32 %v7633_v4, %v1004_v48  ;;  %v1233_v23 = vadd.f32 %v1225_v61, %v1163_v49  ;;  %v1232_v47 = vadd.f32 %v1224_v55, %v1162_v51  ;;  %v15549_v13 = vld [vmem:[#allocation38_spill] sm:$0xff]  ;;  %v15550_v48 = vld [vmem:[#allocation39_spill] sm:$0xff]  ;;  %v15552_v49 = vld [vmem:[#allocation40_spill] sm:$0xff] }
 0x1e8   : > { %v7745_v26 = vpop.permute.xlu1 %1176  ;;  %v980_v42 = vsel %vm976_vm5, %v15544_v17, %v15543_v43  ;;  %v984_v34 = vsel %vm976_vm5, %v15543_v43, %v15544_v17  ;;  %v1118_v29 = vsel %vm1116_vm7, %v15546_v3, %v15545_v52  ;;  %v1122_v35 = vsel %vm1116_vm7, %v15545_v52, %v15546_v3  ;;  %v15555_v17 = vld [vmem:[#allocation58_spill] sm:$0xff] }
 0x1e9   : > { %v7753_v45 = vpop.permute.xlu2 %1204  ;;  %v1024_v11 = vadd.f32 %v1016_v39, %v954_v33  ;;  %v1025_v40 = vadd.f32 %v1017_v28, %v955_v53  ;;  %v1050_v54 = vsel %vm1046_vm6, %v15550_v48, %v15549_v13  ;;  %v1054_v63 = vsel %vm1046_vm6, %v15549_v13, %v15550_v48  ;;  %v15553_v53 = vld [vmem:[#allocation44_spill] sm:$0xff] }
 0x1ea   : > { %v1086_v27 = vmul.f32 %v7723_v8, %v1073_v50  ;;  %v1087_v62 = vmul.f32 %v7725_v46, %v1074_v36  ;;  %v1143_v31 = vmul.f32 %v15551_v16, %v1118_v29  ;;  %v1144_v55 = vmul.f32 %v15551_v16, %v1122_v35 }
 0x1eb   : > { %v1007_v51 = vmul.f32 %v15552_v49, %v980_v42  ;;  %v1008_v33 = vmul.f32 %v15552_v49, %v984_v34  ;;  %v1120_v21 = vsel %vm1116_vm7, %v15553_v53, %v7524_v10  ;;  %v1124_v50 = vsel %vm1116_vm7, %v7524_v10, %v15553_v53 }
 0x1ec   : > { %6352 = vmatmul.msk.f32.gmra.mxu2 %vm571_vm0, %v1343_v25  ;;  %v1094_v39 = vadd.f32 %v1086_v27, %v1024_v11  ;;  %v1095_v28 = vadd.f32 %v1087_v62, %v1025_v40  ;;  %v1188_v42 = vsel %vm1186_vm8, %v7532_v32, %v15555_v17  ;;  %v1192_v34 = vsel %vm1186_vm8, %v15555_v17, %v7532_v32  ;;  %v15556_v40 = vld [vmem:[#allocation63_spill] sm:$0xff] }
 0x1ed   : > { %6356 = vmatmul.msk.f32.gmra.mxu3 %vm571_vm0, %v1343_v25  ;;  %v1156_v10 = vmul.f32 %v7741_v56, %v1143_v31  ;;  %v1157_v3 = vmul.f32 %v7743_v18, %v1144_v55  ;;  %v1021_v11 = vmul.f32 %v7633_v4, %v1008_v33  ;;  %v1147_v25 = vmul.f32 %v15556_v40, %v1120_v21  ;;  %v1248_v55 = vpop.permute.xlu0 %1247 }
 0x1ee   : > { %v1148_v13 = vmul.f32 %v15556_v40, %v1124_v50  ;;  %v958_v27 = vadd.f32 %v950_v22, %v888_v12  ;;  %v959_v62 = vadd.f32 %v951_v38, %v889_v58  ;;  %v1190_v58 = vsel %vm1186_vm8, %v7745_v26, %v7678_v24  ;;  %v6735_v40 = vld [vmem:[%s14749_s4 + $0x10] sm:$0xff] }
 0x1ef   : > { %v1160_v33 = vmul.f32 %v7741_v56, %v1147_v25  ;;  %v1194_v22 = vsel %vm1186_vm8, %v7678_v24, %v7745_v26  ;;  %v648_v25 = vld [vmem:[%s15481_s5 + $0x10] sm:$0xff] }
 0x1f0   : > { %v7788_v14 = vpop.permute.xlu1 %1182  ;;  %v1161_v53 = vmul.f32 %v7743_v18, %v1148_v13  ;;  %v1344_v13 = vld [vmem:[%s15461_s3 + $0x20] sm:$0xff] }
 0x1f2   : > { %v1243_v30 = vpop.permute.xlu2 %1242 }
 0x1f3   : > { %v7808_v44 = vadd.f32 %v1243_v30, %v1232_v47  ;;  %v7810_v41 = vadd.f32 %v1243_v30, %v1233_v23  ;;  %v15554_v23 = vld [vmem:[#allocation52_spill] sm:$0xff]  ;;  %v1020_v30 = vmul.f32 %v7631_v5, %v1007_v51  ;;  %v1029_v51 = vadd.f32 %v1021_v11, %v959_v62 }
 0x1f4   : > { %v1077_v47 = vmul.f32 %v15554_v23, %v1050_v54  ;;  %v1078_v43 = vmul.f32 %v15554_v23, %v1054_v63  ;;  %v1164_v54 = vadd.f32 %v1156_v10, %v1094_v39  ;;  %v1165_v63 = vadd.f32 %v1157_v3, %v1095_v28 }
 0x1f5   : > { %15547 = vst [vmem:[#allocation56_spill] sm:$0xff] %v7808_v44  ;;  %v1268_v61 = vmul.f32 %v7808_v44, %v7808_v44  ;;  %v1269_v37 = vmul.f32 %v7810_v41, %v7810_v41  ;;  %v1028_v49 = vadd.f32 %v1020_v30, %v958_v27  ;;  %v7917_v27 = vld [vmem:[%s14749_s4 + $0x38] sm:$0xff]  ;;  %v15562_v62 = vmov 0  }
 0x1f6   : > { %15548 = vst [vmem:[#allocation17_spill] sm:$0xff] %v7810_v41  ;;  %v1090_v16 = vmul.f32 %v7723_v8, %v1077_v47  ;;  %v1091_v31 = vmul.f32 %v7725_v46, %v1078_v43 }
 0x1f7   : > { %v1276_v36 = vadd.f32 %v1269_v37, %v1268_v61 }
 0x1f8   : > { %v1201_v52 = vpop.permute.xlu1 %1200  ;;  %v1099_v12 = vadd.f32 %v1091_v31, %v1029_v51 }
 0x1f9   : > { %v1213_v29 = vmul.f32 %v1201_v52, %v1188_v42  ;;  %v1214_v35 = vmul.f32 %v1201_v52, %v1192_v34  ;;  %1277 = vadd.xlane.f32.xlu1 %v1276_v36  ;;  %v1098_v36 = vadd.f32 %v1090_v16, %v1028_v49  ;;  %v7924_v16 = vld [vmem:[%s14749_s4 + $0x30] sm:$0xff] }
 0x1fa   : > { %v1169_v17 = vadd.f32 %v1161_v53, %v1099_v12  ;;  %v1258_v24 = vpop.permute.xlu2 %1257  ;;  %v15567_v53 = vld [vmem:[#allocation21_spill] sm:$0xff] }
 0x1fb   : > { %v1226_v48 = vmul.f32 %v7747_v1, %v1213_v29  ;;  %v1227_v32 = vmul.f32 %v7749_v0, %v1214_v35  ;;  %v1168_v43 = vadd.f32 %v1160_v33, %v1098_v36  ;;  %v15566_v33 = vld [vmem:[#allocation20_spill] sm:$0xff] }
 0x1fc   : > { %v699_v36 = vsel %vm696_vm1, %v15567_v53, %v15566_v33  ;;  %v703_v12 = vsel %vm696_vm1, %v15566_v33, %v15567_v53  ;;  %v15579_v53 = vld [vmem:[#allocation19_spill] sm:$0xff] }
 0x1fd   : > { %v1234_v61 = vadd.f32 %v1226_v48, %v1164_v54  ;;  %v1235_v37 = vadd.f32 %v1227_v32, %v1165_v63  ;;  %v1345_v48 = vld [vmem:[%s15461_s3 + $0x28] sm:$0xff]  ;;  %v1347_v32 = vld [vmem:[%s15461_s3 + $0x38] sm:$0xff]  ;;  %v15561_v63 = vmov 4  }
 0x1fe   : > { %v7909_v54 = vld [vmem:[%s14749_s4 + $0x28] sm:$0xff] }
 0x1ff   : > { %v7865_v21 = vadd.f32 %v1248_v55, %v1234_v61  ;;  %v7867_v50 = vadd.f32 %v1248_v55, %v1235_v37  ;;  %v15564_v61 = vld [vmem:[#allocation22_spill] sm:$0xff] }
 0x200   : > { %v1209_v38 = vpop.permute.xlu1 %1208  ;;  %v15565_v37 = vld [vmem:[#allocation26_spill] sm:$0xff] }
 0x201   : > { %15557 = vst [vmem:[#allocation37_spill] sm:$0xff] %v7865_v21  ;;  %v1217_v39 = vmul.f32 %v1209_v38, %v1190_v58  ;;  %v1218_v28 = vmul.f32 %v1209_v38, %v1194_v22  ;;  %v1270_v23 = vmul.f32 %v7865_v21, %v7865_v21  ;;  %v1271_v47 = vmul.f32 %v7867_v50, %v7867_v50  ;;  %v15568_v58 = vld [vmem:[#allocation27_spill] sm:$0xff] }
 0x202   : > { %15558 = vst [vmem:[#allocation46_spill] sm:$0xff] %v7867_v50  ;;  %v773_v49 = vsel %vm766_vm2, %v15565_v37, %v15564_v61  ;;  %v769_v51 = vsel %vm766_vm2, %v15564_v61, %v15565_v37  ;;  %v15569_v22 = vld [vmem:[#allocation23_spill] sm:$0xff] }
 0x203   : > { %v1230_v42 = vmul.f32 %v7747_v1, %v1217_v39  ;;  %v1231_v34 = vmul.f32 %v7749_v0, %v1218_v28  ;;  %v1279_v52 = vadd.f32 %v1271_v47, %v1270_v23  ;;  %v843_v38 = vsel %vm836_vm3, %v15569_v22, %v15568_v58  ;;  %v15570_v39 = vld [vmem:[#allocation24_spill] sm:$0xff]  ;;  %v15571_v28 = vld [vmem:[#allocation25_spill] sm:$0xff] }
 0x204   : > { %v909_v23 = vsel %vm906_vm4, %v15571_v28, %v15570_v39  ;;  %v913_v47 = vsel %vm906_vm4, %v15570_v39, %v15571_v28 }
 0x205   : > { %1280 = vadd.xlane.f32.xlu2 %v1279_v52  ;;  %v1238_v10 = vadd.f32 %v1230_v42, %v1168_v43  ;;  %v1239_v3 = vadd.f32 %v1231_v34, %v1169_v17  ;;  %v15572_v43 = vld [vmem:[#allocation15_spill] sm:$0xff]  ;;  %v839_v42 = vsel %vm836_vm3, %v15568_v58, %v15569_v22  ;;  %v15580_v22 = vld [vmem:[#allocation33_spill] sm:$0xff] }
 0x206   : > { %v795_v17 = vmul.f32 %v15572_v43, %v773_v49  ;;  %v796_v52 = vmul.f32 %v15572_v43, %v769_v51  ;;  %v15581_v43 = vld [vmem:[#allocation42_spill] sm:$0xff] }
 0x207   : > { %v7883_v26 = vadd.f32 %v1258_v24, %v1238_v10  ;;  %v7885_v29 = vadd.f32 %v1258_v24, %v1239_v3  ;;  %v15573_v10 = vld [vmem:[#allocation34_spill] sm:$0xff]  ;;  %v15574_v3 = vld [vmem:[#allocation28_spill] sm:$0xff] }
 0x208   : > { %v979_v24 = vsel %vm976_vm5, %v15574_v3, %v15573_v10  ;;  %v983_v49 = vsel %vm976_vm5, %v15573_v10, %v15574_v3  ;;  %v808_v58 = vmul.f32 %v7467_v57, %v795_v17  ;;  %v809_v28 = vmul.f32 %v7471_v2, %v796_v52 }
 0x209   : > { %15559 = vst [vmem:[#allocation32_spill] sm:$0xff] %v7883_v26  ;;  %v1274_v35 = vmul.f32 %v7883_v26, %v7883_v26  ;;  %v1275_v30 = vmul.f32 %v7885_v29, %v7885_v29  ;;  %v1005_v39 = vmul.f32 %v15580_v22, %v979_v24 }
 0x20a   : > { %15560 = vst [vmem:[#allocation45_spill] sm:$0xff] %v7885_v29 }
 0x20b   : > { %v1285_v11 = vadd.f32 %v1275_v30, %v1274_v35 }
 0x20d   : > { %1286 = vadd.xlane.f32.xlu2 %v1285_v11  ;;  %v15575_v11 = vld [vmem:[#allocation14_spill] sm:$0xff] }
 0x212   : > { %714 = vperm.xlu1 %6523, %v6735_v40   ;;  %v15576_v40 = vld [vmem:[#allocation16_spill] sm:$0xff] }
 0x21a   : > { %1252 = vperm.xlu1 %6523, %v648_v25   ;;  %v674_v25 = vmul.f32 %v15576_v40, %v15575_v11 }
 0x222   : > { %1350 = vperm.xlu1 %6523, %v1344_v13   ;;  %v15577_v13 = vld [vmem:[#allocation13_spill] sm:$0xff] }
 0x225   : > { %1355 = vperm.xlu2 %6522, %v1345_v48   ;;  %v675_v48 = vmul.f32 %v15576_v40, %v15577_v13  ;;  %v1018_v40 = vmul.f32 %v7631_v5, %v1005_v39 }
 0x22a   : > { %1365 = vperm.xlu1 %6523, %v1347_v32   ;;  %v15578_v32 = vld [vmem:[#allocation18_spill] sm:$0xff] }
 0x22b   : > { %v865_v61 = vmul.f32 %v15578_v32, %v843_v38  ;;  %v866_v37 = vmul.f32 %v15578_v32, %v839_v42  ;;  %v15582_v42 = vld [vmem:[#allocation43_spill] sm:$0xff] }
 0x22d   : > { %6525 = vset.pattern.permute.xlu2 %v15561_v63  ;;  %v879_v17 = vmul.f32 %v7509_v59, %v866_v37 }
 0x22e   : > { %1453 = vperm.xlu2 %6525, %v7909_v54  }
 0x232   : > { %6526 = vset.pattern.permute.xlu1 %v15561_v63 }
 0x233   : > { %1458 = vperm.xlu1 %6526, %v7924_v16  }
 0x236   : > { %1463 = vperm.xlu2 %6525, %v7917_v27  }
 0x23b   : > { %6528 = vset.pattern.permute.xlu1 %v15562_v62 }
 0x23e   : > { %6527 = vset.pattern.permute.xlu2 %v15562_v62 }
 0x24e   : > { %v7930_v55 = vpop.f32.mrf.mxu2 }
 0x25b   : > { %v7986_v38 = vpop.f32.mrf.mxu2 }
 0x26c   : > { %v7928_v31 = vpop.xlane.xlu1 %1277 }
 0x26d   : > { %15563 = vst [vmem:[#allocation30_spill] sm:$0xff] %v7928_v31 }
 0x284   : > { %v715_v34 = vpop.permute.xlu1 %714 }
 0x285   : > { %v725_v35 = vmul.f32 %v715_v34, %v703_v12  ;;  %v726_v30 = vmul.f32 %v715_v34, %v699_v36  ;;  %v935_v36 = vmul.f32 %v15579_v53, %v913_v47  ;;  %v936_v12 = vmul.f32 %v15579_v53, %v909_v23  ;;  %v15585_v53 = vld [vmem:[#allocation47_spill] sm:$0xff] }
 0x286   : > { %v1049_v34 = vsel %vm1046_vm6, %v15582_v42, %v15581_v43  ;;  %v1053_v23 = vsel %vm1046_vm6, %v15581_v43, %v15582_v42  ;;  %v878_v47 = vmul.f32 %v7507_v20, %v865_v61 }
 0x287   : > { %v738_v51 = vmul.f32 %v7454_v15, %v725_v35  ;;  %v739_v33 = vmul.f32 %v7463_v60, %v726_v30  ;;  %v1006_v35 = vmul.f32 %v15580_v22, %v983_v49  ;;  %v948_v30 = vmul.f32 %v7513_v6, %v935_v36  ;;  %v15584_v49 = vld [vmem:[#allocation54_spill] sm:$0xff]  ;;  %v15586_v36 = vld [vmem:[#allocation51_spill] sm:$0xff] }
 0x288   : > { %v949_v11 = vmul.f32 %v7517_v9, %v936_v12  ;;  %v1189_v61 = vsel %vm1186_vm8, %v15584_v49, %v7788_v14  ;;  %v1119_v12 = vsel %vm1116_vm7, %v15586_v36, %v15585_v53  ;;  %v1193_v22 = vsel %vm1186_vm8, %v7788_v14, %v15584_v49 }
 0x289   : > { %v746_v10 = vadd.f32 %v738_v51, %v674_v25  ;;  %v747_v3 = vadd.f32 %v739_v33, %v675_v48  ;;  %v15583_v25 = vld [vmem:[#allocation41_spill] sm:$0xff]  ;;  %v1019_v33 = vmul.f32 %v7633_v4, %v1006_v35  ;;  %v1145_v39 = vmul.f32 %v7609_v7, %v1119_v12 }
 0x28a   : > { %v1075_v13 = vmul.f32 %v15583_v25, %v1049_v34  ;;  %v1076_v32 = vmul.f32 %v15583_v25, %v1053_v23  ;;  %v1216_v23 = vmul.f32 %v7753_v45, %v1193_v22  ;;  %v1426_v22 = vpop.f32.mrf.mxu3 }
 0x28b   : > { %v816_v24 = vadd.f32 %v808_v58, %v746_v10  ;;  %v817_v52 = vadd.f32 %v809_v28, %v747_v3  ;;  %v1123_v58 = vsel %vm1116_vm7, %v15585_v53, %v15586_v36  ;;  %v1215_v10 = vmul.f32 %v7753_v45, %v1189_v61  ;;  %v1403_v3 = vpop.f32.mrf.mxu2 }
 0x28c   : > { %v1253_v48 = vpop.permute.xlu1 %1252  ;;  %v1146_v28 = vmul.f32 %v7609_v7, %v1123_v58  ;;  %v1088_v34 = vmul.f32 %v7723_v8, %v1075_v13  ;;  %v1089_v35 = vmul.f32 %v7725_v46, %v1076_v32  ;;  %v8049_v58 = vpop.xlane.xlu2 %1280 }
 0x28d   : > { %v886_v51 = vadd.f32 %v878_v47, %v816_v24  ;;  %v887_v37 = vadd.f32 %v879_v17, %v817_v52  ;;  %v1158_v24 = vmul.f32 %v7741_v56, %v1145_v39  ;;  %v1228_v7 = vmul.f32 %v7747_v1, %v1215_v10  ;;  %15591 = vst [vmem:[#allocation38_spill] sm:$0xff] %v8049_v58 }
 0x28e   : > { %v1159_v14 = vmul.f32 %v7743_v18, %v1146_v28  ;;  %v8059_v28 = vld [vmem:[%s14749_s4 + $0x20] sm:$0xff] }
 0x28f   : > { %v956_v43 = vadd.f32 %v948_v30, %v886_v51  ;;  %v957_v42 = vadd.f32 %v949_v11, %v887_v37  ;;  %v1229_v11 = vmul.f32 %v7749_v0, %v1216_v23 }
 0x291   : > { %v1026_v47 = vadd.f32 %v1018_v40, %v956_v43  ;;  %v1027_v17 = vadd.f32 %v1019_v33, %v957_v42 }
 0x292   : > { %v1429_v43 = vpop.f32.mrf.mxu3 }
 0x293   : > { %v1096_v52 = vadd.f32 %v1088_v34, %v1026_v47  ;;  %v1097_v25 = vadd.f32 %v1089_v35, %v1027_v17  ;;  %v1406_v37 = vpop.f32.mrf.mxu2  ;;  %v15593_v35 = vmov 1  }
 0x294   : > { %v1351_v30 = vpop.permute.xlu1 %1350  ;;  %v8054_v39 = vpop.xlane.xlu2 %1286 }
 0x295   : > { %v1166_v13 = vadd.f32 %v1158_v24, %v1096_v52  ;;  %v1167_v49 = vadd.f32 %v1159_v14, %v1097_v25  ;;  %v8033_v61 = vadd.f32 %v7930_v55, %v1351_v30  ;;  %15592 = vst [vmem:[#allocation39_spill] sm:$0xff] %v8054_v39  ;;  %v8069_v23 = vadd.f32 %v1426_v22, %v1351_v30 }
 0x297   : > { %v1236_v32 = vadd.f32 %v1228_v7, %v1166_v13  ;;  %v1237_v45 = vadd.f32 %v1229_v11, %v1167_v49  ;;  %1474 = vrot.lane.b32.xlu1 %v8033_v61, %s15587_s30  ;;  %v15600_v7 = vmov 3   ;;  %v15602_v11 = vmov 5  }
 0x299   : > { %v8037_v40 = vadd.f32 %v1253_v48, %v1236_v32  ;;  %v8039_v51 = vadd.f32 %v1253_v48, %v1237_v45  ;;  %v1346_v48 = vld [vmem:[%s15461_s3 + $0x30] sm:$0xff] }
 0x29a   : > { %v1432_v10 = vpop.f32.mrf.mxu3 }
 0x29b   : > { %15588 = vst [vmem:[#allocation31_spill] sm:$0xff] %v8037_v40  ;;  %v1272_v33 = vmul.f32 %v8037_v40, %v8037_v40  ;;  %v1273_v53 = vmul.f32 %v8039_v51, %v8039_v51 }
 0x29c   : > { %15589 = vst [vmem:[#allocation53_spill] sm:$0xff] %v8039_v51  ;;  %v1366_v36 = vpop.permute.xlu1 %1365  ;;  %v1356_v42 = vpop.permute.xlu2 %1355 }
 0x29d   : > { %v8045_v12 = vadd.f32 %v1406_v37, %v1366_v36  ;;  %v1282_v55 = vadd.f32 %v1273_v53, %v1272_v33  ;;  %v8064_v34 = vadd.f32 %v7986_v38, %v1356_v42  ;;  %v8091_v25 = vadd.f32 %v1429_v43, %v1356_v42 }
 0x29f   : > { %15590 = vst [vmem:[#allocation55_spill] sm:$0xff] %v8045_v12  ;;  %1283 = vadd.xlane.f32.xlu0 %v1282_v55  ;;  %1480 = vrot.lane.b32.xlu1 %v8045_v12, %s15587_s30  ;;  %v15606_v55 = vmov 6  }
 0x2a2   : > { %v1435_v47 = vpop.f32.mrf.mxu3 }
 0x2a3   : > { %v8073_v17 = vadd.f32 %v1435_v47, %v1366_v36 }
 0x2a4   : > { %v8147_v13 = vpop.permute.xlu2 %1453 }
 0x2a5   : > { %15594 = vst [vmem:[#allocation50_spill] sm:$0xff] %v8073_v17  ;;  %v8160_v37 = vpop.permute.xlu1 %1458 }
 0x2ac   : > { %v8156_v32 = vpop.permute.xlu2 %1463 }
 0x2ad   : > { %15603 = vst [vmem:[#allocation44_spill] sm:$0xff] %v8156_v32 }
 0x2b3   : > { %1360 = vperm.xlu0 %6519, %v1346_v48  }
 0x2bb   : > { %6524 = vset.pattern.permute.xlu0 %v15561_v63 }
 0x2bc   : > { %1448 = vperm.xlu0 %6524, %v8059_v28  }
 0x2c4   : > { %1476 = vrot.lane.b32.xlu0 %v8064_v34, %s15587_s30 }
 0x2c5   : > { %6530 = vset.pattern.permute.xlu0 %v15593_v35 }
 0x2cc   : > { %1482 = vrot.lane.b32.xlu0 %v8069_v23, %s15587_s30 }
 0x2d4   : > { %1488 = vrot.lane.b32.xlu0 %v8073_v17, %s15587_s30 }
 0x2dc   : > { %1544 = vrot.lane.b32.xlu0 %v8045_v12, %s15595_s18 }
 0x309   : > { %v8174_v36 = vpop.permute.xlu1 %1474 }
 0x311   : > { %v8192_v42 = vpop.permute.xlu1 %1480 }
 0x312   : > { %v8079_v38 = vpop.xlane.xlu0 %1283  ;;  %15608 = vst [vmem:[#allocation63_spill] sm:$0xff] %v8192_v42 }
 0x313   : > { %15596 = vst [vmem:[#allocation40_spill] sm:$0xff] %v8079_v38 }
 0x325   : > { %v1361_v24 = vpop.permute.xlu0 %1360 }
 0x326   : > { %v8081_v14 = vadd.f32 %v1403_v3, %v1361_v24  ;;  %v8083_v52 = vadd.f32 %v1432_v10, %v1361_v24  ;;  %v15598_v3 = vmov 2  }
 0x328   : > { %1478 = vrot.lane.b32.xlu2 %v8081_v14, %s15587_s30  ;;  %1550 = vrot.lane.b32.xlu0 %v8083_v52, %s15595_s18 }
 0x329   : > { %1486 = vrot.lane.b32.xlu1 %v8083_v52, %s15587_s30 }
 0x32e   : > { %v8138_v30 = vpop.permute.xlu0 %1448 }
 0x330   : > { %1484 = vrot.lane.b32.xlu2 %v8091_v25, %s15587_s30  ;;  %1567 = vperm.xlu0 %6530, %v7909_v54  }
 0x331   : > { %1503 = vperm.xlu1 %6528, %v7909_v54  }
 0x336   : > { %v8149_v49 = vpop.permute.xlu0 %1476 }
 0x338   : > { %1499 = vperm.xlu2 %6527, %v8059_v28   ;;  %1606 = vrot.lane.b32.xlu0 %v8081_v14, %s15597_s20 }
 0x339   : > { %1538 = vrot.lane.b32.xlu1 %v8033_v61, %s15595_s18  ;;  %6532 = vset.pattern.permute.xlu0 %v15598_v3 }
 0x33a   : > { %6529 = vset.pattern.permute.xlu1 %v15593_v35 }
 0x33e   : > { %v8158_v45 = vpop.permute.xlu0 %1482 }
 0x340   : > { %1511 = vperm.xlu2 %6527, %v7917_v27   ;;  %1612 = vrot.lane.b32.xlu0 %v8091_v25, %s15597_s20 }
 0x341   : > { %1542 = vrot.lane.b32.xlu1 %v8081_v14, %s15595_s18 }
 0x346   : > { %v8169_v53 = vpop.permute.xlu0 %1488 }
 0x347   : > { %15604 = vst [vmem:[#allocation52_spill] sm:$0xff] %v8169_v53 }
 0x348   : > { %1540 = vrot.lane.b32.xlu2 %v8064_v34, %s15595_s18  ;;  %1627 = vperm.xlu0 %6532, %v8059_v28  }
 0x349   : > { %1548 = vrot.lane.b32.xlu1 %v8091_v25, %s15595_s18  ;;  %6531 = vset.pattern.permute.xlu2 %v15593_v35 }
 0x34e   : > { %v8188_v22 = vpop.permute.xlu0 %1544 }
 0x34f   : > { %15607 = vst [vmem:[#allocation58_spill] sm:$0xff] %v8188_v22 }
 0x350   : > { %1546 = vrot.lane.b32.xlu2 %v8069_v23, %s15595_s18  ;;  %1668 = vrot.lane.b32.xlu0 %v8064_v34, %s15599_s23 }
 0x351   : > { %1563 = vperm.xlu1 %6529, %v8059_v28   ;;  %6537 = vset.pattern.permute.xlu0 %v15600_v7 }
 0x358   : > { %1552 = vrot.lane.b32.xlu2 %v8073_v17, %s15595_s18  ;;  %1674 = vrot.lane.b32.xlu0 %v8069_v23, %s15599_s23 }
 0x359   : > { %1575 = vperm.xlu1 %6529, %v7917_v27  }
 0x360   : > { %1571 = vperm.xlu2 %6531, %v7924_v16   ;;  %1680 = vrot.lane.b32.xlu0 %v8073_v17, %s15599_s23 }
 0x361   : > { %1604 = vrot.lane.b32.xlu1 %v8064_v34, %s15597_s20 }
 0x362   : > { %6534 = vset.pattern.permute.xlu1 %v15598_v3 }
 0x368   : > { %1602 = vrot.lane.b32.xlu2 %v8033_v61, %s15597_s20  ;;  %1699 = vperm.xlu0 %6537, %v7924_v16  }
 0x369   : > { %1610 = vrot.lane.b32.xlu1 %v8069_v23, %s15597_s20  ;;  %6533 = vset.pattern.permute.xlu2 %v15598_v3 }
 0x370   : > { %1608 = vrot.lane.b32.xlu2 %v8045_v12, %s15597_s20  ;;  %1736 = vrot.lane.b32.xlu0 %v8045_v12, %s15601_s1 }
 0x371   : > { %1616 = vrot.lane.b32.xlu1 %v8073_v17, %s15597_s20  ;;  %6539 = vset.pattern.permute.xlu0 %v15602_v11 }
 0x378   : > { %1614 = vrot.lane.b32.xlu2 %v8083_v52, %s15597_s20  ;;  %1742 = vrot.lane.b32.xlu0 %v8083_v52, %s15601_s1 }
 0x379   : > { %1635 = vperm.xlu1 %6534, %v7924_v16  }
 0x380   : > { %1631 = vperm.xlu2 %6533, %v7909_v54   ;;  %1759 = vperm.xlu0 %6539, %v7909_v54  }
 0x381   : > { %1666 = vrot.lane.b32.xlu1 %v8033_v61, %s15599_s23 }
 0x382   : > { %v8166_v33 = vpop.permute.xlu2 %1478  ;;  %6536 = vset.pattern.permute.xlu1 %v15600_v7 }
 0x388   : > { %1639 = vperm.xlu2 %6533, %v7917_v27   ;;  %1798 = vrot.lane.b32.xlu0 %v8081_v14, %s15605_s27 }
 0x389   : > { %1672 = vrot.lane.b32.xlu1 %v8045_v12, %s15599_s23  ;;  %6541 = vset.pattern.permute.xlu0 %v15606_v55 }
 0x38a   : > { %v8179_v48 = vpop.permute.xlu2 %1484 }
 0x390   : > { %1670 = vrot.lane.b32.xlu2 %v8081_v14, %s15599_s23  ;;  %1804 = vrot.lane.b32.xlu0 %v8091_v25, %s15605_s27 }
 0x391   : > { %1678 = vrot.lane.b32.xlu1 %v8083_v52, %s15599_s23  ;;  %6535 = vset.pattern.permute.xlu2 %v15600_v7  ;;  %v15611_v7 = vmov 7  }
 0x392   : > { %v8190_v43 = vpop.permute.xlu2 %1499 }
 0x398   : > { %1676 = vrot.lane.b32.xlu2 %v8091_v25, %s15599_s23  ;;  %1819 = vperm.xlu0 %6541, %v8059_v28  }
 0x399   : > { %1695 = vperm.xlu1 %6536, %v7909_v54  }
 0x39a   : > { %v8198_v10 = vpop.permute.xlu2 %1511  ;;  %v8200_v47 = vpop.permute.xlu0 %1550 }
 0x39b   : > { %15609 = vst [vmem:[#allocation22_spill] sm:$0xff] %v8198_v10  ;;  %v8202_v24 = vpop.permute.xlu1 %1486 }
 0x3a0   : > { %1691 = vperm.xlu2 %6535, %v8059_v28   ;;  %1860 = vrot.lane.b32.xlu0 %v8064_v34, %s15610_s26 }
 0x3a1   : > { %1730 = vrot.lane.b32.xlu1 %v8033_v61, %s15601_s1  ;;  %6546 = vset.pattern.permute.xlu0 %v15611_v7 }
 0x3a2   : > { %v8210_v29 = vpop.permute.xlu2 %1540  ;;  %v8212_v26 = vpop.permute.xlu0 %1567  ;;  %6538 = vset.pattern.permute.xlu1 %v15602_v11 }
 0x3a3   : > { %v8215_v3 = vpop.permute.xlu1 %1503 }
 0x3a8   : > { %1703 = vperm.xlu2 %6535, %v7917_v27   ;;  %1866 = vrot.lane.b32.xlu0 %v8069_v23, %s15610_s26 }
 0x3a9   : > { %1734 = vrot.lane.b32.xlu1 %v8081_v14, %s15601_s1 }
 0x3aa   : > { %v8222_v51 = vpop.permute.xlu2 %1546  ;;  %v8224_v40 = vpop.permute.xlu0 %1606 }
 0x3ab   : > { %v8226_v50 = vpop.permute.xlu1 %1538 }
 0x3b0   : > { %1732 = vrot.lane.b32.xlu2 %v8064_v34, %s15601_s1  ;;  %1872 = vrot.lane.b32.xlu0 %v8073_v17, %s15610_s26 }
 0x3b1   : > { %1740 = vrot.lane.b32.xlu1 %v8091_v25, %s15601_s1  ;;  %6540 = vset.pattern.permute.xlu2 %v15602_v11  ;;  %v15614_v11 = vmov 8  }
 0x3b2   : > { %v8235_v21 = vpop.permute.xlu2 %1552  ;;  %v8237_v41 = vpop.permute.xlu0 %1612 }
 0x3b3   : > { %15612 = vst [vmem:[#allocation26_spill] sm:$0xff] %v8235_v21  ;;  %v8239_v44 = vpop.permute.xlu1 %1542 }
 0x3b8   : > { %1738 = vrot.lane.b32.xlu2 %v8069_v23, %s15601_s1  ;;  %1891 = vperm.xlu0 %6546, %v7924_v16  }
 0x3b9   : > { %1755 = vperm.xlu1 %6538, %v8059_v28  }
 0x3ba   : > { %v8245_v39 = vpop.permute.xlu2 %1571  ;;  %v8247_v38 = vpop.permute.xlu0 %1627 }
 0x3bb   : > { %v8249_v58 = vpop.permute.xlu1 %1548 }
 0x3c0   : > { %1744 = vrot.lane.b32.xlu2 %v8073_v17, %s15601_s1  ;;  %1928 = vrot.lane.b32.xlu0 %v8045_v12, %s15613_s29 }
 0x3c1   : > { %1767 = vperm.xlu1 %6538, %v7917_v27   ;;  %6548 = vset.pattern.permute.xlu0 %v15614_v11 }
 0x3c2   : > { %v8257_v31 = vpop.permute.xlu2 %1602  ;;  %v8259_v32 = vpop.permute.xlu0 %1668 }
 0x3c3   : > { %15615 = vst [vmem:[#allocation20_spill] sm:$0xff] %v8259_v32  ;;  %v8261_v22 = vpop.permute.xlu1 %1563 }
 0x3c8   : > { %1763 = vperm.xlu2 %6540, %v7924_v16   ;;  %1934 = vrot.lane.b32.xlu0 %v8083_v52, %s15613_s29 }
 0x3c9   : > { %1796 = vrot.lane.b32.xlu1 %v8064_v34, %s15605_s27 }
 0x3ca   : > { %v8268_v21 = vpop.permute.xlu2 %1608  ;;  %6543 = vset.pattern.permute.xlu1 %v15606_v55  ;;  %v8273_v42 = vpop.permute.xlu0 %1674 }
 0x3cb   : > { %15616 = vst [vmem:[#allocation21_spill] sm:$0xff] %v8268_v21  ;;  %v8271_v10 = vpop.permute.xlu1 %1575 }
 0x3cc   : > { %15617 = vst [vmem:[#allocation27_spill] sm:$0xff] %v8271_v10 }
 0x3d0   : > { %1794 = vrot.lane.b32.xlu2 %v8033_v61, %s15605_s27  ;;  %1951 = vperm.xlu0 %6548, %v7909_v54  }
 0x3d1   : > { %1802 = vrot.lane.b32.xlu1 %v8069_v23, %s15605_s27  ;;  %6542 = vset.pattern.permute.xlu2 %v15606_v55 }
 0x3d2   : > { %v8281_v53 = vpop.permute.xlu2 %1614  ;;  %v8285_v21 = vpop.permute.xlu0 %1680 }
 0x3d3   : > { %v8283_v35 = vpop.permute.xlu1 %1604  ;;  %15618 = vst [vmem:[#allocation23_spill] sm:$0xff] %v8285_v21 }
 0x3d8   : > { %1800 = vrot.lane.b32.xlu2 %v8045_v12, %s15605_s27  ;;  %6549 = vset.pattern.permute.xlu0 %v15562_v62 }
 0x3d9   : > { %1808 = vrot.lane.b32.xlu1 %v8073_v17, %s15605_s27  ;;  %1507 = vperm.xlu0 %6549, %v7924_v16  }
 0x3da   : > { %v8293_v10 = vpop.permute.xlu2 %1631  ;;  %v8297_v55 = vpop.permute.xlu0 %1699 }
 0x3db   : > { %v8295_v63 = vpop.permute.xlu1 %1610 }
 0x3e0   : > { %1806 = vrot.lane.b32.xlu2 %v8083_v52, %s15605_s27 }
 0x3e1   : > { %1827 = vperm.xlu1 %6543, %v7924_v16  }
 0x3e2   : > { %v8302_v21 = vpop.permute.xlu2 %1639  ;;  %v8309_v1 = vpop.permute.xlu0 %1736 }
 0x3e3   : > { %15619 = vst [vmem:[#allocation24_spill] sm:$0xff] %v8302_v21  ;;  %v8304_v0 = vpop.permute.xlu1 %1616 }
 0x3e4   : > { %15620 = vst [vmem:[#allocation25_spill] sm:$0xff] %v8304_v0 }
 0x3e5   : > { %15621 = vst [vmem:[#allocation15_spill] sm:$0xff] %v8309_v1 }
 0x3e8   : > { %1823 = vperm.xlu2 %6542, %v7909_v54  }
 0x3e9   : > { %1858 = vrot.lane.b32.xlu1 %v8033_v61, %s15610_s26 }
 0x3ea   : > { %v8311_v18 = vpop.permute.xlu2 %1670  ;;  %6545 = vset.pattern.permute.xlu1 %v15611_v7  ;;  %v8323_v46 = vpop.permute.xlu0 %1742 }
 0x3eb   : > { %v8314_v56 = vpop.permute.xlu1 %1635 }
 0x3f0   : > { %1831 = vperm.xlu2 %6542, %v7917_v27  }
 0x3f1   : > { %1864 = vrot.lane.b32.xlu1 %v8045_v12, %s15610_s26  ;;  %v1444_v12 = vld [vmem:[%s15481_s5 + $0x30] sm:$0xff] }
 0x3f2   : > { %v8319_v21 = vpop.permute.xlu2 %1676  ;;  %1998 = vperm.xlu0 %6549, %v1444_v12   ;;  %v8337_v4 = vpop.permute.xlu0 %1759 }
 0x3f3   : > { %15622 = vst [vmem:[#allocation34_spill] sm:$0xff] %v8319_v21  ;;  %v8321_v0 = vpop.permute.xlu1 %1666 }
 0x3f4   : > { %15624 = vst [vmem:[#allocation14_spill] sm:$0xff] %v8337_v4 }
 0x3f8   : > { %1862 = vrot.lane.b32.xlu2 %v8081_v14, %s15610_s26 }
 0x3f9   : > { %1870 = vrot.lane.b32.xlu1 %v8083_v52, %s15610_s26  ;;  %6544 = vset.pattern.permute.xlu2 %v15611_v7 }
 0x3fa   : > { %v8330_v1 = vpop.permute.xlu2 %1691  ;;  %v8346_v7 = vpop.permute.xlu0 %1798 }
 0x3fb   : > { %v8332_v8 = vpop.permute.xlu1 %1672  ;;  %15626 = vst [vmem:[#allocation13_spill] sm:$0xff] %v8346_v7 }
 0x3fc   : > { %15623 = vst [vmem:[#allocation28_spill] sm:$0xff] %v8332_v8 }
 0x400   : > { %1868 = vrot.lane.b32.xlu2 %v8091_v25, %s15610_s26 }
 0x401   : > { %1887 = vperm.xlu1 %6545, %v7909_v54  }
 0x402   : > { %v8342_v5 = vpop.permute.xlu2 %1703  ;;  %v8359_v54 = vpop.permute.xlu0 %1804 }
 0x403   : > { %15625 = vst [vmem:[#allocation16_spill] sm:$0xff] %v8342_v5  ;;  %v8344_v32 = vpop.permute.xlu1 %1678 }
 0x404   : > { %15629 = vst [vmem:[#allocation33_spill] sm:$0xff] %v8359_v54 }
 0x408   : > { %1883 = vperm.xlu2 %6544, %v8059_v28  }
 0x409   : > { %1922 = vrot.lane.b32.xlu1 %v8033_v61, %s15613_s29 }
 0x40a   : > { %v8351_v8 = vpop.permute.xlu2 %1732  ;;  %6547 = vset.pattern.permute.xlu1 %v15614_v11  ;;  %v8374_v7 = vpop.permute.xlu0 %1819 }
 0x40b   : > { %15627 = vst [vmem:[#allocation18_spill] sm:$0xff] %v8351_v8  ;;  %v8354_v12 = vpop.permute.xlu1 %1695 }
 0x40c   : > { %15628 = vst [vmem:[#allocation19_spill] sm:$0xff] %v8354_v12 }
 0x40d   : > { %15633 = vst [vmem:[#allocation54_spill] sm:$0xff] %v8374_v7  ;;  %v1443_v7 = vld [vmem:[%s15481_s5 + $0x28] sm:$0xff] }
 0x410   : > { %1895 = vperm.xlu2 %6544, %v7917_v27  }
 0x411   : > { %1926 = vrot.lane.b32.xlu1 %v8081_v14, %s15613_s29 }
 0x412   : > { %v8361_v5 = vpop.permute.xlu2 %1738 }
 0x413   : > { %15630 = vst [vmem:[#allocation42_spill] sm:$0xff] %v8361_v5  ;;  %v8363_v4 = vpop.permute.xlu1 %1730  ;;  %v8383_v5 = vpop.permute.xlu0 %1860 }
 0x414   : > { %15631 = vst [vmem:[#allocation43_spill] sm:$0xff] %v8363_v4 }
 0x415   : > { %15635 = vst [vmem:[#allocation51_spill] sm:$0xff] %v8383_v5 }
 0x418   : > { %1924 = vrot.lane.b32.xlu2 %v8064_v34, %s15613_s29 }
 0x419   : > { %1932 = vrot.lane.b32.xlu1 %v8091_v25, %s15613_s29  ;;  %6550 = vset.pattern.permute.xlu2 %v15614_v11 }
 0x41a   : > { %v8370_v8 = vpop.permute.xlu2 %1744 }
 0x41b   : > { %15632 = vst [vmem:[#allocation41_spill] sm:$0xff] %v8370_v8  ;;  %v8372_v12 = vpop.permute.xlu1 %1734 }
 0x420   : > { %1930 = vrot.lane.b32.xlu2 %v8069_v23, %s15613_s29 }
 0x421   : > { %1947 = vperm.xlu1 %6547, %v8059_v28   ;;  %v8395_v28 = vpop.permute.xlu0 %1866 }
 0x422   : > { %v8379_v54 = vpop.permute.xlu2 %1763  ;;  %15638 = vst [vmem:[#allocation72_spill] sm:$0xff] %v8395_v28 }
 0x423   : > { %v8381_v4 = vpop.permute.xlu1 %1740 }
 0x424   : > { %15634 = vst [vmem:[#allocation47_spill] sm:$0xff] %v8381_v4 }
 0x428   : > { %1936 = vrot.lane.b32.xlu2 %v8073_v17, %s15613_s29 }
 0x429   : > { %1959 = vperm.xlu1 %6547, %v7917_v27   ;;  %v1442_v27 = vld [vmem:[%s15481_s5 + $0x20] sm:$0xff] }
 0x42a   : > { %v8388_v11 = vpop.permute.xlu2 %1794 }
 0x42b   : > { %15636 = vst [vmem:[#allocation70_spill] sm:$0xff] %v8388_v11  ;;  %v8390_v8 = vpop.permute.xlu1 %1755 }
 0x42c   : > { %15637 = vst [vmem:[#allocation71_spill] sm:$0xff] %v8390_v8  ;;  %v8407_v8 = vpop.permute.xlu0 %1872 }
 0x42d   : > { %15641 = vst [vmem:[#allocation75_spill] sm:$0xff] %v8407_v8 }
 0x430   : > { %1955 = vperm.xlu2 %6550, %v7924_v16  }
 0x431   : > { %6552 = vset.pattern.permute.xlu1 %v15562_v62 }
 0x432   : > { %1993 = vperm.xlu1 %6552, %v1443_v7   ;;  %v8399_v5 = vpop.permute.xlu2 %1800 }
 0x433   : > { %15639 = vst [vmem:[#allocation73_spill] sm:$0xff] %v8399_v5  ;;  %v8401_v17 = vpop.permute.xlu1 %1767 }
 0x434   : > { %15640 = vst [vmem:[#allocation74_spill] sm:$0xff] %v8401_v17  ;;  %v8417_v5 = vpop.permute.xlu0 %1891 }
 0x435   : > { %15646 = vst [vmem:[#allocation80_spill] sm:$0xff] %v8417_v5 }
 0x438   : > { %6551 = vset.pattern.permute.xlu2 %v15562_v62 }
 0x439   : > { %1988 = vperm.xlu2 %6551, %v1442_v27  }
 0x43a   : > { %v8409_v4 = vpop.permute.xlu2 %1806 }
 0x43b   : > { %15642 = vst [vmem:[#allocation76_spill] sm:$0xff] %v8409_v4  ;;  %v8411_v28 = vpop.permute.xlu1 %1796 }
 0x43c   : > { %15643 = vst [vmem:[#allocation77_spill] sm:$0xff] %v8411_v28  ;;  %v8423_v21 = vpop.permute.xlu0 %1928 }
 0x43d   : > { %15649 = vst [vmem:[#allocation83_spill] sm:$0xff] %v8423_v21  ;;  %v1494_v21 = vsel %vm696_vm1, %v8158_v45, %v8174_v36 }
 0x442   : > { %v8413_v16 = vpop.permute.xlu2 %1823 }
 0x443   : > { %15644 = vst [vmem:[#allocation78_spill] sm:$0xff] %v8413_v16  ;;  %v8415_v7 = vpop.permute.xlu1 %1802 }
 0x444   : > { %15645 = vst [vmem:[#allocation79_spill] sm:$0xff] %v8415_v7  ;;  %v8429_v8 = vpop.permute.xlu0 %1934 }
 0x445   : > { %15651 = vst [vmem:[#allocation85_spill] sm:$0xff] %v8429_v8  ;;  %v1469_v8 = vmul.f32 %v8147_v13, %v8091_v25  ;;  %v1471_v25 = vmul.f32 %v8160_v37, %v8083_v52  ;;  %v1559_v52 = vsel %vm766_vm2, %v8249_v58, %v8210_v29 }
 0x44a   : > { %v8419_v17 = vpop.permute.xlu2 %1831 }
 0x44b   : > { %15647 = vst [vmem:[#allocation81_spill] sm:$0xff] %v8419_v17  ;;  %v8421_v11 = vpop.permute.xlu1 %1808  ;;  %v1495_v17 = vsel %vm696_vm1, %v8179_v48, %v8149_v49 }
 0x44c   : > { %15648 = vst [vmem:[#allocation82_spill] sm:$0xff] %v8421_v11  ;;  %v8435_v16 = vpop.permute.xlu0 %1951  ;;  %v1514_v11 = vmul.f32 %v8190_v43, %v1494_v21  ;;  %v1490_v21 = vsel %vm696_vm1, %v8174_v36, %v8158_v45  ;;  %v2086_v45 = vld [vmem:[%s15463_s2 + $0x40] sm:$0xff] }
 0x44d   : > { %15654 = vst [vmem:[#allocation88_spill] sm:$0xff] %v8435_v16  ;;  %v1468_v16 = vmul.f32 %v8147_v13, %v8064_v34  ;;  %v1470_v34 = vmul.f32 %v8160_v37, %v8081_v14  ;;  %v1466_v13 = vmul.f32 %v8138_v30, %v8033_v61  ;;  %v1496_v14 = vsel %vm696_vm1, %v8202_v24, %v8166_v33 }
 0x44e   : > { %v1555_v61 = vsel %vm766_vm2, %v8210_v29, %v8249_v58  ;;  %v1467_v37 = vmul.f32 %v8138_v30, %v8069_v23  ;;  %6357 = vmatmul.msk.f32.vlgmr.msrb.gmra.mxu0 %vm571_vm0, %v2086_v45  ;;  %6361 = vmatmul.msk.f32.vlgmr.msrb.gmra.mxu1 %vm571_vm0, %v2086_v45  ;;  %v1558_v23 = vsel %vm766_vm2, %v8222_v51, %v8226_v50 }
 0x452   : > { %v8425_v62 = vpop.permute.xlu2 %1862 }
 0x453   : > { %v8427_v27 = vpop.permute.xlu1 %1827 }
 0x454   : > { %15650 = vst [vmem:[#allocation84_spill] sm:$0xff] %v8427_v27  ;;  %v1515_v27 = vmul.f32 %v8190_v43, %v1490_v21  ;;  %v1581_v21 = vmul.f32 %v8212_v26, %v1555_v61 }
 0x456   : > { %v1523_v43 = vmul.f32 %v1515_v27, %v7463_v60 }
 0x45a   : > { %v8431_v4 = vpop.permute.xlu2 %1868 }
 0x45b   : > { %15652 = vst [vmem:[#allocation86_spill] sm:$0xff] %v8431_v4  ;;  %v8433_v28 = vpop.permute.xlu1 %1858  ;;  %v1516_v4 = vmul.f32 %v8215_v3, %v1495_v17 }
 0x45c   : > { %15653 = vst [vmem:[#allocation87_spill] sm:$0xff] %v8433_v28 }
 0x462   : > { %v8437_v7 = vpop.permute.xlu2 %1883 }
 0x463   : > { %15655 = vst [vmem:[#allocation89_spill] sm:$0xff] %v8437_v7  ;;  %v8439_v5 = vpop.permute.xlu1 %1864 }
 0x464   : > { %15656 = vst [vmem:[#allocation90_spill] sm:$0xff] %v8439_v5  ;;  %v1491_v5 = vsel %vm696_vm1, %v8149_v49, %v8179_v48  ;;  %v1522_v49 = vmul.f32 %v1514_v11, %v7454_v15  ;;  %v1524_v48 = vmul.f32 %v1516_v4, %v7454_v15  ;;  %v1560_v4 = vsel %vm766_vm2, %v8200_v47, %v8239_v44 }
 0x465   : > { %v1517_v17 = vmul.f32 %v8215_v3, %v1491_v5  ;;  %v1492_v5 = vsel %vm696_vm1, %v8166_v33, %v8202_v24  ;;  %v1582_v36 = vmul.f32 %v8245_v39, %v1560_v4  ;;  %v1556_v24 = vsel %vm766_vm2, %v8239_v44, %v8200_v47 }
 0x466   : > { %v1530_v29 = vadd.f32 %v1522_v49, %v1466_v13  ;;  %v1532_v58 = vadd.f32 %v1524_v48, %v1468_v16  ;;  %v1583_v30 = vmul.f32 %v8245_v39, %v1556_v24  ;;  %v1578_v16 = vmul.f32 %v8261_v22, %v1558_v23 }
 0x467   : > { %v1525_v33 = vmul.f32 %v1517_v17, %v7463_v60  ;;  %v1622_v44 = vsel %vm836_vm3, %v8295_v63, %v8257_v31  ;;  %v1590_v48 = vmul.f32 %v1582_v36, %v7467_v57  ;;  %v1623_v13 = vsel %vm836_vm3, %v8237_v41, %v8283_v35 }
 0x468   : > { %v1531_v23 = vadd.f32 %v1523_v43, %v1467_v37 }
 0x469   : > { %v1533_v39 = vadd.f32 %v1525_v33, %v1469_v8  ;;  %v1644_v8 = vmul.f32 %v8293_v10, %v1623_v13 }
 0x46a   : > { %v8451_v28 = vpop.permute.xlu2 %1895 }
 0x46b   : > { %15657 = vst [vmem:[#allocation91_spill] sm:$0xff] %v8451_v28  ;;  %v8459_v7 = vpop.permute.xlu1 %1870  ;;  %v1508_v28 = vpop.permute.xlu0 %1507 }
 0x46c   : > { %v1518_v3 = vmul.f32 %v1508_v28, %v1496_v14  ;;  %v1519_v11 = vmul.f32 %v1508_v28, %v1492_v5  ;;  %v1580_v28 = vmul.f32 %v8212_v26, %v1559_v52  ;;  %v1554_v26 = vsel %vm766_vm2, %v8226_v50, %v8222_v51 }
 0x46d   : > { %v1579_v5 = vmul.f32 %v8261_v22, %v1554_v26  ;;  %v1619_v14 = vsel %vm836_vm3, %v8283_v35, %v8237_v41  ;;  %v1618_v50 = vsel %vm836_vm3, %v8257_v31, %v8295_v63  ;;  %v1591_v51 = vmul.f32 %v1583_v30, %v7471_v2 }
 0x46e   : > { %v1526_v47 = vmul.f32 %v1518_v3, %v7454_v15  ;;  %v1527_v27 = vmul.f32 %v1519_v11, %v7463_v60  ;;  %v1588_v4 = vmul.f32 %v1580_v28, %v7467_v57  ;;  %v1645_v61 = vmul.f32 %v8293_v10, %v1619_v14  ;;  %v2087_v11 = vld [vmem:[%s15463_s2 + $0x48] sm:$0xff] }
 0x46f   : > { %v1642_v22 = vmul.f32 %v8247_v38, %v1622_v44  ;;  %v1589_v52 = vmul.f32 %v1581_v21, %v7471_v2  ;;  %v1586_v3 = vmul.f32 %v1578_v16, %v7467_v57  ;;  %v1620_v63 = vsel %vm836_vm3, %v8224_v40, %v8281_v53  ;;  %6358 = vmatmul.msk.f32.gmra.mxu0 %vm571_vm0, %v2087_v11 }
 0x470   : > { %v1534_v41 = vadd.f32 %v1526_v47, %v1470_v34  ;;  %v1535_v35 = vadd.f32 %v1527_v27, %v1471_v25  ;;  %v1624_v31 = vsel %vm836_vm3, %v8281_v53, %v8224_v40  ;;  %v1643_v10 = vmul.f32 %v8247_v38, %v1618_v50  ;;  %6362 = vmatmul.msk.f32.gmra.mxu1 %vm571_vm0, %v2087_v11 }
 0x471   : > { %v1587_v34 = vmul.f32 %v1579_v5, %v7471_v2  ;;  %v1652_v25 = vmul.f32 %v1644_v8, %v7507_v20  ;;  %v1646_v45 = vmul.f32 %v8314_v56, %v1624_v31  ;;  %v1647_v33 = vmul.f32 %v8314_v56, %v1620_v63  ;;  %v15660_v31 = vld [vmem:[#allocation68_spill] sm:$0xff] }
 0x472   : > { %v8518_v17 = vpop.permute.xlu2 %1924  ;;  %v1653_v36 = vmul.f32 %v1645_v61, %v7509_v59  ;;  %v1650_v24 = vmul.f32 %v1642_v22, %v7507_v20  ;;  %v1684_v40 = vsel %vm906_vm4, %v8311_v18, %v8344_v32  ;;  %v1688_v38 = vsel %vm906_vm4, %v8344_v32, %v8311_v18 }
 0x473   : > { %v8527_v49 = vpop.permute.xlu1 %1887  ;;  %v1598_v30 = vadd.f32 %v1590_v48, %v1534_v41  ;;  %v1599_v28 = vadd.f32 %v1591_v51, %v1535_v35  ;;  %v1596_v21 = vadd.f32 %v1588_v4, %v1532_v58  ;;  %v1597_v16 = vadd.f32 %v1589_v52, %v1533_v39  ;;  %v2088_v51 = vld [vmem:[%s15463_s2 + $0x50] sm:$0xff]  ;;  %v15658_v52 = vld [vmem:[#allocation34_spill] sm:$0xff] }
 0x474   : > { %v1594_v44 = vadd.f32 %v1586_v3, %v1530_v29  ;;  %v1651_v47 = vmul.f32 %v1643_v10, %v7509_v59  ;;  %v1654_v27 = vmul.f32 %v1646_v45, %v7507_v20  ;;  %v1655_v26 = vmul.f32 %v1647_v33, %v7509_v59  ;;  %v15659_v3 = vld [vmem:[#allocation20_spill] sm:$0xff] }
 0x475   : > { %v1710_v13 = vmul.f32 %v8297_v55, %v1688_v38  ;;  %v1711_v18 = vmul.f32 %v8297_v55, %v1684_v40  ;;  %v1595_v32 = vadd.f32 %v1587_v34, %v1531_v23  ;;  %v8591_v5 = vadd.f32 %v1652_v25, %v1596_v21  ;;  %v15661_v34 = vld [vmem:[#allocation69_spill] sm:$0xff]  ;;  %v15665_v38 = vld [vmem:[#allocation80_spill] sm:$0xff] }
 0x476   : > { %v8593_v37 = vadd.f32 %v1653_v36, %v1597_v16  ;;  %v8595_v43 = vadd.f32 %v1650_v24, %v1594_v44  ;;  %v1748_v29 = vsel %vm976_vm5, %v8372_v12, %v8323_v46  ;;  %v1752_v58 = vsel %vm976_vm5, %v8323_v46, %v8372_v12  ;;  %v15664_v36 = vld [vmem:[#allocation84_spill] sm:$0xff]  ;;  %v15666_v16 = vld [vmem:[#allocation19_spill] sm:$0xff] }
 0x477   : > { %v1662_v39 = vadd.f32 %v1654_v27, %v1598_v30  ;;  %v1663_v48 = vadd.f32 %v1655_v26, %v1599_v28  ;;  %v8605_v55 = vadd.f32 %v1651_v47, %v1595_v32  ;;  %v1682_v14 = vsel %vm906_vm4, %v8321_v0, %v8273_v42  ;;  %6359 = vmatmul.msk.f32.gmra.mxu0 %vm571_vm0, %v2088_v51  ;;  %v15667_v27 = vld [vmem:[#allocation42_spill] sm:$0xff]  ;;  %v15668_v26 = vld [vmem:[#allocation43_spill] sm:$0xff] }
 0x478   : > { %v1774_v8 = vmul.f32 %v8379_v54, %v1748_v29  ;;  %v1775_v50 = vmul.f32 %v8379_v54, %v1752_v58  ;;  %v1686_v46 = vsel %vm906_vm4, %v8273_v42, %v8321_v0  ;;  %v1718_v12 = vmul.f32 %v1710_v13, %v7513_v6  ;;  %6363 = vmatmul.msk.f32.gmra.mxu1 %vm571_vm0, %v2088_v51  ;;  %v15670_v32 = vld [vmem:[#allocation70_spill] sm:$0xff]  ;;  %v15673_v51 = vld [vmem:[#allocation71_spill] sm:$0xff] }
 0x479   : > { %v1719_v4 = vmul.f32 %v1711_v18, %v7517_v9  ;;  %v1706_v61 = vmul.f32 %v8330_v1, %v1686_v46  ;;  %v1707_v54 = vmul.f32 %v8330_v1, %v1682_v14  ;;  %v1876_v22 = vsel %vm1116_vm7, %v8425_v62, %v8459_v7  ;;  %v15669_v18 = vld [vmem:[#allocation79_spill] sm:$0xff] }
 0x47a   : > { %v8582_v53 = vpop.permute.xlu2 %1930  ;;  %v1880_v0 = vsel %vm1116_vm7, %v8459_v7, %v8425_v62  ;;  %v1683_v41 = vsel %vm906_vm4, %v15659_v3, %v15658_v52  ;;  %v1687_v1 = vsel %vm906_vm4, %v15658_v52, %v15659_v3  ;;  %v1726_v35 = vadd.f32 %v1718_v12, %v1662_v39  ;;  %v15662_v62 = vld [vmem:[#allocation76_spill] sm:$0xff]  ;;  %v15663_v7 = vld [vmem:[#allocation13_spill] sm:$0xff]  ;;  %v15671_v14 = vld [vmem:[#allocation47_spill] sm:$0xff] }
 0x47b   : > { %v8584_v56 = vpop.permute.xlu1 %1922  ;;  %v1727_v11 = vadd.f32 %v1719_v4, %v1663_v48  ;;  %v1782_v10 = vmul.f32 %v1774_v8, %v15660_v31  ;;  %v1783_v25 = vmul.f32 %v1775_v50, %v15661_v34  ;;  %v1812_v45 = vsel %vm1046_vm6, %v15663_v7, %v15662_v62  ;;  %v15672_v8 = vld [vmem:[#allocation18_spill] sm:$0xff]  ;;  %v15674_v4 = vld [vmem:[#allocation29_spill] sm:$0xff] }
 0x47c   : > { %v1816_v33 = vsel %vm1046_vm6, %v15662_v62, %v15663_v7  ;;  %v1838_v24 = vmul.f32 %v15664_v36, %v1812_v45  ;;  %v1902_v23 = vmul.f32 %v15665_v38, %v1876_v22  ;;  %v1903_v30 = vmul.f32 %v15665_v38, %v1880_v0  ;;  %v15676_v0 = vld [vmem:[#allocation36_spill] sm:$0xff]  ;;  %v15677_v3 = vld [vmem:[#allocation49_spill] sm:$0xff] }
 0x47d   : > { %v1839_v40 = vmul.f32 %v15664_v36, %v1816_v33  ;;  %v1714_v28 = vmul.f32 %v1706_v61, %v7513_v6  ;;  %v1715_v21 = vmul.f32 %v1707_v54, %v7517_v9  ;;  %v1708_v44 = vmul.f32 %v15666_v16, %v1687_v1  ;;  %v15675_v54 = vld [vmem:[#allocation35_spill] sm:$0xff]  ;;  %v2089_v38 = vld [vmem:[%s15463_s2 + $0x58] sm:$0xff] }
 0x47e   : > { %v1709_v47 = vmul.f32 %v15666_v16, %v1683_v41  ;;  %v1746_v13 = vsel %vm976_vm5, %v15668_v26, %v15667_v27  ;;  %v1810_v29 = vsel %vm1046_vm6, %v15670_v32, %v15669_v18  ;;  %v1790_v58 = vadd.f32 %v1782_v10, %v1726_v35  ;;  %v15678_v35 = vld [vmem:[#allocation54_spill] sm:$0xff]  ;;  %v15679_v10 = vld [vmem:[#allocation85_spill] sm:$0xff]  ;;  %v15681_v16 = vld [vmem:[#allocation87_spill] sm:$0xff] }
 0x47f   : > { %v1791_v39 = vadd.f32 %v1783_v25, %v1727_v11  ;;  %v1750_v48 = vsel %vm976_vm5, %v15667_v27, %v15668_v26  ;;  %v1747_v50 = vsel %vm976_vm5, %v15672_v8, %v15671_v14  ;;  %v1770_v46 = vmul.f32 %v15673_v51, %v1746_v13  ;;  %6360 = vmatmul.msk.f32.gmra.mxu0 %vm571_vm0, %v2089_v38  ;;  %v15682_v26 = vld [vmem:[#allocation62_spill] sm:$0xff] }
 0x480   : > { %v1814_v12 = vsel %vm1046_vm6, %v15669_v18, %v15670_v32  ;;  %v1846_v61 = vmul.f32 %v1838_v24, %v15674_v4  ;;  %v1847_v22 = vmul.f32 %v1839_v40, %v15675_v54  ;;  %v1910_v52 = vmul.f32 %v1902_v23, %v15676_v0  ;;  %6364 = vmatmul.msk.f32.gmra.mxu1 %vm571_vm0, %v2089_v38  ;;  %v15683_v18 = vld [vmem:[#allocation48_spill] sm:$0xff] }
 0x481   : > { %v1911_v41 = vmul.f32 %v1903_v30, %v15677_v3  ;;  %v1771_v1 = vmul.f32 %v15673_v51, %v1750_v48  ;;  %v1834_v11 = vmul.f32 %v15678_v35, %v1810_v29  ;;  %v1835_v23 = vmul.f32 %v15678_v35, %v1814_v12  ;;  %v15680_v30 = vld [vmem:[#allocation72_spill] sm:$0xff]  ;;  %v15684_v51 = vld [vmem:[#allocation89_spill] sm:$0xff] }
 0x482   : > { %v8634_v42 = vpop.permute.xlu2 %1936  ;;  %v1854_v45 = vadd.f32 %v1846_v61, %v1790_v58  ;;  %v1855_v33 = vadd.f32 %v1847_v22, %v1791_v39  ;;  %v1874_v27 = vsel %vm1116_vm7, %v15681_v16, %v15680_v30  ;;  %v1778_v39 = vmul.f32 %v1770_v46, %v15660_v31  ;;  %v1999_v22 = vpop.permute.xlu0 %1998 }
 0x483   : > { %v1927_v63 = vpop.permute.xlu1 %1926  ;;  %v1779_v48 = vmul.f32 %v1771_v1, %v15661_v34  ;;  %v1898_v12 = vmul.f32 %v15684_v51, %v1874_v27  ;;  %v1722_v35 = vadd.f32 %v1714_v28, %v8595_v43  ;;  %v1843_v46 = vmul.f32 %v1835_v23, %v15675_v54  ;;  %v15686_v27 = vld [vmem:[#allocation33_spill] sm:$0xff] }
 0x484   : > { %v1940_v25 = vsel %vm1186_vm8, %v1927_v63, %v15679_v10  ;;  %v1944_v62 = vsel %vm1186_vm8, %v15679_v10, %v1927_v63  ;;  %v1878_v63 = vsel %vm1116_vm7, %v15680_v30, %v15681_v16  ;;  %v1918_v29 = vadd.f32 %v1910_v52, %v1854_v45  ;;  %v15685_v45 = vld [vmem:[#allocation14_spill] sm:$0xff] }
 0x485   : > { %v1919_v58 = vadd.f32 %v1911_v41, %v1855_v33  ;;  %v1899_v61 = vmul.f32 %v15684_v51, %v1878_v63  ;;  %v1723_v10 = vadd.f32 %v1715_v21, %v8605_v55  ;;  %v1717_v52 = vmul.f32 %v1709_v47, %v7517_v9  ;;  %v15687_v63 = vld [vmem:[#allocation77_spill] sm:$0xff] }
 0x486   : > { %v1842_v41 = vmul.f32 %v1834_v11, %v15674_v4  ;;  %v1751_v1 = vsel %vm976_vm5, %v15671_v14, %v15672_v8  ;;  %v1772_v33 = vmul.f32 %v15685_v45, %v1747_v50  ;;  %v1786_v28 = vadd.f32 %v1778_v39, %v1722_v35 }
 0x487   : > { %v1787_v21 = vadd.f32 %v1779_v48, %v1723_v10  ;;  %v1907_v47 = vmul.f32 %v1899_v61, %v15677_v3  ;;  %v1938_v11 = vsel %vm1186_vm8, %v8584_v56, %v8582_v53  ;;  %v1942_v14 = vsel %vm1186_vm8, %v8582_v53, %v8584_v56  ;;  %v15688_v48 = vld [vmem:[#allocation78_spill] sm:$0xff] }
 0x488   : > { %v1773_v16 = vmul.f32 %v15685_v45, %v1751_v1  ;;  %v1815_v53 = vsel %vm1046_vm6, %v15686_v27, %v15687_v63  ;;  %v15689_v61 = vld [vmem:[#allocation86_spill] sm:$0xff]  ;;  %v1780_v45 = vmul.f32 %v1772_v33, %v15660_v31 }
 0x489   : > { %v1851_v38 = vadd.f32 %v1843_v46, %v1787_v21 }
 0x48a   : > { %v1956_v7 = vpop.permute.xlu2 %1955 }
 0x48b   : > { %v1966_v36 = vmul.f32 %v1956_v7, %v1940_v25  ;;  %v1967_v24 = vmul.f32 %v1956_v7, %v1944_v62  ;;  %v1933_v40 = vpop.permute.xlu1 %1932  ;;  %v1716_v7 = vmul.f32 %v1708_v44, %v7513_v6  ;;  %v1906_v44 = vmul.f32 %v1898_v12, %v15676_v0 }
 0x48c   : > { %v1915_v39 = vadd.f32 %v1907_v47, %v1851_v38  ;;  %v1837_v12 = vmul.f32 %v15688_v48, %v1815_v53 }
 0x48d   : > { %v1974_v13 = vmul.f32 %v1966_v36, %v15682_v26  ;;  %v1975_v32 = vmul.f32 %v1967_v24, %v15683_v18  ;;  %v1850_v24 = vadd.f32 %v1842_v41, %v1786_v28  ;;  %v1943_v41 = vsel %vm1186_vm8, %v1933_v40, %v8518_v17 }
 0x48e   : > { %v1781_v28 = vmul.f32 %v1773_v16, %v15661_v34  ;;  %v1724_v47 = vadd.f32 %v1716_v7, %v8591_v5 }
 0x48f   : > { %v1982_v25 = vadd.f32 %v1974_v13, %v1918_v29  ;;  %v1983_v62 = vadd.f32 %v1975_v32, %v1919_v58  ;;  %v1811_v13 = vsel %vm1046_vm6, %v15687_v63, %v15686_v27  ;;  %v1914_v58 = vadd.f32 %v1906_v44, %v1850_v24 }
 0x490   : > { %v1836_v51 = vmul.f32 %v15688_v48, %v1811_v13 }
 0x491   : > { %v8726_v43 = vadd.f32 %v1999_v22, %v1982_v25  ;;  %v8728_v55 = vadd.f32 %v1999_v22, %v1983_v62  ;;  %v15690_v22 = vld [vmem:[#allocation51_spill] sm:$0xff]  ;;  %v1939_v62 = vsel %vm1186_vm8, %v8518_v17, %v1933_v40  ;;  %v1845_v40 = vmul.f32 %v1837_v12, %v15675_v54 }
 0x492   : > { %v1875_v35 = vsel %vm1116_vm7, %v15690_v22, %v15689_v61  ;;  %v1879_v10 = vsel %vm1116_vm7, %v15689_v61, %v15690_v22  ;;  %v1844_v17 = vmul.f32 %v1836_v51, %v15674_v4  ;;  %v2092_v12 = vld [vmem:[%s15461_s3 + $0x50] sm:$0xff]  ;;  %v8809_v22 = vld [vmem:[%s14749_s4 + $0x40] sm:$0xff] }
 0x493   : > { %v2018_v8 = vmul.f32 %v8726_v43, %v8726_v43  ;;  %v2019_v50 = vmul.f32 %v8728_v55, %v8728_v55  ;;  %v1948_v36 = vpop.permute.xlu1 %1947  ;;  %v1989_v25 = vpop.permute.xlu2 %1988  ;;  %v1900_v21 = vmul.f32 %v8527_v49, %v1875_v35  ;;  %v1901_v44 = vmul.f32 %v8527_v49, %v1879_v10 }
 0x494   : > { %v1962_v23 = vmul.f32 %v1948_v36, %v1938_v11  ;;  %v1963_v30 = vmul.f32 %v1948_v36, %v1942_v14  ;;  %v1725_v11 = vadd.f32 %v1717_v52, %v8593_v37  ;;  %v1788_v37 = vadd.f32 %v1780_v45, %v1724_v47  ;;  %v15695_v45 = vld [vmem:[#allocation52_spill] sm:$0xff]  ;;  %v15697_v47 = vld [vmem:[#allocation22_spill] sm:$0xff] }
 0x495   : > { %v2028_v56 = vadd.f32 %v2019_v50, %v2018_v8  ;;  %v15691_v50 = vld [vmem:[#allocation88_spill] sm:$0xff]  ;;  %v1908_v52 = vmul.f32 %v1900_v21, %v15676_v0  ;;  %v1909_v38 = vmul.f32 %v1901_v44, %v15677_v3  ;;  %v15692_v35 = vmov 4  }
 0x496   : > { %v1970_v32 = vmul.f32 %v1962_v23, %v15682_v26  ;;  %v1971_v29 = vmul.f32 %v1963_v30, %v15683_v18  ;;  %v1964_v33 = vmul.f32 %v15691_v50, %v1939_v62  ;;  %v1965_v36 = vmul.f32 %v15691_v50, %v1943_v41  ;;  %v2090_v62 = vld [vmem:[%s15461_s3 + $0x40] sm:$0xff]  ;;  %v2093_v41 = vld [vmem:[%s15461_s3 + $0x58] sm:$0xff] }
 0x497   : > { %2029 = vadd.xlane.f32.xlu0 %v2028_v56  ;;  %v1789_v7 = vadd.f32 %v1781_v28, %v1725_v11  ;;  %v1852_v30 = vadd.f32 %v1844_v17, %v1788_v37  ;;  %v15693_v10 = vmov 1   ;;  %v15696_v28 = vld [vmem:[#allocation63_spill] sm:$0xff]  ;;  %v15699_v50 = vld [vmem:[#allocation21_spill] sm:$0xff] }
 0x498   : > { %v1978_v46 = vadd.f32 %v1970_v32, %v1914_v58  ;;  %v1979_v1 = vadd.f32 %v1971_v29, %v1915_v39  ;;  %v1972_v27 = vmul.f32 %v1964_v33, %v15682_v26  ;;  %v1973_v63 = vmul.f32 %v1965_v36, %v15683_v18 }
 0x499   : > { %v1853_v16 = vadd.f32 %v1845_v40, %v1789_v7  ;;  %v1916_v13 = vadd.f32 %v1908_v52, %v1852_v30  ;;  %v1493_v21 = vsel %vm696_vm1, %v15696_v28, %v15695_v45  ;;  %v1497_v44 = vsel %vm696_vm1, %v15695_v45, %v15696_v28  ;;  %v15698_v40 = vld [vmem:[#allocation25_spill] sm:$0xff]  ;;  %v15702_v52 = vld [vmem:[#allocation27_spill] sm:$0xff]  ;;  %v15709_v45 = vld [vmem:[#allocation16_spill] sm:$0xff] }
 0x49a   : > { %v8777_v14 = vadd.f32 %v1989_v25, %v1978_v46  ;;  %v8779_v8 = vadd.f32 %v1989_v25, %v1979_v1  ;;  %v1445_v25 = vld [vmem:[%s15481_s5 + $0x38] sm:$0xff]  ;;  %v8826_v46 = vld [vmem:[%s14749_s4 + $0x50] sm:$0xff]  ;;  %v15694_v1 = vmov 0   ;;  %v1520_v11 = vmul.f32 %v15697_v47, %v1497_v44 }
 0x49b   : > { %v8785_v24 = vpop.permute.xlu1 %1959  ;;  %v1917_v53 = vadd.f32 %v1909_v38, %v1853_v16  ;;  %v1980_v56 = vadd.f32 %v1972_v27, %v1916_v13  ;;  %v1521_v17 = vmul.f32 %v15697_v47, %v1493_v21  ;;  %v1621_v33 = vsel %vm836_vm3, %v15699_v50, %v15698_v40  ;;  %v15703_v27 = vld [vmem:[#allocation24_spill] sm:$0xff] }
 0x49c   : > { %v2014_v49 = vmul.f32 %v8777_v14, %v8777_v14  ;;  %v2015_v5 = vmul.f32 %v8779_v8, %v8779_v8  ;;  %v1625_v36 = vsel %vm836_vm3, %v15698_v40, %v15699_v50  ;;  %v1528_v30 = vmul.f32 %v1520_v11, %v7454_v15  ;;  %v15710_v40 = vld [vmem:[#allocation41_spill] sm:$0xff]  ;;  %v15711_v50 = vld [vmem:[#allocation15_spill] sm:$0xff] }
 0x49d   : > { %v1981_v32 = vadd.f32 %v1973_v63, %v1917_v53  ;;  %v1529_v16 = vmul.f32 %v1521_v17, %v7463_v60  ;;  %v1648_v63 = vmul.f32 %v15703_v27, %v1625_v36  ;;  %v1649_v13 = vmul.f32 %v15703_v27, %v1621_v33  ;;  %v15704_v53 = vld [vmem:[#allocation55_spill] sm:$0xff] }
 0x49e   : > { %v2022_v23 = vadd.f32 %v2015_v5, %v2014_v49  ;;  %v15700_v49 = vld [vmem:[#allocation26_spill] sm:$0xff]  ;;  %v1749_v33 = vsel %vm976_vm5, %v15711_v50, %v15710_v40  ;;  %v1753_v36 = vsel %vm976_vm5, %v15710_v40, %v15711_v50 }
 0x49f   : > { %v15701_v5 = vld [vmem:[#allocation58_spill] sm:$0xff]  ;;  %v1656_v11 = vmul.f32 %v1648_v63, %v7507_v20  ;;  %v1657_v17 = vmul.f32 %v1649_v13, %v7509_v59 }
 0x4a0   : > { %2023 = vadd.xlane.f32.xlu1 %v2022_v23  ;;  %v1557_v37 = vsel %vm766_vm2, %v15701_v5, %v15700_v49  ;;  %v1561_v7 = vsel %vm766_vm2, %v15700_v49, %v15701_v5  ;;  %v15712_v49 = vld [vmem:[#allocation82_spill] sm:$0xff]  ;;  %v15713_v5 = vld [vmem:[#allocation73_spill] sm:$0xff] }
 0x4a1   : > { %v1584_v38 = vmul.f32 %v15702_v52, %v1561_v7  ;;  %v1585_v23 = vmul.f32 %v15702_v52, %v1557_v37  ;;  %v1813_v37 = vsel %vm1046_vm6, %v15713_v5, %v15712_v49  ;;  %v1817_v7 = vsel %vm1046_vm6, %v15712_v49, %v15713_v5  ;;  %v15714_v52 = vld [vmem:[#allocation74_spill] sm:$0xff] }
 0x4a4   : > { %v1994_v29 = vpop.permute.xlu1 %1993 }
 0x4a5   : > { %v8795_v58 = vadd.f32 %v1994_v29, %v1980_v56  ;;  %v8797_v39 = vadd.f32 %v1994_v29, %v1981_v32  ;;  %v15705_v56 = vld [vmem:[#allocation44_spill] sm:$0xff]  ;;  %v15706_v29 = vld [vmem:[#allocation50_spill] sm:$0xff] }
 0x4a6   : > { %v1472_v32 = vmul.f32 %v15705_v56, %v15704_v53  ;;  %v15715_v53 = vld [vmem:[#allocation81_spill] sm:$0xff] }
 0x4a7   : > { %v2016_v48 = vmul.f32 %v8795_v58, %v8795_v58  ;;  %v2017_v51 = vmul.f32 %v8797_v39, %v8797_v39 }
 0x4a8   : > { %v1536_v44 = vadd.f32 %v1528_v30, %v1472_v32  ;;  %v1841_v32 = vmul.f32 %v15715_v53, %v1817_v7 }
 0x4a9   : > { %v2025_v61 = vadd.f32 %v2017_v51, %v2016_v48  ;;  %v1473_v48 = vmul.f32 %v15705_v56, %v15706_v29  ;;  %v15707_v51 = vld [vmem:[#allocation23_spill] sm:$0xff]  ;;  %v1840_v56 = vmul.f32 %v15715_v53, %v1813_v37 }
 0x4ab   : > { %2026 = vadd.xlane.f32.xlu2 %v2025_v61  ;;  %2106 = vperm.xlu0 %6549, %v2092_v12   ;;  %v15708_v12 = vld [vmem:[#allocation28_spill] sm:$0xff]  ;;  %v1537_v47 = vadd.f32 %v1529_v16, %v1473_v48  ;;  %v1848_v50 = vmul.f32 %v1840_v56, %v15674_v4 }
 0x4ac   : > { %v1685_v61 = vsel %vm906_vm4, %v15708_v12, %v15707_v51 }
 0x4ad   : > { %v1713_v21 = vmul.f32 %v15709_v45, %v1685_v61 }
 0x4af   : > { %v1721_v63 = vmul.f32 %v1713_v21, %v7517_v9 }
 0x4b3   : > { %6553 = vset.pattern.permute.xlu0 %v15692_v35 }
 0x4b4   : > { %2194 = vperm.xlu0 %6553, %v8809_v22  }
 0x4bc   : > { %6559 = vset.pattern.permute.xlu0 %v15693_v10 }
 0x4c3   : > { %2003 = vperm.xlu2 %6551, %v1445_v25   ;;  %v1689_v25 = vsel %vm906_vm4, %v15707_v51, %v15708_v12  ;;  %v15716_v51 = vld [vmem:[#allocation75_spill] sm:$0xff]  ;;  %v15717_v12 = vld [vmem:[#allocation90_spill] sm:$0xff] }
 0x4c4   : > { %v1712_v28 = vmul.f32 %v15709_v45, %v1689_v25  ;;  %v1877_v61 = vsel %vm1116_vm7, %v15717_v12, %v15716_v51  ;;  %v1881_v25 = vsel %vm1116_vm7, %v15716_v51, %v15717_v12  ;;  %v15718_v45 = vld [vmem:[#allocation91_spill] sm:$0xff] }
 0x4c5   : > { %v1905_v21 = vmul.f32 %v15718_v45, %v1881_v25 }
 0x4c6   : > { %v1720_v27 = vmul.f32 %v1712_v28, %v7513_v6  ;;  %v1904_v28 = vmul.f32 %v15718_v45, %v1877_v61 }
 0x4cb   : > { %2096 = vperm.xlu2 %6551, %v2090_v62   ;;  %v1592_v62 = vmul.f32 %v1584_v38, %v7467_v57  ;;  %v1776_v38 = vmul.f32 %v15714_v52, %v1749_v33  ;;  %v2143_v13 = vpop.f32.mrf.mxu0  ;;  %v1849_v33 = vmul.f32 %v1841_v32, %v15675_v54  ;;  %v8937_v51 = vpop.f32.mrf.mxu1 }
 0x4cd   : > { %v1600_v30 = vadd.f32 %v1592_v62, %v1536_v44  ;;  %v1784_v62 = vmul.f32 %v1776_v38, %v15660_v31  ;;  %v1913_v38 = vmul.f32 %v1905_v21, %v15677_v3 }
 0x4cf   : > { %v1664_v29 = vadd.f32 %v1656_v11, %v1600_v30  ;;  %v15719_v11 = vld [vmem:[#allocation83_spill] sm:$0xff] }
 0x4d0   : > { %v1945_v40 = vsel %vm1186_vm8, %v8634_v42, %v15719_v11 }
 0x4d1   : > { %v1728_v44 = vadd.f32 %v1720_v27, %v1664_v29  ;;  %v1969_v49 = vmul.f32 %v8785_v24, %v1945_v40 }
 0x4d3   : > { %2111 = vperm.xlu2 %6551, %v2093_v41   ;;  %v1593_v41 = vmul.f32 %v1585_v23, %v7471_v2  ;;  %v1777_v23 = vmul.f32 %v15714_v52, %v1753_v36  ;;  %v1792_v37 = vadd.f32 %v1784_v62, %v1728_v44  ;;  %v1912_v52 = vmul.f32 %v1904_v28, %v15676_v0 }
 0x4d5   : > { %v1601_v16 = vadd.f32 %v1593_v41, %v1537_v47  ;;  %v1785_v41 = vmul.f32 %v1777_v23, %v15661_v34  ;;  %v1856_v23 = vadd.f32 %v1848_v50, %v1792_v37 }
 0x4d7   : > { %v1665_v48 = vadd.f32 %v1657_v17, %v1601_v16  ;;  %v1941_v17 = vsel %vm1186_vm8, %v15719_v11, %v8634_v42  ;;  %v1977_v42 = vmul.f32 %v1969_v49, %v15683_v18  ;;  %v15724_v18 = vld [vmem:[#allocation40_spill] sm:$0xff] }
 0x4d8   : > { %v1968_v36 = vmul.f32 %v8785_v24, %v1941_v17 }
 0x4d9   : > { %v1729_v47 = vadd.f32 %v1721_v63, %v1665_v48  ;;  %v1920_v63 = vadd.f32 %v1912_v52, %v1856_v23 }
 0x4da   : > { %v1976_v16 = vmul.f32 %v1968_v36, %v15682_v26  ;;  %v8980_v36 = vld [vmem:[%s14749_s4 + $0x58] sm:$0xff] }
 0x4db   : > { %6555 = vset.pattern.permute.xlu2 %v15692_v35  ;;  %v1793_v7 = vadd.f32 %v1785_v41, %v1729_v47 }
 0x4dc   : > { %2204 = vperm.xlu2 %6555, %v8826_v46   ;;  %v1984_v56 = vadd.f32 %v1976_v16, %v1920_v63 }
 0x4dd   : > { %v1857_v30 = vadd.f32 %v1849_v33, %v1793_v7  ;;  %v8969_v33 = vld [vmem:[%s14749_s4 + $0x48] sm:$0xff] }
 0x4df   : > { %v1921_v53 = vadd.f32 %v1913_v38, %v1857_v30  ;;  %v15722_v30 = vld [vmem:[#allocation30_spill] sm:$0xff] }
 0x4e0   : > { %v8996_v16 = vadd.f32 1e-12, %v15722_v30 }
 0x4e1   : > { %v1985_v32 = vadd.f32 %v1977_v42, %v1921_v53 }
 0x4e4   : > { %6557 = vset.pattern.permute.xlu2 %v15694_v1 }
 0x4ec   : > { %v8931_v27 = vpop.f32.mrf.mxu0 }
 0x4ed   : > { %v8950_v28 = vpop.f32.mrf.mxu1 }
 0x4f4   : > { %v2149_v62 = vpop.f32.mrf.mxu0 }
 0x4f5   : > { %v2178_v17 = vpop.f32.mrf.mxu1 }
 0x4fc   : > { %v2152_v44 = vpop.f32.mrf.mxu0 }
 0x50a   : > { %v2030_v21 = vpop.xlane.xlu0 %2029 }
 0x50b   : > { %v2036_v37 = vadd.f32 1e-12, %v2030_v21 }
 0x50d   : > { %6639 = vrsqrt.f32 %v2036_v37  ;;  %vm2064_vm13 = vweird.f32 %v2036_v37 }
 0x513   : > { %v2024_v7 = vpop.xlane.xlu1 %2023  ;;  %v6640_v23 = vpop.eup %6639 }
 0x514   : > { %v8992_v38 = vadd.f32 1e-12, %v2024_v7  ;;  %v2059_v63 = vmul.f32 %v6640_v23, %v2036_v37  ;;  %vm2065_vm10 = vweird.f32 %v6640_v23 }
 0x515   : > { %vm2066_vm14 = vmor %vm2064_vm13, %vm2065_vm10 }
 0x516   : > { %vm2044_vm13 = vweird.f32 %v8992_v38 }
 0x51d   : > { %v2107_v40 = vpop.permute.xlu0 %2106 }
 0x51e   : > { %v2027_v5 = vpop.xlane.xlu2 %2026  ;;  %v8959_v50 = vadd.f32 %v2178_v17, %v2107_v40  ;;  %v8982_v49 = vadd.f32 %v2149_v62, %v2107_v40 }
 0x51f   : > { %v8990_v52 = vadd.f32 1e-12, %v2027_v5 }
 0x520   : > { %15720 = vst [vmem:[#allocation34_spill] sm:$0xff] %v8959_v50 }
 0x521   : > { %15721 = vst [vmem:[#allocation20_spill] sm:$0xff] %v8982_v49  ;;  %6641 = vrsqrt.f32 %v8990_v52 }
 0x522   : > { %6643 = vrsqrt.f32 %v8992_v38 }
 0x523   : > { %6645 = vrsqrt.f32 %v8996_v16 }
 0x526   : > { %v2004_v24 = vpop.permute.xlu2 %2003 }
 0x527   : > { %v8933_v29 = vadd.f32 %v2004_v24, %v1984_v56  ;;  %v8935_v48 = vadd.f32 %v2004_v24, %v1985_v32  ;;  %v6642_v56 = vpop.eup %6641  ;;  %v2060_v32 = vmul.f32 %v6640_v23, %v2059_v63 }
 0x528   : > { %v2049_v5 = vmul.f32 %v6642_v56, %v8990_v52  ;;  %v9001_v24 = vpop.eup %6643  ;;  %vm2055_vm15 = vweird.f32 %v6642_v56 }
 0x529   : > { %v2020_v12 = vmul.f32 %v8933_v29, %v8933_v29  ;;  %v2021_v61 = vmul.f32 %v8935_v48, %v8935_v48  ;;  %v2061_v21 = vmul.f32 0.5, %v2060_v32  ;;  %v9016_v32 = vadd.f32 1e-12, %v15724_v18 }
 0x52a   : > { %v2050_v17 = vmul.f32 %v6642_v56, %v2049_v5 }
 0x52b   : > { %v2031_v25 = vadd.f32 %v2021_v61, %v2020_v12  ;;  %v15723_v12 = vld [vmem:[#allocation38_spill] sm:$0xff]  ;;  %v2062_v30 = vsub.f32 1.5, %v2061_v21 }
 0x52c   : > { %v9004_v61 = vadd.f32 1e-12, %v15723_v12  ;;  %v2051_v63 = vmul.f32 0.5, %v2050_v17 }
 0x52d   : > { %2032 = vadd.xlane.f32.xlu1 %v2031_v25  ;;  %v9006_v25 = vpop.eup %6645  ;;  %v2063_v3 = vmul.f32 %v6640_v23, %v2062_v30 }
 0x52e   : > { %v8943_v41 = vpop.permute.xlu2 %2096  ;;  %v2052_v54 = vsub.f32 1.5, %v2051_v63 }
 0x52f   : > { %v8946_v45 = vadd.f32 %v2143_v13, %v8943_v41  ;;  %v2091_v13 = vld [vmem:[%s15461_s3 + $0x48] sm:$0xff] }
 0x530   : > { %v2053_v30 = vmul.f32 %v6642_v56, %v2052_v54 }
 0x531   : > { %2220 = vrot.lane.b32.xlu2 %v8946_v45, %s15587_s30 }
 0x536   : > { %v8952_v47 = vpop.permute.xlu2 %2111 }
 0x537   : > { %v8955_v11 = vadd.f32 %v2152_v44, %v8952_v47  ;;  %v2039_v44 = vmul.f32 %v9001_v24, %v8992_v38 }
 0x539   : > { %2226 = vrot.lane.b32.xlu2 %v8955_v11, %s15587_s30 }
 0x541   : > { %2232 = vrot.lane.b32.xlu2 %v8959_v50, %s15587_s30 }
 0x546   : > { %2101 = vperm.xlu1 %6552, %v2091_v13   ;;  %v1293_v13 = vmul.f32 %v9006_v25, %v8996_v16 }
 0x549   : > { %2249 = vperm.xlu2 %6557, %v8969_v33  }
 0x54e   : > { %6554 = vset.pattern.permute.xlu1 %v15692_v35  ;;  %v1294_v35 = vmul.f32 %v9006_v25, %v1293_v13 }
 0x54f   : > { %2199 = vperm.xlu1 %6554, %v8969_v33  }
 0x550   : > { %v1295_v21 = vmul.f32 0.5, %v1294_v35 }
 0x551   : > { %2284 = vrot.lane.b32.xlu2 %v8946_v45, %s15595_s18 }
 0x552   : > { %6558 = vset.pattern.permute.xlu2 %v15693_v10 }
 0x557   : > { %2209 = vperm.xlu1 %6554, %v8980_v36  }
 0x559   : > { %2288 = vrot.lane.b32.xlu2 %v8982_v49, %s15595_s18 }
 0x55f   : > { %2224 = vrot.lane.b32.xlu1 %v8982_v49, %s15587_s30 }
 0x560   : > { %6556 = vset.pattern.permute.xlu1 %v15694_v1 }
 0x5a0   : > { %v2033_v42 = vpop.xlane.xlu1 %2032 }
 0x5a1   : > { %v2037_v53 = vadd.f32 1e-12, %v2033_v42  ;;  %v2040_v42 = vmul.f32 %v9001_v24, %v2039_v44 }
 0x5a3   : > { %6647 = vrsqrt.f32 %v2037_v53  ;;  %v2041_v0 = vmul.f32 0.5, %v2040_v42  ;;  %vm2074_vm11 = vweird.f32 %v2037_v53 }
 0x5a4   : > { %6649 = vrsqrt.f32 %v9004_v61 }
 0x5a5   : > { %6651 = vrsqrt.f32 %v9016_v32  ;;  %v2042_v13 = vsub.f32 1.5, %v2041_v0 }
 0x5a9   : > { %v6648_v62 = vpop.eup %6647 }
 0x5aa   : > { %v2069_v40 = vmul.f32 %v6648_v62, %v2037_v53  ;;  %vm2075_vm9 = vweird.f32 %v6648_v62  ;;  %v9018_v5 = vpop.eup %6649  ;;  %v15725_v53 = vld [vmem:[#allocation39_spill] sm:$0xff] }
 0x5ab   : > { %vm2076_vm12 = vmor %vm2074_vm11, %vm2075_vm9  ;;  %v1303_v44 = vmul.f32 %v9018_v5, %v9004_v61  ;;  %v9027_v42 = vadd.f32 1e-12, %v15725_v53  ;;  %vm2054_vm9 = vweird.f32 %v8990_v52  ;;  %vm2045_vm11 = vweird.f32 %v9001_v24 }
 0x5ac   : > { %v2070_v7 = vmul.f32 %v6648_v62, %v2069_v40  ;;  %vm2056_vm10 = vmor %vm2054_vm9, %vm2055_vm15  ;;  %vm1298_vm15 = vweird.f32 %v8996_v16  ;;  %v15729_v16 = vld [vmem:[#allocation56_spill] sm:$0xff] }
 0x5ad   : > { %v1304_v35 = vmul.f32 %v9018_v5, %v1303_v44  ;;  %v2057_v37 = vsel %vm2056_vm10, %v6642_v56, %v2053_v30  ;;  %6653 = vrsqrt.f32 %v9027_v42  ;;  %vm1309_vm10 = vweird.f32 %v9018_v5 }
 0x5ae   : > { %v2071_v12 = vmul.f32 0.5, %v2070_v7  ;;  %v2067_v7 = vsel %vm2066_vm14, %v6640_v23, %v2063_v3  ;;  %v9038_v3 = vpop.eup %6651  ;;  %v2043_v23 = vmul.f32 %v9001_v24, %v2042_v13  ;;  %v2081_v52 = vmul.f32 %v2057_v37, %v8797_v39  ;;  %vm2046_vm14 = vmor %vm2044_vm13, %vm2045_vm11 }
 0x5af   : > { %v2082_v54 = vmul.f32 %v2067_v7, %v8726_v43  ;;  %v2083_v0 = vmul.f32 %v2067_v7, %v8728_v55  ;;  %v1305_v43 = vmul.f32 0.5, %v1304_v35  ;;  %v1313_v55 = vmul.f32 %v9038_v3, %v9016_v32  ;;  %v15731_v7 = vld [vmem:[#allocation37_spill] sm:$0xff] }
 0x5b0   : > { %v2072_v26 = vsub.f32 1.5, %v2071_v12  ;;  %v2047_v38 = vsel %vm2046_vm14, %v9001_v24, %v2043_v23  ;;  %v9064_v39 = vadd.f32 %v8937_v51, %v8943_v41  ;;  %vm1308_vm11 = vweird.f32 %v9004_v61  ;;  %v2181_v51 = vpop.f32.mrf.mxu1 }
 0x5b1   : > { %v2078_v63 = vmul.f32 %v2047_v38, %v8777_v14  ;;  %v2079_v12 = vmul.f32 %v2047_v38, %v8779_v8  ;;  %v9078_v13 = vadd.f32 %v2181_v51, %v8952_v47  ;;  %vm1319_vm13 = vweird.f32 %v9038_v3 }
 0x5b2   : > { %v2073_v4 = vmul.f32 %v6648_v62, %v2072_v26  ;;  %v1296_v26 = vsub.f32 1.5, %v1295_v21  ;;  %v1306_v21 = vsub.f32 1.5, %v1305_v43  ;;  %15728 = vst [vmem:[#allocation84_spill] sm:$0xff] %v9064_v39  ;;  %vm1318_vm14 = vweird.f32 %v9016_v32 }
 0x5b4   : > { %v2077_v18 = vsel %vm2076_vm12, %v6648_v62, %v2073_v4  ;;  %vm1299_vm12 = vweird.f32 %v9006_v25  ;;  %v1314_v62 = vmul.f32 %v9038_v3, %v1313_v55  ;;  %v1307_v8 = vmul.f32 %v9018_v5, %v1306_v21  ;;  %v15737_v55 = vld [vmem:[#allocation32_spill] sm:$0xff] }
 0x5b5   : > { %v2084_v17 = vmul.f32 %v2077_v18, %v8933_v29  ;;  %v2085_v40 = vmul.f32 %v2077_v18, %v8935_v48  ;;  %vm1300_vm9 = vmor %vm1298_vm15, %vm1299_vm12 }
 0x5b6   : > { %v1315_v18 = vmul.f32 0.5, %v1314_v62  ;;  %vm1310_vm12 = vmor %vm1308_vm11, %vm1309_vm10  ;;  %vm1328_vm10 = vweird.f32 %v9027_v42  ;;  %v15740_v62 = vmov 3  }
 0x5b7   : > { %2772 = vmatpush.xpose.msra.mxu2 %v2084_v17  ;;  %2801 = vmatpush.xpose.msra.mxu3 %v2085_v40  ;;  %v1311_v17 = vsel %vm1310_vm12, %v9018_v5, %v1307_v8  ;;  %vm1320_vm15 = vmor %vm1318_vm14, %vm1319_vm13  ;;  %v9188_v8 = vpop.permute.xlu0 %2194 }
 0x5b8   : > { %v2102_v4 = vpop.permute.xlu1 %2101  ;;  %v1316_v40 = vsub.f32 1.5, %v1315_v18  ;;  %v1334_v30 = vmul.f32 %v1311_v17, %v15731_v7 }
 0x5b9   : > { %v9031_v29 = vadd.f32 %v8931_v27, %v2102_v4  ;;  %v9034_v48 = vadd.f32 %v8950_v28, %v2102_v4  ;;  %v1297_v27 = vmul.f32 %v9006_v25, %v1296_v26  ;;  %v2080_v28 = vmul.f32 %v2057_v37, %v8795_v58  ;;  %v6654_v58 = vpop.eup %6653  ;;  %v15732_v26 = vld [vmem:[#allocation46_spill] sm:$0xff]  ;;  %v9090_v4 = vpop.permute.xlu2 %2204  ;;  %v15735_v37 = vld [vmem:[#allocation53_spill] sm:$0xff] }
 0x5ba   : > { %v1323_v14 = vmul.f32 %v6654_v58, %v9027_v42  ;;  %v1335_v35 = vmul.f32 %v1311_v17, %v15732_v26  ;;  %v1317_v61 = vmul.f32 %v9038_v3, %v1316_v40  ;;  %15733 = vst [vmem:[#allocation80_spill] sm:$0xff] %v9090_v4  ;;  %v15750_v26 = vmov 6  }
 0x5bb   : > { %15726 = vst [vmem:[#allocation76_spill] sm:$0xff] %v9031_v29  ;;  %2773 = vmatpush.xpose.msra.mxu2 %v2082_v54  ;;  %2802 = vmatpush.xpose.msra.mxu3 %v2083_v0  ;;  %v1301_v56 = vsel %vm1300_vm9, %v9006_v25, %v1297_v27  ;;  %v15730_v25 = vld [vmem:[#allocation17_spill] sm:$0xff]  ;;  %v15734_v54 = vld [vmem:[#allocation31_spill] sm:$0xff]  ;;  %vm1329_vm9 = vweird.f32 %v6654_v58  ;;  %v15736_v27 = vmov 2  }
 0x5bc   : > { %15727 = vst [vmem:[#allocation13_spill] sm:$0xff] %v9034_v48  ;;  %2294 = vrot.lane.b32.xlu2 %v9034_v48, %s15595_s18  ;;  %2230 = vrot.lane.b32.xlu1 %v9034_v48, %s15587_s30  ;;  %v1332_v24 = vmul.f32 %v1301_v56, %v15729_v16  ;;  %v1333_v44 = vmul.f32 %v1301_v56, %v15730_v25  ;;  %vm1330_vm11 = vmor %vm1328_vm10, %vm1329_vm9  ;;  %v15744_v16 = vmov 5  }
 0x5bd   : > { %2222 = vrot.lane.b32.xlu0 %v9031_v29, %s15587_s30  ;;  %v1324_v41 = vmul.f32 %v6654_v58, %v1323_v14  ;;  %v1321_v47 = vsel %vm1320_vm15, %v9038_v3, %v1317_v61 }
 0x5be   : > { %v1336_v0 = vmul.f32 %v1321_v47, %v15734_v54  ;;  %v1337_v23 = vmul.f32 %v1321_v47, %v15735_v37 }
 0x5bf   : > { %2774 = vmatpush.xpose.msra.mxu2 %v2080_v28  ;;  %2803 = vmatpush.xpose.msra.mxu3 %v2081_v52  ;;  %v1325_v53 = vmul.f32 0.5, %v1324_v41  ;;  %v15738_v52 = vld [vmem:[#allocation45_spill] sm:$0xff] }
 0x5c1   : > { %v1326_v5 = vsub.f32 1.5, %v1325_v53  ;;  %v9103_v43 = vpop.permute.xlu2 %2220 }
 0x5c3   : > { %2775 = vmatpush.xpose.msra.mxu2 %v2078_v63  ;;  %2804 = vmatpush.xpose.msra.mxu3 %v2079_v12  ;;  %v1327_v32 = vmul.f32 %v6654_v58, %v1326_v5 }
 0x5c4   : > { %2309 = vperm.xlu2 %6558, %v8809_v22   ;;  %2245 = vperm.xlu1 %6556, %v8809_v22  }
 0x5c5   : > { %2228 = vrot.lane.b32.xlu0 %v9064_v39, %s15587_s30  ;;  %v1331_v3 = vsel %vm1330_vm11, %v6654_v58, %v1327_v32  ;;  %v9157_v58 = vpop.permute.xlu1 %2199 }
 0x5c6   : > { %2776 = vmatmul.f32.vlgmr.msra.gmra.mxu2 %v1332_v24  ;;  %2805 = vmatmul.f32.vlgmr.msra.gmra.mxu3 %v1333_v44  ;;  %v1338_v28 = vmul.f32 %v1331_v3, %v15737_v55  ;;  %v1339_v38 = vmul.f32 %v1331_v3, %v15738_v52  ;;  %15743 = vst [vmem:[#allocation79_spill] sm:$0xff] %v9157_v58 }
 0x5c9   : > { %v9118_v42 = vpop.permute.xlu2 %2226 }
 0x5cc   : > { %2321 = vperm.xlu2 %6558, %v8980_v36   ;;  %2257 = vperm.xlu1 %6556, %v8980_v36  }
 0x5cd   : > { %2234 = vrot.lane.b32.xlu0 %v9078_v13, %s15587_s30  ;;  %v9167_v25 = vpop.permute.xlu1 %2209 }
 0x5ce   : > { %2779 = vmatmul.f32.gmra.mxu2 %v1334_v30  ;;  %2808 = vmatmul.f32.gmra.mxu3 %v1335_v35 }
 0x5d1   : > { %v9125_v56 = vpop.permute.xlu2 %2232 }
 0x5d2   : > { %15739 = vst [vmem:[#allocation19_spill] sm:$0xff] %v9125_v56 }
 0x5d4   : > { %2350 = vrot.lane.b32.xlu2 %v9031_v29, %s15597_s20  ;;  %2286 = vrot.lane.b32.xlu1 %v9031_v29, %s15595_s18 }
 0x5d5   : > { %2290 = vrot.lane.b32.xlu0 %v8955_v11, %s15595_s18  ;;  %6563 = vset.pattern.permute.xlu2 %v15736_v27  ;;  %v9183_v14 = vpop.permute.xlu1 %2224 }
 0x5d6   : > { %2782 = vmatmul.f32.gmra.mxu2 %v1336_v0  ;;  %2811 = vmatmul.f32.gmra.mxu3 %v1337_v23  ;;  %15747 = vst [vmem:[#allocation18_spill] sm:$0xff] %v9183_v14 }
 0x5d7   : > { %6560 = vset.pattern.permute.xlu1 %v15693_v10  ;;  %v15759_v10 = vmov 7  }
 0x5d9   : > { %v9135_v63 = vpop.permute.xlu2 %2249 }
 0x5da   : > { %15741 = vst [vmem:[#allocation42_spill] sm:$0xff] %v9135_v63 }
 0x5dc   : > { %2356 = vrot.lane.b32.xlu2 %v9064_v39, %s15597_s20  ;;  %2292 = vrot.lane.b32.xlu1 %v9064_v39, %s15595_s18 }
 0x5dd   : > { %2296 = vrot.lane.b32.xlu0 %v8959_v50, %s15595_s18 }
 0x5de   : > { %2785 = vmatmul.f32.gmra.mxu2 %v1338_v28  ;;  %2814 = vmatmul.f32.gmra.mxu3 %v1339_v38 }
 0x5e1   : > { %v9142_v12 = vpop.permute.xlu2 %2284 }
 0x5e4   : > { %2362 = vrot.lane.b32.xlu2 %v9078_v13, %s15597_s20  ;;  %2298 = vrot.lane.b32.xlu1 %v9078_v13, %s15595_s18 }
 0x5e5   : > { %2313 = vperm.xlu0 %6559, %v8969_v33  }
 0x5e9   : > { %v9155_v21 = vpop.permute.xlu2 %2288 }
 0x5ea   : > { %15742 = vst [vmem:[#allocation43_spill] sm:$0xff] %v9155_v21 }
 0x5ec   : > { %2381 = vperm.xlu2 %6563, %v8826_v46   ;;  %2317 = vperm.xlu1 %6560, %v8826_v46  }
 0x5ed   : > { %2352 = vrot.lane.b32.xlu0 %v8982_v49, %s15597_s20 }
 0x5ee   : > { %6561 = vset.pattern.permute.xlu0 %v15736_v27 }
 0x5f4   : > { %2412 = vrot.lane.b32.xlu2 %v8946_v45, %s15599_s23  ;;  %2348 = vrot.lane.b32.xlu1 %v8946_v45, %s15597_s20 }
 0x5f5   : > { %2358 = vrot.lane.b32.xlu0 %v9034_v48, %s15597_s20  ;;  %6565 = vset.pattern.permute.xlu2 %v15740_v62 }
 0x5f6   : > { %6562 = vset.pattern.permute.xlu1 %v15736_v27 }
 0x5fc   : > { %2418 = vrot.lane.b32.xlu2 %v8955_v11, %s15599_s23  ;;  %2354 = vrot.lane.b32.xlu1 %v8955_v11, %s15597_s20 }
 0x5fd   : > { %2373 = vperm.xlu0 %6561, %v8809_v22  }
 0x604   : > { %2424 = vrot.lane.b32.xlu2 %v8959_v50, %s15599_s23  ;;  %2360 = vrot.lane.b32.xlu1 %v8959_v50, %s15597_s20 }
 0x605   : > { %2414 = vrot.lane.b32.xlu0 %v9031_v29, %s15599_s23 }
 0x606   : > { %6566 = vset.pattern.permute.xlu0 %v15740_v62 }
 0x60c   : > { %2441 = vperm.xlu2 %6565, %v8969_v33   ;;  %2377 = vperm.xlu1 %6562, %v8969_v33  }
 0x60d   : > { %2420 = vrot.lane.b32.xlu0 %v9064_v39, %s15599_s23 }
 0x614   : > { %2476 = vrot.lane.b32.xlu2 %v8946_v45, %s15601_s1  ;;  %2385 = vperm.xlu1 %6562, %v8980_v36  }
 0x615   : > { %2426 = vrot.lane.b32.xlu0 %v9078_v13, %s15599_s23  ;;  %6567 = vset.pattern.permute.xlu2 %v15744_v16 }
 0x616   : > { %v9165_v24 = vpop.permute.xlu2 %2294 }
 0x617   : > { %15745 = vst [vmem:[#allocation70_spill] sm:$0xff] %v9165_v24 }
 0x61c   : > { %2480 = vrot.lane.b32.xlu2 %v8982_v49, %s15601_s1  ;;  %2416 = vrot.lane.b32.xlu1 %v8982_v49, %s15599_s23 }
 0x61d   : > { %2445 = vperm.xlu0 %6566, %v8826_v46   ;;  %6564 = vset.pattern.permute.xlu1 %v15740_v62  ;;  %v15755_v62 = vmov 8  }
 0x61e   : > { %v9175_v44 = vpop.permute.xlu2 %2309 }
 0x61f   : > { %15746 = vst [vmem:[#allocation47_spill] sm:$0xff] %v9175_v44 }
 0x624   : > { %2486 = vrot.lane.b32.xlu2 %v9034_v48, %s15601_s1  ;;  %2422 = vrot.lane.b32.xlu1 %v9034_v48, %s15599_s23 }
 0x625   : > { %2482 = vrot.lane.b32.xlu0 %v8955_v11, %s15601_s1 }
 0x626   : > { %v9185_v18 = vpop.permute.xlu2 %2321  ;;  %6568 = vset.pattern.permute.xlu0 %v15744_v16 }
 0x62c   : > { %2501 = vperm.xlu2 %6567, %v8809_v22   ;;  %2437 = vperm.xlu1 %6564, %v8809_v22  }
 0x62d   : > { %2488 = vrot.lane.b32.xlu0 %v8959_v50, %s15601_s1 }
 0x62e   : > { %v9194_v51 = vpop.permute.xlu2 %2350  ;;  %v9196_v41 = vpop.permute.xlu1 %2230 }
 0x62f   : > { %15748 = vst [vmem:[#allocation71_spill] sm:$0xff] %v9194_v51  ;;  %v9198_v17 = vpop.permute.xlu0 %2222 }
 0x634   : > { %2513 = vperm.xlu2 %6567, %v8980_v36   ;;  %2449 = vperm.xlu1 %6564, %v8980_v36  }
 0x635   : > { %2505 = vperm.xlu0 %6568, %v8969_v33  }
 0x636   : > { %v9203_v40 = vpop.permute.xlu2 %2356  ;;  %v9205_v7 = vpop.permute.xlu1 %2245 }
 0x637   : > { %15749 = vst [vmem:[#allocation54_spill] sm:$0xff] %v9203_v40  ;;  %v9207_v30 = vpop.permute.xlu0 %2228 }
 0x63c   : > { %2542 = vrot.lane.b32.xlu2 %v9031_v29, %s15605_s27  ;;  %2478 = vrot.lane.b32.xlu1 %v9031_v29, %s15601_s1 }
 0x63d   : > { %2544 = vrot.lane.b32.xlu0 %v8982_v49, %s15605_s27  ;;  %6572 = vset.pattern.permute.xlu2 %v15750_v26 }
 0x63e   : > { %v9216_v35 = vpop.permute.xlu2 %2362  ;;  %v9218_v53 = vpop.permute.xlu1 %2257  ;;  %6570 = vset.pattern.permute.xlu0 %v15750_v26  ;;  %6569 = vset.pattern.permute.xlu1 %v15744_v16 }
 0x63f   : > { %v9222_v61 = vpop.permute.xlu0 %2234 }
 0x644   : > { %2548 = vrot.lane.b32.xlu2 %v9064_v39, %s15605_s27  ;;  %2484 = vrot.lane.b32.xlu1 %v9064_v39, %s15601_s1 }
 0x645   : > { %2550 = vrot.lane.b32.xlu0 %v9034_v48, %s15605_s27 }
 0x646   : > { %v9230_v47 = vpop.permute.xlu2 %2381  ;;  %v9232_v5 = vpop.permute.xlu1 %2286 }
 0x647   : > { %15751 = vst [vmem:[#allocation85_spill] sm:$0xff] %v9230_v47  ;;  %v9234_v54 = vpop.permute.xlu0 %2290 }
 0x648   : > { %15752 = vst [vmem:[#allocation72_spill] sm:$0xff] %v9232_v5 }
 0x649   : > { %v9236_v0 = vpop.f32.mrf.mxu2  ;;  %v9238_v37 = vpop.f32.mrf.mxu3 }
 0x64c   : > { %2554 = vrot.lane.b32.xlu2 %v9078_v13, %s15605_s27  ;;  %2490 = vrot.lane.b32.xlu1 %v9078_v13, %s15601_s1 }
 0x64d   : > { %2565 = vperm.xlu0 %6570, %v8809_v22  }
 0x64e   : > { %v9245_v23 = vpop.permute.xlu2 %2412  ;;  %v9247_v32 = vpop.permute.xlu1 %2292 }
 0x64f   : > { %15753 = vst [vmem:[#allocation87_spill] sm:$0xff] %v9245_v23  ;;  %v9249_v3 = vpop.permute.xlu0 %2296 }
 0x650   : > { %15754 = vst [vmem:[#allocation89_spill] sm:$0xff] %v9249_v3 }
 0x651   : > { %v2780_v55 = vpop.f32.mrf.mxu2  ;;  %v2809_v28 = vpop.f32.mrf.mxu3 }
 0x652   : > { %v9251_v52 = vadd.f32 %v2809_v28, %v2780_v55 }
 0x654   : > { %2573 = vperm.xlu2 %6572, %v8826_v46   ;;  %2509 = vperm.xlu1 %6569, %v8826_v46  }
 0x655   : > { %2606 = vrot.lane.b32.xlu0 %v9031_v29, %s15610_s26 }
 0x656   : > { %v9257_v38 = vpop.permute.xlu2 %2418  ;;  %v9259_v16 = vpop.permute.xlu1 %2298  ;;  %6576 = vset.pattern.permute.xlu0 %v15755_v62 }
 0x657   : > { %v9262_v27 = vpop.permute.xlu0 %2313 }
 0x658   : > { %15756 = vst [vmem:[#allocation14_spill] sm:$0xff] %v9262_v27 }
 0x65c   : > { %2604 = vrot.lane.b32.xlu2 %v8946_v45, %s15610_s26  ;;  %2540 = vrot.lane.b32.xlu1 %v8946_v45, %s15605_s27 }
 0x65d   : > { %2612 = vrot.lane.b32.xlu0 %v9064_v39, %s15610_s26  ;;  %6574 = vset.pattern.permute.xlu2 %v15759_v10 }
 0x65e   : > { %v9270_v55 = vpop.permute.xlu2 %2424  ;;  %v9272_v28 = vpop.permute.xlu1 %2317  ;;  %6571 = vset.pattern.permute.xlu1 %v15750_v26 }
 0x65f   : > { %15757 = vst [vmem:[#allocation33_spill] sm:$0xff] %v9270_v55  ;;  %v9276_v47 = vpop.permute.xlu0 %2352 }
 0x660   : > { %15758 = vst [vmem:[#allocation77_spill] sm:$0xff] %v9272_v28 }
 0x661   : > { %15760 = vst [vmem:[#allocation78_spill] sm:$0xff] %v9276_v47 }
 0x664   : > { %2610 = vrot.lane.b32.xlu2 %v8955_v11, %s15610_s26  ;;  %2546 = vrot.lane.b32.xlu1 %v8955_v11, %s15605_s27 }
 0x665   : > { %2618 = vrot.lane.b32.xlu0 %v9078_v13, %s15610_s26 }
 0x666   : > { %v9284_v23 = vpop.permute.xlu2 %2441  ;;  %v9286_v55 = vpop.permute.xlu1 %2348 }
 0x667   : > { %15761 = vst [vmem:[#allocation86_spill] sm:$0xff] %v9284_v23  ;;  %v9288_v51 = vpop.permute.xlu0 %2358 }
 0x668   : > { %15762 = vst [vmem:[#allocation51_spill] sm:$0xff] %v9286_v55  ;;  %v2783_v55 = vpop.f32.mrf.mxu2 }
 0x669   : > { %15763 = vst [vmem:[#allocation88_spill] sm:$0xff] %v9288_v51 }
 0x66c   : > { %2616 = vrot.lane.b32.xlu2 %v8959_v50, %s15610_s26  ;;  %2552 = vrot.lane.b32.xlu1 %v8959_v50, %s15605_s27 }
 0x66d   : > { %2674 = vrot.lane.b32.xlu0 %v8955_v11, %s15613_s29 }
 0x66e   : > { %v9296_v26 = vpop.permute.xlu2 %2476  ;;  %v9298_v47 = vpop.permute.xlu1 %2354 }
 0x66f   : > { %15764 = vst [vmem:[#allocation52_spill] sm:$0xff] %v9296_v26  ;;  %v9300_v14 = vpop.permute.xlu0 %2373 }
 0x670   : > { %15765 = vst [vmem:[#allocation63_spill] sm:$0xff] %v9300_v14 }
 0x674   : > { %2633 = vperm.xlu2 %6574, %v8969_v33   ;;  %2569 = vperm.xlu1 %6571, %v8969_v33  }
 0x675   : > { %2680 = vrot.lane.b32.xlu0 %v8959_v50, %s15613_s29 }
 0x676   : > { %v9306_v23 = vpop.permute.xlu2 %2480  ;;  %v9308_v51 = vpop.permute.xlu1 %2360 }
 0x677   : > { %15766 = vst [vmem:[#allocation22_spill] sm:$0xff] %v9306_v23  ;;  %v9310_v56 = vpop.permute.xlu0 %2414 }
 0x678   : > { %15767 = vst [vmem:[#allocation25_spill] sm:$0xff] %v9308_v51 }
 0x679   : > { %15768 = vst [vmem:[#allocation21_spill] sm:$0xff] %v9310_v56 }
 0x67c   : > { %2668 = vrot.lane.b32.xlu2 %v8946_v45, %s15613_s29  ;;  %2577 = vperm.xlu1 %6571, %v8980_v36  }
 0x67d   : > { %2697 = vperm.xlu0 %6576, %v8969_v33   ;;  %6575 = vset.pattern.permute.xlu2 %v15755_v62 }
 0x67e   : > { %v9316_v26 = vpop.permute.xlu2 %2486  ;;  %v9318_v4 = vpop.permute.xlu1 %2377 }
 0x67f   : > { %15769 = vst [vmem:[#allocation26_spill] sm:$0xff] %v9316_v26  ;;  %v9321_v50 = vpop.permute.xlu0 %2420 }
 0x680   : > { %15770 = vst [vmem:[#allocation58_spill] sm:$0xff] %v9318_v4  ;;  %v2821_v4 = vld [vmem:[%s14751_s6 + $0x18] sm:$0xff] }
 0x681   : > { %15771 = vst [vmem:[#allocation27_spill] sm:$0xff] %v9321_v50  ;;  %v2190_v50 = vld [vmem:[%s15481_s5 + $0x50] sm:$0xff] }
 0x684   : > { %2672 = vrot.lane.b32.xlu2 %v8982_v49, %s15613_s29  ;;  %2608 = vrot.lane.b32.xlu1 %v8982_v49, %s15610_s26 }
 0x685   : > { %6577 = vset.pattern.permute.xlu0 %v15694_v1  ;;  %6573 = vset.pattern.permute.xlu1 %v15759_v10 }
 0x686   : > { %2253 = vperm.xlu0 %6577, %v8826_v46   ;;  %v9329_v23 = vpop.permute.xlu2 %2501  ;;  %v9331_v33 = vpop.permute.xlu1 %2385 }
 0x687   : > { %15772 = vst [vmem:[#allocation24_spill] sm:$0xff] %v9329_v23  ;;  %v9334_v26 = vpop.permute.xlu0 %2426 }
 0x68c   : > { %2678 = vrot.lane.b32.xlu2 %v9034_v48, %s15613_s29  ;;  %2614 = vrot.lane.b32.xlu1 %v9034_v48, %s15610_s26 }
 0x68e   : > { %2744 = vperm.xlu0 %6577, %v2190_v50   ;;  %v9343_v51 = vpop.permute.xlu2 %2513  ;;  %v9345_v23 = vpop.permute.xlu1 %2416 }
 0x68f   : > { %15773 = vst [vmem:[#allocation55_spill] sm:$0xff] %v9345_v23  ;;  %v9347_v56 = vpop.permute.xlu0 %2445 }
 0x690   : > { %15774 = vst [vmem:[#allocation44_spill] sm:$0xff] %v9347_v56 }
 0x694   : > { %2693 = vperm.xlu2 %6575, %v8809_v22   ;;  %2629 = vperm.xlu1 %6573, %v8809_v22   ;;  %v2189_v22 = vld [vmem:[%s15481_s5 + $0x48] sm:$0xff] }
 0x696   : > { %2839 = vperm.xlu0 %6577, %v2821_v4   ;;  %v9354_v49 = vpop.permute.xlu2 %2542  ;;  %v9356_v28 = vpop.permute.xlu1 %2422 }
 0x697   : > { %15775 = vst [vmem:[#allocation50_spill] sm:$0xff] %v9354_v49  ;;  %v9358_v50 = vpop.permute.xlu0 %2482 }
 0x698   : > { %15776 = vst [vmem:[#allocation23_spill] sm:$0xff] %v9356_v28 }
 0x69c   : > { %2705 = vperm.xlu2 %6575, %v8980_v36   ;;  %2641 = vperm.xlu1 %6573, %v8980_v36  }
 0x69e   : > { %v9362_v56 = vpop.permute.xlu2 %2548  ;;  %v9364_v23 = vpop.permute.xlu1 %2437 }
 0x69f   : > { %15777 = vst [vmem:[#allocation28_spill] sm:$0xff] %v9362_v56  ;;  %v9366_v21 = vpop.permute.xlu0 %2488  ;;  %v2818_v56 = vld [vmem:[%s14751_s6] sm:$0xff] }
 0x6a0   : > { %15778 = vst [vmem:[#allocation16_spill] sm:$0xff] %v9364_v23 }
 0x6a1   : > { %15779 = vst [vmem:[#allocation41_spill] sm:$0xff] %v9366_v21 }
 0x6a4   : > { %6580 = vset.pattern.permute.xlu2 %v15694_v1  ;;  %2670 = vrot.lane.b32.xlu1 %v9031_v29, %s15613_s29 }
 0x6a5   : > { %2739 = vperm.xlu2 %6580, %v2189_v22   ;;  %6578 = vset.pattern.permute.xlu1 %v15755_v62  ;;  %v2820_v62 = vld [vmem:[%s14751_s6 + $0x10] sm:$0xff] }
 0x6a6   : > { %v9374_v4 = vpop.permute.xlu2 %2554  ;;  %v9376_v49 = vpop.permute.xlu1 %2449 }
 0x6a7   : > { %v9379_v36 = vpop.permute.xlu0 %2505 }
 0x6a8   : > { %15780 = vst [vmem:[#allocation15_spill] sm:$0xff] %v9379_v36 }
 0x6ac   : > { %2676 = vrot.lane.b32.xlu1 %v9064_v39, %s15613_s29 }
 0x6ad   : > { %2824 = vperm.xlu2 %6580, %v2818_v56  }
 0x6ae   : > { %v9386_v21 = vpop.permute.xlu2 %2573  ;;  %v9388_v23 = vpop.permute.xlu1 %2478 }
 0x6af   : > { %15781 = vst [vmem:[#allocation82_spill] sm:$0xff] %v9386_v21  ;;  %v9390_v22 = vpop.permute.xlu0 %2544 }
 0x6b0   : > { %15782 = vst [vmem:[#allocation73_spill] sm:$0xff] %v9388_v23  ;;  %v2188_v23 = vld [vmem:[%s15481_s5 + $0x40] sm:$0xff] }
 0x6b1   : > { %15783 = vst [vmem:[#allocation74_spill] sm:$0xff] %v9390_v22 }
 0x6b4   : > { %2682 = vrot.lane.b32.xlu1 %v9078_v13, %s15613_s29 }
 0x6b5   : > { %2834 = vperm.xlu2 %6580, %v2820_v62  }
 0x6b6   : > { %v9397_v36 = vpop.permute.xlu2 %2604  ;;  %v9399_v28 = vpop.permute.xlu1 %2484 }
 0x6b7   : > { %15784 = vst [vmem:[#allocation81_spill] sm:$0xff] %v9397_v36  ;;  %v9401_v3 = vpop.permute.xlu0 %2550 }
 0x6b8   : > { %15785 = vst [vmem:[#allocation75_spill] sm:$0xff] %v9399_v28 }
 0x6b9   : > { %15786 = vst [vmem:[#allocation90_spill] sm:$0xff] %v9401_v3 }
 0x6bc   : > { %2701 = vperm.xlu1 %6578, %v8826_v46   ;;  %v2191_v46 = vld [vmem:[%s15481_s5 + $0x58] sm:$0xff] }
 0x6be   : > { %v9404_v56 = vpop.permute.xlu2 %2610  ;;  %v9406_v21 = vpop.permute.xlu1 %2490 }
 0x6bf   : > { %v9408_v22 = vpop.permute.xlu0 %2565 }
 0x6c0   : > { %15787 = vst [vmem:[#allocation91_spill] sm:$0xff] %v9408_v22 }
 0x6c4   : > { %6579 = vset.pattern.permute.xlu1 %v15694_v1 }
 0x6c5   : > { %2734 = vperm.xlu1 %6579, %v2188_v23   ;;  %v2819_v23 = vld [vmem:[%s14751_s6 + $0x8] sm:$0xff] }
 0x6c6   : > { %v9414_v62 = vpop.permute.xlu2 %2616  ;;  %v9416_v36 = vpop.permute.xlu1 %2509 }
 0x6c7   : > { %15788 = vst [vmem:[#allocation83_spill] sm:$0xff] %v9414_v62  ;;  %v9418_v3 = vpop.permute.xlu0 %2606 }
 0x6c8   : > { %15789 = vst [vmem:[#allocation30_spill] sm:$0xff] %v9416_v36 }
 0x6c9   : > { %15790 = vst [vmem:[#allocation38_spill] sm:$0xff] %v9418_v3 }
 0x6cd   : > { %2749 = vperm.xlu1 %6579, %v2191_v46  }
 0x6ce   : > { %v9423_v28 = vpop.permute.xlu2 %2633  ;;  %v9427_v14 = vpop.permute.xlu1 %2540 }
 0x6cf   : > { %15791 = vst [vmem:[#allocation40_spill] sm:$0xff] %v9423_v28  ;;  %v9425_v22 = vpop.permute.xlu0 %2612 }
 0x6d0   : > { %15792 = vst [vmem:[#allocation39_spill] sm:$0xff] %v9425_v22 }
 0x6d1   : > { %15793 = vst [vmem:[#allocation56_spill] sm:$0xff] %v9427_v14 }
 0x6d5   : > { %2829 = vperm.xlu1 %6579, %v2819_v23  }
 0x6d6   : > { %v9432_v1 = vpop.permute.xlu2 %2668  ;;  %v9436_v3 = vpop.permute.xlu1 %2546 }
 0x6d7   : > { %15794 = vst [vmem:[#allocation17_spill] sm:$0xff] %v9432_v1  ;;  %v9434_v62 = vpop.permute.xlu0 %2618 }
 0x6de   : > { %v9438_v36 = vpop.permute.xlu2 %2672  ;;  %v9442_v28 = vpop.permute.xlu1 %2552 }
 0x6df   : > { %15795 = vst [vmem:[#allocation37_spill] sm:$0xff] %v9438_v36  ;;  %v9440_v46 = vpop.permute.xlu0 %2674 }
 0x6e0   : > { %15796 = vst [vmem:[#allocation46_spill] sm:$0xff] %v9442_v28  ;;  %v2812_v28 = vpop.f32.mrf.mxu3 }
 0x6e6   : > { %v9444_v22 = vpop.permute.xlu2 %2678  ;;  %v9448_v48 = vpop.permute.xlu1 %2569 }
 0x6e7   : > { %15797 = vst [vmem:[#allocation31_spill] sm:$0xff] %v9444_v22  ;;  %v9446_v14 = vpop.permute.xlu0 %2680 }
 0x6e8   : > { %15798 = vst [vmem:[#allocation53_spill] sm:$0xff] %v9446_v14  ;;  %v2815_v44 = vpop.f32.mrf.mxu3 }
 0x6e9   : > { %15799 = vst [vmem:[#allocation32_spill] sm:$0xff] %v9448_v48  ;;  %v2786_v48 = vpop.f32.mrf.mxu2 }
 0x6ea   : > { %v2816_v39 = vadd.f32 %v2815_v44, %v2786_v48 }
 0x6ee   : > { %v9450_v58 = vpop.permute.xlu2 %2693  ;;  %v9452_v23 = vpop.permute.xlu1 %2577 }
 0x6ef   : > { %15800 = vst [vmem:[#allocation45_spill] sm:$0xff] %v9450_v58  ;;  %v9454_v1 = vpop.permute.xlu0 %2697  ;;  %v2807_v58 = vadd.f32 %v9238_v37, %v9236_v0  ;;  %v2849_v0 = vld [vmem:[%s14752_s7 + $0x18] sm:$0xff]  ;;  %v2813_v37 = vadd.f32 %v2812_v28, %v2783_v55  ;;  %v2243_v55 = vsel %vm696_vm1, %v9222_v61, %v9118_v42  ;;  %v2303_v28 = vsel %vm766_vm2, %v9234_v54, %v9259_v16 }
 0x6f0   : > { %15801 = vst [vmem:[#allocation92_spill] sm:$0xff] %v9454_v1 }
 0x6f6   : > { %v9456_v29 = vpop.permute.xlu2 %2705  ;;  %v9458_v40 = vpop.permute.xlu1 %2608 }
 0x6f7   : > { %15802 = vst [vmem:[#allocation93_spill] sm:$0xff] %v9458_v40  ;;  %v2846_v40 = vld [vmem:[%s14752_s7] sm:$0xff] }
 0x6f8   : > { %v9460_v36 = vpop.permute.xlu0 %2253 }
 0x6f9   : > { %15803 = vst [vmem:[#allocation94_spill] sm:$0xff] %v9460_v36 }
 0x6fe   : > { %v9462_v27 = vpop.permute.xlu1 %2614 }
 0x6ff   : > { %15804 = vst [vmem:[#allocation95_spill] sm:$0xff] %v9462_v27  ;;  %v9464_v22 = vpop.permute.xlu2 %2739 }
 0x700   : > { %15805 = vst [vmem:[#allocation96_spill] sm:$0xff] %v9464_v22  ;;  %v9466_v14 = vpop.permute.xlu0 %2744 }
 0x701   : > { %15806 = vst [vmem:[#allocation97_spill] sm:$0xff] %v9466_v14 }
 0x706   : > { %v9470_v1 = vpop.permute.xlu1 %2629 }
 0x707   : > { %15807 = vst [vmem:[#allocation98_spill] sm:$0xff] %v9470_v1  ;;  %v2825_v5 = vpop.permute.xlu2 %2824 }
 0x708   : > { %v2842_v36 = vmul.f32 %v2825_v5, %v2807_v58  ;;  %v2840_v24 = vpop.permute.xlu0 %2839  ;;  %v2848_v58 = vld [vmem:[%s14752_s7 + $0x10] sm:$0xff] }
 0x709   : > { %v2845_v22 = vmul.f32 %v2840_v24, %v2816_v39 }
 0x70a   : > { %v9475_v27 = vadd.f32 %v2846_v40, %v2842_v36  ;;  %v2307_v36 = vsel %vm766_vm2, %v9259_v16, %v9234_v54 }
 0x70b   : > { %v9485_v48 = vadd.f32 %v2849_v0, %v2845_v22  ;;  %v2266_v22 = vmul.f32 %v9218_v53, %v2243_v55 }
 0x70c   : > { %v2854_v14 = vsel %vm571_vm0, %v9475_v27, -inf }
 0x70d   : > { %2855 = vmax.xlane.f32.xlu1 %v2854_v14  ;;  %v2863_v24 = vsel %vm571_vm0, %v9485_v48, -inf  ;;  %v2274_v16 = vmul.f32 %v2266_v22, %v7454_v15 }
 0x70e   : > { %v2642_v1 = vpop.permute.xlu1 %2641 }
 0x70f   : > { %v2835_v63 = vpop.permute.xlu2 %2834 }
 0x710   : > { %v2844_v5 = vmul.f32 %v2835_v63, %v2813_v37  ;;  %v2239_v63 = vsel %vm696_vm1, %v9118_v42, %v9222_v61  ;;  %v2367_v42 = vsel %vm836_vm3, %v9298_v47, %v9216_v35  ;;  %v2371_v61 = vsel %vm836_vm3, %v9216_v35, %v9298_v47 }
 0x711   : > { %v2267_v0 = vmul.f32 %v9218_v53, %v2239_v63  ;;  %v2394_v53 = vmul.f32 %v9331_v33, %v2371_v61  ;;  %v2431_v35 = vsel %vm906_vm4, %v9257_v38, %v9334_v26  ;;  %v2435_v47 = vsel %vm906_vm4, %v9334_v26, %v9257_v38 }
 0x712   : > { %v9487_v44 = vadd.f32 %v2848_v58, %v2844_v5  ;;  %v2330_v58 = vmul.f32 %v9185_v18, %v2307_v36  ;;  %v2331_v5 = vmul.f32 %v9185_v18, %v2303_v28  ;;  %v2218_v18 = vmul.f32 %v9167_v25, %v8955_v11 }
 0x713   : > { %v2275_v54 = vmul.f32 %v2267_v0, %v7463_v60  ;;  %v2459_v11 = vmul.f32 %v9376_v49, %v2431_v35  ;;  %v2402_v22 = vmul.f32 %v2394_v53, %v7507_v20 }
 0x714   : > { %v2860_v39 = vsel %vm571_vm0, %v9487_v44, -inf  ;;  %v2338_v63 = vmul.f32 %v2330_v58, %v7467_v57  ;;  %v2339_v55 = vmul.f32 %v2331_v5, %v7471_v2  ;;  %v2282_v28 = vadd.f32 %v2274_v16, %v2218_v18 }
 0x715   : > { %2861 = vmax.xlane.f32.xlu0 %v2860_v39  ;;  %2864 = vmax.xlane.f32.xlu1 %v2863_v24  ;;  %v2395_v39 = vmul.f32 %v9331_v33, %v2367_v42  ;;  %v2219_v24 = vmul.f32 %v9167_v25, %v9078_v13  ;;  %v2458_v33 = vmul.f32 %v9376_v49, %v2435_v47 }
 0x716   : > { %v9493_v14 = vpop.permute.xlu1 %2670  ;;  %v2495_v13 = vsel %vm976_vm5, %v9358_v50, %v9406_v21  ;;  %v2499_v25 = vsel %vm976_vm5, %v9406_v21, %v9358_v50  ;;  %v2346_v0 = vadd.f32 %v2338_v63, %v2282_v28  ;;  %v2467_v61 = vmul.f32 %v2459_v11, %v7517_v9 }
 0x717   : > { %v2283_v36 = vadd.f32 %v2275_v54, %v2219_v24  ;;  %v2403_v26 = vmul.f32 %v2395_v39, %v7509_v59  ;;  %v2522_v58 = vmul.f32 %v9343_v51, %v2495_v13  ;;  %v2523_v5 = vmul.f32 %v9343_v51, %v2499_v25  ;;  %v15809_v13 = vld [vmem:[#allocation35_spill] sm:$0xff] }
 0x718   : > { %v2466_v42 = vmul.f32 %v2458_v33, %v7513_v6  ;;  %v2559_v21 = vsel %vm1046_vm6, %v9436_v3, %v9374_v4  ;;  %v2563_v50 = vsel %vm1046_vm6, %v9374_v4, %v9436_v3  ;;  %v2410_v16 = vadd.f32 %v2402_v22, %v2346_v0  ;;  %v15808_v33 = vld [vmem:[#allocation29_spill] sm:$0xff] }
 0x719   : > { %v2347_v49 = vadd.f32 %v2339_v55, %v2283_v36  ;;  %v2586_v53 = vmul.f32 %v9452_v23, %v2559_v21  ;;  %v2587_v51 = vmul.f32 %v9452_v23, %v2563_v50  ;;  %v2623_v39 = vsel %vm1116_vm7, %v9404_v56, %v9434_v62 }
 0x71a   : > { %v2627_v18 = vsel %vm1116_vm7, %v9434_v62, %v9404_v56  ;;  %v2530_v23 = vmul.f32 %v2522_v58, %v15660_v31  ;;  %v2531_v24 = vmul.f32 %v2523_v5, %v15661_v34  ;;  %v2650_v63 = vmul.f32 %v2642_v1, %v2623_v39  ;;  %v15812_v58 = vld [vmem:[#allocation62_spill] sm:$0xff] }
 0x71b   : > { %v2411_v54 = vadd.f32 %v2403_v26, %v2347_v49  ;;  %v2651_v55 = vmul.f32 %v2642_v1, %v2627_v18  ;;  %v2474_v35 = vadd.f32 %v2466_v42, %v2410_v16  ;;  %v2594_v11 = vmul.f32 %v2586_v53, %v15808_v33  ;;  %v15811_v26 = vld [vmem:[#allocation49_spill] sm:$0xff]  ;;  %v15813_v42 = vld [vmem:[#allocation48_spill] sm:$0xff]  ;;  %v2847_v18 = vld [vmem:[%s14752_s7 + $0x8] sm:$0xff] }
 0x71c   : > { %v2595_v56 = vmul.f32 %v2587_v51, %v15809_v13 }
 0x71d   : > { %v2475_v47 = vadd.f32 %v2467_v61, %v2411_v54  ;;  %v2538_v36 = vadd.f32 %v2530_v23, %v2474_v35  ;;  %v2659_v0 = vmul.f32 %v2651_v55, %v15811_v26 }
 0x71e   : > { %v9495_v40 = vpop.permute.xlu1 %2676 }
 0x71f   : > { %v2602_v49 = vadd.f32 %v2594_v11, %v2538_v36 }
 0x726   : > { %v2683_v37 = vpop.permute.xlu1 %2682 }
 0x727   : > { %v2687_v3 = vsel %vm1186_vm8, %v9440_v46, %v2683_v37  ;;  %v2691_v4 = vsel %vm1186_vm8, %v2683_v37, %v9440_v46  ;;  %v2539_v46 = vadd.f32 %v2531_v24, %v2475_v47  ;;  %v15810_v37 = vld [vmem:[#allocation36_spill] sm:$0xff] }
 0x728   : > { %v2714_v62 = vmul.f32 %v9456_v29, %v2687_v3  ;;  %v2715_v25 = vmul.f32 %v9456_v29, %v2691_v4  ;;  %v2658_v22 = vmul.f32 %v2650_v63, %v15810_v37 }
 0x729   : > { %v2603_v1 = vadd.f32 %v2595_v56, %v2539_v46 }
 0x72a   : > { %v2722_v5 = vmul.f32 %v2714_v62, %v15812_v58  ;;  %v2723_v61 = vmul.f32 %v2715_v25, %v15813_v42  ;;  %v2666_v21 = vadd.f32 %v2658_v22, %v2602_v49  ;;  %v3084_v49 = vld [vmem:[%s14756_s11 + $0x10] sm:$0xff] }
 0x72b   : > { %v2667_v50 = vadd.f32 %v2659_v0, %v2603_v1  ;;  %v2973_v0 = vld [vmem:[%s14754_s9 + $0x8] sm:$0xff]  ;;  %v3082_v1 = vld [vmem:[%s14756_s11] sm:$0xff] }
 0x72c   : > { %v2730_v16 = vadd.f32 %v2722_v5, %v2666_v21  ;;  %v3087_v5 = vld [vmem:[%s14756_s11 + $0x28] sm:$0xff] }
 0x72d   : > { %v2731_v54 = vadd.f32 %v2723_v61, %v2667_v50  ;;  %v3085_v61 = vld [vmem:[%s14756_s11 + $0x18] sm:$0xff] }
 0x72e   : > { %v9555_v38 = vpop.permute.xlu1 %2701 }
 0x737   : > { %v9591_v28 = vpop.permute.xlu1 %2734 }
 0x73f   : > { %v2750_v53 = vpop.permute.xlu1 %2749 }
 0x740   : > { %v2758_v29 = vadd.f32 %v2750_v53, %v2730_v16  ;;  %v2759_v51 = vadd.f32 %v2750_v53, %v2731_v54  ;;  %v3088_v16 = vld [vmem:[%s14756_s11 + $0x30] sm:$0xff]  ;;  %v15814_v53 = vmov 4  }
 0x742   : > { %2922 = vmatpush.msra.mxu0 %v2758_v29  ;;  %2951 = vmatpush.msra.mxu1 %v2759_v51 }
 0x747   : > { %v2830_v39 = vpop.permute.xlu1 %2829 }
 0x748   : > { %v2843_v3 = vmul.f32 %v2830_v39, %v9251_v52  ;;  %v2972_v39 = vld [vmem:[%s14754_s9] sm:$0xff] }
 0x74a   : > { %v2851_v4 = vadd.f32 %v2847_v18, %v2843_v3  ;;  %v2975_v18 = vld [vmem:[%s14754_s9 + $0x18] sm:$0xff]  ;;  %v3083_v3 = vld [vmem:[%s14756_s11 + $0x8] sm:$0xff] }
 0x74c   : > { %v2857_v23 = vsel %vm571_vm0, %v2851_v4, -inf }
 0x74d   : > { %2858 = vmax.xlane.f32.xlu2 %v2857_v23  ;;  %v3089_v23 = vld [vmem:[%s14756_s11 + $0x38] sm:$0xff] }
 0x780   : > { %v2856_v24 = vpop.xlane.xlu1 %2855 }
 0x781   : > { %v2866_v63 = vsub.f32 %v9475_v27, %v2856_v24  ;;  %v6736_v24 = vld [vmem:[%s14749_s4 + $0x50] sm:$0xff] }
 0x783   : > { %v2870_v55 = vmul.f32 1.442695, %v2866_v63 }
 0x785   : > { %6655 = vpow2.f32 %v2870_v55  ;;  %v2240_v55 = vsel %vm696_vm1, %v9207_v30, %v9103_v43 }
 0x788   : > { %v2862_v35 = vpop.xlane.xlu0 %2861  ;;  %v2865_v47 = vpop.xlane.xlu1 %2864 }
 0x789   : > { %v2868_v11 = vsub.f32 %v9487_v44, %v2862_v35  ;;  %v2869_v56 = vsub.f32 %v9485_v48, %v2865_v47  ;;  %v2974_v44 = vld [vmem:[%s14754_s9 + $0x10] sm:$0xff]  ;;  %v2237_v35 = vsel %vm696_vm1, %v9198_v17, %v9196_v41  ;;  %v2241_v47 = vsel %vm696_vm1, %v9196_v41, %v9198_v17  ;;  %v15815_v17 = vld [vmem:[#allocation42_spill] sm:$0xff] }
 0x78a   : > { %v2212_v41 = vmul.f32 %v9188_v8, %v8946_v45  ;;  %v15819_v45 = vld [vmem:[#allocation47_spill] sm:$0xff] }
 0x78b   : > { %v9605_v62 = vpop.eup %6655  ;;  %v2874_v25 = vmul.f32 1.442695, %v2868_v11  ;;  %v2876_v36 = vmul.f32 1.442695, %v2869_v56  ;;  %v2236_v11 = vsel %vm696_vm1, %v9103_v43, %v9207_v30  ;;  %v2304_v56 = vsel %vm766_vm2, %v9247_v32, %v9142_v12 }
 0x78c   : > { %v2878_v52 = vsel %vm571_vm0, %v9605_v62, 0.0  ;;  %v2263_v43 = vmul.f32 %v15815_v17, %v2237_v35  ;;  %v2261_v30 = vmul.f32 %v9205_v7, %v2236_v11 }
 0x78d   : > { %6657 = vpow2.f32 %v2874_v25  ;;  %2879 = vadd.xlane.f32.xlu2 %v2878_v52  ;;  %v2300_v52 = vsel %vm766_vm2, %v9142_v12, %v9247_v32  ;;  %v2324_v32 = vmul.f32 %v15819_v45, %v2304_v56  ;;  %v15827_v56 = vld [vmem:[#allocation89_spill] sm:$0xff] }
 0x78e   : > { %6659 = vpow2.f32 %v2876_v36  ;;  %v2260_v36 = vmul.f32 %v9205_v7, %v2240_v55  ;;  %v2271_v35 = vmul.f32 %v2263_v43, %v7463_v60 }
 0x793   : > { %v9609_v46 = vpop.eup %6657 }
 0x794   : > { %v9611_v27 = vpop.eup %6659  ;;  %v2884_v22 = vsel %vm571_vm0, %v9609_v46, 0.0 }
 0x795   : > { %2885 = vadd.xlane.f32.xlu1 %v2884_v22  ;;  %v2887_v48 = vsel %vm571_vm0, %v9611_v27, 0.0  ;;  %v2262_v22 = vmul.f32 %v15815_v17, %v2241_v47  ;;  %v2269_v47 = vmul.f32 %v2261_v30, %v7463_v60 }
 0x796   : > { %2888 = vadd.xlane.f32.xlu2 %v2887_v48  ;;  %v15816_v48 = vld [vmem:[#allocation84_spill] sm:$0xff] }
 0x797   : > { %v2270_v55 = vmul.f32 %v2262_v22, %v7454_v15  ;;  %v2332_v22 = vmul.f32 %v2324_v32, %v7467_v57 }
 0x7ae   : > { %2988 = vperm.xlu2 %6580, %v2974_v44   ;;  %2983 = vperm.xlu1 %6579, %v2973_v0   ;;  %v2213_v44 = vmul.f32 %v9188_v8, %v15816_v48  ;;  %v15817_v0 = vld [vmem:[#allocation70_spill] sm:$0xff] }
 0x7af   : > { %v15822_v8 = vld [vmem:[#allocation54_spill] sm:$0xff] }
 0x7b6   : > { %3102 = vperm.xlu2 %6580, %v3084_v49   ;;  %3092 = vperm.xlu1 %6579, %v3082_v1   ;;  %v15818_v49 = vld [vmem:[#allocation72_spill] sm:$0xff] }
 0x7b7   : > { %v2301_v1 = vsel %vm766_vm2, %v15818_v49, %v15817_v0  ;;  %v2305_v12 = vsel %vm766_vm2, %v15817_v0, %v15818_v49  ;;  %v15829_v49 = vld [vmem:[#allocation77_spill] sm:$0xff] }
 0x7be   : > { %3117 = vperm.xlu2 %6580, %v3087_v5   ;;  %3107 = vperm.xlu1 %6579, %v3085_v61   ;;  %v2325_v5 = vmul.f32 %v15819_v45, %v2300_v52  ;;  %v15820_v61 = vld [vmem:[#allocation14_spill] sm:$0xff]  ;;  %v15828_v52 = vld [vmem:[#allocation43_spill] sm:$0xff]  ;;  %v15830_v45 = vld [vmem:[#allocation20_spill] sm:$0xff] }
 0x7bf   : > { %v2327_v7 = vmul.f32 %v15820_v61, %v2301_v1  ;;  %v2302_v17 = vsel %vm766_vm2, %v15828_v52, %v15827_v56 }
 0x7c0   : > { %v2859_v21 = vpop.xlane.xlu2 %2858  ;;  %v2333_v30 = vmul.f32 %v2325_v5, %v7471_v2 }
 0x7c1   : > { %v2867_v50 = vsub.f32 %v2851_v4, %v2859_v21  ;;  %v3086_v4 = vld [vmem:[%s14756_s11 + $0x20] sm:$0xff]  ;;  %v2326_v21 = vmul.f32 %v15820_v61, %v2305_v12  ;;  %v2335_v0 = vmul.f32 %v2327_v7, %v7471_v2  ;;  %v15831_v61 = vld [vmem:[#allocation80_spill] sm:$0xff]  ;;  %v15834_v7 = vld [vmem:[#allocation18_spill] sm:$0xff] }
 0x7c3   : > { %v2872_v54 = vmul.f32 1.442695, %v2867_v50  ;;  %v15821_v50 = vld [vmem:[#allocation51_spill] sm:$0xff]  ;;  %v2334_v48 = vmul.f32 %v2326_v21, %v7467_v57  ;;  %v2277_v21 = vadd.f32 %v2269_v47, %v2213_v44 }
 0x7c4   : > { %v2364_v11 = vsel %vm836_vm3, %v15821_v50, %v15822_v8 }
 0x7c5   : > { %6661 = vpow2.f32 %v2872_v54  ;;  %v15823_v54 = vld [vmem:[#allocation76_spill] sm:$0xff] }
 0x7c6   : > { %3122 = vperm.xlu1 %6579, %v3088_v16   ;;  %6582 = vset.pattern.permute.xlu2 %v15814_v53  ;;  %v2368_v16 = vsel %vm836_vm3, %v15822_v8, %v15821_v50  ;;  %v2216_v50 = vmul.f32 %v15831_v61, %v15830_v45 }
 0x7cb   : > { %v9639_v29 = vpop.eup %6661 }
 0x7cc   : > { %v2881_v51 = vsel %vm571_vm0, %v9639_v29, 0.0 }
 0x7cd   : > { %2882 = vadd.xlane.f32.xlu0 %v2881_v51  ;;  %v15824_v51 = vld [vmem:[#allocation79_spill] sm:$0xff] }
 0x7ce   : > { %6583 = vset.pattern.permute.xlu1 %v15814_v53  ;;  %v15853_v53 = vld [vmem:[#allocation15_spill] sm:$0xff] }
 0x7e1   : > { %2978 = vperm.xlu0 %6577, %v2972_v39   ;;  %v2214_v39 = vmul.f32 %v15824_v51, %v15823_v54  ;;  %v15832_v54 = vld [vmem:[#allocation34_spill] sm:$0xff] }
 0x7e3   : > { %v2278_v5 = vadd.f32 %v2270_v55, %v2214_v39  ;;  %v15836_v55 = vld [vmem:[#allocation71_spill] sm:$0xff] }
 0x7e9   : > { %2993 = vperm.xlu0 %6577, %v2975_v18   ;;  %v15825_v18 = vld [vmem:[#allocation13_spill] sm:$0xff] }
 0x7f1   : > { %3097 = vperm.xlu0 %6577, %v3083_v3   ;;  %v2215_v3 = vmul.f32 %v15824_v51, %v15825_v18  ;;  %v2217_v51 = vmul.f32 %v15831_v61, %v15832_v54  ;;  %v15840_v61 = vld [vmem:[#allocation25_spill] sm:$0xff] }
 0x7f3   : > { %v2279_v18 = vadd.f32 %v2271_v35, %v2215_v3  ;;  %v15835_v3 = vld [vmem:[#allocation88_spill] sm:$0xff] }
 0x7f4   : > { %v2365_v35 = vsel %vm836_vm3, %v15836_v55, %v15835_v3  ;;  %v2369_v47 = vsel %vm836_vm3, %v15835_v3, %v15836_v55  ;;  %v15848_v3 = vld [vmem:[#allocation33_spill] sm:$0xff]  ;;  %v15849_v55 = vld [vmem:[#allocation55_spill] sm:$0xff] }
 0x7f9   : > { %3112 = vperm.xlu0 %6577, %v3086_v4   ;;  %v2268_v4 = vmul.f32 %v2260_v36, %v7454_v15  ;;  %v2306_v36 = vsel %vm766_vm2, %v15827_v56, %v15828_v52  ;;  %v2342_v52 = vadd.f32 %v2334_v48, %v2278_v5  ;;  %v15838_v48 = vld [vmem:[#allocation23_spill] sm:$0xff] }
 0x7fa   : > { %v2328_v1 = vmul.f32 %v15829_v49, %v2306_v36 }
 0x7fb   : > { %v2276_v8 = vadd.f32 %v2268_v4, %v2212_v41 }
 0x7fc   : > { %v2336_v39 = vmul.f32 %v2328_v1, %v7467_v57 }
 0x7fd   : > { %v2340_v4 = vadd.f32 %v2332_v22, %v2276_v8  ;;  %v15837_v22 = vld [vmem:[#allocation58_spill] sm:$0xff] }
 0x7fe   : > { %v15841_v8 = vld [vmem:[#allocation78_spill] sm:$0xff] }
 0x801   : > { %3127 = vperm.xlu0 %6577, %v3089_v23   ;;  %v15826_v23 = vld [vmem:[#allocation63_spill] sm:$0xff] }
 0x802   : > { %v2389_v43 = vmul.f32 %v15826_v23, %v2364_v11 }
 0x804   : > { %v2397_v56 = vmul.f32 %v2389_v43, %v7509_v59  ;;  %v2390_v43 = vmul.f32 %v15837_v22, %v2369_v47  ;;  %v2434_v47 = vsel %vm906_vm4, %v15848_v3, %v15849_v55 }
 0x809   : > { %6581 = vset.pattern.permute.xlu0 %v15759_v10 }
 0x80a   : > { %2637 = vperm.xlu0 %6581, %v6736_v24   ;;  %v2388_v24 = vmul.f32 %v15826_v23, %v2368_v16  ;;  %v2329_v16 = vmul.f32 %v15829_v49, %v2302_v17  ;;  %v15833_v23 = vld [vmem:[#allocation19_spill] sm:$0xff]  ;;  %v2343_v17 = vadd.f32 %v2335_v0, %v2279_v18  ;;  %v15839_v0 = vld [vmem:[#allocation21_spill] sm:$0xff]  ;;  %v2370_v18 = vsel %vm836_vm3, %v15840_v61, %v15841_v8 }
 0x80b   : > { %v2238_v11 = vsel %vm696_vm1, %v15834_v7, %v15833_v23  ;;  %v2242_v41 = vsel %vm696_vm1, %v15833_v23, %v15834_v7  ;;  %v2429_v49 = vsel %vm906_vm4, %v15839_v0, %v15838_v48  ;;  %v2433_v1 = vsel %vm906_vm4, %v15838_v48, %v15839_v0  ;;  %v15844_v23 = vld [vmem:[#allocation87_spill] sm:$0xff] }
 0x80c   : > { %v2396_v32 = vmul.f32 %v2388_v24, %v7507_v20  ;;  %v2341_v24 = vadd.f32 %v2333_v30, %v2277_v21  ;;  %v2337_v44 = vmul.f32 %v2329_v16, %v7471_v2  ;;  %v2391_v30 = vmul.f32 %v15837_v22, %v2365_v35  ;;  %v15843_v21 = vld [vmem:[#allocation27_spill] sm:$0xff]  ;;  %v15850_v22 = vld [vmem:[#allocation86_spill] sm:$0xff]  ;;  %v15852_v2 = vld [vmem:[#allocation85_spill] sm:$0xff] }
 0x80d   : > { %v2366_v16 = vsel %vm836_vm3, %v15841_v8, %v15840_v61  ;;  %v2428_v7 = vsel %vm906_vm4, %v15844_v23, %v15843_v21  ;;  %v2430_v35 = vsel %vm906_vm4, %v15849_v55, %v15848_v3  ;;  %v2454_v48 = vmul.f32 %v15850_v22, %v2433_v1  ;;  %v15854_v55 = vld [vmem:[#allocation44_spill] sm:$0xff] }
 0x80e   : > { %v2404_v36 = vadd.f32 %v2396_v32, %v2340_v4  ;;  %v2405_v45 = vadd.f32 %v2397_v56, %v2341_v24  ;;  %v15842_v32 = vld [vmem:[#allocation94_spill] sm:$0xff]  ;;  %v2432_v4 = vsel %vm906_vm4, %v15843_v21, %v15844_v23  ;;  %v15846_v24 = vld [vmem:[#allocation73_spill] sm:$0xff]  ;;  %v2455_v0 = vmul.f32 %v15850_v22, %v2429_v49 }
 0x80f   : > { %v2264_v54 = vmul.f32 %v15842_v32, %v2242_v41  ;;  %v2265_v5 = vmul.f32 %v15842_v32, %v2238_v11  ;;  %v15845_v56 = vld [vmem:[#allocation26_spill] sm:$0xff]  ;;  %v2398_v61 = vmul.f32 %v2390_v43, %v7507_v20  ;;  %v2399_v8 = vmul.f32 %v2391_v30, %v7509_v59  ;;  %v15851_v32 = vld [vmem:[#allocation16_spill] sm:$0xff] }
 0x810   : > { %v2493_v11 = vsel %vm976_vm5, %v15846_v24, %v15845_v56  ;;  %v2452_v21 = vmul.f32 %v15851_v32, %v2432_v4  ;;  %v2453_v23 = vmul.f32 %v15851_v32, %v2428_v7  ;;  %v2392_v57 = vmul.f32 %v15852_v2, %v2370_v18  ;;  %v15855_v4 = vld [vmem:[#allocation75_spill] sm:$0xff] }
 0x811   : > { %v2518_v10 = vmul.f32 %v15853_v53, %v2493_v11  ;;  %v2273_v3 = vmul.f32 %v2265_v5, %v7463_v60  ;;  %v2393_v1 = vmul.f32 %v15852_v2, %v2366_v16  ;;  %v2456_v49 = vmul.f32 %v15854_v55, %v2434_v47  ;;  %v15856_v11 = vld [vmem:[#allocation52_spill] sm:$0xff] }
 0x812   : > { %v2457_v43 = vmul.f32 %v15854_v55, %v2430_v35  ;;  %v2497_v30 = vsel %vm976_vm5, %v15845_v56, %v15846_v24  ;;  %v2462_v7 = vmul.f32 %v2454_v48, %v7513_v6  ;;  %v2463_v18 = vmul.f32 %v2455_v0, %v7517_v9  ;;  %v15857_v55 = vld [vmem:[#allocation24_spill] sm:$0xff] }
 0x813   : > { %v2496_v2 = vsel %vm976_vm5, %v15855_v4, %v15856_v11  ;;  %v2406_v16 = vadd.f32 %v2398_v61, %v2342_v52  ;;  %v2407_v5 = vadd.f32 %v2399_v8, %v2343_v17  ;;  %v2460_v35 = vmul.f32 %v2452_v21, %v7513_v6  ;;  %v15858_v21 = vld [vmem:[#allocation41_spill] sm:$0xff] }
 0x814   : > { %v2461_v56 = vmul.f32 %v2453_v23, %v7517_v9  ;;  %v2519_v24 = vmul.f32 %v15853_v53, %v2497_v30  ;;  %v2526_v47 = vmul.f32 %v2518_v10, %v15660_v31  ;;  %v2281_v48 = vadd.f32 %v2273_v3, %v2217_v51  ;;  %v15859_v10 = vld [vmem:[#allocation22_spill] sm:$0xff] }
 0x815   : > { %v2400_v0 = vmul.f32 %v2392_v57, %v7507_v20  ;;  %v2401_v32 = vmul.f32 %v2393_v1, %v7509_v59  ;;  %v2464_v17 = vmul.f32 %v2456_v49, %v7513_v6  ;;  %v2465_v61 = vmul.f32 %v2457_v43, %v7517_v9  ;;  %v15860_v43 = vld [vmem:[#allocation90_spill] sm:$0xff] }
 0x816   : > { %v2470_v8 = vadd.f32 %v2462_v7, %v2406_v16  ;;  %v2471_v53 = vadd.f32 %v2463_v18, %v2407_v5  ;;  %v2498_v57 = vsel %vm976_vm5, %v15858_v21, %v15859_v10  ;;  %v2468_v51 = vadd.f32 %v2460_v35, %v2404_v36  ;;  %v15861_v30 = vld [vmem:[#allocation50_spill] sm:$0xff] }
 0x817   : > { %v2527_v23 = vmul.f32 %v2519_v24, %v15661_v34  ;;  %v2345_v49 = vadd.f32 %v2337_v44, %v2281_v48  ;;  %v2557_v7 = vsel %vm1046_vm6, %v15861_v30, %v15860_v43  ;;  %v2561_v36 = vsel %vm1046_vm6, %v15860_v43, %v15861_v30  ;;  %v15864_v44 = vld [vmem:[#allocation56_spill] sm:$0xff]  ;;  %v15865_v5 = vld [vmem:[#allocation46_spill] sm:$0xff] }
 0x818   : > { %v2534_v3 = vadd.f32 %v2526_v47, %v2470_v8  ;;  %v15866_v35 = vld [vmem:[#allocation74_spill] sm:$0xff]  ;;  %v15867_v47 = vld [vmem:[#allocation32_spill] sm:$0xff] }
 0x819   : > { %v2562_v24 = vsel %vm1046_vm6, %v15865_v5, %v15866_v35  ;;  %v2583_v48 = vmul.f32 %v15867_v47, %v2561_v36  ;;  %v2409_v8 = vadd.f32 %v2401_v32, %v2345_v49  ;;  %v15872_v49 = vld [vmem:[#allocation40_spill] sm:$0xff] }
 0x840   : > { %v9663_v63 = vpop.xlane.xlu0 %2882 }
 0x853   : > { %v9685_v25 = vpop.permute.xlu0 %2978 }
 0x85b   : > { %v9742_v12 = vpop.permute.xlu0 %2993 }
 0x863   : > { %v9801_v41 = vpop.permute.xlu0 %3097 }
 0x864   : > { %15847 = vst [vmem:[#allocation42_spill] sm:$0xff] %v9801_v41  ;;  %v2272_v41 = vmul.f32 %v2264_v54, %v7454_v15  ;;  %v2492_v54 = vsel %vm976_vm5, %v15856_v11, %v15855_v4  ;;  %v2517_v4 = vmul.f32 %v15857_v55, %v2496_v2 }
 0x865   : > { %v2516_v60 = vmul.f32 %v15857_v55, %v2492_v54  ;;  %v15862_v54 = vld [vmem:[#allocation30_spill] sm:$0xff]  ;;  %v2535_v55 = vadd.f32 %v2527_v23, %v2471_v53 }
 0x866   : > { %v2280_v22 = vadd.f32 %v2272_v41, %v2216_v50  ;;  %v2494_v50 = vsel %vm976_vm5, %v15859_v10, %v15858_v21  ;;  %v2469_v41 = vadd.f32 %v2461_v56, %v2405_v45  ;;  %v2525_v11 = vmul.f32 %v2517_v4, %v15661_v34  ;;  %v15868_v21 = vld [vmem:[#allocation95_spill] sm:$0xff]  ;;  %v15869_v10 = vld [vmem:[#allocation38_spill] sm:$0xff] }
 0x867   : > { %v2524_v18 = vmul.f32 %v2516_v60, %v15660_v31  ;;  %v2520_v2 = vmul.f32 %v15862_v54, %v2494_v50  ;;  %v2521_v45 = vmul.f32 %v15862_v54, %v2498_v57  ;;  %v2558_v56 = vsel %vm1046_vm6, %v15866_v35, %v15865_v5  ;;  %v15870_v54 = vld [vmem:[#allocation91_spill] sm:$0xff]  ;;  %v15871_v53 = vld [vmem:[#allocation82_spill] sm:$0xff] }
 0x868   : > { %v2344_v1 = vadd.f32 %v2336_v39, %v2280_v22  ;;  %v15863_v39 = vld [vmem:[#allocation28_spill] sm:$0xff]  ;;  %v2582_v22 = vmul.f32 %v15867_v47, %v2557_v7  ;;  %v2621_v50 = vsel %vm1116_vm7, %v15869_v10, %v15868_v21  ;;  %v9895_v43 = vadd.f32 %v2525_v11, %v2469_v41  ;;  %v15873_v11 = vld [vmem:[#allocation39_spill] sm:$0xff] }
 0x869   : > { %v2556_v16 = vsel %vm1046_vm6, %v15864_v44, %v15863_v39  ;;  %v2560_v60 = vsel %vm1046_vm6, %v15863_v39, %v15864_v44  ;;  %v9893_v57 = vadd.f32 %v2524_v18, %v2468_v51  ;;  %v2528_v30 = vmul.f32 %v2520_v2, %v15660_v31  ;;  %v15874_v2 = vld [vmem:[#allocation81_spill] sm:$0xff] }
 0x86a   : > { %v2408_v4 = vadd.f32 %v2400_v0, %v2344_v1  ;;  %v2580_v39 = vmul.f32 %v15870_v54, %v2556_v16  ;;  %v2581_v7 = vmul.f32 %v15870_v54, %v2560_v60  ;;  %v2584_v0 = vmul.f32 %v15871_v53, %v2558_v56  ;;  %v15875_v56 = vld [vmem:[#allocation31_spill] sm:$0xff]  ;;  %v15878_v54 = vld [vmem:[#allocation92_spill] sm:$0xff] }
 0x86b   : > { %v9846_v52 = vpop.permute.xlu0 %3112  ;;  %v2585_v32 = vmul.f32 %v15871_v53, %v2562_v24  ;;  %v2625_v51 = vsel %vm1116_vm7, %v15868_v21, %v15869_v10  ;;  %v2529_v41 = vmul.f32 %v2521_v45, %v15661_v34  ;;  %v2590_v23 = vmul.f32 %v2582_v22, %v15808_v33 }
 0x86c   : > { %v2591_v1 = vmul.f32 %v2583_v48, %v15809_v13  ;;  %v2646_v18 = vmul.f32 %v15872_v49, %v2621_v50  ;;  %v2620_v36 = vsel %vm1116_vm7, %v15874_v2, %v15873_v11  ;;  %v2624_v16 = vsel %vm1116_vm7, %v15873_v11, %v15874_v2 }
 0x86d   : > { %v2472_v60 = vadd.f32 %v2464_v17, %v2408_v4  ;;  %v2473_v5 = vadd.f32 %v2465_v61, %v2409_v8  ;;  %v2588_v45 = vmul.f32 %v2580_v39, %v15808_v33  ;;  %v2647_v35 = vmul.f32 %v15872_v49, %v2625_v51  ;;  %v15876_v61 = vld [vmem:[#allocation53_spill] sm:$0xff] }
 0x86e   : > { %v2685_v24 = vsel %vm1186_vm8, %v9493_v14, %v15875_v56  ;;  %v2689_v47 = vsel %vm1186_vm8, %v15875_v56, %v9493_v14  ;;  %v2589_v22 = vmul.f32 %v2581_v7, %v15809_v13  ;;  %v2592_v48 = vmul.f32 %v2584_v0, %v15808_v33  ;;  %v15877_v4 = vld [vmem:[#allocation37_spill] sm:$0xff] }
 0x86f   : > { %v2593_v17 = vmul.f32 %v2585_v32, %v15809_v13  ;;  %v2686_v8 = vsel %vm1186_vm8, %v15877_v4, %v15876_v61  ;;  %v2690_v21 = vsel %vm1186_vm8, %v15876_v61, %v15877_v4  ;;  %v2598_v10 = vadd.f32 %v2590_v23, %v2534_v3  ;;  %v15879_v32 = vld [vmem:[#allocation83_spill] sm:$0xff]  ;;  %v15880_v51 = vld [vmem:[#allocation93_spill] sm:$0xff] }
 0x870   : > { %v2599_v50 = vadd.f32 %v2591_v1, %v2535_v55  ;;  %v2654_v14 = vmul.f32 %v2646_v18, %v15810_v37  ;;  %v2710_v39 = vmul.f32 %v15878_v54, %v2685_v24  ;;  %v2711_v7 = vmul.f32 %v15878_v54, %v2689_v47  ;;  %v15881_v55 = vld [vmem:[#allocation98_spill] sm:$0xff]  ;;  %v15882_v18 = vld [vmem:[#allocation17_spill] sm:$0xff]  ;;  %v2880_v47 = vpop.xlane.xlu2 %2879 }
 0x871   : > { %v2536_v53 = vadd.f32 %v2528_v30, %v2472_v60  ;;  %v2537_v0 = vadd.f32 %v2529_v41, %v2473_v5  ;;  %v2622_v49 = vsel %vm1116_vm7, %v15880_v51, %v15879_v32  ;;  %v2626_v11 = vsel %vm1116_vm7, %v15879_v32, %v15880_v51  ;;  %v15883_v54 = vld [vmem:[#allocation45_spill] sm:$0xff] }
 0x872   : > { %v2655_v3 = vmul.f32 %v2647_v35, %v15811_v26  ;;  %v2644_v23 = vmul.f32 %v15881_v55, %v2620_v36  ;;  %v2645_v1 = vmul.f32 %v15881_v55, %v2624_v16  ;;  %v2684_v30 = vsel %vm1186_vm8, %v15882_v18, %v9495_v40 }
 0x873   : > { %v9899_v44 = vpop.permute.xlu0 %3127  ;;  %v2688_v41 = vsel %vm1186_vm8, %v9495_v40, %v15882_v18  ;;  %v2712_v2 = vmul.f32 %v9555_v38, %v2686_v8  ;;  %v2713_v5 = vmul.f32 %v9555_v38, %v2690_v21  ;;  %v2662_v36 = vadd.f32 %v2654_v14, %v2598_v10 }
 0x874   : > { %v2718_v16 = vmul.f32 %v2710_v39, %v15812_v58  ;;  %v2719_v24 = vmul.f32 %v2711_v7, %v15813_v42  ;;  %v2600_v61 = vadd.f32 %v2592_v48, %v2536_v53  ;;  %v2601_v4 = vadd.f32 %v2593_v17, %v2537_v0 }
 0x875   : > { %v2708_v32 = vmul.f32 %v15883_v54, %v2684_v30  ;;  %v2709_v51 = vmul.f32 %v15883_v54, %v2688_v41  ;;  %v2652_v38 = vmul.f32 %v2644_v23, %v15810_v37  ;;  %v2653_v21 = vmul.f32 %v2645_v1, %v15811_v26 }
 0x876   : > { %v2720_v10 = vmul.f32 %v2712_v2, %v15812_v58  ;;  %v2663_v14 = vadd.f32 %v2655_v3, %v2599_v50  ;;  %v2721_v39 = vmul.f32 %v2713_v5, %v15813_v42  ;;  %6663 = vrcp.f32 %v2880_v47  ;;  %v15884_v50 = vld [vmem:[#allocation97_spill] sm:$0xff]  ;;  %v15885_v2 = vld [vmem:[#allocation96_spill] sm:$0xff] }
 0x877   : > { %v2596_v7 = vadd.f32 %v2588_v45, %v9893_v57  ;;  %v2597_v53 = vadd.f32 %v2589_v22, %v9895_v43  ;;  %v2726_v0 = vadd.f32 %v2718_v16, %v2662_v36  ;;  %v2717_v55 = vmul.f32 %v2709_v51, %v15813_v42  ;;  %v2886_v36 = vpop.xlane.xlu1 %2885 }
 0x878   : > { %6665 = vrcp.f32 %v9663_v63 }
 0x879   : > { %v2660_v18 = vadd.f32 %v2652_v38, %v2596_v7  ;;  %v2661_v30 = vadd.f32 %v2653_v21, %v2597_v53  ;;  %6667 = vrcp.f32 %v2886_v36  ;;  %v2970_v21 = vld [vmem:[%s14753_s8 + $0x10] sm:$0xff] }
 0x87a   : > { %v6741_v36 = vld [vmem:[%s7001_s17 + $0x10] sm:$0xff] }
 0x87b   : > { %v2725_v45 = vadd.f32 %v2717_v55, %v2661_v30 }
 0x87c   : > { %v2638_v60 = vpop.permute.xlu0 %2637  ;;  %v6664_v5 = vpop.eup %6663 }
 0x87d   : > { %v2648_v35 = vmul.f32 %v2638_v60, %v2622_v49  ;;  %v2649_v56 = vmul.f32 %v2638_v60, %v2626_v11  ;;  %v2727_v49 = vadd.f32 %v2719_v24, %v2663_v14  ;;  %v2716_v11 = vmul.f32 %v2708_v32, %v15812_v58 }
 0x87e   : > { %v2754_v60 = vadd.f32 %v15885_v2, %v2726_v0  ;;  %v6666_v16 = vpop.eup %6665  ;;  %v10021_v0 = vld [vmem:[%s14757_s12 + $0x8] sm:$0xff] }
 0x87f   : > { %v2656_v40 = vmul.f32 %v2648_v35, %v15810_v37  ;;  %v2657_v8 = vmul.f32 %v2649_v56, %v15811_v26  ;;  %v2724_v57 = vadd.f32 %v2716_v11, %v2660_v18  ;;  %v2755_v43 = vadd.f32 %v15885_v2, %v2727_v49  ;;  %v6668_v63 = vpop.eup %6667  ;;  %3259 = vperm.xlu1 %6583, %v10021_v0   ;;  %v6737_v2 = vld [vmem:[%s7001_s17 + $0x30] sm:$0xff] }
 0x880   : > { %v2753_v35 = vadd.f32 %v9591_v28, %v2725_v45  ;;  %v2894_v56 = vmul.f32 %v6664_v5, %v9605_v62  ;;  %v2895_v24 = vmul.f32 %v6666_v16, %v9639_v29  ;;  %v2896_v62 = vmul.f32 %v6668_v63, %v9609_v46  ;;  %v2968_v46 = vld [vmem:[%s14753_s8] sm:$0xff]  ;;  %v6738_v5 = vld [vmem:[%s7001_s17 + $0x38] sm:$0xff] }
 0x881   : > { %v2664_v48 = vadd.f32 %v2656_v40, %v2600_v61  ;;  %v2665_v17 = vadd.f32 %v2657_v8, %v2601_v4  ;;  %v2752_v22 = vadd.f32 %v9591_v28, %v2724_v57  ;;  %v2889_v28 = vpop.xlane.xlu2 %2888 }
 0x882   : > { %6669 = vrcp.f32 %v2889_v28  ;;  %v6743_v28 = vld [vmem:[%s7001_s17] sm:$0xff] }
 0x883   : > { %v2728_v23 = vadd.f32 %v2720_v10, %v2664_v48  ;;  %v2729_v1 = vadd.f32 %v2721_v39, %v2665_v17  ;;  %v2971_v10 = vld [vmem:[%s14753_s8 + $0x18] sm:$0xff] }
 0x885   : > { %v2756_v3 = vadd.f32 %v15884_v50, %v2728_v23  ;;  %v2757_v41 = vadd.f32 %v15884_v50, %v2729_v1  ;;  %v2984_v50 = vpop.permute.xlu1 %2983 }
 0x887   : > { %2923 = vmatpush.msra.mxu0 %v2756_v3  ;;  %2952 = vmatpush.msra.mxu1 %v2757_v41 }
 0x888   : > { %v6670_v47 = vpop.eup %6669 }
 0x889   : > { %2924 = vmatpush.msra.mxu0 %v2754_v60  ;;  %2953 = vmatpush.msra.mxu1 %v2755_v43  ;;  %v2897_v61 = vmul.f32 %v6670_v47, %v9611_v27  ;;  %v2969_v27 = vld [vmem:[%s14753_s8 + $0x8] sm:$0xff]  ;;  %v2989_v49 = vpop.permute.xlu2 %2988 }
 0x88b   : > { %2925 = vmatpush.msra.mxu0 %v2752_v22  ;;  %2954 = vmatpush.msra.mxu1 %v2753_v35  ;;  %v6739_v22 = vld [vmem:[%s7001_s17 + $0x20] sm:$0xff] }
 0x88c   : > { %6365 = vmatmul.msk.f32.vlgmr.msra.gmra.mxu0 %vm571_vm0, %v2894_v56  ;;  %6369 = vmatmul.msk.f32.vlgmr.msra.gmra.mxu1 %vm571_vm0, %v2894_v56 }
 0x894   : > { %6366 = vmatmul.msk.f32.gmra.mxu0 %vm571_vm0, %v2895_v24  ;;  %6370 = vmatmul.msk.f32.gmra.mxu1 %vm571_vm0, %v2895_v24 }
 0x89c   : > { %6367 = vmatmul.msk.f32.gmra.mxu0 %vm571_vm0, %v2896_v62  ;;  %6371 = vmatmul.msk.f32.gmra.mxu1 %vm571_vm0, %v2896_v62  ;;  %v6744_v62 = vld [vmem:[%s7001_s17 + $0x8] sm:$0xff] }
 0x8a4   : > { %6368 = vmatmul.msk.f32.gmra.mxu0 %vm571_vm0, %v2897_v61  ;;  %6372 = vmatmul.msk.f32.gmra.mxu1 %vm571_vm0, %v2897_v61  ;;  %v3074_v61 = vld [vmem:[%s14755_s10] sm:$0xff] }
 0x909   : > { %v2927_v29 = vpop.f32.mrf.mxu0  ;;  %v2956_v4 = vpop.f32.mrf.mxu1 }
 0x911   : > { %v2930_v54 = vpop.f32.mrf.mxu0  ;;  %v2959_v32 = vpop.f32.mrf.mxu1 }
 0x919   : > { %v2933_v51 = vpop.f32.mrf.mxu0  ;;  %v2962_v40 = vpop.f32.mrf.mxu1 }
 0x921   : > { %v2936_v8 = vpop.f32.mrf.mxu0  ;;  %v2965_v38 = vpop.f32.mrf.mxu1 }
 0x922   : > { %3020 = vmatpush.msrb.mxu2 %v2936_v8  ;;  %3049 = vmatpush.msrb.mxu3 %v2965_v38  ;;  %v10108_v8 = vld [vmem:[%s14757_s12 + $0x28] sm:$0xff]  ;;  %v15894_v38 = vmov 0  }
 0x924   : > { %3021 = vmatpush.msrb.mxu2 %v2933_v51  ;;  %3050 = vmatpush.msrb.mxu3 %v2962_v40  ;;  %v10098_v51 = vld [vmem:[%s14757_s12 + $0x30] sm:$0xff] }
 0x925   : > { %v3076_v40 = vld [vmem:[%s14755_s10 + $0x10] sm:$0xff] }
 0x926   : > { %3022 = vmatpush.msrb.mxu2 %v2930_v54  ;;  %3051 = vmatpush.msrb.mxu3 %v2959_v32  ;;  %v3075_v54 = vld [vmem:[%s14755_s10 + $0x8] sm:$0xff]  ;;  %v10091_v32 = vld [vmem:[%s14757_s12 + $0x18] sm:$0xff] }
 0x928   : > { %3023 = vmatpush.msrb.mxu2 %v2927_v29  ;;  %3052 = vmatpush.msrb.mxu3 %v2956_v4  ;;  %v10072_v29 = vld [vmem:[%s14757_s12] sm:$0xff] }
 0x929   : > { %6373 = vmatmul.msk.f32.vlgmr.msrb.gmra.mxu2 %vm571_vm0, %v2968_v46  ;;  %6377 = vmatmul.msk.f32.vlgmr.msrb.gmra.mxu3 %vm571_vm0, %v2968_v46  ;;  %v10081_v4 = vld [vmem:[%s14757_s12 + $0x20] sm:$0xff]  ;;  %v3077_v46 = vld [vmem:[%s14755_s10 + $0x18] sm:$0xff] }
 0x92a   : > { %3254 = vperm.xlu2 %6582, %v10072_v29   ;;  %3274 = vperm.xlu1 %6583, %v10081_v4  }
 0x931   : > { %6374 = vmatmul.msk.f32.gmra.mxu2 %vm571_vm0, %v2969_v27  ;;  %6378 = vmatmul.msk.f32.gmra.mxu3 %vm571_vm0, %v2969_v27  ;;  %v10121_v27 = vld [vmem:[%s14757_s12 + $0x10] sm:$0xff] }
 0x932   : > { %3269 = vperm.xlu2 %6582, %v10091_v32   ;;  %3284 = vperm.xlu1 %6583, %v10098_v51  }
 0x939   : > { %6375 = vmatmul.msk.f32.gmra.mxu2 %vm571_vm0, %v2970_v21  ;;  %6379 = vmatmul.msk.f32.gmra.mxu3 %vm571_vm0, %v2970_v21  ;;  %v3078_v21 = vld [vmem:[%s14755_s10 + $0x20] sm:$0xff] }
 0x93a   : > { %3279 = vperm.xlu2 %6582, %v10108_v8   ;;  %6584 = vset.pattern.permute.xlu1 %v15894_v38 }
 0x93b   : > { %3357 = vperm.xlu1 %6584, %v10072_v29  }
 0x941   : > { %6376 = vmatmul.msk.f32.gmra.mxu2 %vm571_vm0, %v2971_v10  ;;  %6380 = vmatmul.msk.f32.gmra.mxu3 %vm571_vm0, %v2971_v10  ;;  %v3079_v10 = vld [vmem:[%s14755_s10 + $0x28] sm:$0xff] }
 0x942   : > { %6585 = vset.pattern.permute.xlu2 %v15894_v38 }
 0x943   : > { %3365 = vperm.xlu2 %6585, %v10121_v27   ;;  %3369 = vperm.xlu1 %6584, %v10091_v32  }
 0x94b   : > { %3373 = vperm.xlu2 %6585, %v10081_v4   ;;  %3377 = vperm.xlu1 %6584, %v10108_v8  }
 0x9ac   : > { %v3025_v14 = vpop.f32.mrf.mxu2  ;;  %v3054_v39 = vpop.f32.mrf.mxu3 }
 0x9ad   : > { %v3026_v45 = vadd.f32 %v3025_v14, %v9685_v25  ;;  %v3055_v43 = vadd.f32 %v3054_v39, %v9685_v25  ;;  %v6742_v25 = vld [vmem:[%s7001_s17 + $0x18] sm:$0xff]  ;;  %v15895_v39 = vmov 1  }
 0x9ae   : > { %v10141_v14 = vld [vmem:[%s14757_s12 + $0x38] sm:$0xff]  ;;  %6587 = vset.pattern.permute.xlu1 %v15895_v39 }
 0x9af   : > { %v10055_v63 = vadd.f32 %v6743_v28, %v3026_v45  ;;  %v10058_v47 = vadd.f32 %v6744_v62, %v3055_v43  ;;  %3385 = vperm.xlu2 %6585, %v10141_v14   ;;  %3493 = vperm.xlu1 %6587, %v10121_v27  }
 0x9b1   : > { %15892 = vst [vmem:[#allocation54_spill] sm:$0xff] %v10055_v63 }
 0x9b2   : > { %15893 = vst [vmem:[#allocation76_spill] sm:$0xff] %v10058_v47 }
 0x9b4   : > { %v3028_v48 = vpop.f32.mrf.mxu2  ;;  %v3057_v17 = vpop.f32.mrf.mxu3 }
 0x9b5   : > { %v3029_v3 = vadd.f32 %v3028_v48, %v2984_v50  ;;  %v3058_v41 = vadd.f32 %v3057_v17, %v2984_v50  ;;  %v3080_v48 = vld [vmem:[%s14755_s10 + $0x30] sm:$0xff]  ;;  %v3081_v17 = vld [vmem:[%s14755_s10 + $0x38] sm:$0xff] }
 0x9b7   : > { %v10045_v16 = vadd.f32 %v6741_v36, %v3029_v3  ;;  %v10048_v24 = vadd.f32 %v6742_v25, %v3058_v41  ;;  %6586 = vset.pattern.permute.xlu2 %v15895_v39  ;;  %3501 = vperm.xlu1 %6587, %v10081_v4  }
 0x9b8   : > { %3489 = vperm.xlu2 %6586, %v10021_v0  }
 0x9b9   : > { %15890 = vst [vmem:[#allocation14_spill] sm:$0xff] %v10045_v16 }
 0x9ba   : > { %15891 = vst [vmem:[#allocation51_spill] sm:$0xff] %v10048_v24 }
 0x9bc   : > { %v3031_v7 = vpop.f32.mrf.mxu2  ;;  %v3060_v53 = vpop.f32.mrf.mxu3 }
 0x9bd   : > { %v3032_v23 = vadd.f32 %v3031_v7, %v2989_v49  ;;  %v3061_v1 = vadd.f32 %v3060_v53, %v2989_v49  ;;  %v15896_v7 = vmov 2   ;;  %v3103_v53 = vpop.permute.xlu2 %3102 }
 0x9bf   : > { %v10035_v35 = vadd.f32 %v6739_v22, %v3032_v23  ;;  %3513 = vperm.xlu1 %6587, %v10141_v14   ;;  %v15898_v22 = vld [vmem:[#allocation42_spill] sm:$0xff] }
 0x9c0   : > { %3497 = vperm.xlu2 %6586, %v10091_v32  }
 0x9c1   : > { %15888 = vst [vmem:[#allocation72_spill] sm:$0xff] %v10035_v35 }
 0x9c4   : > { %v3034_v11 = vpop.f32.mrf.mxu2  ;;  %v3063_v55 = vpop.f32.mrf.mxu3 }
 0x9c5   : > { %v3035_v18 = vadd.f32 %v3034_v11, %v9742_v12  ;;  %v3064_v30 = vadd.f32 %v3063_v55, %v9742_v12  ;;  %v6740_v12 = vld [vmem:[%s7001_s17 + $0x28] sm:$0xff]  ;;  %v10169_v49 = vpop.permute.xlu2 %3117  ;;  %v3093_v55 = vpop.permute.xlu1 %3092  ;;  %s17000_s17 = sld [smem:[#allocation323_spill]] }
 0x9c6   : > { %v10038_v56 = vadd.f32 %v6740_v12, %v3061_v1 }
 0x9c7   : > { %v10027_v60 = vadd.f32 %v6737_v2, %v3035_v18  ;;  %v10030_v57 = vadd.f32 %v6738_v5, %v3064_v30  ;;  %6589 = vset.pattern.permute.xlu1 %v15896_v7 }
 0x9c8   : > { %15889 = vst [vmem:[#allocation47_spill] sm:$0xff] %v10038_v56  ;;  %3509 = vperm.xlu2 %6586, %v10098_v51   ;;  %3617 = vperm.xlu1 %6589, %v10021_v0  }
 0x9c9   : > { %15886 = vst [vmem:[#allocation84_spill] sm:$0xff] %v10027_v60  ;;  %3166 = vmatpush.msrb.mxu0 %v10027_v60  ;;  %3207 = vmatpush.msrb.mxu1 %v10030_v57 }
 0x9ca   : > { %15887 = vst [vmem:[#allocation70_spill] sm:$0xff] %v10030_v57  ;;  %4896 = vmatpush.msra.mxu2 %v10027_v60  ;;  %4937 = vmatpush.msra.mxu3 %v10030_v57 }
 0x9cb   : > { %3167 = vmatpush.msrb.mxu0 %v10035_v35  ;;  %3208 = vmatpush.msrb.mxu1 %v10038_v56  ;;  %s6261_s24 = scalar_lea.hbm %s17000_s17, %s6427_s0  ;;  %s6785_s3 = scalar_lea.hbm %s17000_s17, 128 }
 0x9cc   : > { %4897 = vmatpush.msra.mxu2 %v10035_v35  ;;  %4938 = vmatpush.msra.mxu3 %v10038_v56 }
 0x9cd   : > { %3168 = vmatpush.msrb.mxu0 %v10045_v16  ;;  %3209 = vmatpush.msrb.mxu1 %v10048_v24  ;;  %v10171_v11 = vpop.permute.xlu2 %3254  ;;  %v3108_v3 = vpop.permute.xlu1 %3107 }
 0x9ce   : > { %4898 = vmatpush.msra.mxu2 %v10045_v16  ;;  %4939 = vmatpush.msra.mxu3 %v10048_v24 }
 0x9cf   : > { %3169 = vmatpush.msrb.mxu0 %v10055_v63  ;;  %3210 = vmatpush.msrb.mxu1 %v10058_v47 }
 0x9d0   : > { %4899 = vmatpush.msra.mxu2 %v10055_v63  ;;  %4940 = vmatpush.msra.mxu3 %v10058_v47 }
 0x9d1   : > { %6381 = vmatmul.msk.f32.vlgmr.msrb.gmra.mxu0 %vm571_vm0, %v3074_v61  ;;  %6389 = vmatmul.msk.f32.vlgmr.msrb.gmra.mxu1 %vm571_vm0, %v3074_v61 }
 0x9d2   : > { %6588 = vset.pattern.permute.xlu2 %v15896_v7 }
 0x9d3   : > { %3613 = vperm.xlu2 %6588, %v10072_v29  }
 0x9d5   : > { %v10173_v23 = vpop.permute.xlu2 %3269  ;;  %v10193_v2 = vpop.permute.xlu1 %3122 }
 0x9d9   : > { %6382 = vmatmul.msk.f32.gmra.mxu0 %vm571_vm0, %v3075_v54  ;;  %6390 = vmatmul.msk.f32.gmra.mxu1 %vm571_vm0, %v3075_v54 }
 0x9db   : > { %3625 = vperm.xlu2 %6588, %v10091_v32  }
 0x9dd   : > { %v10185_v41 = vpop.permute.xlu2 %3279  ;;  %v10209_v25 = vpop.permute.xlu1 %3259 }
 0x9e1   : > { %6383 = vmatmul.msk.f32.gmra.mxu0 %vm571_vm0, %v3076_v40  ;;  %6391 = vmatmul.msk.f32.gmra.mxu1 %vm571_vm0, %v3076_v40 }
 0x9e5   : > { %v10195_v45 = vpop.permute.xlu2 %3365  ;;  %v10219_v62 = vpop.permute.xlu1 %3274 }
 0x9e6   : > { %15897 = vst [vmem:[#allocation79_spill] sm:$0xff] %v10195_v45 }
 0x9e9   : > { %6384 = vmatmul.msk.f32.gmra.mxu0 %vm571_vm0, %v3077_v46  ;;  %6392 = vmatmul.msk.f32.gmra.mxu1 %vm571_vm0, %v3077_v46 }
 0x9ed   : > { %v10211_v28 = vpop.permute.xlu2 %3373 }
 0x9ee   : > { %15899 = vst [vmem:[#allocation13_spill] sm:$0xff] %v10211_v28 }
 0x9f1   : > { %6385 = vmatmul.msk.f32.gmra.mxu0 %vm571_vm0, %v3078_v21  ;;  %6393 = vmatmul.msk.f32.gmra.mxu1 %vm571_vm0, %v3078_v21 }
 0x9f9   : > { %6386 = vmatmul.msk.f32.gmra.mxu0 %vm571_vm0, %v3079_v10  ;;  %6394 = vmatmul.msk.f32.gmra.mxu1 %vm571_vm0, %v3079_v10  ;;  %v10233_v10 = vpop.permute.xlu1 %3284 }
 0x9fa   : > { %15903 = vst [vmem:[#allocation77_spill] sm:$0xff] %v10233_v10 }
 0xa01   : > { %6387 = vmatmul.msk.f32.gmra.mxu0 %vm571_vm0, %v3080_v48  ;;  %6395 = vmatmul.msk.f32.gmra.mxu1 %vm571_vm0, %v3080_v48 }
 0xa09   : > { %6388 = vmatmul.msk.f32.gmra.mxu0 %vm571_vm0, %v3081_v17  ;;  %6396 = vmatmul.msk.f32.gmra.mxu1 %vm571_vm0, %v3081_v17  ;;  %v10225_v21 = vpop.permute.xlu2 %3385 }
 0xa0a   : > { %15902 = vst [vmem:[#allocation43_spill] sm:$0xff] %v10225_v21 }
 0xa12   : > { %v10241_v48 = vpop.permute.xlu2 %3489 }
 0xa13   : > { %15904 = vst [vmem:[#allocation20_spill] sm:$0xff] %v10241_v48 }
 0xa4e   : > { %v3171_v1 = vpop.f32.mrf.mxu0  ;;  %v3212_v18 = vpop.f32.mrf.mxu1 }
 0xa4f   : > { %v10175_v30 = vadd.f32 %v3171_v1, %v3093_v55  ;;  %v10177_v50 = vadd.f32 %v3212_v18, %v3093_v55  ;;  %v10247_v18 = vpop.permute.xlu1 %3357 }
 0xa51   : > { %3324 = vrot.lane.b32.xlu0 %v10177_v50, %s15587_s30  ;;  %3436 = vrot.lane.b32.xlu1 %v10175_v30, %s15595_s18 }
 0xa52   : > { %3308 = vrot.lane.b32.xlu2 %v10175_v30, %s15587_s30 }
 0xa56   : > { %v3174_v5 = vpop.f32.mrf.mxu0  ;;  %v3215_v43 = vpop.f32.mrf.mxu1 }
 0xa57   : > { %v10198_v12 = vadd.f32 %v3174_v5, %v15898_v22  ;;  %v10201_v36 = vadd.f32 %v3215_v43, %v15898_v22  ;;  %v10255_v5 = vpop.permute.xlu2 %3497  ;;  %v10257_v43 = vpop.permute.xlu1 %3369 }
 0xa58   : > { %15905 = vst [vmem:[#allocation80_spill] sm:$0xff] %v10255_v5 }
 0xa59   : > { %3564 = vrot.lane.b32.xlu0 %v10175_v30, %s15597_s20  ;;  %3580 = vrot.lane.b32.xlu1 %v10177_v50, %s15597_s20  ;;  %15906 = vst [vmem:[#allocation34_spill] sm:$0xff] %v10257_v43 }
 0xa5a   : > { %3452 = vrot.lane.b32.xlu2 %v10177_v50, %s15595_s18 }
 0xa5e   : > { %v3177_v61 = vpop.f32.mrf.mxu0  ;;  %v3218_v54 = vpop.f32.mrf.mxu1 }
 0xa5f   : > { %v10221_v40 = vadd.f32 %v3177_v61, %v3103_v53  ;;  %v10223_v46 = vadd.f32 %v3218_v54, %v3103_v53  ;;  %v10265_v61 = vpop.permute.xlu2 %3509 }
 0xa60   : > { %15907 = vst [vmem:[#allocation19_spill] sm:$0xff] %v10265_v61  ;;  %v15926_v61 = vmov 3  }
 0xa61   : > { %3438 = vrot.lane.b32.xlu0 %v10198_v12, %s15595_s18  ;;  %3310 = vrot.lane.b32.xlu1 %v10198_v12, %s15587_s30  ;;  %15900 = vst [vmem:[#allocation63_spill] sm:$0xff] %v10221_v40 }
 0xa62   : > { %3326 = vrot.lane.b32.xlu2 %v10201_v36, %s15587_s30  ;;  %15901 = vst [vmem:[#allocation89_spill] sm:$0xff] %v10223_v46 }
 0xa66   : > { %v3180_v17 = vpop.f32.mrf.mxu0  ;;  %v3221_v53 = vpop.f32.mrf.mxu1 }
 0xa67   : > { %v10243_v55 = vadd.f32 %v3180_v17, %v3108_v3  ;;  %v10245_v1 = vadd.f32 %v3221_v53, %v3108_v3  ;;  %v10279_v53 = vpop.permute.xlu1 %3377  ;;  %v10281_v57 = vpop.permute.xlu2 %3613 }
 0xa68   : > { %15908 = vst [vmem:[#allocation18_spill] sm:$0xff] %v10279_v53 }
 0xa69   : > { %3582 = vrot.lane.b32.xlu0 %v10201_v36, %s15597_s20  ;;  %3454 = vrot.lane.b32.xlu1 %v10201_v36, %s15595_s18  ;;  %15909 = vst [vmem:[#allocation88_spill] sm:$0xff] %v10281_v57 }
 0xa6a   : > { %3566 = vrot.lane.b32.xlu2 %v10198_v12, %s15597_s20 }
 0xa6e   : > { %v3183_v3 = vpop.f32.mrf.mxu0  ;;  %v3224_v22 = vpop.f32.mrf.mxu1 }
 0xa6f   : > { %v10268_v54 = vadd.f32 %v3183_v3, %v9846_v52  ;;  %v10271_v17 = vadd.f32 %v3224_v22, %v9846_v52  ;;  %v10289_v22 = vpop.permute.xlu1 %3493  ;;  %v10303_v35 = vpop.permute.xlu2 %3625 }
 0xa70   : > { %15910 = vst [vmem:[#allocation71_spill] sm:$0xff] %v10289_v22 }
 0xa71   : > { %3312 = vrot.lane.b32.xlu0 %v10221_v40, %s15587_s30  ;;  %3328 = vrot.lane.b32.xlu1 %v10223_v46, %s15587_s30  ;;  %15911 = vst [vmem:[#allocation58_spill] sm:$0xff] %v10303_v35 }
 0xa72   : > { %3440 = vrot.lane.b32.xlu2 %v10221_v40, %s15595_s18 }
 0xa76   : > { %v3186_v52 = vpop.f32.mrf.mxu0  ;;  %v3227_v3 = vpop.f32.mrf.mxu1 }
 0xa77   : > { %v10292_v60 = vadd.f32 %v3186_v52, %v10169_v49  ;;  %v10295_v56 = vadd.f32 %v3227_v3, %v10169_v49  ;;  %v10305_v24 = vpop.permute.xlu1 %3501 }
 0xa78   : > { %15912 = vst [vmem:[#allocation23_spill] sm:$0xff] %v10305_v24 }
 0xa79   : > { %3456 = vrot.lane.b32.xlu0 %v10223_v46, %s15595_s18  ;;  %3568 = vrot.lane.b32.xlu1 %v10221_v40, %s15597_s20 }
 0xa7a   : > { %3584 = vrot.lane.b32.xlu2 %v10223_v46, %s15597_s20 }
 0xa7e   : > { %v3189_v49 = vpop.f32.mrf.mxu0  ;;  %v3230_v52 = vpop.f32.mrf.mxu1 }
 0xa7f   : > { %v10316_v16 = vadd.f32 %v3189_v49, %v10193_v2  ;;  %v10319_v47 = vadd.f32 %v3230_v52, %v10193_v2  ;;  %v10321_v63 = vpop.permute.xlu1 %3513 }
 0xa80   : > { %15915 = vst [vmem:[#allocation78_spill] sm:$0xff] %v10321_v63 }
 0xa81   : > { %3330 = vrot.lane.b32.xlu0 %v10245_v1, %s15587_s30  ;;  %3442 = vrot.lane.b32.xlu1 %v10243_v55, %s15595_s18  ;;  %15913 = vst [vmem:[#allocation21_spill] sm:$0xff] %v10316_v16 }
 0xa82   : > { %3314 = vrot.lane.b32.xlu2 %v10243_v55, %s15587_s30  ;;  %15914 = vst [vmem:[#allocation25_spill] sm:$0xff] %v10319_v47 }
 0xa86   : > { %v3192_v49 = vpop.f32.mrf.mxu0  ;;  %v3233_v58 = vpop.f32.mrf.mxu1 }
 0xa87   : > { %v10335_v2 = vpop.permute.xlu1 %3617  ;;  %v10342_v26 = vadd.f32 %v3192_v49, %v9899_v44  ;;  %v10345_v37 = vadd.f32 %v3233_v58, %v9899_v44 }
 0xa88   : > { %15917 = vst [vmem:[#allocation27_spill] sm:$0xff] %v10335_v2 }
 0xa89   : > { %3570 = vrot.lane.b32.xlu0 %v10243_v55, %s15597_s20  ;;  %3586 = vrot.lane.b32.xlu1 %v10245_v1, %s15597_s20  ;;  %15919 = vst [vmem:[#allocation26_spill] sm:$0xff] %v10342_v26 }
 0xa8a   : > { %3458 = vrot.lane.b32.xlu2 %v10245_v1, %s15595_s18  ;;  %15920 = vst [vmem:[#allocation73_spill] sm:$0xff] %v10345_v37 }
 0xa91   : > { %3444 = vrot.lane.b32.xlu0 %v10268_v54, %s15595_s18  ;;  %3316 = vrot.lane.b32.xlu1 %v10268_v54, %s15587_s30 }
 0xa92   : > { %3332 = vrot.lane.b32.xlu2 %v10271_v17, %s15587_s30 }
 0xa99   : > { %3588 = vrot.lane.b32.xlu0 %v10271_v17, %s15597_s20  ;;  %3460 = vrot.lane.b32.xlu1 %v10271_v17, %s15595_s18 }
 0xa9a   : > { %3572 = vrot.lane.b32.xlu2 %v10268_v54, %s15597_s20 }
 0xaa1   : > { %3318 = vrot.lane.b32.xlu0 %v10292_v60, %s15587_s30  ;;  %3334 = vrot.lane.b32.xlu1 %v10295_v56, %s15587_s30 }
 0xaa2   : > { %3446 = vrot.lane.b32.xlu2 %v10292_v60, %s15595_s18 }
 0xaa9   : > { %3462 = vrot.lane.b32.xlu0 %v10295_v56, %s15595_s18  ;;  %3574 = vrot.lane.b32.xlu1 %v10292_v60, %s15597_s20 }
 0xaaa   : > { %3590 = vrot.lane.b32.xlu2 %v10295_v56, %s15597_s20 }
 0xaac   : > { %v10313_v3 = vpop.permute.xlu2 %3308 }
 0xab1   : > { %3336 = vrot.lane.b32.xlu0 %v10319_v47, %s15587_s30  ;;  %3448 = vrot.lane.b32.xlu1 %v10316_v16, %s15595_s18 }
 0xab2   : > { %3320 = vrot.lane.b32.xlu2 %v10316_v16, %s15587_s30 }
 0xab4   : > { %v10329_v42 = vpop.permute.xlu2 %3452 }
 0xab5   : > { %15916 = vst [vmem:[#allocation94_spill] sm:$0xff] %v10329_v42 }
 0xab9   : > { %3576 = vrot.lane.b32.xlu0 %v10316_v16, %s15597_s20  ;;  %3592 = vrot.lane.b32.xlu1 %v10319_v47, %s15597_s20 }
 0xaba   : > { %3464 = vrot.lane.b32.xlu2 %v10319_v47, %s15595_s18 }
 0xabc   : > { %v10339_v52 = vpop.permute.xlu2 %3326 }
 0xabd   : > { %15918 = vst [vmem:[#allocation87_spill] sm:$0xff] %v10339_v52 }
 0xac1   : > { %3450 = vrot.lane.b32.xlu0 %v10342_v26, %s15595_s18  ;;  %3322 = vrot.lane.b32.xlu1 %v10342_v26, %s15587_s30 }
 0xac2   : > { %3338 = vrot.lane.b32.xlu2 %v10345_v37, %s15587_s30 }
 0xac3   : > { %v10353_v13 = vpop.permute.xlu0 %3324  ;;  %v10355_v33 = vpop.permute.xlu1 %3436 }
 0xac4   : > { %15921 = vst [vmem:[#allocation33_spill] sm:$0xff] %v10355_v33  ;;  %v10357_v34 = vpop.permute.xlu2 %3566 }
 0xac9   : > { %3696 = vrot.lane.b32.xlu0 %v10221_v40, %s15599_s23  ;;  %3466 = vrot.lane.b32.xlu1 %v10345_v37, %s15595_s18 }
 0xaca   : > { %3578 = vrot.lane.b32.xlu2 %v10342_v26, %s15597_s20 }
 0xacb   : > { %v10365_v58 = vpop.permute.xlu0 %3564  ;;  %v10367_v44 = vpop.permute.xlu1 %3580 }
 0xacc   : > { %v10369_v49 = vpop.permute.xlu2 %3440 }
 0xacd   : > { %15922 = vst [vmem:[#allocation55_spill] sm:$0xff] %v10369_v49 }
 0xad1   : > { %3702 = vrot.lane.b32.xlu0 %v10292_v60, %s15599_s23  ;;  %3629 = vperm.xlu1 %6589, %v10081_v4  }
 0xad2   : > { %3633 = vperm.xlu2 %6588, %v10108_v8  }
 0xad3   : > { %v10375_v31 = vpop.permute.xlu0 %3438  ;;  %v10377_v9 = vpop.permute.xlu1 %3310 }
 0xad4   : > { %15923 = vst [vmem:[#allocation86_spill] sm:$0xff] %v10375_v31  ;;  %v10379_v6 = vpop.permute.xlu2 %3584 }
 0xad5   : > { %15924 = vst [vmem:[#allocation16_spill] sm:$0xff] %v10377_v9 }
 0xad6   : > { %15925 = vst [vmem:[#allocation85_spill] sm:$0xff] %v10379_v6 }
 0xad9   : > { %3594 = vrot.lane.b32.xlu0 %v10345_v37, %s15597_s20  ;;  %3637 = vperm.xlu1 %6589, %v10098_v51  }
 0xada   : > { %3692 = vrot.lane.b32.xlu2 %v10175_v30, %s15599_s23 }
 0xadb   : > { %v10386_v63 = vpop.permute.xlu0 %3582  ;;  %v10388_v21 = vpop.permute.xlu1 %3454  ;;  %6591 = vset.pattern.permute.xlu2 %v15926_v61 }
 0xadc   : > { %v10391_v22 = vpop.permute.xlu2 %3314 }
 0xadd   : > { %15927 = vst [vmem:[#allocation15_spill] sm:$0xff] %v10391_v22 }
 0xae1   : > { %3708 = vrot.lane.b32.xlu0 %v10177_v50, %s15599_s23  ;;  %3694 = vrot.lane.b32.xlu1 %v10198_v12, %s15599_s23 }
 0xae2   : > { %3698 = vrot.lane.b32.xlu2 %v10243_v55, %s15599_s23  ;;  %6590 = vset.pattern.permute.xlu1 %v15926_v61 }
 0xae3   : > { %v10400_v6 = vpop.permute.xlu0 %3312  ;;  %v10402_v53 = vpop.permute.xlu1 %3328 }
 0xae4   : > { %15928 = vst [vmem:[#allocation44_spill] sm:$0xff] %v10400_v6  ;;  %v10404_v24 = vpop.permute.xlu2 %3458 }
 0xae5   : > { %15929 = vst [vmem:[#allocation75_spill] sm:$0xff] %v10402_v53 }
 0xae6   : > { %15930 = vst [vmem:[#allocation52_spill] sm:$0xff] %v10404_v24 }
 0xae9   : > { %3714 = vrot.lane.b32.xlu0 %v10245_v1, %s15599_s23  ;;  %3700 = vrot.lane.b32.xlu1 %v10268_v54, %s15599_s23 }
 0xaea   : > { %3704 = vrot.lane.b32.xlu2 %v10316_v16, %s15599_s23 }
 0xaeb   : > { %v10412_v35 = vpop.permute.xlu0 %3456  ;;  %v10414_v28 = vpop.permute.xlu1 %3568 }
 0xaec   : > { %15931 = vst [vmem:[#allocation24_spill] sm:$0xff] %v10412_v35  ;;  %v10416_v5 = vpop.permute.xlu2 %3332 }
 0xaed   : > { %15932 = vst [vmem:[#allocation41_spill] sm:$0xff] %v10414_v28 }
 0xaee   : > { %15933 = vst [vmem:[#allocation22_spill] sm:$0xff] %v10416_v5 }
 0xaf1   : > { %3720 = vrot.lane.b32.xlu0 %v10319_v47, %s15599_s23  ;;  %3706 = vrot.lane.b32.xlu1 %v10342_v26, %s15599_s23 }
 0xaf2   : > { %3710 = vrot.lane.b32.xlu2 %v10201_v36, %s15599_s23 }
 0xaf3   : > { %v10424_v24 = vpop.permute.xlu0 %3330  ;;  %v10426_v49 = vpop.permute.xlu1 %3442 }
 0xaf4   : > { %15934 = vst [vmem:[#allocation90_spill] sm:$0xff] %v10424_v24  ;;  %v10428_v43 = vpop.permute.xlu2 %3572 }
 0xaf5   : > { %15935 = vst [vmem:[#allocation50_spill] sm:$0xff] %v10426_v49 }
 0xaf6   : > { %15936 = vst [vmem:[#allocation30_spill] sm:$0xff] %v10428_v43 }
 0xaf9   : > { %3822 = vrot.lane.b32.xlu0 %v10198_v12, %s15601_s1  ;;  %3712 = vrot.lane.b32.xlu1 %v10223_v46, %s15599_s23 }
 0xafa   : > { %3716 = vrot.lane.b32.xlu2 %v10271_v17, %s15599_s23 }
 0xafb   : > { %v10436_v28 = vpop.permute.xlu0 %3570  ;;  %v10438_v5 = vpop.permute.xlu1 %3586 }
 0xafc   : > { %15937 = vst [vmem:[#allocation28_spill] sm:$0xff] %v10436_v28  ;;  %v10440_v35 = vpop.permute.xlu2 %3446 }
 0xafd   : > { %15938 = vst [vmem:[#allocation56_spill] sm:$0xff] %v10438_v5 }
 0xafe   : > { %15939 = vst [vmem:[#allocation46_spill] sm:$0xff] %v10440_v35 }
 0xb01   : > { %3828 = vrot.lane.b32.xlu0 %v10268_v54, %s15601_s1  ;;  %3718 = vrot.lane.b32.xlu1 %v10295_v56, %s15599_s23 }
 0xb02   : > { %3722 = vrot.lane.b32.xlu2 %v10345_v37, %s15599_s23 }
 0xb03   : > { %v10448_v43 = vpop.permute.xlu0 %3444  ;;  %v10450_v49 = vpop.permute.xlu1 %3316 }
 0xb04   : > { %15940 = vst [vmem:[#allocation74_spill] sm:$0xff] %v10448_v43  ;;  %v10452_v9 = vpop.permute.xlu2 %3590 }
 0xb05   : > { %15941 = vst [vmem:[#allocation32_spill] sm:$0xff] %v10450_v49 }
 0xb06   : > { %15942 = vst [vmem:[#allocation95_spill] sm:$0xff] %v10452_v9 }
 0xb09   : > { %3840 = vrot.lane.b32.xlu0 %v10223_v46, %s15601_s1  ;;  %3741 = vperm.xlu1 %6590, %v10072_v29  }
 0xb0a   : > { %3749 = vperm.xlu2 %6591, %v10121_v27  }
 0xb0b   : > { %v10458_v35 = vpop.permute.xlu0 %3588  ;;  %v10460_v28 = vpop.permute.xlu1 %3460 }
 0xb0c   : > { %15943 = vst [vmem:[#allocation38_spill] sm:$0xff] %v10458_v35  ;;  %v10462_v5 = vpop.permute.xlu2 %3320 }
 0xb0d   : > { %15944 = vst [vmem:[#allocation91_spill] sm:$0xff] %v10460_v28 }
 0xb0e   : > { %15945 = vst [vmem:[#allocation82_spill] sm:$0xff] %v10462_v5 }
 0xb11   : > { %3846 = vrot.lane.b32.xlu0 %v10295_v56, %s15601_s1  ;;  %3753 = vperm.xlu1 %6590, %v10091_v32  }
 0xb12   : > { %3757 = vperm.xlu2 %6591, %v10081_v4  }
 0xb13   : > { %v10468_v9 = vpop.permute.xlu0 %3318  ;;  %v10470_v43 = vpop.permute.xlu1 %3334 }
 0xb14   : > { %15946 = vst [vmem:[#allocation40_spill] sm:$0xff] %v10468_v9  ;;  %v10472_v49 = vpop.permute.xlu2 %3464 }
 0xb15   : > { %15947 = vst [vmem:[#allocation39_spill] sm:$0xff] %v10470_v43 }
 0xb16   : > { %15948 = vst [vmem:[#allocation81_spill] sm:$0xff] %v10472_v49  ;;  %v15952_v49 = vmov 5  }
 0xb19   : > { %3834 = vrot.lane.b32.xlu0 %v10342_v26, %s15601_s1  ;;  %3761 = vperm.xlu1 %6590, %v10108_v8  }
 0xb1a   : > { %3769 = vperm.xlu2 %6591, %v10141_v14  }
 0xb1b   : > { %v10478_v5 = vpop.permute.xlu0 %3462  ;;  %v10480_v35 = vpop.permute.xlu1 %3574 }
 0xb1c   : > { %15949 = vst [vmem:[#allocation31_spill] sm:$0xff] %v10478_v5  ;;  %v10482_v28 = vpop.permute.xlu2 %3338 }
 0xb1d   : > { %15950 = vst [vmem:[#allocation53_spill] sm:$0xff] %v10480_v35 }
 0xb1e   : > { %15951 = vst [vmem:[#allocation37_spill] sm:$0xff] %v10482_v28 }
 0xb21   : > { %3948 = vrot.lane.b32.xlu0 %v10175_v30, %s15605_s27  ;;  %3820 = vrot.lane.b32.xlu1 %v10175_v30, %s15601_s1 }
 0xb22   : > { %3824 = vrot.lane.b32.xlu2 %v10221_v40, %s15601_s1  ;;  %6593 = vset.pattern.permute.xlu1 %v15952_v49 }
 0xb23   : > { %v10491_v43 = vpop.permute.xlu0 %3336  ;;  %v10493_v9 = vpop.permute.xlu1 %3448  ;;  %6592 = vset.pattern.permute.xlu2 %v15952_v49 }
 0xb24   : > { %15953 = vst [vmem:[#allocation92_spill] sm:$0xff] %v10491_v43  ;;  %v10496_v35 = vpop.permute.xlu2 %3578 }
 0xb25   : > { %15954 = vst [vmem:[#allocation83_spill] sm:$0xff] %v10493_v9 }
 0xb26   : > { %15955 = vst [vmem:[#allocation93_spill] sm:$0xff] %v10496_v35 }
 0xb29   : > { %3954 = vrot.lane.b32.xlu0 %v10243_v55, %s15605_s27  ;;  %3826 = vrot.lane.b32.xlu1 %v10243_v55, %s15601_s1 }
 0xb2a   : > { %3830 = vrot.lane.b32.xlu2 %v10292_v60, %s15601_s1 }
 0xb2b   : > { %v10504_v28 = vpop.permute.xlu0 %3576  ;;  %v10506_v5 = vpop.permute.xlu1 %3592 }
 0xb2c   : > { %15956 = vst [vmem:[#allocation98_spill] sm:$0xff] %v10504_v28  ;;  %v10508_v43 = vpop.permute.xlu2 %3633 }
 0xb2d   : > { %15957 = vst [vmem:[#allocation17_spill] sm:$0xff] %v10506_v5 }
 0xb2e   : > { %15958 = vst [vmem:[#allocation45_spill] sm:$0xff] %v10508_v43 }
 0xb31   : > { %3960 = vrot.lane.b32.xlu0 %v10316_v16, %s15605_s27  ;;  %3832 = vrot.lane.b32.xlu1 %v10316_v16, %s15601_s1 }
 0xb32   : > { %3836 = vrot.lane.b32.xlu2 %v10177_v50, %s15601_s1 }
 0xb33   : > { %v10516_v35 = vpop.permute.xlu0 %3450  ;;  %v10518_v9 = vpop.permute.xlu1 %3322 }
 0xb34   : > { %15959 = vst [vmem:[#allocation97_spill] sm:$0xff] %v10516_v35  ;;  %v10520_v52 = vpop.permute.xlu2 %3692 }
 0xb35   : > { %15960 = vst [vmem:[#allocation96_spill] sm:$0xff] %v10518_v9 }
 0xb36   : > { %15961 = vst [vmem:[#allocation42_spill] sm:$0xff] %v10520_v52 }
 0xb39   : > { %3966 = vrot.lane.b32.xlu0 %v10201_v36, %s15605_s27  ;;  %3838 = vrot.lane.b32.xlu1 %v10201_v36, %s15601_s1 }
 0xb3a   : > { %3842 = vrot.lane.b32.xlu2 %v10245_v1, %s15601_s1 }
 0xb3b   : > { %v10528_v5 = vpop.permute.xlu0 %3696  ;;  %v10530_v28 = vpop.permute.xlu1 %3466 }
 0xb3c   : > { %15962 = vst [vmem:[#allocation99_spill] sm:$0xff] %v10528_v5  ;;  %v10532_v43 = vpop.permute.xlu2 %3698 }
 0xb3d   : > { %15963 = vst [vmem:[#allocation100_spill] sm:$0xff] %v10530_v28 }
 0xb3e   : > { %15964 = vst [vmem:[#allocation101_spill] sm:$0xff] %v10532_v43 }
 0xb41   : > { %3972 = vrot.lane.b32.xlu0 %v10271_v17, %s15605_s27  ;;  %3844 = vrot.lane.b32.xlu1 %v10271_v17, %s15601_s1 }
 0xb42   : > { %3848 = vrot.lane.b32.xlu2 %v10319_v47, %s15601_s1 }
 0xb43   : > { %v10540_v52 = vpop.permute.xlu0 %3702  ;;  %v10542_v35 = vpop.permute.xlu1 %3629 }
 0xb44   : > { %15965 = vst [vmem:[#allocation102_spill] sm:$0xff] %v10540_v52  ;;  %v10544_v9 = vpop.permute.xlu2 %3704 }
 0xb45   : > { %15966 = vst [vmem:[#allocation103_spill] sm:$0xff] %v10542_v35 }
 0xb46   : > { %15967 = vst [vmem:[#allocation104_spill] sm:$0xff] %v10544_v9 }
 0xb49   : > { %3978 = vrot.lane.b32.xlu0 %v10345_v37, %s15605_s27  ;;  %3850 = vrot.lane.b32.xlu1 %v10345_v37, %s15601_s1 }
 0xb4a   : > { %3873 = vperm.xlu2 %6592, %v10021_v0  }
 0xb4b   : > { %v10551_v5 = vpop.permute.xlu0 %3594  ;;  %v10553_v43 = vpop.permute.xlu1 %3637 }
 0xb4c   : > { %15968 = vst [vmem:[#allocation105_spill] sm:$0xff] %v10551_v5  ;;  %v10555_v28 = vpop.permute.xlu2 %3710 }
 0xb4d   : > { %15969 = vst [vmem:[#allocation106_spill] sm:$0xff] %v10553_v43 }
 0xb4e   : > { %15970 = vst [vmem:[#allocation107_spill] sm:$0xff] %v10555_v28 }
 0xb51   : > { %4080 = vrot.lane.b32.xlu0 %v10221_v40, %s15610_s26  ;;  %3877 = vperm.xlu1 %6593, %v10121_v27  }
 0xb52   : > { %3881 = vperm.xlu2 %6592, %v10091_v32  }
 0xb53   : > { %v10561_v52 = vpop.permute.xlu0 %3708  ;;  %v10563_v9 = vpop.permute.xlu1 %3694 }
 0xb54   : > { %15971 = vst [vmem:[#allocation108_spill] sm:$0xff] %v10561_v52  ;;  %v10565_v35 = vpop.permute.xlu2 %3716  ;;  %v15979_v52 = vmov 6  }
 0xb55   : > { %15972 = vst [vmem:[#allocation109_spill] sm:$0xff] %v10563_v9 }
 0xb56   : > { %15973 = vst [vmem:[#allocation110_spill] sm:$0xff] %v10565_v35 }
 0xb59   : > { %4086 = vrot.lane.b32.xlu0 %v10292_v60, %s15610_s26  ;;  %3885 = vperm.xlu1 %6593, %v10081_v4  }
 0xb5a   : > { %3893 = vperm.xlu2 %6592, %v10098_v51  }
 0xb5b   : > { %v10571_v28 = vpop.permute.xlu0 %3714  ;;  %v10573_v5 = vpop.permute.xlu1 %3700 }
 0xb5c   : > { %15974 = vst [vmem:[#allocation111_spill] sm:$0xff] %v10571_v28  ;;  %v10575_v43 = vpop.permute.xlu2 %3722 }
 0xb5d   : > { %15975 = vst [vmem:[#allocation112_spill] sm:$0xff] %v10573_v5 }
 0xb5e   : > { %15976 = vst [vmem:[#allocation113_spill] sm:$0xff] %v10575_v43 }
 0xb61   : > { %4092 = vrot.lane.b32.xlu0 %v10177_v50, %s15610_s26  ;;  %3897 = vperm.xlu1 %6593, %v10141_v14  }
 0xb62   : > { %3950 = vrot.lane.b32.xlu2 %v10198_v12, %s15605_s27 }
 0xb63   : > { %v10582_v35 = vpop.permute.xlu0 %3720  ;;  %v10584_v9 = vpop.permute.xlu1 %3706  ;;  %6594 = vset.pattern.permute.xlu2 %v15979_v52 }
 0xb64   : > { %15977 = vst [vmem:[#allocation114_spill] sm:$0xff] %v10582_v35  ;;  %v10587_v59 = vpop.permute.xlu2 %3749 }
 0xb65   : > { %15978 = vst [vmem:[#allocation115_spill] sm:$0xff] %v10584_v9 }
 0xb66   : > { %15980 = vst [vmem:[#allocation116_spill] sm:$0xff] %v10587_v59 }
 0xb69   : > { %4098 = vrot.lane.b32.xlu0 %v10245_v1, %s15610_s26  ;;  %3952 = vrot.lane.b32.xlu1 %v10221_v40, %s15605_s27 }
 0xb6a   : > { %3956 = vrot.lane.b32.xlu2 %v10268_v54, %s15605_s27  ;;  %6595 = vset.pattern.permute.xlu1 %v15979_v52 }
 0xb6b   : > { %v10596_v43 = vpop.permute.xlu0 %3822  ;;  %v10598_v35 = vpop.permute.xlu1 %3712 }
 0xb6c   : > { %15981 = vst [vmem:[#allocation117_spill] sm:$0xff] %v10596_v43  ;;  %v10600_v9 = vpop.permute.xlu2 %3757 }
 0xb6d   : > { %15982 = vst [vmem:[#allocation118_spill] sm:$0xff] %v10598_v35 }
 0xb6e   : > { %15983 = vst [vmem:[#allocation119_spill] sm:$0xff] %v10600_v9 }
 0xb71   : > { %4104 = vrot.lane.b32.xlu0 %v10319_v47, %s15610_s26  ;;  %3958 = vrot.lane.b32.xlu1 %v10292_v60, %s15605_s27 }
 0xb72   : > { %3962 = vrot.lane.b32.xlu2 %v10342_v26, %s15605_s27 }
 0xb73   : > { %v10608_v59 = vpop.permute.xlu0 %3828  ;;  %v10610_v5 = vpop.permute.xlu1 %3718 }
 0xb74   : > { %15984 = vst [vmem:[#allocation120_spill] sm:$0xff] %v10608_v59  ;;  %v10612_v28 = vpop.permute.xlu2 %3769 }
 0xb75   : > { %15985 = vst [vmem:[#allocation121_spill] sm:$0xff] %v10610_v5 }
 0xb76   : > { %15986 = vst [vmem:[#allocation122_spill] sm:$0xff] %v10612_v28 }
 0xb79   : > { %4129 = vperm.xlu0 %6581, %v10021_v0   ;;  %3964 = vrot.lane.b32.xlu1 %v10177_v50, %s15605_s27 }
 0xb7a   : > { %3968 = vrot.lane.b32.xlu2 %v10223_v46, %s15605_s27 }
 0xb7b   : > { %v10619_v43 = vpop.permute.xlu0 %3840  ;;  %v10621_v9 = vpop.permute.xlu1 %3741 }
 0xb7c   : > { %15987 = vst [vmem:[#allocation123_spill] sm:$0xff] %v10619_v43  ;;  %v10623_v35 = vpop.permute.xlu2 %3824 }
 0xb7d   : > { %15988 = vst [vmem:[#allocation124_spill] sm:$0xff] %v10621_v9 }
 0xb7e   : > { %15989 = vst [vmem:[#allocation125_spill] sm:$0xff] %v10623_v35  ;;  %v15993_v35 = vmov 8  }
 0xb81   : > { %4149 = vperm.xlu0 %6581, %v10098_v51   ;;  %3970 = vrot.lane.b32.xlu1 %v10245_v1, %s15605_s27 }
 0xb82   : > { %3974 = vrot.lane.b32.xlu2 %v10295_v56, %s15605_s27 }
 0xb83   : > { %v10630_v59 = vpop.permute.xlu0 %3846  ;;  %v10632_v5 = vpop.permute.xlu1 %3753 }
 0xb84   : > { %15990 = vst [vmem:[#allocation126_spill] sm:$0xff] %v10630_v59  ;;  %v10634_v28 = vpop.permute.xlu2 %3830 }
 0xb85   : > { %15991 = vst [vmem:[#allocation127_spill] sm:$0xff] %v10632_v5 }
 0xb86   : > { %15992 = vst [vmem:[#allocation128_spill] sm:$0xff] %v10634_v28 }
 0xb89   : > { %4206 = vrot.lane.b32.xlu0 %v10198_v12, %s15613_s29  ;;  %3976 = vrot.lane.b32.xlu1 %v10319_v47, %s15605_s27 }
 0xb8a   : > { %3997 = vperm.xlu2 %6594, %v10072_v29   ;;  %6598 = vset.pattern.permute.xlu0 %v15993_v35 }
 0xb8b   : > { %v10642_v43 = vpop.permute.xlu0 %3834  ;;  %v10644_v9 = vpop.permute.xlu1 %3761 }
 0xb8c   : > { %15994 = vst [vmem:[#allocation129_spill] sm:$0xff] %v10642_v43  ;;  %v10646_v52 = vpop.permute.xlu2 %3836 }
 0xb8d   : > { %15995 = vst [vmem:[#allocation130_spill] sm:$0xff] %v10644_v9 }
 0xb8e   : > { %15996 = vst [vmem:[#allocation131_spill] sm:$0xff] %v10646_v52 }
 0xb91   : > { %4212 = vrot.lane.b32.xlu0 %v10268_v54, %s15613_s29  ;;  %4001 = vperm.xlu1 %6595, %v10021_v0  }
 0xb92   : > { %4009 = vperm.xlu2 %6594, %v10091_v32  }
 0xb93   : > { %v10652_v28 = vpop.permute.xlu0 %3948  ;;  %v10654_v59 = vpop.permute.xlu1 %3820 }
 0xb94   : > { %15997 = vst [vmem:[#allocation132_spill] sm:$0xff] %v10652_v28  ;;  %v10656_v5 = vpop.permute.xlu2 %3842 }
 0xb95   : > { %15998 = vst [vmem:[#allocation133_spill] sm:$0xff] %v10654_v59 }
 0xb96   : > { %15999 = vst [vmem:[#allocation134_spill] sm:$0xff] %v10656_v5  ;;  %v16005_v5 = vmov 7  }
 0xb99   : > { %4218 = vrot.lane.b32.xlu0 %v10342_v26, %s15613_s29  ;;  %4013 = vperm.xlu1 %6595, %v10081_v4  }
 0xb9a   : > { %4017 = vperm.xlu2 %6594, %v10108_v8  }
 0xb9b   : > { %v10662_v43 = vpop.permute.xlu0 %3954  ;;  %v10664_v52 = vpop.permute.xlu1 %3826 }
 0xb9c   : > { %16000 = vst [vmem:[#allocation135_spill] sm:$0xff] %v10662_v43  ;;  %v10666_v9 = vpop.permute.xlu2 %3848 }
 0xb9d   : > { %16001 = vst [vmem:[#allocation136_spill] sm:$0xff] %v10664_v52 }
 0xb9e   : > { %16002 = vst [vmem:[#allocation137_spill] sm:$0xff] %v10666_v9 }
 0xba1   : > { %4224 = vrot.lane.b32.xlu0 %v10223_v46, %s15613_s29  ;;  %4021 = vperm.xlu1 %6595, %v10098_v51  }
 0xba2   : > { %4076 = vrot.lane.b32.xlu2 %v10175_v30, %s15610_s26 }
 0xba3   : > { %v10673_v28 = vpop.permute.xlu0 %3960  ;;  %v10675_v59 = vpop.permute.xlu1 %3832  ;;  %6597 = vset.pattern.permute.xlu2 %v16005_v5 }
 0xba4   : > { %16003 = vst [vmem:[#allocation138_spill] sm:$0xff] %v10673_v28  ;;  %v10678_v20 = vpop.permute.xlu2 %3873 }
 0xba5   : > { %16004 = vst [vmem:[#allocation139_spill] sm:$0xff] %v10675_v59  ;;  %v4804_v59 = vld [vmem:[%s14755_s10 + $0x40] sm:$0xff] }
 0xba6   : > { %16006 = vst [vmem:[#allocation140_spill] sm:$0xff] %v10678_v20  ;;  %6397 = vmatmul.msk.f32.vlgmr.msra.gmra.mxu2 %vm571_vm0, %v4804_v59  ;;  %6405 = vmatmul.msk.f32.vlgmr.msra.gmra.mxu3 %vm571_vm0, %v4804_v59 }
 0xba9   : > { %4230 = vrot.lane.b32.xlu0 %v10295_v56, %s15613_s29  ;;  %4078 = vrot.lane.b32.xlu1 %v10198_v12, %s15610_s26 }
 0xbaa   : > { %4082 = vrot.lane.b32.xlu2 %v10243_v55, %s15610_s26  ;;  %6596 = vset.pattern.permute.xlu1 %v16005_v5 }
 0xbab   : > { %v10687_v43 = vpop.permute.xlu0 %3966  ;;  %v10689_v28 = vpop.permute.xlu1 %3838 }
 0xbac   : > { %16007 = vst [vmem:[#allocation141_spill] sm:$0xff] %v10687_v43  ;;  %v10694_v20 = vpop.permute.xlu2 %3881 }
 0xbad   : > { %16008 = vst [vmem:[#allocation142_spill] sm:$0xff] %v10689_v28  ;;  %v4805_v28 = vld [vmem:[%s14755_s10 + $0x48] sm:$0xff] }
 0xbae   : > { %16009 = vst [vmem:[#allocation143_spill] sm:$0xff] %v10694_v20  ;;  %6398 = vmatmul.msk.f32.gmra.mxu2 %vm571_vm0, %v4805_v28  ;;  %6406 = vmatmul.msk.f32.gmra.mxu3 %vm571_vm0, %v4805_v28 }
 0xbb1   : > { %4253 = vperm.xlu0 %6598, %v10072_v29   ;;  %4084 = vrot.lane.b32.xlu1 %v10268_v54, %s15610_s26 }
 0xbb2   : > { %4088 = vrot.lane.b32.xlu2 %v10316_v16, %s15610_s26 }
 0xbb3   : > { %v10703_v43 = vpop.permute.xlu0 %3972  ;;  %v10705_v9 = vpop.permute.xlu1 %3844 }
 0xbb4   : > { %16010 = vst [vmem:[#allocation144_spill] sm:$0xff] %v10703_v43  ;;  %v10710_v20 = vpop.permute.xlu2 %3893 }
 0xbb5   : > { %16011 = vst [vmem:[#allocation145_spill] sm:$0xff] %v10705_v9  ;;  %v4806_v9 = vld [vmem:[%s14755_s10 + $0x50] sm:$0xff] }
 0xbb6   : > { %16012 = vst [vmem:[#allocation146_spill] sm:$0xff] %v10710_v20  ;;  %6399 = vmatmul.msk.f32.gmra.mxu2 %vm571_vm0, %v4806_v9  ;;  %6407 = vmatmul.msk.f32.gmra.mxu3 %vm571_vm0, %v4806_v9 }
 0xbb9   : > { %4273 = vperm.xlu0 %6598, %v10108_v8   ;;  %4090 = vrot.lane.b32.xlu1 %v10342_v26, %s15610_s26 }
 0xbba   : > { %4094 = vrot.lane.b32.xlu2 %v10201_v36, %s15610_s26 }
 0xbbb   : > { %v10719_v59 = vpop.permute.xlu0 %3978  ;;  %v10721_v43 = vpop.permute.xlu1 %3850 }
 0xbbc   : > { %16013 = vst [vmem:[#allocation147_spill] sm:$0xff] %v10719_v59  ;;  %v10726_v20 = vpop.permute.xlu2 %3950  ;;  %v4807_v59 = vld [vmem:[%s14755_s10 + $0x58] sm:$0xff] }
 0xbbd   : > { %16014 = vst [vmem:[#allocation148_spill] sm:$0xff] %v10721_v43 }
 0xbbe   : > { %16015 = vst [vmem:[#allocation149_spill] sm:$0xff] %v10726_v20  ;;  %6400 = vmatmul.msk.f32.gmra.mxu2 %vm571_vm0, %v4807_v59  ;;  %6408 = vmatmul.msk.f32.gmra.mxu3 %vm571_vm0, %v4807_v59  ;;  %v3244_v59 = vld [vmem:[%s14758_s13] sm:$0xff] }
 0xbc1   : > { %6601 = vset.pattern.permute.xlu0 %v15894_v38  ;;  %4096 = vrot.lane.b32.xlu1 %v10223_v46, %s15610_s26 }
 0xbc2   : > { %4100 = vrot.lane.b32.xlu2 %v10271_v17, %s15610_s26  ;;  %3361 = vperm.xlu0 %6601, %v10021_v0  }
 0xbc3   : > { %v10736_v28 = vpop.permute.xlu0 %4080  ;;  %v10738_v26 = vpop.permute.xlu1 %3877 }
 0xbc4   : > { %16016 = vst [vmem:[#allocation150_spill] sm:$0xff] %v10736_v28  ;;  %v10743_v43 = vpop.permute.xlu2 %3956  ;;  %v4808_v28 = vld [vmem:[%s14755_s10 + $0x60] sm:$0xff] }
 0xbc5   : > { %16017 = vst [vmem:[#allocation151_spill] sm:$0xff] %v10738_v26 }
 0xbc6   : > { %16018 = vst [vmem:[#allocation152_spill] sm:$0xff] %v10743_v43  ;;  %6401 = vmatmul.msk.f32.gmra.mxu2 %vm571_vm0, %v4808_v28  ;;  %6409 = vmatmul.msk.f32.gmra.mxu3 %vm571_vm0, %v4808_v28  ;;  %v3249_v28 = vld [vmem:[%s14758_s13 + $0x28] sm:$0xff] }
 0xbc9   : > { %4102 = vrot.lane.b32.xlu1 %v10295_v56, %s15610_s26 }
 0xbca   : > { %4106 = vrot.lane.b32.xlu2 %v10345_v37, %s15610_s26  ;;  %3381 = vperm.xlu0 %6601, %v10098_v51  }
 0xbcb   : > { %v10752_v9 = vpop.permute.xlu0 %4086  ;;  %v10754_v46 = vpop.permute.xlu1 %3885 }
 0xbcc   : > { %16019 = vst [vmem:[#allocation153_spill] sm:$0xff] %v10752_v9  ;;  %v10759_v43 = vpop.permute.xlu2 %3962 }
 0xbcd   : > { %16020 = vst [vmem:[#allocation154_spill] sm:$0xff] %v10754_v46 }
 0xbce   : > { %16021 = vst [vmem:[#allocation155_spill] sm:$0xff] %v10759_v43  ;;  %v4809_v43 = vld [vmem:[%s14755_s10 + $0x68] sm:$0xff] }
 0xbcf   : > { %6402 = vmatmul.msk.f32.gmra.mxu2 %vm571_vm0, %v4809_v43  ;;  %6410 = vmatmul.msk.f32.gmra.mxu3 %vm571_vm0, %v4809_v43  ;;  %v4812_v43 = vld [vmem:[%s14756_s11 + $0x40] sm:$0xff] }
 0xbd1   : > { %4125 = vperm.xlu1 %6596, %v10072_v29  }
 0xbd2   : > { %4133 = vperm.xlu2 %6597, %v10121_v27   ;;  %4334 = vperm.xlu0 %6601, %v3244_v59  }
 0xbd3   : > { %v10768_v9 = vpop.permute.xlu0 %4092  ;;  %v10770_v26 = vpop.permute.xlu1 %3897 }
 0xbd4   : > { %16022 = vst [vmem:[#allocation156_spill] sm:$0xff] %v10768_v9  ;;  %v10775_v20 = vpop.permute.xlu2 %3968 }
 0xbd5   : > { %16023 = vst [vmem:[#allocation157_spill] sm:$0xff] %v10770_v26 }
 0xbd6   : > { %16024 = vst [vmem:[#allocation158_spill] sm:$0xff] %v10775_v20  ;;  %v4810_v20 = vld [vmem:[%s14755_s10 + $0x70] sm:$0xff] }
 0xbd7   : > { %6403 = vmatmul.msk.f32.gmra.mxu2 %vm571_vm0, %v4810_v20  ;;  %6411 = vmatmul.msk.f32.gmra.mxu3 %vm571_vm0, %v4810_v20 }
 0xbd9   : > { %4137 = vperm.xlu1 %6596, %v10091_v32  }
 0xbda   : > { %4141 = vperm.xlu2 %6597, %v10081_v4   ;;  %4359 = vperm.xlu0 %6601, %v3249_v28  }
 0xbdb   : > { %v10784_v59 = vpop.permute.xlu0 %4098  ;;  %v10786_v9 = vpop.permute.xlu1 %3952 }
 0xbdc   : > { %16025 = vst [vmem:[#allocation159_spill] sm:$0xff] %v10784_v59  ;;  %v10791_v26 = vpop.permute.xlu2 %3974 }
 0xbdd   : > { %16026 = vst [vmem:[#allocation160_spill] sm:$0xff] %v10786_v9 }
 0xbde   : > { %16027 = vst [vmem:[#allocation161_spill] sm:$0xff] %v10791_v26  ;;  %v4815_v26 = vld [vmem:[%s14756_s11 + $0x58] sm:$0xff] }
 0xbe1   : > { %4145 = vperm.xlu1 %6596, %v10108_v8  }
 0xbe2   : > { %4153 = vperm.xlu2 %6597, %v10141_v14   ;;  %4822 = vperm.xlu0 %6601, %v4812_v43  }
 0xbe3   : > { %v10800_v28 = vpop.permute.xlu0 %4104  ;;  %v10802_v59 = vpop.permute.xlu1 %3958 }
 0xbe4   : > { %16028 = vst [vmem:[#allocation162_spill] sm:$0xff] %v10800_v28  ;;  %v10804_v9 = vpop.permute.xlu2 %3997 }
 0xbe5   : > { %16029 = vst [vmem:[#allocation163_spill] sm:$0xff] %v10802_v59  ;;  %v4818_v59 = vld [vmem:[%s14756_s11 + $0x70] sm:$0xff] }
 0xbe6   : > { %16030 = vst [vmem:[#allocation164_spill] sm:$0xff] %v10804_v9 }
 0xbe9   : > { %4204 = vrot.lane.b32.xlu1 %v10175_v30, %s15613_s29 }
 0xbea   : > { %4208 = vrot.lane.b32.xlu2 %v10221_v40, %s15613_s29  ;;  %4837 = vperm.xlu0 %6601, %v4815_v26  }
 0xbeb   : > { %v10813_v20 = vpop.permute.xlu0 %4129  ;;  %v10815_v43 = vpop.permute.xlu1 %3964  ;;  %6599 = vset.pattern.permute.xlu2 %v15993_v35  ;;  %6600 = vset.pattern.permute.xlu1 %v15993_v35  ;;  %v16037_v35 = vmov 4  }
 0xbec   : > { %16031 = vst [vmem:[#allocation165_spill] sm:$0xff] %v10813_v20  ;;  %v10819_v28 = vpop.permute.xlu2 %4009 }
 0xbed   : > { %16032 = vst [vmem:[#allocation166_spill] sm:$0xff] %v10815_v43 }
 0xbee   : > { %16033 = vst [vmem:[#allocation167_spill] sm:$0xff] %v10819_v28 }
 0xbf1   : > { %4210 = vrot.lane.b32.xlu1 %v10243_v55, %s15613_s29 }
 0xbf2   : > { %4214 = vrot.lane.b32.xlu2 %v10292_v60, %s15613_s29  ;;  %4852 = vperm.xlu0 %6601, %v4818_v59  }
 0xbf3   : > { %v10828_v26 = vpop.permute.xlu1 %3970  ;;  %v10830_v40 = vpop.permute.xlu0 %4149 }
 0xbf4   : > { %16034 = vst [vmem:[#allocation168_spill] sm:$0xff] %v10828_v26  ;;  %v10832_v20 = vpop.permute.xlu2 %4017 }
 0xbf5   : > { %16035 = vst [vmem:[#allocation169_spill] sm:$0xff] %v10830_v40 }
 0xbf6   : > { %16036 = vst [vmem:[#allocation170_spill] sm:$0xff] %v10832_v20 }
 0xbf9   : > { %4216 = vrot.lane.b32.xlu1 %v10316_v16, %s15613_s29 }
 0xbfa   : > { %4220 = vrot.lane.b32.xlu2 %v10177_v50, %s15613_s29  ;;  %6604 = vset.pattern.permute.xlu0 %v16037_v35 }
 0xbfb   : > { %3264 = vperm.xlu0 %6604, %v10121_v27   ;;  %v10840_v9 = vpop.permute.xlu1 %3976  ;;  %v10844_v59 = vpop.permute.xlu0 %4206 }
 0xbfc   : > { %16038 = vst [vmem:[#allocation171_spill] sm:$0xff] %v10840_v9  ;;  %v10842_v28 = vpop.permute.xlu2 %4076  ;;  %v4811_v9 = vld [vmem:[%s14755_s10 + $0x78] sm:$0xff] }
 0xbfd   : > { %16039 = vst [vmem:[#allocation172_spill] sm:$0xff] %v10842_v28  ;;  %6404 = vmatmul.msk.f32.gmra.mxu2 %vm571_vm0, %v4811_v9  ;;  %6412 = vmatmul.msk.f32.gmra.mxu3 %vm571_vm0, %v4811_v9  ;;  %v10865_v28 = vld [vmem:[%s14757_s12 + $0x48] sm:$0xff]  ;;  %v10879_v9 = vld [vmem:[%s14757_s12 + $0x70] sm:$0xff] }
 0xbfe   : > { %16040 = vst [vmem:[#allocation173_spill] sm:$0xff] %v10844_v59 }
 0xc01   : > { %4222 = vrot.lane.b32.xlu1 %v10201_v36, %s15613_s29 }
 0xc02   : > { %4226 = vrot.lane.b32.xlu2 %v10245_v1, %s15613_s29 }
 0xc03   : > { %3289 = vperm.xlu0 %6604, %v10141_v14   ;;  %v10851_v40 = vpop.permute.xlu1 %4001  ;;  %v10860_v59 = vpop.permute.xlu0 %4212 }
 0xc04   : > { %16041 = vst [vmem:[#allocation174_spill] sm:$0xff] %v10851_v40  ;;  %v10853_v20 = vpop.permute.xlu2 %4082 }
 0xc05   : > { %16042 = vst [vmem:[#allocation175_spill] sm:$0xff] %v10853_v20 }
 0xc06   : > { %16043 = vst [vmem:[#allocation176_spill] sm:$0xff] %v10860_v59 }
 0xc09   : > { %4228 = vrot.lane.b32.xlu1 %v10271_v17, %s15613_s29 }
 0xc0a   : > { %4232 = vrot.lane.b32.xlu2 %v10319_v47, %s15613_s29 }
 0xc0b   : > { %4989 = vperm.xlu0 %6604, %v10865_v28   ;;  %v10872_v20 = vpop.permute.xlu1 %4013  ;;  %v10883_v59 = vpop.permute.xlu0 %4218 }
 0xc0c   : > { %16044 = vst [vmem:[#allocation177_spill] sm:$0xff] %v10872_v20  ;;  %v10874_v40 = vpop.permute.xlu2 %4088 }
 0xc0d   : > { %16045 = vst [vmem:[#allocation178_spill] sm:$0xff] %v10874_v40 }
 0xc0e   : > { %16046 = vst [vmem:[#allocation179_spill] sm:$0xff] %v10883_v59 }
 0xc11   : > { %4234 = vrot.lane.b32.xlu1 %v10345_v37, %s15613_s29 }
 0xc12   : > { %4257 = vperm.xlu2 %6599, %v10021_v0  }
 0xc13   : > { %5014 = vperm.xlu0 %6604, %v10879_v9   ;;  %v10887_v43 = vpop.permute.xlu1 %4021  ;;  %v10896_v20 = vpop.permute.xlu0 %4224 }
 0xc14   : > { %16047 = vst [vmem:[#allocation180_spill] sm:$0xff] %v10887_v43  ;;  %v10889_v26 = vpop.permute.xlu2 %4094 }
 0xc15   : > { %16048 = vst [vmem:[#allocation181_spill] sm:$0xff] %v10889_v26  ;;  %v11030_v26 = vld [vmem:[%s14757_s12 + $0x78] sm:$0xff] }
 0xc16   : > { %16050 = vst [vmem:[#allocation183_spill] sm:$0xff] %v10896_v20  ;;  %v3247_v20 = vld [vmem:[%s14758_s13 + $0x18] sm:$0xff] }
 0xc19   : > { %4261 = vperm.xlu1 %6600, %v10121_v27   ;;  %v3245_v27 = vld [vmem:[%s14758_s13 + $0x8] sm:$0xff] }
 0xc1a   : > { %4265 = vperm.xlu2 %6599, %v10091_v32  }
 0xc1b   : > { %6607 = vset.pattern.permute.xlu0 %v15895_v39  ;;  %v10894_v40 = vpop.permute.xlu1 %4078  ;;  %v10908_v32 = vpop.permute.xlu0 %4230 }
 0xc1c   : > { %16049 = vst [vmem:[#allocation182_spill] sm:$0xff] %v10894_v40  ;;  %v10898_v37 = vpop.permute.xlu2 %4100  ;;  %3485 = vperm.xlu0 %6607, %v10072_v29   ;;  %v11025_v40 = vld [vmem:[%s14757_s12 + $0x68] sm:$0xff] }
 0xc1d   : > { %16051 = vst [vmem:[#allocation184_spill] sm:$0xff] %v10898_v37 }
 0xc1e   : > { %16054 = vst [vmem:[#allocation187_spill] sm:$0xff] %v10908_v32  ;;  %v3248_v32 = vld [vmem:[%s14758_s13 + $0x20] sm:$0xff] }
 0xc21   : > { %4269 = vperm.xlu1 %6600, %v10081_v4  }
 0xc22   : > { %4277 = vperm.xlu2 %6599, %v10098_v51   ;;  %v3246_v51 = vld [vmem:[%s14758_s13 + $0x10] sm:$0xff] }
 0xc23   : > { %v10903_v0 = vpop.permute.xlu1 %4084 }
 0xc24   : > { %16052 = vst [vmem:[#allocation185_spill] sm:$0xff] %v10903_v0  ;;  %v10905_v59 = vpop.permute.xlu2 %4106  ;;  %3505 = vperm.xlu0 %6607, %v10108_v8   ;;  %v10922_v8 = vpop.permute.xlu0 %4253  ;;  %v10992_v0 = vld [vmem:[%s14757_s12 + $0x50] sm:$0xff] }
 0xc25   : > { %16053 = vst [vmem:[#allocation186_spill] sm:$0xff] %v10905_v59 }
 0xc26   : > { %16057 = vst [vmem:[#allocation190_spill] sm:$0xff] %v10922_v8  ;;  %v3250_v8 = vld [vmem:[%s14758_s13 + $0x30] sm:$0xff] }
 0xc29   : > { %4281 = vperm.xlu1 %6600, %v10141_v14   ;;  %v11020_v37 = vpop.f32.mrf.mxu3 }
 0xc2a   : > { %6602 = vset.pattern.permute.xlu2 %v15894_v38 }
 0xc2b   : > { %4339 = vperm.xlu2 %6602, %v3245_v27   ;;  %v10915_v29 = vpop.permute.xlu1 %4090 }
 0xc2c   : > { %16055 = vst [vmem:[#allocation188_spill] sm:$0xff] %v10915_v29  ;;  %v10917_v4 = vpop.permute.xlu2 %4133  ;;  %v10938_v29 = vpop.permute.xlu0 %4273 }
 0xc2d   : > { %16056 = vst [vmem:[#allocation189_spill] sm:$0xff] %v10917_v4  ;;  %v4813_v4 = vld [vmem:[%s14756_s11 + $0x48] sm:$0xff] }
 0xc2e   : > { %16060 = vst [vmem:[#allocation193_spill] sm:$0xff] %v10938_v29 }
 0xc31   : > { %6603 = vset.pattern.permute.xlu1 %v15894_v38  ;;  %v4945_v52 = vpop.f32.mrf.mxu3 }
 0xc32   : > { %4344 = vperm.xlu1 %6603, %v3246_v51  }
 0xc33   : > { %4349 = vperm.xlu2 %6602, %v3247_v20   ;;  %v10928_v14 = vpop.permute.xlu1 %4096  ;;  %v3251_v20 = vld [vmem:[%s14758_s13 + $0x38] sm:$0xff] }
 0xc34   : > { %16058 = vst [vmem:[#allocation191_spill] sm:$0xff] %v10928_v14  ;;  %v10930_v27 = vpop.permute.xlu2 %4141  ;;  %v4901_v14 = vpop.f32.mrf.mxu2 }
 0xc35   : > { %16059 = vst [vmem:[#allocation192_spill] sm:$0xff] %v10930_v27  ;;  %v10952_v29 = vpop.permute.xlu0 %3361 }
 0xc36   : > { %16064 = vst [vmem:[#allocation197_spill] sm:$0xff] %v10952_v29  ;;  %v4819_v29 = vld [vmem:[%s14756_s11 + $0x78] sm:$0xff] }
 0xc3a   : > { %4354 = vperm.xlu1 %6603, %v3248_v32  }
 0xc3b   : > { %4364 = vperm.xlu2 %6602, %v3250_v8   ;;  %v10940_v59 = vpop.permute.xlu1 %4102  ;;  %v4814_v8 = vld [vmem:[%s14756_s11 + $0x50] sm:$0xff] }
 0xc3c   : > { %16061 = vst [vmem:[#allocation194_spill] sm:$0xff] %v10940_v59  ;;  %v10942_v51 = vpop.permute.xlu2 %4153  ;;  %v4816_v59 = vld [vmem:[%s14756_s11 + $0x60] sm:$0xff] }
 0xc3d   : > { %16062 = vst [vmem:[#allocation195_spill] sm:$0xff] %v10942_v51 }
 0xc42   : > { %4369 = vperm.xlu1 %6603, %v3251_v20  }
 0xc43   : > { %4827 = vperm.xlu2 %6602, %v4813_v4   ;;  %v10950_v27 = vpop.permute.xlu1 %4125  ;;  %v10966_v4 = vpop.f32.mrf.mxu2 }
 0xc44   : > { %16063 = vst [vmem:[#allocation196_spill] sm:$0xff] %v10950_v27  ;;  %v10954_v32 = vpop.permute.xlu2 %4208  ;;  %v10968_v27 = vpop.permute.xlu0 %3381 }
 0xc45   : > { %16065 = vst [vmem:[#allocation198_spill] sm:$0xff] %v10954_v32  ;;  %v4817_v32 = vld [vmem:[%s14756_s11 + $0x68] sm:$0xff] }
 0xc46   : > { %16068 = vst [vmem:[#allocation201_spill] sm:$0xff] %v10968_v27  ;;  %v10987_v27 = vld [vmem:[%s14757_s12 + $0x40] sm:$0xff] }
 0xc4a   : > { %4832 = vperm.xlu1 %6603, %v4814_v8  }
 0xc4b   : > { %4842 = vperm.xlu2 %6602, %v4816_v59   ;;  %v10962_v51 = vpop.permute.xlu1 %4137 }
 0xc4c   : > { %16066 = vst [vmem:[#allocation199_spill] sm:$0xff] %v10962_v51  ;;  %v10964_v20 = vpop.permute.xlu2 %4214  ;;  %v10980_v51 = vpop.f32.mrf.mxu2 }
 0xc4d   : > { %16067 = vst [vmem:[#allocation200_spill] sm:$0xff] %v10964_v20  ;;  %v10982_v20 = vpop.permute.xlu0 %4334 }
 0xc4e   : > { %16071 = vst [vmem:[#allocation204_spill] sm:$0xff] %v10982_v20  ;;  %v11005_v20 = vld [vmem:[%s14757_s12 + $0x58] sm:$0xff] }
 0xc52   : > { %4847 = vperm.xlu1 %6603, %v4817_v32  }
 0xc53   : > { %4857 = vperm.xlu2 %6602, %v4819_v29   ;;  %v10976_v8 = vpop.permute.xlu1 %4145 }
 0xc54   : > { %16069 = vst [vmem:[#allocation202_spill] sm:$0xff] %v10976_v8  ;;  %v10978_v59 = vpop.permute.xlu2 %4220  ;;  %v11010_v8 = vld [vmem:[%s14757_s12 + $0x60] sm:$0xff] }
 0xc55   : > { %16070 = vst [vmem:[#allocation203_spill] sm:$0xff] %v10978_v59  ;;  %v4910_v59 = vpop.f32.mrf.mxu2 }
 0xc5a   : > { %6605 = vset.pattern.permute.xlu1 %v16037_v35 }
 0xc5b   : > { %6606 = vset.pattern.permute.xlu2 %v16037_v35  ;;  %4984 = vperm.xlu1 %6605, %v10987_v27   ;;  %v10997_v29 = vpop.permute.xlu1 %4204  ;;  %v11012_v35 = vpop.permute.xlu0 %4359 }
 0xc5c   : > { %16072 = vst [vmem:[#allocation205_spill] sm:$0xff] %v10997_v29  ;;  %4994 = vperm.xlu2 %6606, %v10992_v0   ;;  %v11000_v32 = vpop.permute.xlu2 %4226 }
 0xc5d   : > { %16073 = vst [vmem:[#allocation206_spill] sm:$0xff] %v11000_v32 }
 0xc5e   : > { %16074 = vst [vmem:[#allocation207_spill] sm:$0xff] %v11012_v35  ;;  %v4913_v35 = vpop.f32.mrf.mxu2 }
 0xc63   : > { %4999 = vperm.xlu1 %6605, %v11005_v20   ;;  %v11015_v29 = vpop.permute.xlu1 %4210  ;;  %v11035_v43 = vpop.permute.xlu0 %4822 }
 0xc64   : > { %16075 = vst [vmem:[#allocation208_spill] sm:$0xff] %v11015_v29  ;;  %5004 = vperm.xlu2 %6606, %v11010_v8   ;;  %v11018_v32 = vpop.permute.xlu2 %4232  ;;  %v11041_v46 = vadd.f32 %v4901_v14, %v11035_v43 }
 0xc65   : > { %16076 = vst [vmem:[#allocation209_spill] sm:$0xff] %v11018_v32 }
 0xc66   : > { %16079 = vst [vmem:[#allocation212_spill] sm:$0xff] %v11041_v46  ;;  %v4916_v48 = vpop.f32.mrf.mxu2 }
 0xc6b   : > { %5009 = vperm.xlu1 %6605, %v11025_v40   ;;  %v11033_v29 = vpop.permute.xlu1 %4216 }
 0xc6c   : > { %16077 = vst [vmem:[#allocation210_spill] sm:$0xff] %v11033_v29  ;;  %5019 = vperm.xlu2 %6606, %v11030_v26   ;;  %v11038_v32 = vpop.permute.xlu2 %4257  ;;  %v4838_v29 = vpop.permute.xlu0 %4837 }
 0xc6d   : > { %16078 = vst [vmem:[#allocation211_spill] sm:$0xff] %v11038_v32  ;;  %v11051_v24 = vadd.f32 %v4910_v59, %v4838_v29  ;;  %v4948_v32 = vpop.f32.mrf.mxu3 }
 0xc6f   : > { %16082 = vst [vmem:[#allocation215_spill] sm:$0xff] %v11051_v24 }
 0xc73   : > { %v11043_v5 = vpop.permute.xlu1 %4222  ;;  %5038 = vrot.lane.b32.xlu1 %v11041_v46, %s15587_s30 }
 0xc74   : > { %16080 = vst [vmem:[#allocation213_spill] sm:$0xff] %v11043_v5  ;;  %v11047_v45 = vpop.permute.xlu2 %4265  ;;  %6609 = vset.pattern.permute.xlu1 %v15894_v38  ;;  %6608 = vset.pattern.permute.xlu2 %v15894_v38  ;;  %v4919_v5 = vpop.f32.mrf.mxu2 }
 0xc75   : > { %16081 = vst [vmem:[#allocation214_spill] sm:$0xff] %v11047_v45  ;;  %v4853_v2 = vpop.permute.xlu0 %4852  ;;  %v4951_v38 = vpop.f32.mrf.mxu3 }
 0xc76   : > { %v11059_v33 = vadd.f32 %v4919_v5, %v4853_v2 }
 0xc78   : > { %16085 = vst [vmem:[#allocation218_spill] sm:$0xff] %v11059_v33 }
 0xc7b   : > { %v11053_v22 = vpop.permute.xlu1 %4228  ;;  %5044 = vrot.lane.b32.xlu1 %v11051_v24, %s15587_s30 }
 0xc7c   : > { %16083 = vst [vmem:[#allocation216_spill] sm:$0xff] %v11053_v22  ;;  %v11057_v14 = vpop.permute.xlu2 %4277 }
 0xc7d   : > { %16084 = vst [vmem:[#allocation217_spill] sm:$0xff] %v11057_v14  ;;  %v4954_v47 = vpop.f32.mrf.mxu3 }
 0xc83   : > { %v11061_v45 = vpop.permute.xlu1 %4234  ;;  %5050 = vrot.lane.b32.xlu1 %v11059_v33, %s15587_s30 }
 0xc84   : > { %16086 = vst [vmem:[#allocation219_spill] sm:$0xff] %v11061_v45 }
 0xc85   : > { %v11065_v59 = vpop.permute.xlu2 %4339  ;;  %v4957_v16 = vpop.f32.mrf.mxu3 }
 0xc86   : > { %16087 = vst [vmem:[#allocation220_spill] sm:$0xff] %v11065_v59 }
 0xc8b   : > { %v11067_v42 = vpop.permute.xlu1 %4261 }
 0xc8c   : > { %16088 = vst [vmem:[#allocation221_spill] sm:$0xff] %v11067_v42 }
 0xc8d   : > { %v11069_v22 = vpop.permute.xlu2 %4349  ;;  %v4960_v59 = vpop.f32.mrf.mxu3 }
 0xc8e   : > { %16089 = vst [vmem:[#allocation222_spill] sm:$0xff] %v11069_v22 }
 0xc93   : > { %v11071_v10 = vpop.permute.xlu1 %4269 }
 0xc94   : > { %16090 = vst [vmem:[#allocation223_spill] sm:$0xff] %v11071_v10 }
 0xc95   : > { %v11073_v14 = vpop.permute.xlu2 %4364 }
 0xc96   : > { %16091 = vst [vmem:[#allocation224_spill] sm:$0xff] %v11073_v14 }
 0xc9b   : > { %v11075_v5 = vpop.permute.xlu1 %4281 }
 0xc9c   : > { %16092 = vst [vmem:[#allocation225_spill] sm:$0xff] %v11075_v5 }
 0xc9d   : > { %v4828_v57 = vpop.permute.xlu2 %4827 }
 0xc9e   : > { %v11078_v45 = vadd.f32 %v10966_v4, %v4828_v57  ;;  %v11080_v53 = vadd.f32 %v4945_v52, %v4828_v57  ;;  %v4922_v57 = vpop.f32.mrf.mxu2  ;;  %v4963_v52 = vpop.f32.mrf.mxu3 }
 0xca0   : > { %16093 = vst [vmem:[#allocation226_spill] sm:$0xff] %v11078_v45  ;;  %5040 = vrot.lane.b32.xlu0 %v11078_v45, %s15587_s30  ;;  %5056 = vrot.lane.b32.xlu1 %v11080_v53, %s15587_s30 }
 0xca1   : > { %16094 = vst [vmem:[#allocation227_spill] sm:$0xff] %v11080_v53 }
 0xca4   : > { %v11086_v42 = vpop.permute.xlu1 %4344 }
 0xca5   : > { %16095 = vst [vmem:[#allocation228_spill] sm:$0xff] %v11086_v42  ;;  %v4843_v10 = vpop.permute.xlu2 %4842 }
 0xca6   : > { %v11088_v14 = vadd.f32 %v4913_v35, %v4843_v10  ;;  %v11090_v22 = vadd.f32 %v4954_v47, %v4843_v10 }
 0xca8   : > { %16096 = vst [vmem:[#allocation229_spill] sm:$0xff] %v11088_v14  ;;  %5046 = vrot.lane.b32.xlu0 %v11088_v14, %s15587_s30  ;;  %5062 = vrot.lane.b32.xlu1 %v11090_v22, %s15587_s30 }
 0xca9   : > { %16097 = vst [vmem:[#allocation230_spill] sm:$0xff] %v11090_v22 }
 0xcac   : > { %v11096_v4 = vpop.permute.xlu1 %4354 }
 0xcad   : > { %16098 = vst [vmem:[#allocation231_spill] sm:$0xff] %v11096_v4  ;;  %v4858_v5 = vpop.permute.xlu2 %4857  ;;  %v11231_v4 = vld [vmem:[%s14757_s12 + $0x38] sm:$0xff] }
 0xcae   : > { %v11098_v6 = vadd.f32 %v4922_v57, %v4858_v5  ;;  %v11100_v31 = vadd.f32 %v4963_v52, %v4858_v5  ;;  %16124 = vst [vmem:[#allocation257_spill] sm:$0xff] %v11231_v4 }
 0xcb0   : > { %16099 = vst [vmem:[#allocation232_spill] sm:$0xff] %v11098_v6  ;;  %5052 = vrot.lane.b32.xlu0 %v11098_v6, %s15587_s30  ;;  %5068 = vrot.lane.b32.xlu1 %v11100_v31, %s15587_s30 }
 0xcb1   : > { %16100 = vst [vmem:[#allocation233_spill] sm:$0xff] %v11100_v31 }
 0xcb4   : > { %v11106_v47 = vpop.permute.xlu1 %4369 }
 0xcb5   : > { %16101 = vst [vmem:[#allocation234_spill] sm:$0xff] %v11106_v47 }
 0xcb8   : > { %5095 = vperm.xlu1 %6609, %v10992_v0  }
 0xcbc   : > { %v4833_v10 = vpop.permute.xlu1 %4832 }
 0xcbd   : > { %v11110_v35 = vadd.f32 %v10980_v51, %v4833_v10  ;;  %v11112_v42 = vadd.f32 %v4948_v32, %v4833_v10  ;;  %v11130_v51 = vadd.f32 %v11020_v37, %v11035_v43  ;;  %v11151_v43 = vadd.f32 %v4960_v59, %v4853_v2 }
 0xcbf   : > { %16102 = vst [vmem:[#allocation235_spill] sm:$0xff] %v11110_v35  ;;  %5058 = vrot.lane.b32.xlu0 %v11112_v42, %s15587_s30  ;;  %5042 = vrot.lane.b32.xlu2 %v11110_v35, %s15587_s30 }
 0xcc0   : > { %16103 = vst [vmem:[#allocation236_spill] sm:$0xff] %v11112_v42  ;;  %5103 = vperm.xlu1 %6609, %v11010_v8  }
 0xcc1   : > { %16106 = vst [vmem:[#allocation239_spill] sm:$0xff] %v11130_v51 }
 0xcc2   : > { %16110 = vst [vmem:[#allocation243_spill] sm:$0xff] %v11151_v43 }
 0xcc4   : > { %v4848_v5 = vpop.permute.xlu1 %4847 }
 0xcc5   : > { %v11119_v57 = vadd.f32 %v4916_v48, %v4848_v5  ;;  %v11121_v52 = vadd.f32 %v4957_v16, %v4848_v5  ;;  %v11139_v16 = vadd.f32 %v4951_v38, %v4838_v29  ;;  %v11149_v48 = vpop.permute.xlu0 %3264  ;;  %v11185_v5 = vpop.permute.xlu2 %4994 }
 0xcc6   : > { %16109 = vst [vmem:[#allocation242_spill] sm:$0xff] %v11149_v48 }
 0xcc7   : > { %16104 = vst [vmem:[#allocation237_spill] sm:$0xff] %v11119_v57  ;;  %5064 = vrot.lane.b32.xlu0 %v11121_v52, %s15587_s30  ;;  %5048 = vrot.lane.b32.xlu2 %v11119_v57, %s15587_s30 }
 0xcc8   : > { %16105 = vst [vmem:[#allocation238_spill] sm:$0xff] %v11121_v52  ;;  %5115 = vperm.xlu1 %6609, %v11030_v26  }
 0xcc9   : > { %16107 = vst [vmem:[#allocation240_spill] sm:$0xff] %v11139_v16 }
 0xcca   : > { %16116 = vst [vmem:[#allocation249_spill] sm:$0xff] %v11185_v5 }
 0xccd   : > { %v11145_v37 = vpop.permute.xlu1 %4984  ;;  %v11161_v29 = vpop.permute.xlu0 %3289 }
 0xcce   : > { %16108 = vst [vmem:[#allocation241_spill] sm:$0xff] %v11145_v37 }
 0xccf   : > { %5166 = vrot.lane.b32.xlu0 %v11041_v46, %s15595_s18  ;;  %5054 = vrot.lane.b32.xlu2 %v11130_v51, %s15587_s30  ;;  %16112 = vst [vmem:[#allocation245_spill] sm:$0xff] %v11161_v29 }
 0xcd0   : > { %5170 = vrot.lane.b32.xlu1 %v11110_v35, %s15595_s18 }
 0xcd1   : > { %6611 = vset.pattern.permute.xlu1 %v15895_v39 }
 0xcd5   : > { %v11159_v38 = vpop.permute.xlu1 %4999  ;;  %v11170_v32 = vpop.permute.xlu0 %4989 }
 0xcd6   : > { %16111 = vst [vmem:[#allocation244_spill] sm:$0xff] %v11159_v38 }
 0xcd7   : > { %5172 = vrot.lane.b32.xlu0 %v11051_v24, %s15595_s18  ;;  %5060 = vrot.lane.b32.xlu2 %v11139_v16, %s15587_s30 }
 0xcd8   : > { %5176 = vrot.lane.b32.xlu1 %v11119_v57, %s15595_s18 }
 0xcdd   : > { %v11168_v2 = vpop.permute.xlu1 %5009  ;;  %v11183_v10 = vpop.permute.xlu0 %5014 }
 0xcde   : > { %16113 = vst [vmem:[#allocation246_spill] sm:$0xff] %v11168_v2  ;;  %v11196_v2 = vpop.permute.xlu2 %5004 }
 0xcdf   : > { %5178 = vrot.lane.b32.xlu0 %v11059_v33, %s15595_s18  ;;  %5066 = vrot.lane.b32.xlu2 %v11151_v43, %s15587_s30  ;;  %16115 = vst [vmem:[#allocation248_spill] sm:$0xff] %v11183_v10 }
 0xce0   : > { %5182 = vrot.lane.b32.xlu1 %v11130_v51, %s15595_s18 }
 0xce5   : > { %v11177_v59 = vpop.permute.xlu1 %5038 }
 0xce6   : > { %16114 = vst [vmem:[#allocation247_spill] sm:$0xff] %v11177_v59  ;;  %v11194_v59 = vpop.permute.xlu0 %3485 }
 0xce7   : > { %5184 = vrot.lane.b32.xlu0 %v11080_v53, %s15595_s18  ;;  %5091 = vperm.xlu2 %6608, %v10865_v28   ;;  %16118 = vst [vmem:[#allocation251_spill] sm:$0xff] %v11194_v59  ;;  %v11217_v59 = vpop.permute.xlu2 %5019 }
 0xce8   : > { %5188 = vrot.lane.b32.xlu1 %v11139_v16, %s15595_s18 }
 0xced   : > { %v11190_v47 = vpop.permute.xlu1 %5044 }
 0xcee   : > { %16117 = vst [vmem:[#allocation250_spill] sm:$0xff] %v11190_v47  ;;  %v11204_v29 = vpop.permute.xlu0 %3505 }
 0xcef   : > { %5190 = vrot.lane.b32.xlu0 %v11090_v22, %s15595_s18  ;;  %5099 = vperm.xlu2 %6608, %v11005_v20   ;;  %16120 = vst [vmem:[#allocation253_spill] sm:$0xff] %v11204_v29 }
 0xcf0   : > { %5194 = vrot.lane.b32.xlu1 %v11151_v43, %s15595_s18 }
 0xcf5   : > { %v11202_v37 = vpop.permute.xlu1 %5050 }
 0xcf6   : > { %16119 = vst [vmem:[#allocation252_spill] sm:$0xff] %v11202_v37 }
 0xcf7   : > { %5196 = vrot.lane.b32.xlu0 %v11100_v31, %s15595_s18  ;;  %5111 = vperm.xlu2 %6608, %v10879_v9  }
 0xcf8   : > { %5219 = vperm.xlu1 %6611, %v10865_v28  }
 0xcff   : > { %5223 = vperm.xlu0 %6607, %v10992_v0   ;;  %5168 = vrot.lane.b32.xlu2 %v11078_v45, %s15595_s18 }
 0xd00   : > { %5231 = vperm.xlu1 %6611, %v11010_v8   ;;  %6610 = vset.pattern.permute.xlu2 %v15895_v39  ;;  %v11214_v39 = vld [vmem:[%s14757_s12 + $0x10] sm:$0xff] }
 0xd01   : > { %16121 = vst [vmem:[#allocation254_spill] sm:$0xff] %v11214_v39 }
 0xd07   : > { %5243 = vperm.xlu0 %6607, %v11030_v26   ;;  %5174 = vrot.lane.b32.xlu2 %v11088_v14, %s15595_s18 }
 0xd08   : > { %5239 = vperm.xlu1 %6611, %v10879_v9  }
 0xd0f   : > { %6612 = vset.pattern.permute.xlu0 %v15896_v7  ;;  %5180 = vrot.lane.b32.xlu2 %v11098_v6, %s15595_s18 }
 0xd10   : > { %5296 = vrot.lane.b32.xlu1 %v11078_v45, %s15597_s20  ;;  %3621 = vperm.xlu0 %6612, %v11214_v39  }
 0xd11   : > { %6613 = vset.pattern.permute.xlu1 %v15896_v7 }
 0xd12   : > { %v11220_v29 = vpop.permute.xlu1 %5056  ;;  %v11222_v48 = vpop.permute.xlu0 %5040 }
 0xd13   : > { %16122 = vst [vmem:[#allocation255_spill] sm:$0xff] %v11220_v29 }
 0xd14   : > { %16123 = vst [vmem:[#allocation256_spill] sm:$0xff] %v11222_v48 }
 0xd17   : > { %5186 = vrot.lane.b32.xlu2 %v11112_v42, %s15595_s18 }
 0xd18   : > { %5302 = vrot.lane.b32.xlu1 %v11088_v14, %s15597_s20  ;;  %3641 = vperm.xlu0 %6612, %v11231_v4  }
 0xd19   : > { %v11234_v5 = vpop.permute.xlu2 %5042 }
 0xd1a   : > { %16125 = vst [vmem:[#allocation258_spill] sm:$0xff] %v11234_v5  ;;  %v11236_v10 = vpop.permute.xlu1 %5062  ;;  %v11238_v37 = vpop.permute.xlu0 %5046 }
 0xd1f   : > { %5192 = vrot.lane.b32.xlu2 %v11121_v52, %s15595_s18 }
 0xd20   : > { %5308 = vrot.lane.b32.xlu1 %v11098_v6, %s15597_s20  ;;  %5298 = vrot.lane.b32.xlu0 %v11110_v35, %s15597_s20 }
 0xd21   : > { %v11246_v38 = vpop.permute.xlu2 %5048 }
 0xd22   : > { %16126 = vst [vmem:[#allocation259_spill] sm:$0xff] %v11246_v38  ;;  %v11248_v47 = vpop.permute.xlu1 %5068  ;;  %v11255_v5 = vpop.permute.xlu0 %5052 }
 0xd23   : > { %16127 = vst [vmem:[#allocation260_spill] sm:$0xff] %v11248_v47 }
 0xd24   : > { %16128 = vst [vmem:[#allocation261_spill] sm:$0xff] %v11255_v5 }
 0xd27   : > { %5215 = vperm.xlu2 %6610, %v10987_v27  }
 0xd28   : > { %5314 = vrot.lane.b32.xlu1 %v11112_v42, %s15597_s20  ;;  %5304 = vrot.lane.b32.xlu0 %v11119_v57, %s15597_s20 }
 0xd29   : > { %v11257_v4 = vpop.permute.xlu2 %5054 }
 0xd2a   : > { %16129 = vst [vmem:[#allocation262_spill] sm:$0xff] %v11257_v4  ;;  %v11259_v48 = vpop.permute.xlu1 %5095 }
 0xd2b   : > { %16130 = vst [vmem:[#allocation263_spill] sm:$0xff] %v11259_v48 }
 0xd2f   : > { %5227 = vperm.xlu2 %6610, %v11005_v20  }
 0xd30   : > { %5320 = vrot.lane.b32.xlu1 %v11121_v52, %s15597_s20  ;;  %5310 = vrot.lane.b32.xlu0 %v11130_v51, %s15597_s20 }
 0xd31   : > { %v11266_v38 = vpop.permute.xlu0 %5058  ;;  %v11268_v29 = vpop.permute.xlu2 %5060 }
 0xd32   : > { %16131 = vst [vmem:[#allocation264_spill] sm:$0xff] %v11266_v38  ;;  %v11270_v39 = vpop.permute.xlu1 %5103 }
 0xd33   : > { %16132 = vst [vmem:[#allocation265_spill] sm:$0xff] %v11268_v29 }
 0xd37   : > { %5235 = vperm.xlu2 %6610, %v11025_v40  }
 0xd38   : > { %5343 = vperm.xlu1 %6613, %v10987_v27   ;;  %5316 = vrot.lane.b32.xlu0 %v11139_v16, %s15597_s20 }
 0xd39   : > { %v11276_v4 = vpop.permute.xlu0 %5064  ;;  %v11278_v48 = vpop.permute.xlu2 %5066 }
 0xd3a   : > { %16133 = vst [vmem:[#allocation266_spill] sm:$0xff] %v11276_v4  ;;  %v11280_v5 = vpop.permute.xlu1 %5115 }
 0xd3b   : > { %16134 = vst [vmem:[#allocation267_spill] sm:$0xff] %v11278_v48 }
 0xd3c   : > { %16135 = vst [vmem:[#allocation268_spill] sm:$0xff] %v11280_v5 }
 0xd3f   : > { %5294 = vrot.lane.b32.xlu2 %v11041_v46, %s15597_s20 }
 0xd40   : > { %5355 = vperm.xlu1 %6613, %v11005_v20   ;;  %5322 = vrot.lane.b32.xlu0 %v11151_v43, %s15597_s20 }
 0xd41   : > { %v11287_v38 = vpop.permute.xlu0 %5166  ;;  %v11289_v29 = vpop.permute.xlu2 %5091  ;;  %6614 = vset.pattern.permute.xlu2 %v15896_v7 }
 0xd42   : > { %16136 = vst [vmem:[#allocation269_spill] sm:$0xff] %v11287_v38  ;;  %v11292_v47 = vpop.permute.xlu1 %5170 }
 0xd43   : > { %16137 = vst [vmem:[#allocation270_spill] sm:$0xff] %v11289_v29 }
 0xd44   : > { %16138 = vst [vmem:[#allocation271_spill] sm:$0xff] %v11292_v47 }
 0xd47   : > { %5300 = vrot.lane.b32.xlu2 %v11051_v24, %s15597_s20 }
 0xd48   : > { %5363 = vperm.xlu1 %6613, %v11025_v40   ;;  %5347 = vperm.xlu0 %6612, %v10865_v28  }
 0xd49   : > { %v11298_v4 = vpop.permute.xlu0 %5172  ;;  %v11300_v48 = vpop.permute.xlu2 %5099 }
 0xd4a   : > { %16139 = vst [vmem:[#allocation272_spill] sm:$0xff] %v11298_v4  ;;  %v11302_v5 = vpop.permute.xlu1 %5176 }
 0xd4b   : > { %16140 = vst [vmem:[#allocation273_spill] sm:$0xff] %v11300_v48  ;;  %v6748_v48 = vld [vmem:[%s14757_s12 + $0x30] sm:$0xff] }
 0xd4c   : > { %16141 = vst [vmem:[#allocation274_spill] sm:$0xff] %v11302_v5 }
 0xd4f   : > { %5306 = vrot.lane.b32.xlu2 %v11059_v33, %s15597_s20 }
 0xd50   : > { %5422 = vrot.lane.b32.xlu1 %v11041_v46, %s15599_s23  ;;  %5367 = vperm.xlu0 %6612, %v10879_v9  }
 0xd51   : > { %v11309_v7 = vpop.permute.xlu0 %5178  ;;  %v11311_v38 = vpop.permute.xlu2 %5111  ;;  %6617 = vset.pattern.permute.xlu1 %v15926_v61 }
 0xd52   : > { %16142 = vst [vmem:[#allocation275_spill] sm:$0xff] %v11309_v7  ;;  %v11314_v47 = vpop.permute.xlu1 %5182  ;;  %v6747_v7 = vld [vmem:[%s14757_s12 + $0x8] sm:$0xff] }
 0xd53   : > { %16143 = vst [vmem:[#allocation276_spill] sm:$0xff] %v11311_v38 }
 0xd54   : > { %16144 = vst [vmem:[#allocation277_spill] sm:$0xff] %v11314_v47 }
 0xd57   : > { %5312 = vrot.lane.b32.xlu2 %v11080_v53, %s15597_s20 }
 0xd58   : > { %5428 = vrot.lane.b32.xlu1 %v11051_v24, %s15599_s23  ;;  %6615 = vset.pattern.permute.xlu0 %v15926_v61 }
 0xd59   : > { %v11321_v5 = vpop.permute.xlu0 %5184  ;;  %3745 = vperm.xlu0 %6615, %v6747_v7   ;;  %v11326_v38 = vpop.permute.xlu2 %5168 }
 0xd5a   : > { %16145 = vst [vmem:[#allocation278_spill] sm:$0xff] %v11321_v5  ;;  %v11328_v4 = vpop.permute.xlu1 %5188 }
 0xd5b   : > { %16146 = vst [vmem:[#allocation279_spill] sm:$0xff] %v11326_v38 }
 0xd5c   : > { %16147 = vst [vmem:[#allocation280_spill] sm:$0xff] %v11328_v4 }
 0xd5f   : > { %5318 = vrot.lane.b32.xlu2 %v11090_v22, %s15597_s20 }
 0xd60   : > { %5434 = vrot.lane.b32.xlu1 %v11059_v33, %s15599_s23 }
 0xd61   : > { %v11334_v47 = vpop.permute.xlu0 %5190  ;;  %3765 = vperm.xlu0 %6615, %v6748_v48   ;;  %v11339_v5 = vpop.permute.xlu2 %5174 }
 0xd62   : > { %16148 = vst [vmem:[#allocation281_spill] sm:$0xff] %v11339_v5  ;;  %v11341_v7 = vpop.permute.xlu1 %5194 }
 0xd63   : > { %16149 = vst [vmem:[#allocation282_spill] sm:$0xff] %v11341_v7 }
 0xd67   : > { %5324 = vrot.lane.b32.xlu2 %v11100_v31, %s15597_s20 }
 0xd68   : > { %5440 = vrot.lane.b32.xlu1 %v11080_v53, %s15599_s23 }
 0xd69   : > { %v11347_v4 = vpop.permute.xlu0 %5196  ;;  %5424 = vrot.lane.b32.xlu0 %v11078_v45, %s15599_s23  ;;  %v11351_v38 = vpop.permute.xlu2 %5180 }
 0xd6a   : > { %16150 = vst [vmem:[#allocation283_spill] sm:$0xff] %v11347_v4  ;;  %v11353_v29 = vpop.permute.xlu1 %5219 }
 0xd6b   : > { %16151 = vst [vmem:[#allocation284_spill] sm:$0xff] %v11351_v38 }
 0xd6c   : > { %16152 = vst [vmem:[#allocation285_spill] sm:$0xff] %v11353_v29 }
 0xd6f   : > { %5351 = vperm.xlu2 %6614, %v10992_v0  }
 0xd70   : > { %5446 = vrot.lane.b32.xlu1 %v11090_v22, %s15599_s23 }
 0xd71   : > { %v11358_v48 = vpop.permute.xlu0 %5223  ;;  %5430 = vrot.lane.b32.xlu0 %v11088_v14, %s15599_s23  ;;  %v11362_v7 = vpop.permute.xlu2 %5186 }
 0xd72   : > { %16153 = vst [vmem:[#allocation286_spill] sm:$0xff] %v11358_v48  ;;  %v11364_v4 = vpop.permute.xlu1 %5231 }
 0xd73   : > { %16154 = vst [vmem:[#allocation287_spill] sm:$0xff] %v11362_v7 }
 0xd74   : > { %16155 = vst [vmem:[#allocation288_spill] sm:$0xff] %v11364_v4 }
 0xd77   : > { %5359 = vperm.xlu2 %6614, %v11010_v8  }
 0xd78   : > { %5452 = vrot.lane.b32.xlu1 %v11100_v31, %s15599_s23 }
 0xd79   : > { %v11369_v29 = vpop.permute.xlu0 %5243  ;;  %5436 = vrot.lane.b32.xlu0 %v11098_v6, %s15599_s23  ;;  %v11373_v38 = vpop.permute.xlu2 %5192 }
 0xd7a   : > { %16156 = vst [vmem:[#allocation289_spill] sm:$0xff] %v11369_v29  ;;  %v11375_v48 = vpop.permute.xlu1 %5239 }
 0xd7b   : > { %16157 = vst [vmem:[#allocation290_spill] sm:$0xff] %v11373_v38 }
 0xd7c   : > { %16158 = vst [vmem:[#allocation291_spill] sm:$0xff] %v11375_v48 }
 0xd7f   : > { %5371 = vperm.xlu2 %6614, %v11030_v26  }
 0xd80   : > { %5479 = vperm.xlu1 %6617, %v10992_v0  }
 0xd81   : > { %5442 = vrot.lane.b32.xlu0 %v11112_v42, %s15599_s23  ;;  %v11381_v7 = vpop.permute.xlu2 %5215 }
 0xd82   : > { %16159 = vst [vmem:[#allocation292_spill] sm:$0xff] %v11381_v7  ;;  %v11383_v4 = vpop.permute.xlu1 %5296  ;;  %v11385_v5 = vpop.permute.xlu0 %3621 }
 0xd83   : > { %16160 = vst [vmem:[#allocation293_spill] sm:$0xff] %v11383_v4 }
 0xd84   : > { %16161 = vst [vmem:[#allocation294_spill] sm:$0xff] %v11385_v5 }
 0xd87   : > { %5426 = vrot.lane.b32.xlu2 %v11110_v35, %s15599_s23 }
 0xd88   : > { %5487 = vperm.xlu1 %6617, %v11010_v8   ;;  %6616 = vset.pattern.permute.xlu2 %v15926_v61 }
 0xd89   : > { %5448 = vrot.lane.b32.xlu0 %v11121_v52, %s15599_s23  ;;  %v11393_v38 = vpop.permute.xlu2 %5227 }
 0xd8a   : > { %16162 = vst [vmem:[#allocation295_spill] sm:$0xff] %v11393_v38  ;;  %v11395_v48 = vpop.permute.xlu1 %5302  ;;  %v11397_v29 = vpop.permute.xlu0 %3641 }
 0xd8b   : > { %16163 = vst [vmem:[#allocation296_spill] sm:$0xff] %v11397_v29 }
 0xd8f   : > { %5432 = vrot.lane.b32.xlu2 %v11119_v57, %s15599_s23 }
 0xd90   : > { %5499 = vperm.xlu1 %6617, %v11030_v26  }
 0xd91   : > { %5471 = vperm.xlu0 %6615, %v10987_v27   ;;  %v11403_v7 = vpop.permute.xlu2 %5235 }
 0xd92   : > { %16164 = vst [vmem:[#allocation297_spill] sm:$0xff] %v11403_v7  ;;  %v11405_v5 = vpop.permute.xlu1 %5308  ;;  %v11407_v61 = vpop.permute.xlu0 %5298 }
 0xd93   : > { %16165 = vst [vmem:[#allocation298_spill] sm:$0xff] %v11405_v5 }
 0xd94   : > { %16166 = vst [vmem:[#allocation299_spill] sm:$0xff] %v11407_v61 }
 0xd97   : > { %5438 = vrot.lane.b32.xlu2 %v11130_v51, %s15599_s23 }
 0xd98   : > { %5554 = vrot.lane.b32.xlu1 %v11110_v35, %s15601_s1  ;;  %v3292_v35 = vmul.f32 %v10171_v11, %v10175_v30  ;;  %v11510_v30 = vmul.f32 %v10173_v23, %v10245_v1 }
 0xd99   : > { %5491 = vperm.xlu0 %6615, %v11025_v40   ;;  %v11414_v29 = vpop.permute.xlu2 %5294  ;;  %6620 = vset.pattern.permute.xlu1 %v15952_v49  ;;  %v6749_v40 = vld [vmem:[%s14757_s12] sm:$0xff] }
 0xd9a   : > { %16167 = vst [vmem:[#allocation300_spill] sm:$0xff] %v11414_v29  ;;  %v11417_v38 = vpop.permute.xlu1 %5314  ;;  %v11419_v4 = vpop.permute.xlu0 %5304 }
 0xd9b   : > { %16168 = vst [vmem:[#allocation301_spill] sm:$0xff] %v11417_v38 }
 0xd9c   : > { %16169 = vst [vmem:[#allocation302_spill] sm:$0xff] %v11419_v4 }
 0xd9f   : > { %5444 = vrot.lane.b32.xlu2 %v11139_v16, %s15599_s23 }
 0xda0   : > { %5560 = vrot.lane.b32.xlu1 %v11119_v57, %s15601_s1 }
 0xda1   : > { %6618 = vset.pattern.permute.xlu0 %v15952_v49  ;;  %v11426_v7 = vpop.permute.xlu2 %5300 }
 0xda2   : > { %16170 = vst [vmem:[#allocation303_spill] sm:$0xff] %v11426_v7  ;;  %v11428_v61 = vpop.permute.xlu1 %5320  ;;  %3869 = vperm.xlu0 %6618, %v6749_v40   ;;  %v11433_v29 = vpop.permute.xlu0 %5310 }
 0xda3   : > { %16171 = vst [vmem:[#allocation304_spill] sm:$0xff] %v11428_v61  ;;  %v6750_v61 = vld [vmem:[%s14757_s12 + $0x28] sm:$0xff] }
 0xda4   : > { %16172 = vst [vmem:[#allocation305_spill] sm:$0xff] %v11433_v29 }
 0xda7   : > { %5450 = vrot.lane.b32.xlu2 %v11151_v43, %s15599_s23 }
 0xda8   : > { %5566 = vrot.lane.b32.xlu1 %v11130_v51, %s15601_s1 }
 0xda9   : > { %v5307_v4 = vpop.permute.xlu2 %5306 }
 0xdaa   : > { %v11439_v38 = vpop.permute.xlu1 %5343  ;;  %3889 = vperm.xlu0 %6618, %v6750_v61   ;;  %v11444_v57 = vpop.permute.xlu0 %5316 }
 0xdab   : > { %16173 = vst [vmem:[#allocation306_spill] sm:$0xff] %v11439_v38 }
 0xdac   : > { %16174 = vst [vmem:[#allocation307_spill] sm:$0xff] %v11444_v57 }
 0xdaf   : > { %5475 = vperm.xlu2 %6616, %v10865_v28  }
 0xdb0   : > { %5572 = vrot.lane.b32.xlu1 %v11139_v16, %s15601_s1 }
 0xdb1   : > { %v11449_v40 = vpop.permute.xlu2 %5312 }
 0xdb2   : > { %16175 = vst [vmem:[#allocation308_spill] sm:$0xff] %v11449_v40  ;;  %v11451_v29 = vpop.permute.xlu1 %5355  ;;  %5550 = vrot.lane.b32.xlu0 %v11041_v46, %s15601_s1  ;;  %v5323_v38 = vpop.permute.xlu0 %5322  ;;  %v16241_v40 = vld [vmem:[#allocation58_spill] sm:$0xff] }
 0xdb3   : > { %16176 = vst [vmem:[#allocation309_spill] sm:$0xff] %v11451_v29 }
 0xdb7   : > { %5483 = vperm.xlu2 %6616, %v11005_v20   ;;  %v3348_v20 = vsel %vm696_vm1, %v10353_v13, %v10313_v3 }
 0xdb8   : > { %5578 = vrot.lane.b32.xlu1 %v11151_v43, %s15601_s1  ;;  %v5332_v43 = vsel %vm836_vm3, %v5307_v4, %v5323_v38 }
 0xdb9   : > { %v11458_v61 = vpop.permute.xlu2 %5318 }
 0xdba   : > { %v11460_v51 = vpop.permute.xlu1 %5363  ;;  %5556 = vrot.lane.b32.xlu0 %v11051_v24, %s15601_s1  ;;  %v11464_v16 = vpop.permute.xlu0 %5347 }
 0xdbb   : > { %16177 = vst [vmem:[#allocation310_spill] sm:$0xff] %v11460_v51  ;;  %v5340_v51 = vsel %vm836_vm3, %v5323_v38, %v5307_v4  ;;  %v3388_v4 = vmul.f32 %v10247_v18, %v3348_v20  ;;  %v11495_v38 = vmul.f32 %v10209_v25, %v10198_v12  ;;  %v11514_v12 = vmul.f32 %v10219_v62, %v10268_v54  ;;  %v16192_v20 = vld [vmem:[#allocation77_spill] sm:$0xff] }
 0xdbc   : > { %16178 = vst [vmem:[#allocation311_spill] sm:$0xff] %v11464_v16 }
 0xdbd   : > { %16182 = vst [vmem:[#allocation315_spill] sm:$0xff] %v11495_v38 }
 0xdbf   : > { %5495 = vperm.xlu2 %6616, %v10879_v9  }
 0xdc0   : > { %5603 = vperm.xlu1 %6620, %v10865_v28   ;;  %v3340_v28 = vsel %vm696_vm1, %v10313_v3, %v10353_v13  ;;  %v3293_v13 = vmul.f32 %v10171_v11, %v10177_v50  ;;  %v3596_v11 = vsel %vm836_vm3, %v10365_v58, %v10367_v44  ;;  %v11532_v50 = vmul.f32 %v10185_v41, %v10292_v60 }
 0xdc1   : > { %v11468_v29 = vpop.permute.xlu2 %5324  ;;  %v3389_v3 = vmul.f32 %v10247_v18, %v3340_v28  ;;  %v11547_v60 = vmul.f32 %v10185_v41, %v10295_v56  ;;  %v16185_v18 = vld [vmem:[#allocation59_spill] sm:$0xff]  ;;  %v16190_v41 = vld [vmem:[#allocation88_spill] sm:$0xff] }
 0xdc2   : > { %16179 = vst [vmem:[#allocation312_spill] sm:$0xff] %v11468_v29  ;;  %v11478_v24 = vpop.permute.xlu1 %5422  ;;  %5562 = vrot.lane.b32.xlu0 %v11059_v33, %s15601_s1  ;;  %v5368_v7 = vpop.permute.xlu0 %5367  ;;  %v11499_v33 = vmul.f32 %v10209_v25, %v10201_v36  ;;  %v11518_v36 = vmul.f32 %v10219_v62, %v10271_v17  ;;  %v3404_v25 = vmul.f32 %v3388_v4, %v7454_v15  ;;  %v16186_v17 = vld [vmem:[#allocation86_spill] sm:$0xff]  ;;  %v16194_v4 = vld [vmem:[#allocation25_spill] sm:$0xff]  ;;  %v16242_v29 = vld [vmem:[#allocation23_spill] sm:$0xff] }
 0xdc3   : > { %v11486_v57 = vmul.f32 %v5368_v7, %v5340_v51  ;;  %v11488_v46 = vmul.f32 %v5368_v7, %v5332_v43  ;;  %v11506_v51 = vmul.f32 %v10173_v23, %v10243_v55  ;;  %v3604_v23 = vsel %vm836_vm3, %v10367_v44, %v10365_v58  ;;  %v16191_v7 = vld [vmem:[#allocation21_spill] sm:$0xff] }
 0xdc4   : > { %16183 = vst [vmem:[#allocation316_spill] sm:$0xff] %v11499_v33  ;;  %v3597_v62 = vsel %vm836_vm3, %v10357_v34, %v10386_v63  ;;  %v3605_v55 = vsel %vm836_vm3, %v10386_v63, %v10357_v34  ;;  %v3405_v54 = vmul.f32 %v3389_v3, %v16185_v18  ;;  %v3469_v58 = vsel %vm766_vm2, %v16186_v17, %v10388_v21  ;;  %v16188_v34 = vld [vmem:[#allocation75_spill] sm:$0xff]  ;;  %v16198_v33 = vld [vmem:[#allocation33_spill] sm:$0xff] }
 0xdc5   : > { %16180 = vst [vmem:[#allocation313_spill] sm:$0xff] %v11486_v57  ;;  %v3477_v44 = vsel %vm766_vm2, %v10388_v21, %v16186_v17  ;;  %v3645_v43 = vmul.f32 %v16190_v41, %v3596_v11  ;;  %v11572_v28 = vmul.f32 %v16192_v20, %v16191_v7  ;;  %v11576_v21 = vmul.f32 %v16192_v20, %v16194_v4  ;;  %v16197_v17 = vld [vmem:[#allocation94_spill] sm:$0xff] }
 0xdc6   : > { %16181 = vst [vmem:[#allocation314_spill] sm:$0xff] %v11488_v46  ;;  %v11584_v38 = vsel %vm766_vm2, %v16198_v33, %v16197_v17  ;;  %v16202_v46 = vld [vmem:[#allocation90_spill] sm:$0xff]  ;;  %v11599_v57 = vadd.f32 %v3404_v25, %v3292_v35  ;;  %v16212_v35 = vld [vmem:[#allocation87_spill] sm:$0xff] }
 0xdc7   : > { %5552 = vrot.lane.b32.xlu2 %v11078_v45, %s15601_s1  ;;  %16195 = vst [vmem:[#allocation75_spill] sm:$0xff] %v11576_v21 }
 0xdc8   : > { %5615 = vperm.xlu1 %6620, %v11010_v8   ;;  %6619 = vset.pattern.permute.xlu2 %v15952_v49  ;;  %v16187_v49 = vld [vmem:[#allocation44_spill] sm:$0xff]  ;;  %v3644_v8 = vmul.f32 %v16190_v41, %v3604_v23  ;;  %16199 = vst [vmem:[#allocation21_spill] sm:$0xff] %v11584_v38  ;;  %v16201_v41 = vld [vmem:[#allocation15_spill] sm:$0xff] }
 0xdc9   : > { %v11549_v1 = vpop.permute.xlu2 %5351  ;;  %v3350_v56 = vsel %vm696_vm1, %v16188_v34, %v16187_v49  ;;  %16193 = vst [vmem:[#allocation44_spill] sm:$0xff] %v11572_v28  ;;  %v3351_v7 = vsel %vm696_vm1, %v16202_v46, %v16201_v41  ;;  %v16203_v28 = vld [vmem:[#allocation20_spill] sm:$0xff]  ;;  %v3343_v38 = vsel %vm696_vm1, %v16201_v41, %v16202_v46  ;;  %v16221_v41 = vld [vmem:[#allocation61_spill] sm:$0xff] }
 0xdca   : > { %16184 = vst [vmem:[#allocation317_spill] sm:$0xff] %v11549_v1  ;;  %v11564_v63 = vpop.permute.xlu1 %5428  ;;  %5568 = vrot.lane.b32.xlu0 %v11080_v53, %s15601_s1  ;;  %v16200_v1 = vld [vmem:[#allocation27_spill] sm:$0xff]  ;;  %v3518_v20 = vmul.f32 %v16203_v28, %v3477_v44  ;;  %v3519_v4 = vmul.f32 %v16203_v28, %v3469_v58  ;;  %v16208_v58 = vld [vmem:[#allocation64_spill] sm:$0xff] }
 0xdcb   : > { %16189 = vst [vmem:[#allocation86_spill] sm:$0xff] %v11564_v63  ;;  %v11578_v3 = vpop.permute.xlu0 %3745  ;;  %v3646_v23 = vmul.f32 %v16200_v1, %v3605_v55  ;;  %v3647_v11 = vmul.f32 %v16200_v1, %v3597_v62  ;;  %v11601_v55 = vadd.f32 %v3405_v54, %v3293_v13  ;;  %v11607_v62 = vsel %vm766_vm2, %v16197_v17, %v16198_v33  ;;  %v16213_v13 = vld [vmem:[#allocation16_spill] sm:$0xff]  ;;  %v16215_v54 = vld [vmem:[#allocation34_spill] sm:$0xff] }
 0xdcc   : > { %16196 = vst [vmem:[#allocation88_spill] sm:$0xff] %v11578_v3  ;;  %v16204_v3 = vld [vmem:[#allocation79_spill] sm:$0xff]  ;;  %v3342_v1 = vsel %vm696_vm1, %v16187_v49, %v16188_v34  ;;  %v11614_v44 = vmul.f32 %v3644_v8, %v16208_v58  ;;  %v11623_v25 = vsel %vm696_vm1, %v16213_v13, %v16212_v35  ;;  %v3394_v33 = vmul.f32 %v16215_v54, %v3351_v7  ;;  %v16219_v28 = vld [vmem:[#allocation60_spill] sm:$0xff]  ;;  %v16243_v63 = vld [vmem:[#allocation18_spill] sm:$0xff] }
 0xdcd   : > { %v3392_v21 = vmul.f32 %v16204_v3, %v3350_v56  ;;  %16205 = vst [vmem:[#allocation77_spill] sm:$0xff] %v11599_v57  ;;  %v16210_v56 = vld [vmem:[#allocation65_spill] sm:$0xff]  ;;  %v11632_v49 = vsel %vm696_vm1, %v16212_v35, %v16213_v13  ;;  %v11635_v34 = vmul.f32 %v3646_v23, %v16208_v58  ;;  %v11643_v17 = vmul.f32 %v3518_v20, %v16219_v28  ;;  %v16225_v13 = vld [vmem:[#allocation24_spill] sm:$0xff] }
 0xdce   : > { %16206 = vst [vmem:[#allocation25_spill] sm:$0xff] %v11601_v55  ;;  %v11617_v46 = vmul.f32 %v3645_v43, %v16210_v56  ;;  %v11638_v8 = vmul.f32 %v3647_v11, %v16210_v56  ;;  %v3395_v43 = vmul.f32 %v16215_v54, %v3343_v38  ;;  %v11646_v7 = vmul.f32 %v3519_v4, %v16221_v41  ;;  %v16226_v11 = vld [vmem:[#allocation55_spill] sm:$0xff]  ;;  %v16227_v54 = vld [vmem:[#allocation50_spill] sm:$0xff]  ;;  %v16230_v4 = vld [vmem:[#allocation32_spill] sm:$0xff] }
 0xdcf   : > { %16207 = vst [vmem:[#allocation94_spill] sm:$0xff] %v11607_v62  ;;  %5558 = vrot.lane.b32.xlu2 %v11088_v14, %s15601_s1  ;;  %v11650_v35 = vmul.f32 %v3392_v21, %v7454_v15  ;;  %v3470_v38 = vsel %vm766_vm2, %v16226_v11, %v16225_v13  ;;  %v3410_v55 = vmul.f32 %v3394_v33, %v7454_v15  ;;  %v16232_v62 = vld [vmem:[#allocation56_spill] sm:$0xff]  ;;  %v16235_v33 = vld [vmem:[#allocation91_spill] sm:$0xff] }
 0xdd0   : > { %16209 = vst [vmem:[#allocation33_spill] sm:$0xff] %v11614_v44  ;;  %5623 = vperm.xlu1 %6620, %v10879_v9   ;;  %v16228_v9 = vld [vmem:[#allocation52_spill] sm:$0xff]  ;;  %v16229_v44 = vld [vmem:[#allocation22_spill] sm:$0xff] }
 0xdd1   : > { %16211 = vst [vmem:[#allocation27_spill] sm:$0xff] %v11617_v46  ;;  %v3393_v46 = vmul.f32 %v16204_v3, %v3342_v1  ;;  %v11652_v23 = vpop.permute.xlu2 %5359  ;;  %v3479_v20 = vsel %vm766_vm2, %v16228_v9, %v16227_v54  ;;  %v3344_v3 = vsel %vm696_vm1, %v16230_v4, %v16229_v44  ;;  %v3352_v21 = vsel %vm696_vm1, %v16229_v44, %v16230_v4 }
 0xdd2   : > { %16214 = vst [vmem:[#allocation15_spill] sm:$0xff] %v11623_v25  ;;  %v11670_v1 = vpop.permute.xlu1 %5434  ;;  %5574 = vrot.lane.b32.xlu0 %v11090_v22, %s15601_s1  ;;  %v3471_v57 = vsel %vm766_vm2, %v16227_v54, %v16228_v9  ;;  %v16237_v9 = vld [vmem:[#allocation40_spill] sm:$0xff]  ;;  %v16238_v25 = vld [vmem:[#allocation39_spill] sm:$0xff] }
 0xdd3   : > { %16216 = vst [vmem:[#allocation90_spill] sm:$0xff] %v11632_v49  ;;  %v11687_v4 = vpop.permute.xlu0 %3765  ;;  %v3353_v49 = vsel %vm696_vm1, %v16238_v25, %v16237_v9 }
 0xdd4   : > { %16217 = vst [vmem:[#allocation20_spill] sm:$0xff] %v11635_v34  ;;  %v3411_v34 = vmul.f32 %v3395_v43, %v16185_v18 }
 0xdd5   : > { %16218 = vst [vmem:[#allocation79_spill] sm:$0xff] %v11638_v8 }
 0xdd6   : > { %16220 = vst [vmem:[#allocation87_spill] sm:$0xff] %v11643_v17 }
 0xdd7   : > { %16222 = vst [vmem:[#allocation16_spill] sm:$0xff] %v11646_v7  ;;  %v16236_v7 = vld [vmem:[#allocation74_spill] sm:$0xff]  ;;  %5564 = vrot.lane.b32.xlu2 %v11098_v6, %s15601_s1 }
 0xdd8   : > { %16223 = vst [vmem:[#allocation34_spill] sm:$0xff] %v11650_v35  ;;  %v16233_v35 = vld [vmem:[#allocation28_spill] sm:$0xff]  ;;  %v3472_v17 = vsel %vm766_vm2, %v16236_v7, %v16235_v33  ;;  %v3480_v54 = vsel %vm766_vm2, %v16235_v33, %v16236_v7  ;;  %v3478_v7 = vsel %vm766_vm2, %v16225_v13, %v16226_v11  ;;  %v16245_v13 = vld [vmem:[#allocation85_spill] sm:$0xff]  ;;  %5680 = vrot.lane.b32.xlu1 %v11078_v45, %s15605_s27 }
 0xdd9   : > { %16224 = vst [vmem:[#allocation60_spill] sm:$0xff] %v11652_v23  ;;  %v3599_v8 = vsel %vm836_vm3, %v16233_v35, %v16232_v62  ;;  %v3607_v44 = vsel %vm836_vm3, %v16232_v62, %v16233_v35  ;;  %v16239_v62 = vld [vmem:[#allocation80_spill] sm:$0xff]  ;;  %v3398_v23 = vmul.f32 %v16243_v63, %v3353_v49 }
 0xdda   : > { %16231 = vst [vmem:[#allocation61_spill] sm:$0xff] %v11670_v1  ;;  %v3522_v35 = vmul.f32 %v16239_v62, %v3479_v20  ;;  %v3345_v1 = vsel %vm696_vm1, %v16237_v9, %v16238_v25  ;;  %v3523_v33 = vmul.f32 %v16239_v62, %v3471_v57  ;;  %v3650_v5 = vmul.f32 %v16241_v40, %v3607_v44  ;;  %v16246_v57 = vld [vmem:[#allocation41_spill] sm:$0xff] }
 0xddb   : > { %16234 = vst [vmem:[#allocation24_spill] sm:$0xff] %v11687_v4  ;;  %v16240_v4 = vld [vmem:[#allocation13_spill] sm:$0xff]  ;;  %v3651_v20 = vmul.f32 %v16241_v40, %v3599_v8  ;;  %v11723_v25 = vmul.f32 %v3393_v46, %v16185_v18  ;;  %v11729_v11 = vsel %vm836_vm3, %v16246_v57, %v16245_v13  ;;  %v3427_v40 = vadd.f32 %v3411_v34, %v11510_v30 }
 0xddc   : > { %v3396_v16 = vmul.f32 %v16240_v4, %v3352_v21  ;;  %v3397_v43 = vmul.f32 %v16240_v4, %v3344_v3  ;;  %v3426_v21 = vadd.f32 %v3410_v55, %v11506_v51  ;;  %v3524_v3 = vmul.f32 %v16242_v29, %v3480_v54  ;;  %16247 = vst [vmem:[#allocation50_spill] sm:$0xff] %v11729_v11  ;;  %v16269_v11 = vld [vmem:[#allocation19_spill] sm:$0xff] }
 0xddd   : > { %v3525_v4 = vmul.f32 %v16242_v29, %v3472_v17  ;;  %16244 = vst [vmem:[#allocation55_spill] sm:$0xff] %v11723_v25  ;;  %v3399_v51 = vmul.f32 %v16243_v63, %v3345_v1  ;;  %v16248_v29 = vld [vmem:[#allocation71_spill] sm:$0xff]  ;;  %v3538_v49 = vmul.f32 %v3522_v35, %v16219_v28  ;;  %v11739_v17 = vpop.permute.xlu2 %5371  ;;  %v16249_v44 = vmov 6   ;;  %v5441_v1 = vpop.permute.xlu1 %5440  ;;  %5580 = vrot.lane.b32.xlu0 %v11100_v31, %s15601_s1 }
 0xdde   : > { %v3520_v55 = vmul.f32 %v16248_v29, %v3478_v7  ;;  %v3412_v46 = vmul.f32 %v3396_v16, %v7454_v15  ;;  %v3413_v8 = vmul.f32 %v3397_v43, %v16185_v18  ;;  %6622 = vset.pattern.permute.xlu1 %v16249_v44  ;;  %v3521_v54 = vmul.f32 %v16248_v29, %v3470_v38  ;;  %v5425_v43 = vpop.permute.xlu0 %5424  ;;  %v16253_v29 = vld [vmem:[#allocation38_spill] sm:$0xff] }
 0xddf   : > { %v3539_v30 = vmul.f32 %v3523_v33, %v16221_v41  ;;  %v3666_v63 = vmul.f32 %v3650_v5, %v16208_v58  ;;  %v3667_v34 = vmul.f32 %v3651_v20, %v16210_v56  ;;  %v3554_v9 = vadd.f32 %v3538_v49, %v3426_v21  ;;  %5570 = vrot.lane.b32.xlu2 %v11112_v42, %s15601_s1 }
 0xde0   : > { %v3540_v16 = vmul.f32 %v3524_v3, %v16219_v28  ;;  %v3541_v62 = vmul.f32 %v3525_v4, %v16221_v41  ;;  %v3414_v35 = vmul.f32 %v3398_v23, %v7454_v15  ;;  %v3415_v38 = vmul.f32 %v3399_v51, %v16185_v18  ;;  %5686 = vrot.lane.b32.xlu1 %v11088_v14, %s15605_s27 }
 0xde1   : > { %v3555_v7 = vadd.f32 %v3539_v30, %v3427_v40  ;;  %v11754_v5 = vsel %vm906_vm4, %v5425_v43, %v5441_v1  ;;  %v11758_v33 = vsel %vm906_vm4, %v5441_v1, %v5425_v43  ;;  %v11761_v20 = vmul.f32 %v3520_v55, %v16219_v28  ;;  %v16254_v55 = vld [vmem:[#allocation30_spill] sm:$0xff]  ;;  %v16265_v43 = vld [vmem:[#allocation37_spill] sm:$0xff] }
 0xde2   : > { %v11767_v23 = vsel %vm836_vm3, %v16245_v13, %v16246_v57  ;;  %v3428_v21 = vadd.f32 %v3412_v46, %v11514_v12  ;;  %v3429_v3 = vadd.f32 %v3413_v8, %v11518_v36  ;;  %v11772_v4 = vmul.f32 %v3521_v54, %v16221_v41  ;;  %v16257_v8 = vld [vmem:[#allocation31_spill] sm:$0xff]  ;;  %v16258_v54 = vld [vmem:[#allocation46_spill] sm:$0xff] }
 0xde3   : > { %16250 = vst [vmem:[#allocation52_spill] sm:$0xff] %v11761_v20  ;;  %v11774_v40 = vadd.f32 %v3666_v63, %v3554_v9  ;;  %v11776_v51 = vadd.f32 %v3667_v34, %v3555_v7  ;;  %v3600_v49 = vsel %vm836_vm3, %v16254_v55, %v16253_v29  ;;  %v3608_v13 = vsel %vm836_vm3, %v16253_v29, %v16254_v55  ;;  %v16260_v63 = vld [vmem:[#allocation81_spill] sm:$0xff]  ;;  %v16261_v34 = vld [vmem:[#allocation83_spill] sm:$0xff]  ;;  %v16267_v55 = vld [vmem:[#allocation100_spill] sm:$0xff] }
 0xde4   : > { %16251 = vst [vmem:[#allocation22_spill] sm:$0xff] %v11767_v23  ;;  %v3556_v12 = vadd.f32 %v3540_v16, %v3428_v21  ;;  %v3557_v57 = vadd.f32 %v3541_v62, %v3429_v3  ;;  %v11787_v36 = vadd.f32 %v3414_v35, %v11532_v50  ;;  %v11792_v46 = vadd.f32 %v3415_v38, %v11547_v60  ;;  %v16262_v60 = vld [vmem:[#allocation95_spill] sm:$0xff]  ;;  %v16263_v9 = vld [vmem:[#allocation53_spill] sm:$0xff]  ;;  %v16264_v35 = vld [vmem:[#allocation96_spill] sm:$0xff] }
 0xde5   : > { %16252 = vst [vmem:[#allocation32_spill] sm:$0xff] %v11772_v4  ;;  %v11798_v30 = vsel %vm766_vm2, %v16258_v54, %v16257_v8  ;;  %v3474_v1 = vsel %vm766_vm2, %v16261_v34, %v16260_v63  ;;  %v3482_v50 = vsel %vm766_vm2, %v16260_v63, %v16261_v34  ;;  %v3601_v16 = vsel %vm836_vm3, %v16263_v9, %v16262_v60  ;;  %v16266_v38 = vld [vmem:[#allocation103_spill] sm:$0xff]  ;;  %v11823_v3 = vpop.permute.xlu2 %5426  ;;  %v16268_v63 = vld [vmem:[#allocation97_spill] sm:$0xff] }
 0xde6   : > { %16255 = vst [vmem:[#allocation56_spill] sm:$0xff] %v11787_v36  ;;  %v3609_v62 = vsel %vm836_vm3, %v16262_v60, %v16263_v9  ;;  %v3355_v7 = vsel %vm696_vm1, %v16265_v43, %v16264_v35  ;;  %v3652_v21 = vmul.f32 %v16266_v38, %v3608_v13  ;;  %v3347_v29 = vsel %vm696_vm1, %v16264_v35, %v16265_v43  ;;  %v5447_v13 = vpop.permute.xlu1 %5446  ;;  %v16270_v35 = vld [vmem:[#allocation45_spill] sm:$0xff]  ;;  %v16271_v36 = vld [vmem:[#allocation98_spill] sm:$0xff]  ;;  %v5431_v20 = vpop.permute.xlu0 %5430 }
 0xde7   : > { %16256 = vst [vmem:[#allocation28_spill] sm:$0xff] %v11792_v46  ;;  %v3475_v34 = vsel %vm766_vm2, %v16268_v63, %v16267_v55  ;;  %v3483_v60 = vsel %vm766_vm2, %v16267_v55, %v16268_v63  ;;  %v3653_v9 = vmul.f32 %v16266_v38, %v3600_v49  ;;  %5607 = vperm.xlu0 %6618, %v10992_v0   ;;  %v16273_v55 = vld [vmem:[#allocation43_spill] sm:$0xff] }
 0xde8   : > { %16259 = vst [vmem:[#allocation91_spill] sm:$0xff] %v11798_v30  ;;  %v3528_v23 = vmul.f32 %v16269_v11, %v3482_v50  ;;  %v3529_v46 = vmul.f32 %v16269_v11, %v3474_v1  ;;  %v3654_v43 = vmul.f32 %v16270_v35, %v3609_v62  ;;  %v16272_v30 = vld [vmem:[#allocation17_spill] sm:$0xff]  ;;  %v3655_v25 = vmul.f32 %v16270_v35, %v3601_v16  ;;  %v16274_v1 = vld [vmem:[#allocation78_spill] sm:$0xff] }
 0xde9   : > { %v3610_v4 = vsel %vm836_vm3, %v16272_v30, %v16271_v36  ;;  %v3402_v63 = vmul.f32 %v16273_v55, %v3355_v7  ;;  %v11850_v49 = vsel %vm906_vm4, %v5431_v20, %v5447_v13  ;;  %v11854_v0 = vsel %vm906_vm4, %v5447_v13, %v5431_v20  ;;  %v16278_v35 = vld [vmem:[#allocation82_spill] sm:$0xff]  ;;  %5576 = vrot.lane.b32.xlu2 %v11121_v52, %s15601_s1 }
 0xdea   : > { %v3403_v11 = vmul.f32 %v16273_v55, %v3347_v29  ;;  %v3530_v50 = vmul.f32 %v16274_v1, %v3483_v60  ;;  %v3531_v62 = vmul.f32 %v16274_v1, %v3475_v34  ;;  %v3668_v38 = vmul.f32 %v3652_v21, %v16208_v58  ;;  %v16276_v29 = vld [vmem:[#allocation106_spill] sm:$0xff]  ;;  %v16277_v60 = vld [vmem:[#allocation92_spill] sm:$0xff]  ;;  %5692 = vrot.lane.b32.xlu1 %v11098_v6, %s15605_s27 }
 0xdeb   : > { %v11864_v16 = vsel %vm766_vm2, %v16257_v8, %v16258_v54  ;;  %v3602_v20 = vsel %vm836_vm3, %v16271_v36, %v16272_v30  ;;  %v3669_v7 = vmul.f32 %v3653_v9, %v16210_v56  ;;  %v3656_v13 = vmul.f32 %v16276_v29, %v3610_v4 }
 0xdec   : > { %16275 = vst [vmem:[#allocation74_spill] sm:$0xff] %v11864_v16  ;;  %v11876_v21 = vsel %vm696_vm1, %v16278_v35, %v16277_v60  ;;  %v11882_v8 = vsel %vm696_vm1, %v16277_v60, %v16278_v35  ;;  %v11885_v54 = vmul.f32 %v3528_v23, %v16219_v28  ;;  %v3657_v36 = vmul.f32 %v16276_v29, %v3602_v20  ;;  %v16290_v20 = vld [vmem:[#allocation93_spill] sm:$0xff] }
 0xded   : > { %16279 = vst [vmem:[#allocation40_spill] sm:$0xff] %v11876_v21  ;;  %v11891_v4 = vmul.f32 %v3529_v46, %v16221_v41  ;;  %v11894_v30 = vmul.f32 %v3654_v43, %v16208_v58  ;;  %v11897_v34 = vmul.f32 %v3655_v25, %v16210_v56  ;;  %v11900_v9 = vmul.f32 %v3402_v63, %v7454_v15  ;;  %v11915_v1 = vpop.permute.xlu2 %5432  ;;  %v16289_v63 = vld [vmem:[#allocation105_spill] sm:$0xff] }
 0xdee   : > { %16280 = vst [vmem:[#allocation39_spill] sm:$0xff] %v11882_v8  ;;  %v11905_v23 = vmul.f32 %v3403_v11, %v16185_v18  ;;  %v11908_v55 = vmul.f32 %v3530_v50, %v16219_v28  ;;  %v11911_v46 = vmul.f32 %v3531_v62, %v16221_v41  ;;  %v11913_v43 = vadd.f32 %v3668_v38, %v3556_v12  ;;  %v5453_v12 = vpop.permute.xlu1 %5452  ;;  %v16295_v62 = vld [vmem:[#allocation108_spill] sm:$0xff]  ;;  %v16296_v38 = vld [vmem:[#allocation42_spill] sm:$0xff]  ;;  %v16298_v35 = vld [vmem:[#allocation109_spill] sm:$0xff] }
 0xdef   : > { %16281 = vst [vmem:[#allocation80_spill] sm:$0xff] %v11885_v54  ;;  %v11917_v25 = vadd.f32 %v3669_v7, %v3557_v57  ;;  %v11923_v29 = vsel %vm836_vm3, %v16290_v20, %v16289_v63  ;;  %v11929_v11 = vsel %vm836_vm3, %v16289_v63, %v16290_v20  ;;  %v11932_v50 = vmul.f32 %v3656_v13, %v16208_v58  ;;  %v16297_v13 = vld [vmem:[#allocation107_spill] sm:$0xff] }
 0xdf0   : > { %16282 = vst [vmem:[#allocation13_spill] sm:$0xff] %v11891_v4  ;;  %5627 = vperm.xlu0 %6618, %v11030_v26   ;;  %v11936_v57 = vmul.f32 %v3657_v36, %v16210_v56  ;;  %v11942_v7 = vsel %vm906_vm4, %v16296_v38, %v16295_v62  ;;  %v11948_v60 = vsel %vm906_vm4, %v16295_v62, %v16296_v38  ;;  %v5437_v36 = vpop.permute.xlu0 %5436 }
 0xdf1   : > { %16283 = vst [vmem:[#allocation58_spill] sm:$0xff] %v11894_v30  ;;  %v11954_v26 = vsel %vm906_vm4, %v16298_v35, %v16297_v13  ;;  %v5074_v63 = vsel %vm696_vm1, %v11238_v37, %v11236_v10  ;;  %v5082_v20 = vsel %vm696_vm1, %v11236_v10, %v11238_v37  ;;  %v11966_v62 = vsel %vm906_vm4, %v5437_v36, %v5453_v12 }
 0xdf2   : > { %16284 = vst [vmem:[#allocation23_spill] sm:$0xff] %v11897_v34  ;;  %v11970_v38 = vsel %vm906_vm4, %v5453_v12, %v5437_v36  ;;  %v5126_v34 = vmul.f32 %v11270_v39, %v5082_v20  ;;  %v5127_v30 = vmul.f32 %v11270_v39, %v5074_v63  ;;  %v11984_v37 = vsel %vm906_vm4, %v16297_v13, %v16298_v35  ;;  %v16303_v12 = vld [vmem:[#allocation110_spill] sm:$0xff]  ;;  %v16304_v36 = vld [vmem:[#allocation112_spill] sm:$0xff] }
 0xdf3   : > { %16285 = vst [vmem:[#allocation18_spill] sm:$0xff] %v11900_v9  ;;  %v11996_v16 = vsel %vm906_vm4, %v16304_v36, %v16303_v12  ;;  %v12000_v39 = vmul.f32 %v11170_v32, %v11078_v45  ;;  %v12004_v13 = vmul.f32 %v11170_v32, %v11080_v53  ;;  %v5030_v35 = vmul.f32 %v11196_v2, %v11088_v14  ;;  %v16305_v20 = vld [vmem:[#allocation260_spill] sm:$0xff]  ;;  %v16322_v45 = vld [vmem:[#allocation86_spill] sm:$0xff] }
 0xdf4   : > { %16286 = vst [vmem:[#allocation85_spill] sm:$0xff] %v11905_v23  ;;  %v12016_v63 = vmul.f32 %v11217_v59, %v11100_v31  ;;  %5599 = vperm.xlu2 %6619, %v10987_v27   ;;  %5698 = vrot.lane.b32.xlu1 %v11112_v42, %s15605_s27  ;;  %v5143_v23 = vmul.f32 %v5127_v30, %v16185_v18  ;;  %v16308_v9 = vld [vmem:[#allocation288_spill] sm:$0xff]  ;;  %v16318_v42 = vld [vmem:[#allocation289_spill] sm:$0xff]  ;;  %v16328_v31 = vld [vmem:[#allocation278_spill] sm:$0xff] }
 0xdf5   : > { %16287 = vst [vmem:[#allocation41_spill] sm:$0xff] %v11908_v55 }
 0xdf6   : > { %16288 = vst [vmem:[#allocation71_spill] sm:$0xff] %v11911_v46  ;;  %v16307_v46 = vld [vmem:[#allocation281_spill] sm:$0xff]  ;;  %v5480_v30 = vpop.permute.xlu1 %5479 }
 0xdf7   : > { %16291 = vst [vmem:[#allocation38_spill] sm:$0xff] %v11923_v29  ;;  %v16301_v29 = vld [vmem:[#allocation101_spill] sm:$0xff]  ;;  %v5202_v55 = vsel %vm766_vm2, %v16307_v46, %v11334_v47  ;;  %v5210_v27 = vsel %vm766_vm2, %v11334_v47, %v16307_v46  ;;  %v16310_v46 = vld [vmem:[#allocation283_spill] sm:$0xff] }
 0xdf8   : > { %16292 = vst [vmem:[#allocation30_spill] sm:$0xff] %v11929_v11  ;;  %6621 = vset.pattern.permute.xlu0 %v16249_v44 }
 0xdf9   : > { %16293 = vst [vmem:[#allocation31_spill] sm:$0xff] %v11932_v50  ;;  %v16309_v50 = vld [vmem:[#allocation268_spill] sm:$0xff] }
 0xdfa   : > { %16294 = vst [vmem:[#allocation46_spill] sm:$0xff] %v11936_v57  ;;  %v5254_v57 = vmul.f32 %v16308_v9, %v5210_v27  ;;  %v5443_v27 = vpop.permute.xlu0 %5442 }
 0xdfb   : > { %16299 = vst [vmem:[#allocation81_spill] sm:$0xff] %v11954_v26  ;;  %v16300_v26 = vld [vmem:[#allocation111_spill] sm:$0xff] }
 0xdfc   : > { %v11976_v11 = vsel %vm906_vm4, %v16301_v29, %v16300_v26  ;;  %16302 = vst [vmem:[#allocation83_spill] sm:$0xff] %v11984_v37  ;;  %v11990_v10 = vsel %vm906_vm4, %v16300_v26, %v16301_v29  ;;  %v5031_v29 = vmul.f32 %v11196_v2, %v11090_v22  ;;  %v12012_v26 = vmul.f32 %v11217_v59, %v11098_v6  ;;  %v16306_v37 = vld [vmem:[#allocation261_spill] sm:$0xff]  ;;  %v16329_v22 = vld [vmem:[#allocation279_spill] sm:$0xff] }
 0xdfd   : > { %v5077_v32 = vsel %vm696_vm1, %v16306_v37, %v16305_v20  ;;  %v5085_v2 = vsel %vm696_vm1, %v16305_v20, %v16306_v37  ;;  %v5142_v59 = vmul.f32 %v5126_v34, %v7454_v15  ;;  %v5255_v37 = vmul.f32 %v16308_v9, %v5202_v55  ;;  %v5439_v20 = vpop.permute.xlu2 %5438  ;;  %v16311_v9 = vld [vmem:[#allocation284_spill] sm:$0xff]  ;;  %5704 = vrot.lane.b32.xlu1 %v11121_v52, %s15605_s27 }
 0xdfe   : > { %v5132_v4 = vmul.f32 %v16309_v50, %v5085_v2  ;;  %v5133_v54 = vmul.f32 %v16309_v50, %v5077_v32  ;;  %v12046_v47 = vsel %vm906_vm4, %v11478_v24, %v5439_v20  ;;  %v12051_v34 = vsel %vm906_vm4, %v5439_v20, %v11478_v24  ;;  %v16312_v2 = vld [vmem:[#allocation254_spill] sm:$0xff]  ;;  %v16313_v20 = vld [vmem:[#allocation60_spill] sm:$0xff] }
 0xdff   : > { %v5205_v55 = vsel %vm766_vm2, %v16311_v9, %v16310_v46  ;;  %v5213_v50 = vsel %vm766_vm2, %v16310_v46, %v16311_v9  ;;  %v5330_v32 = vsel %vm836_vm3, %v11395_v48, %v11458_v61  ;;  %v5338_v24 = vsel %vm836_vm3, %v11458_v61, %v11395_v48  ;;  %4005 = vperm.xlu0 %6621, %v16312_v2   ;;  %v16316_v2 = vld [vmem:[#allocation255_spill] sm:$0xff] }
 0xe00   : > { %v5382_v6 = vmul.f32 %v16313_v20, %v5338_v24  ;;  %v5383_v21 = vmul.f32 %v16313_v20, %v5330_v32  ;;  %v5456_v46 = vsel %vm906_vm4, %v11823_v3, %v5443_v27  ;;  %v5464_v9 = vsel %vm906_vm4, %v5443_v27, %v11823_v3  ;;  %v16317_v24 = vld [vmem:[#allocation256_spill] sm:$0xff]  ;;  %v16319_v27 = vld [vmem:[#allocation265_spill] sm:$0xff] }
 0xe01   : > { %v5270_v14 = vmul.f32 %v5254_v57, %v16219_v28  ;;  %v5271_v8 = vmul.f32 %v5255_v37, %v16221_v41  ;;  %v12081_v48 = vmul.f32 %v5480_v30, %v5464_v9  ;;  %v12083_v61 = vmul.f32 %v5480_v30, %v5456_v46  ;;  %v16320_v37 = vld [vmem:[#allocation250_spill] sm:$0xff] }
 0xe02   : > { %v5071_v32 = vsel %vm696_vm1, %v16317_v24, %v16316_v2  ;;  %v5079_v20 = vsel %vm696_vm1, %v16316_v2, %v16317_v24  ;;  %v5260_v3 = vmul.f32 %v16318_v42, %v5213_v50  ;;  %v5261_v57 = vmul.f32 %v16318_v42, %v5205_v55  ;;  %v12106_v2 = vld [vmem:[%s14757_s12 + $0x58] sm:$0xff] }
 0xe03   : > { %16314 = vst [vmem:[#allocation95_spill] sm:$0xff] %v12081_v48  ;;  %v5073_v30 = vsel %vm696_vm1, %v16320_v37, %v16319_v27  ;;  %v5081_v46 = vsel %vm696_vm1, %v16319_v27, %v16320_v37  ;;  %v5158_v9 = vadd.f32 %v5142_v59, %v5030_v35  ;;  %5611 = vperm.xlu2 %6619, %v12106_v2   ;;  %v16321_v35 = vld [vmem:[#allocation270_spill] sm:$0xff] }
 0xe04   : > { %16315 = vst [vmem:[#allocation53_spill] sm:$0xff] %v12083_v61  ;;  %v5159_v61 = vadd.f32 %v5143_v23, %v5031_v29  ;;  %v5148_v42 = vmul.f32 %v5132_v4, %v7454_v15  ;;  %v5149_v55 = vmul.f32 %v5133_v54, %v16185_v18  ;;  %v5398_v50 = vmul.f32 %v5382_v6, %v16208_v58  ;;  %v5488_v54 = vpop.permute.xlu1 %5487 }
 0xe05   : > { %v5399_v24 = vmul.f32 %v5383_v21, %v16210_v56  ;;  %v5120_v23 = vmul.f32 %v16321_v35, %v5079_v20  ;;  %v5121_v29 = vmul.f32 %v16321_v35, %v5071_v32  ;;  %v5286_v59 = vadd.f32 %v5270_v14, %v5158_v9  ;;  %v5445_v37 = vpop.permute.xlu2 %5444  ;;  %v16323_v20 = vld [vmem:[#allocation312_spill] sm:$0xff]  ;;  %v16324_v32 = vld [vmem:[#allocation298_spill] sm:$0xff]  ;;  %v5449_v9 = vpop.permute.xlu0 %5448 }
 0xe06   : > { %v5287_v27 = vadd.f32 %v5271_v8, %v5159_v61  ;;  %v5276_v48 = vmul.f32 %v5260_v3, %v16219_v28  ;;  %v5277_v4 = vmul.f32 %v5261_v57, %v16221_v41  ;;  %v12122_v6 = vsel %vm906_vm4, %v16322_v45, %v5445_v37  ;;  %v16325_v57 = vld [vmem:[#allocation257_spill] sm:$0xff] }
 0xe07   : > { %v12127_v21 = vsel %vm906_vm4, %v5445_v37, %v16322_v45  ;;  %v5333_v14 = vsel %vm836_vm3, %v16324_v32, %v16323_v20  ;;  %v5341_v8 = vsel %vm836_vm3, %v16323_v20, %v16324_v32  ;;  %v5510_v61 = vmul.f32 %v5488_v54, %v11854_v0  ;;  %4025 = vperm.xlu0 %6621, %v16325_v57   ;;  %v16327_v32 = vld [vmem:[#allocation67_spill] sm:$0xff] }
 0xe08   : > { %v5511_v3 = vmul.f32 %v5488_v54, %v11850_v49  ;;  %v5414_v45 = vadd.f32 %v5398_v50, %v5286_v59  ;;  %v5415_v35 = vadd.f32 %v5399_v24, %v5287_v27  ;;  %v12143_v37 = vsel %vm906_vm4, %v11915_v1, %v5449_v9  ;;  %v16326_v49 = vld [vmem:[#allocation66_spill] sm:$0xff] }
 0xe09   : > { %v12148_v52 = vsel %vm906_vm4, %v5449_v9, %v11915_v1  ;;  %v5388_v20 = vmul.f32 %v11739_v17, %v5341_v8  ;;  %v5389_v0 = vmul.f32 %v11739_v17, %v5333_v14  ;;  %v5526_v54 = vmul.f32 %v5510_v61, %v16326_v49 }
 0xe0a   : > { %v5527_v57 = vmul.f32 %v5511_v3, %v16327_v32  ;;  %v5164_v50 = vadd.f32 %v5148_v42, %v12012_v26  ;;  %v5165_v24 = vadd.f32 %v5149_v55, %v12016_v63  ;;  %v5136_v59 = vmul.f32 %v5120_v23, %v7454_v15  ;;  %v12173_v26 = vld [vmem:[%s14757_s12 + $0x68] sm:$0xff]  ;;  %v16331_v63 = vld [vmem:[#allocation273_spill] sm:$0xff] }
 0xe0b   : > { %v5137_v27 = vmul.f32 %v5121_v29, %v16185_v18  ;;  %v5199_v1 = vsel %vm766_vm2, %v16329_v22, %v16328_v31  ;;  %v5207_v17 = vsel %vm766_vm2, %v16328_v31, %v16329_v22  ;;  %v12166_v14 = vadd.f32 %v5526_v54, %v5414_v45  ;;  %5619 = vperm.xlu2 %6619, %v12173_v26   ;;  %v16332_v23 = vld [vmem:[#allocation285_spill] sm:$0xff] }
 0xe0c   : > { %v12168_v8 = vadd.f32 %v5527_v57, %v5415_v35  ;;  %v5124_v42 = vmul.f32 %v16331_v63, %v5081_v46  ;;  %v5125_v55 = vmul.f32 %v16331_v63, %v5073_v30  ;;  %v5248_v29 = vmul.f32 %v16332_v23, %v5207_v17  ;;  %v12183_v31 = vld [vmem:[%s14757_s12 + $0x40] sm:$0xff]  ;;  %v16333_v35 = vld [vmem:[#allocation308_spill] sm:$0xff] }
 0xe0d   : > { %v5249_v61 = vmul.f32 %v16332_v23, %v5199_v1  ;;  %5727 = vperm.xlu1 %6622, %v12183_v31   ;;  %v5292_v22 = vadd.f32 %v5276_v48, %v5164_v50  ;;  %v5293_v3 = vadd.f32 %v5277_v4, %v5165_v24  ;;  %v5404_v9 = vmul.f32 %v5388_v20, %v16208_v58  ;;  %v5451_v46 = vpop.permute.xlu2 %5450  ;;  %v16334_v30 = vld [vmem:[#allocation293_spill] sm:$0xff]  ;;  %v5500_v20 = vpop.permute.xlu1 %5499  ;;  %v16337_v23 = vld [vmem:[#allocation235_spill] sm:$0xff] }
 0xe0e   : > { %16330 = vst [vmem:[#allocation96_spill] sm:$0xff] %v12168_v8  ;;  %v5405_v45 = vmul.f32 %v5389_v0, %v16210_v56  ;;  %v5327_v54 = vsel %vm836_vm3, %v16334_v30, %v16333_v35  ;;  %v5335_v57 = vsel %vm836_vm3, %v16333_v35, %v16334_v30  ;;  %v16335_v1 = vld [vmem:[#allocation61_spill] sm:$0xff]  ;;  %v16336_v0 = vld [vmem:[#allocation311_spill] sm:$0xff]  ;;  %v5516_v17 = vmul.f32 %v5500_v20, %v11970_v38  ;;  %v5472_v35 = vpop.permute.xlu0 %5471 }
 0xe0f   : > { %v12199_v48 = vsel %vm906_vm4, %v16335_v1, %v5451_v46  ;;  %v12204_v4 = vsel %vm906_vm4, %v5451_v46, %v16335_v1  ;;  %v5376_v50 = vmul.f32 %v16336_v0, %v5335_v57  ;;  %v5377_v24 = vmul.f32 %v16336_v0, %v5327_v54  ;;  %5682 = vrot.lane.b32.xlu0 %v16337_v23, %s15605_s27 }
 0xe10   : > { %v5517_v63 = vmul.f32 %v5500_v20, %v11966_v62  ;;  %v5264_v30 = vmul.f32 %v5248_v29, %v16219_v28  ;;  %v5265_v8 = vmul.f32 %v5249_v61, %v16221_v41  ;;  %v12215_v46 = vmul.f32 %v5472_v35, %v12051_v34 }
 0xe11   : > { %v12218_v1 = vmul.f32 %v5472_v35, %v12046_v47  ;;  %v5420_v57 = vadd.f32 %v5404_v9, %v5292_v22  ;;  %v5421_v54 = vadd.f32 %v5405_v45, %v5293_v3  ;;  %v5532_v38 = vmul.f32 %v5516_v17, %v16326_v49  ;;  %v16342_v45 = vld [vmem:[#allocation212_spill] sm:$0xff]  ;;  %v16346_v17 = vld [vmem:[#allocation307_spill] sm:$0xff] }
 0xe12   : > { %16338 = vst [vmem:[#allocation37_spill] sm:$0xff] %v12215_v46  ;;  %v5533_v62 = vmul.f32 %v5517_v63, %v16327_v32  ;;  %v3736_v20 = vsel %vm906_vm4, %v16303_v12, %v16304_v36  ;;  %v5152_v29 = vadd.f32 %v5136_v59, %v12000_v39  ;;  %v5153_v61 = vadd.f32 %v5137_v27, %v12004_v13  ;;  %v16343_v12 = vld [vmem:[#allocation280_spill] sm:$0xff]  ;;  %v16347_v63 = vld [vmem:[#allocation303_spill] sm:$0xff] }
 0xe13   : > { %16339 = vst [vmem:[#allocation103_spill] sm:$0xff] %v12218_v1  ;;  %v5140_v34 = vmul.f32 %v5124_v42, %v7454_v15  ;;  %v5392_v47 = vmul.f32 %v5376_v50, %v16208_v58  ;;  %v5393_v22 = vmul.f32 %v5377_v24, %v16210_v56  ;;  %v12231_v3 = vadd.f32 %v5532_v38, %v5420_v57  ;;  %v16344_v36 = vld [vmem:[#allocation272_spill] sm:$0xff]  ;;  %v16345_v42 = vld [vmem:[#allocation295_spill] sm:$0xff] }
 0xe14   : > { %v12233_v9 = vadd.f32 %v5533_v62, %v5421_v54  ;;  %5678 = vrot.lane.b32.xlu2 %v16342_v45, %s15605_s27  ;;  %v5141_v0 = vmul.f32 %v5125_v55, %v16185_v18  ;;  %v5201_v39 = vsel %vm766_vm2, %v16344_v36, %v16343_v12  ;;  %v5209_v13 = vsel %vm766_vm2, %v16343_v12, %v16344_v36 }
 0xe15   : > { %16340 = vst [vmem:[#allocation100_spill] sm:$0xff] %v12231_v3  ;;  %5739 = vperm.xlu1 %6622, %v12106_v2   ;;  %6623 = vset.pattern.permute.xlu2 %v16249_v44  ;;  %v5280_v59 = vadd.f32 %v5264_v30, %v5152_v29  ;;  %v5281_v27 = vadd.f32 %v5265_v8, %v5153_v61  ;;  %v5476_v24 = vpop.permute.xlu2 %5475  ;;  %v12260_v8 = vpop.permute.xlu1 %5554  ;;  %v16348_v30 = vld [vmem:[#allocation309_spill] sm:$0xff] }
 0xe16   : > { %16341 = vst [vmem:[#allocation97_spill] sm:$0xff] %v12233_v9  ;;  %v5252_v50 = vmul.f32 %v16345_v42, %v5209_v13  ;;  %v5253_v55 = vmul.f32 %v16345_v42, %v5201_v39  ;;  %v5329_v35 = vsel %vm836_vm3, %v16347_v63, %v16346_v17  ;;  %v5337_v57 = vsel %vm836_vm3, %v16346_v17, %v16347_v63  ;;  %v16349_v61 = vld [vmem:[#allocation237_spill] sm:$0xff]  ;;  %v5492_v12 = vpop.permute.xlu0 %5491  ;;  %v16352_v13 = vld [vmem:[#allocation215_spill] sm:$0xff]  ;;  %v16353_v42 = vld [vmem:[#allocation244_spill] sm:$0xff] }
 0xe17   : > { %v5504_v2 = vmul.f32 %v5476_v24, %v11758_v33  ;;  %v5505_v44 = vmul.f32 %v5476_v24, %v11754_v5  ;;  %v5380_v54 = vmul.f32 %v16348_v30, %v5337_v57  ;;  %v5381_v38 = vmul.f32 %v16348_v30, %v5329_v35  ;;  %5688 = vrot.lane.b32.xlu0 %v16349_v61, %s15605_s27  ;;  %v16354_v17 = vld [vmem:[#allocation240_spill] sm:$0xff]  ;;  %v16441_v61 = vld [vmem:[#allocation147_spill] sm:$0xff] }
 0xe18   : > { %v5408_v62 = vadd.f32 %v5392_v47, %v5280_v59  ;;  %v5409_v29 = vadd.f32 %v5393_v22, %v5281_v27  ;;  %v12269_v33 = vmul.f32 %v5492_v12, %v12148_v52  ;;  %v12272_v5 = vmul.f32 %v5492_v12, %v12143_v37  ;;  %v16355_v22 = vld [vmem:[#allocation267_spill] sm:$0xff]  ;;  %v16356_v59 = vld [vmem:[#allocation252_spill] sm:$0xff] }
 0xe19   : > { %v5520_v36 = vmul.f32 %v5504_v2, %v16326_v49  ;;  %v5521_v39 = vmul.f32 %v5505_v44, %v16327_v32  ;;  %v5028_v24 = vmul.f32 %v16353_v42, %v16352_v13  ;;  %v5029_v47 = vmul.f32 %v16353_v42, %v16354_v17  ;;  %v16357_v30 = vld [vmem:[#allocation276_spill] sm:$0xff] }
 0xe1a   : > { %16350 = vst [vmem:[#allocation19_spill] sm:$0xff] %v12269_v33  ;;  %v5076_v27 = vsel %vm696_vm1, %v16356_v59, %v16355_v22  ;;  %v5084_v52 = vsel %vm696_vm1, %v16355_v22, %v16356_v59  ;;  %v5268_v63 = vmul.f32 %v5252_v50, %v16219_v28  ;;  %v5269_v37 = vmul.f32 %v5253_v55, %v16221_v41  ;;  %v16359_v33 = vld [vmem:[#allocation275_spill] sm:$0xff] }
 0xe1b   : > { %16351 = vst [vmem:[#allocation45_spill] sm:$0xff] %v12272_v5  ;;  %v12288_v35 = vadd.f32 %v5520_v36, %v5408_v62  ;;  %v12290_v57 = vadd.f32 %v5521_v39, %v5409_v29  ;;  %v5156_v2 = vadd.f32 %v5140_v34, %v5028_v24  ;;  %v5157_v44 = vadd.f32 %v5141_v0, %v5029_v47  ;;  %v16358_v5 = vld [vmem:[#allocation282_spill] sm:$0xff]  ;;  %v16361_v29 = vld [vmem:[#allocation99_spill] sm:$0xff] }
 0xe1c   : > { %v5130_v12 = vmul.f32 %v16357_v30, %v5084_v52  ;;  %v5131_v42 = vmul.f32 %v16357_v30, %v5076_v27  ;;  %5684 = vrot.lane.b32.xlu2 %v16352_v13, %s15605_s27  ;;  %v5204_v50 = vsel %vm766_vm2, %v16359_v33, %v16358_v5  ;;  %v5212_v55 = vsel %vm766_vm2, %v16358_v5, %v16359_v33  ;;  %v16360_v62 = vld [vmem:[#allocation118_spill] sm:$0xff]  ;;  %v16362_v24 = vld [vmem:[#allocation291_spill] sm:$0xff] }
 0xe1d   : > { %v5396_v34 = vmul.f32 %v5380_v54, %v16208_v58  ;;  %v5397_v0 = vmul.f32 %v5381_v38, %v16210_v56  ;;  %5747 = vperm.xlu1 %6622, %v12173_v26   ;;  %v3726_v36 = vsel %vm906_vm4, %v16361_v29, %v16360_v62  ;;  %v3734_v39 = vsel %vm906_vm4, %v16360_v62, %v16361_v29  ;;  %v5484_v5 = vpop.permute.xlu2 %5483  ;;  %v12319_v27 = vpop.permute.xlu1 %5560  ;;  %v16363_v52 = vld [vmem:[#allocation119_spill] sm:$0xff] }
 0xe1e   : > { %v5258_v47 = vmul.f32 %v16362_v24, %v5212_v55  ;;  %v5259_v33 = vmul.f32 %v16362_v24, %v5204_v50  ;;  %v5284_v54 = vadd.f32 %v5268_v63, %v5156_v2  ;;  %v5285_v22 = vadd.f32 %v5269_v37, %v5157_v44  ;;  %v16364_v50 = vld [vmem:[#allocation239_spill] sm:$0xff]  ;;  %v12330_v2 = vpop.permute.xlu0 %3869  ;;  %v16366_v44 = vld [vmem:[#allocation116_spill] sm:$0xff] }
 0xe1f   : > { %v5508_v38 = vmul.f32 %v5484_v5, %v12127_v21  ;;  %v5509_v59 = vmul.f32 %v5484_v5, %v12122_v6  ;;  %v3780_v30 = vmul.f32 %v16363_v52, %v3736_v20  ;;  %v3781_v1 = vmul.f32 %v16363_v52, %v11996_v16  ;;  %5694 = vrot.lane.b32.xlu0 %v16364_v50, %s15605_s27  ;;  %v16367_v16 = vld [vmem:[#allocation218_spill] sm:$0xff]  ;;  %v16368_v24 = vld [vmem:[#allocation248_spill] sm:$0xff]  ;;  %v16369_v5 = vld [vmem:[#allocation243_spill] sm:$0xff] }
 0xe20   : > { %v5146_v62 = vmul.f32 %v5130_v12, %v7454_v15  ;;  %v5147_v55 = vmul.f32 %v5131_v42, %v16185_v18  ;;  %v5412_v63 = vadd.f32 %v5396_v34, %v5284_v54  ;;  %v5413_v37 = vadd.f32 %v5397_v0, %v5285_v22  ;;  %16365 = vst [vmem:[#allocation98_spill] sm:$0xff] %v12330_v2  ;;  %v16371_v22 = vld [vmem:[#allocation113_spill] sm:$0xff]  ;;  %v16439_v50 = vld [vmem:[#allocation164_spill] sm:$0xff] }
 0xe21   : > { %v5524_v21 = vmul.f32 %v5508_v38, %v16326_v49  ;;  %v5525_v6 = vmul.f32 %v5509_v59, %v16327_v32  ;;  %v3776_v20 = vmul.f32 %v16366_v44, %v3734_v39  ;;  %v3777_v29 = vmul.f32 %v16366_v44, %v3726_v36  ;;  %v16372_v38 = vld [vmem:[#allocation115_spill] sm:$0xff] }
 0xe22   : > { %v5034_v12 = vmul.f32 %v16368_v24, %v16367_v16  ;;  %v5035_v42 = vmul.f32 %v16368_v24, %v16369_v5  ;;  %v5274_v52 = vmul.f32 %v5258_v47, %v16219_v28  ;;  %v5275_v34 = vmul.f32 %v5259_v33, %v16221_v41 }
 0xe23   : > { %v12340_v0 = vadd.f32 %v5524_v21, %v5412_v63  ;;  %v12342_v54 = vadd.f32 %v5525_v6, %v5413_v37  ;;  %v3731_v39 = vsel %vm906_vm4, %v16372_v38, %v16371_v22  ;;  %v3739_v36 = vsel %vm906_vm4, %v16371_v22, %v16372_v38  ;;  %v16373_v37 = vld [vmem:[#allocation313_spill] sm:$0xff]  ;;  %v16374_v6 = vld [vmem:[#allocation314_spill] sm:$0xff]  ;;  %v16378_v22 = vld [vmem:[#allocation104_spill] sm:$0xff] }
 0xe24   : > { %v3796_v59 = vmul.f32 %v3780_v30, %v16326_v49  ;;  %v3797_v47 = vmul.f32 %v3781_v1, %v16327_v32  ;;  %5690 = vrot.lane.b32.xlu2 %v16367_v16, %s15605_s27  ;;  %v5162_v33 = vadd.f32 %v5146_v62, %v5034_v12  ;;  %v5163_v63 = vadd.f32 %v5147_v55, %v5035_v42  ;;  %v16377_v1 = vld [vmem:[#allocation114_spill] sm:$0xff] }
 0xe25   : > { %16370 = vst [vmem:[#allocation17_spill] sm:$0xff] %v12342_v54  ;;  %v5402_v21 = vmul.f32 %v16373_v37, %v16208_v58  ;;  %v5403_v44 = vmul.f32 %v16374_v6, %v16210_v56  ;;  %5806 = vrot.lane.b32.xlu1 %v16342_v45, %s15610_s26  ;;  %v12363_v24 = vmul.f32 %v3776_v20, %v16326_v49  ;;  %v5496_v12 = vpop.permute.xlu2 %5495  ;;  %v16381_v42 = vmov 7   ;;  %v5567_v6 = vpop.permute.xlu1 %5566  ;;  %v16442_v54 = vld [vmem:[#allocation155_spill] sm:$0xff] }
 0xe26   : > { %v12366_v30 = vmul.f32 %v3777_v29, %v16327_v32  ;;  %v12372_v62 = vsel %vm906_vm4, %v16378_v22, %v16377_v1  ;;  %v12378_v55 = vsel %vm906_vm4, %v16377_v1, %v16378_v22  ;;  %6625 = vset.pattern.permute.xlu1 %v16381_v42  ;;  %v5290_v20 = vadd.f32 %v5274_v52, %v5162_v33  ;;  %v12395_v33 = vpop.permute.xlu0 %3889 }
 0xe27   : > { %16375 = vst [vmem:[#allocation43_spill] sm:$0xff] %v12363_v24  ;;  %v5291_v38 = vadd.f32 %v5275_v34, %v5163_v63  ;;  %v5514_v29 = vmul.f32 %v5496_v12, %v12204_v4  ;;  %v5515_v37 = vmul.f32 %v5496_v12, %v12199_v48  ;;  %v12384_v2 = vadd.f32 %v3796_v59, %v11913_v43  ;;  %v16384_v43 = vld [vmem:[#allocation121_spill] sm:$0xff]  ;;  %v16385_v59 = vld [vmem:[#allocation102_spill] sm:$0xff] }
 0xe28   : > { %16376 = vst [vmem:[#allocation78_spill] sm:$0xff] %v12366_v30  ;;  %v12387_v46 = vadd.f32 %v3797_v47, %v11917_v25  ;;  %v16382_v30 = vld [vmem:[#allocation122_spill] sm:$0xff]  ;;  %5700 = vrot.lane.b32.xlu0 %v16354_v17, %s15605_s27  ;;  %v5418_v52 = vadd.f32 %v5402_v21, %v5290_v20  ;;  %v3729_v25 = vsel %vm906_vm4, %v16385_v59, %v16384_v43  ;;  %v16387_v21 = vld [vmem:[#allocation127_spill] sm:$0xff] }
 0xe29   : > { %16379 = vst [vmem:[#allocation106_spill] sm:$0xff] %v12372_v62  ;;  %v3786_v24 = vmul.f32 %v16382_v30, %v3739_v36  ;;  %v3787_v1 = vmul.f32 %v16382_v30, %v3731_v39  ;;  %v5419_v34 = vadd.f32 %v5403_v44, %v5291_v38  ;;  %v5530_v4 = vmul.f32 %v5514_v29, %v16326_v49  ;;  %v16386_v36 = vld [vmem:[#allocation124_spill] sm:$0xff]  ;;  %v16436_v17 = vld [vmem:[#allocation167_spill] sm:$0xff] }
 0xe2a   : > { %16380 = vst [vmem:[#allocation92_spill] sm:$0xff] %v12378_v55  ;;  %v5531_v48 = vmul.f32 %v5515_v37, %v16327_v32  ;;  %v3737_v39 = vsel %vm906_vm4, %v16384_v43, %v16385_v59  ;;  %v3772_v47 = vmul.f32 %v16386_v36, %v11948_v60  ;;  %v3773_v63 = vmul.f32 %v16386_v36, %v11942_v7  ;;  %v16390_v60 = vld [vmem:[#allocation134_spill] sm:$0xff]  ;;  %v16391_v29 = vld [vmem:[#allocation136_spill] sm:$0xff]  ;;  %v16393_v37 = vld [vmem:[#allocation125_spill] sm:$0xff] }
 0xe2b   : > { %16383 = vst [vmem:[#allocation82_spill] sm:$0xff] %v12395_v33  ;;  %v3778_v44 = vmul.f32 %v16387_v21, %v11990_v10  ;;  %v3779_v30 = vmul.f32 %v16387_v21, %v11976_v11  ;;  %v12413_v22 = vadd.f32 %v5530_v4, %v5418_v52  ;;  %v12418_v20 = vmul.f32 %v3786_v24, %v16326_v49  ;;  %v16392_v10 = vld [vmem:[#allocation123_spill] sm:$0xff]  ;;  %v16397_v59 = vld [vmem:[#allocation142_spill] sm:$0xff]  ;;  %v16398_v36 = vld [vmem:[#allocation117_spill] sm:$0xff] }
 0xe2c   : > { %v12415_v12 = vadd.f32 %v5531_v48, %v5419_v34  ;;  %v12421_v38 = vmul.f32 %v3787_v1, %v16327_v32  ;;  %v3855_v7 = vsel %vm976_vm5, %v16391_v29, %v16390_v60  ;;  %v3863_v11 = vsel %vm976_vm5, %v16390_v60, %v16391_v29  ;;  %5696 = vrot.lane.b32.xlu2 %v11080_v53, %s15605_s27  ;;  %v16394_v52 = vld [vmem:[#allocation143_spill] sm:$0xff]  ;;  %v16403_v33 = vld [vmem:[#allocation128_spill] sm:$0xff]  ;;  %v16409_v55 = vld [vmem:[#allocation146_spill] sm:$0xff] }
 0xe2d   : > { %16388 = vst [vmem:[#allocation105_spill] sm:$0xff] %v12418_v20  ;;  %v3854_v24 = vsel %vm976_vm5, %v16393_v37, %v16392_v10  ;;  %v3862_v1 = vsel %vm976_vm5, %v16392_v10, %v16393_v37  ;;  %v3906_v34 = vmul.f32 %v16394_v52, %v3855_v7  ;;  %v3907_v4 = vmul.f32 %v16394_v52, %v3863_v11  ;;  %v12459_v29 = vpop.permute.xlu2 %5552  ;;  %v16399_v11 = vld [vmem:[#allocation130_spill] sm:$0xff]  ;;  %v5573_v37 = vpop.permute.xlu1 %5572  ;;  %v16400_v52 = vld [vmem:[#allocation137_spill] sm:$0xff] }
 0xe2e   : > { %16389 = vst [vmem:[#allocation93_spill] sm:$0xff] %v12421_v38  ;;  %5812 = vrot.lane.b32.xlu1 %v16352_v13, %s15610_s26  ;;  %v12446_v48 = vmul.f32 %v3772_v47, %v16326_v49  ;;  %v12449_v43 = vmul.f32 %v3773_v63, %v16327_v32  ;;  %v3853_v21 = vsel %vm976_vm5, %v16398_v36, %v16397_v59  ;;  %v16401_v38 = vld [vmem:[#allocation139_spill] sm:$0xff] }
 0xe2f   : > { %v3861_v60 = vsel %vm976_vm5, %v16397_v59, %v16398_v36  ;;  %v3794_v7 = vmul.f32 %v3778_v44, %v16326_v49  ;;  %v3795_v47 = vmul.f32 %v3779_v30, %v16327_v32  ;;  %v3782_v10 = vmul.f32 %v16399_v11, %v3737_v39  ;;  %v16402_v36 = vld [vmem:[#allocation126_spill] sm:$0xff]  ;;  %v16406_v39 = vld [vmem:[#allocation68_spill] sm:$0xff] }
 0xe30   : > { %16395 = vst [vmem:[#allocation108_spill] sm:$0xff] %v12446_v48  ;;  %v3783_v63 = vmul.f32 %v16399_v11, %v3729_v25  ;;  %v3858_v20 = vsel %vm976_vm5, %v16401_v38, %v16400_v52  ;;  %v3866_v59 = vsel %vm976_vm5, %v16400_v52, %v16401_v38  ;;  %v12477_v44 = vsel %vm976_vm5, %v16403_v33, %v16402_v36  ;;  %v16407_v11 = vld [vmem:[#allocation69_spill] sm:$0xff]  ;;  %v16408_v38 = vld [vmem:[#allocation140_spill] sm:$0xff] }
 0xe31   : > { %16396 = vst [vmem:[#allocation42_spill] sm:$0xff] %v12449_v43  ;;  %v12483_v25 = vsel %vm976_vm5, %v16402_v36, %v16403_v33  ;;  %5706 = vrot.lane.b32.xlu0 %v16369_v5, %s15605_s27  ;;  %v3922_v30 = vmul.f32 %v3906_v34, %v16406_v39  ;;  %v3923_v45 = vmul.f32 %v3907_v4, %v16407_v11  ;;  %v5551_v43 = vpop.permute.xlu0 %5550 }
 0xe32   : > { %16404 = vst [vmem:[#allocation107_spill] sm:$0xff] %v12477_v44  ;;  %v3902_v52 = vmul.f32 %v16408_v38, %v3853_v21  ;;  %v3903_v62 = vmul.f32 %v16408_v38, %v3861_v60  ;;  %v3912_v44 = vmul.f32 %v16409_v55, %v3858_v20  ;;  %v3913_v48 = vmul.f32 %v16409_v55, %v3866_v59  ;;  %v16412_v20 = vld [vmem:[#allocation145_spill] sm:$0xff]  ;;  %v16413_v55 = vld [vmem:[#allocation120_spill] sm:$0xff]  ;;  %v16421_v38 = vld [vmem:[#allocation154_spill] sm:$0xff] }
 0xe33   : > { %16405 = vst [vmem:[#allocation109_spill] sm:$0xff] %v12483_v25  ;;  %v12495_v33 = vsel %vm976_vm5, %v5551_v43, %v5567_v6  ;;  %v12499_v36 = vsel %vm976_vm5, %v5567_v6, %v5551_v43  ;;  %v3810_v34 = vadd.f32 %v3794_v7, %v11774_v40  ;;  %v3811_v4 = vadd.f32 %v3795_v47, %v11776_v51  ;;  %v16414_v43 = vld [vmem:[#allocation131_spill] sm:$0xff]  ;;  %v16415_v40 = vld [vmem:[#allocation133_spill] sm:$0xff]  ;;  %v16418_v47 = vld [vmem:[#allocation230_spill] sm:$0xff] }
 0xe34   : > { %v12504_v21 = vmul.f32 %v3782_v10, %v16326_v49  ;;  %v12507_v60 = vmul.f32 %v3783_v63, %v16327_v32  ;;  %v3856_v59 = vsel %vm976_vm5, %v16413_v55, %v16412_v20  ;;  %v3864_v6 = vsel %vm976_vm5, %v16412_v20, %v16413_v55  ;;  %5702 = vrot.lane.b32.xlu2 %v16418_v47, %s15605_s27  ;;  %v16429_v25 = vld [vmem:[#allocation168_spill] sm:$0xff] }
 0xe35   : > { %v12521_v51 = vsel %vm976_vm5, %v16415_v40, %v16414_v43  ;;  %v12527_v7 = vsel %vm976_vm5, %v16414_v43, %v16415_v40  ;;  %v12532_v10 = vmul.f32 %v3902_v52, %v16406_v39  ;;  %v12535_v63 = vmul.f32 %v3903_v62, %v16407_v11  ;;  %v16424_v62 = vld [vmem:[#allocation141_spill] sm:$0xff] }
 0xe36   : > { %16410 = vst [vmem:[#allocation111_spill] sm:$0xff] %v12504_v21  ;;  %v3908_v20 = vmul.f32 %v16421_v38, %v3856_v59  ;;  %v3909_v55 = vmul.f32 %v16421_v38, %v3864_v6  ;;  %5818 = vrot.lane.b32.xlu1 %v16367_v16, %s15610_s26  ;;  %v12543_v43 = vadd.f32 %v3923_v45, %v3811_v4  ;;  %v16426_v45 = vld [vmem:[#allocation148_spill] sm:$0xff]  ;;  %v5579_v4 = vpop.permute.xlu1 %5578  ;;  %v16428_v6 = vld [vmem:[#allocation151_spill] sm:$0xff] }
 0xe37   : > { %16411 = vst [vmem:[#allocation101_spill] sm:$0xff] %v12507_v60  ;;  %v12546_v40 = vmul.f32 %v3912_v44, %v16406_v39  ;;  %v12549_v52 = vmul.f32 %v3913_v48, %v16407_v11  ;;  %v3904_v38 = vmul.f32 %v16428_v6, %v3854_v24  ;;  %v16433_v60 = vld [vmem:[#allocation166_spill] sm:$0xff]  ;;  %v16434_v21 = vld [vmem:[#allocation132_spill] sm:$0xff] }
 0xe38   : > { %16416 = vst [vmem:[#allocation110_spill] sm:$0xff] %v12521_v51  ;;  %v12541_v51 = vadd.f32 %v3922_v30, %v3810_v34  ;;  %v16427_v34 = vld [vmem:[#allocation129_spill] sm:$0xff]  ;;  %v3980_v13 = vsel %vm1046_vm6, %v16434_v21, %v16433_v60 }
 0xe39   : > { %16417 = vst [vmem:[#allocation112_spill] sm:$0xff] %v12527_v7  ;;  %v12551_v7 = vpop.permute.xlu2 %5558  ;;  %v3859_v44 = vsel %vm976_vm5, %v16427_v34, %v16426_v45  ;;  %v3867_v48 = vsel %vm976_vm5, %v16426_v45, %v16427_v34  ;;  %v16431_v45 = vld [vmem:[#allocation144_spill] sm:$0xff] }
 0xe3a   : > { %16419 = vst [vmem:[#allocation260_spill] sm:$0xff] %v12532_v10  ;;  %v3905_v10 = vmul.f32 %v16428_v6, %v3862_v1  ;;  %v16432_v34 = vld [vmem:[#allocation152_spill] sm:$0xff]  ;;  %v3924_v1 = vmul.f32 %v3908_v20, %v16406_v39  ;;  %v3925_v6 = vmul.f32 %v3909_v55, %v16407_v11 }
 0xe3b   : > { %16420 = vst [vmem:[#allocation261_spill] sm:$0xff] %v12535_v63  ;;  %v16425_v63 = vld [vmem:[#allocation149_spill] sm:$0xff]  ;;  %v3984_v24 = vsel %vm1046_vm6, %v16432_v34, %v16431_v45  ;;  %v3992_v55 = vsel %vm1046_vm6, %v16431_v45, %v16432_v34 }
 0xe3c   : > { %16422 = vst [vmem:[#allocation281_spill] sm:$0xff] %v12546_v40  ;;  %v3981_v59 = vsel %vm1046_vm6, %v16425_v63, %v16424_v62  ;;  %v3989_v30 = vsel %vm1046_vm6, %v16424_v62, %v16425_v63  ;;  %v6754_v40 = vld [vmem:[%s14757_s12 + $0x48] sm:$0xff]  ;;  %v3941_v45 = vadd.f32 %v3925_v6, %v12387_v46  ;;  %v16451_v46 = vld [vmem:[#allocation35_spill] sm:$0xff] }
 0xe3d   : > { %16423 = vst [vmem:[#allocation288_spill] sm:$0xff] %v12549_v52  ;;  %v16430_v52 = vld [vmem:[#allocation135_spill] sm:$0xff]  ;;  %5731 = vperm.xlu0 %6621, %v6754_v40   ;;  %v3988_v40 = vsel %vm1046_vm6, %v16433_v60, %v16434_v21  ;;  %v12613_v21 = vmul.f32 %v3904_v38, %v16406_v39  ;;  %v12616_v60 = vmul.f32 %v3905_v10, %v16407_v11 }
 0xe3e   : > { %v3983_v63 = vsel %vm1046_vm6, %v16430_v52, %v16429_v25  ;;  %v3991_v62 = vsel %vm1046_vm6, %v16429_v25, %v16430_v52  ;;  %v5557_v25 = vpop.permute.xlu0 %5556  ;;  %v16435_v52 = vld [vmem:[#allocation157_spill] sm:$0xff]  ;;  %v4029_v10 = vmul.f32 %v16439_v50, %v3988_v40  ;;  %5824 = vrot.lane.b32.xlu1 %v11080_v53, %s15610_s26 }
 0xe3f   : > { %v3914_v5 = vmul.f32 %v16435_v52, %v3859_v44  ;;  %v12599_v42 = vsel %vm976_vm5, %v5557_v25, %v5573_v37  ;;  %v12603_v20 = vsel %vm976_vm5, %v5573_v37, %v5557_v25  ;;  %v3915_v44 = vmul.f32 %v16435_v52, %v3867_v48  ;;  %16437 = vst [vmem:[#allocation268_spill] sm:$0xff] %v12613_v21  ;;  %v16440_v25 = vld [vmem:[#allocation233_spill] sm:$0xff] }
 0xe40   : > { %v4034_v9 = vmul.f32 %v16436_v17, %v3983_v63  ;;  %v4035_v3 = vmul.f32 %v16436_v17, %v3991_v62  ;;  %16438 = vst [vmem:[#allocation283_spill] sm:$0xff] %v12616_v60  ;;  %v4028_v37 = vmul.f32 %v16439_v50, %v3980_v13  ;;  %5708 = vrot.lane.b32.xlu2 %v16440_v25, %s15605_s27  ;;  %v16444_v17 = vld [vmem:[#allocation161_spill] sm:$0xff]  ;;  %v16445_v62 = vld [vmem:[#allocation163_spill] sm:$0xff]  ;;  %v16448_v50 = vld [vmem:[#allocation170_spill] sm:$0xff] }
 0xe41   : > { %v12625_v48 = vsel %vm1046_vm6, %v16442_v54, %v16441_v61  ;;  %v3940_v63 = vadd.f32 %v3924_v1, %v12384_v2  ;;  %v3985_v38 = vsel %vm1046_vm6, %v16445_v62, %v16444_v17  ;;  %v12639_v13 = vsel %vm1046_vm6, %v16441_v61, %v16442_v54  ;;  %v12650_v52 = vpop.permute.xlu2 %5564  ;;  %v16450_v54 = vld [vmem:[#allocation29_spill] sm:$0xff] }
 0xe42   : > { %16443 = vst [vmem:[#allocation284_spill] sm:$0xff] %v12625_v48  ;;  %v12643_v2 = vmul.f32 %v3914_v5, %v16406_v39  ;;  %v3993_v34 = vsel %vm1046_vm6, %v16444_v17, %v16445_v62  ;;  %v4038_v1 = vmul.f32 %v16448_v50, %v3985_v38  ;;  %v12653_v40 = vmul.f32 %v3915_v44, %v16407_v11  ;;  %v5604_v5 = vpop.permute.xlu1 %5603  ;;  %v6755_v17 = vld [vmem:[%s14757_s12 + $0x70] sm:$0xff]  ;;  %v16454_v62 = vld [vmem:[#allocation158_spill] sm:$0xff]  ;;  %v16455_v44 = vld [vmem:[#allocation160_spill] sm:$0xff] }
 0xe43   : > { %16446 = vst [vmem:[#allocation254_spill] sm:$0xff] %v12639_v13  ;;  %v4039_v61 = vmul.f32 %v16448_v50, %v3993_v34  ;;  %v4050_v60 = vmul.f32 %v4034_v9, %v16450_v54  ;;  %v4051_v6 = vmul.f32 %v4035_v3, %v16451_v46  ;;  %v12659_v21 = vmul.f32 %v4028_v37, %v16450_v54  ;;  %v16460_v37 = vld [vmem:[#allocation178_spill] sm:$0xff] }
 0xe44   : > { %16447 = vst [vmem:[#allocation60_spill] sm:$0xff] %v12643_v2  ;;  %v16453_v2 = vld [vmem:[#allocation177_spill] sm:$0xff]  ;;  %v12669_v38 = vsel %vm1046_vm6, %v16455_v44, %v16454_v62  ;;  %v12675_v3 = vsel %vm1046_vm6, %v16454_v62, %v16455_v44  ;;  %v12678_v9 = vmul.f32 %v4029_v10, %v16451_v46  ;;  %v16462_v62 = vld [vmem:[#allocation174_spill] sm:$0xff]  ;;  %v16483_v48 = vmov 0  }
 0xe45   : > { %16449 = vst [vmem:[#allocation255_spill] sm:$0xff] %v12653_v40  ;;  %v4036_v13 = vmul.f32 %v16453_v2, %v3984_v24  ;;  %5751 = vperm.xlu0 %6621, %v6755_v17   ;;  %v16459_v24 = vld [vmem:[#allocation162_spill] sm:$0xff]  ;;  %v4037_v17 = vmul.f32 %v16453_v2, %v3992_v55  ;;  %v4030_v44 = vmul.f32 %v16462_v62, %v3981_v59  ;;  %v16464_v59 = vld [vmem:[#allocation171_spill] sm:$0xff]  ;;  %v16466_v40 = vld [vmem:[#allocation169_spill] sm:$0xff] }
 0xe46   : > { %16452 = vst [vmem:[#allocation256_spill] sm:$0xff] %v12659_v21  ;;  %v4114_v34 = vsel %vm1116_vm7, %v16460_v37, %v16459_v24  ;;  %v4122_v50 = vsel %vm1116_vm7, %v16459_v24, %v16460_v37  ;;  %v5563_v21 = vpop.permute.xlu0 %5562  ;;  %v12705_v24 = vadd.f32 %v4050_v60, %v12541_v51  ;;  %v12708_v55 = vadd.f32 %v4051_v6, %v12543_v43  ;;  %v12721_v51 = vld [vmem:[%s14757_s12 + $0x50] sm:$0xff]  ;;  %v16468_v43 = vld [vmem:[#allocation156_spill] sm:$0xff] }
 0xe47   : > { %16456 = vst [vmem:[#allocation289_spill] sm:$0xff] %v12669_v38  ;;  %v12690_v38 = vmul.f32 %v4038_v1, %v16450_v54  ;;  %v12695_v10 = vsel %vm976_vm5, %v5563_v21, %v5579_v4  ;;  %v4031_v2 = vmul.f32 %v16462_v62, %v3989_v30  ;;  %v16465_v1 = vld [vmem:[#allocation138_spill] sm:$0xff]  ;;  %v16469_v30 = vld [vmem:[#allocation172_spill] sm:$0xff]  ;;  %5830 = vrot.lane.b32.xlu1 %v16418_v47, %s15610_s26  ;;  %v16474_v62 = vld [vmem:[#allocation175_spill] sm:$0xff] }
 0xe48   : > { %16457 = vst [vmem:[#allocation265_spill] sm:$0xff] %v12675_v3  ;;  %v12702_v3 = vmul.f32 %v4039_v61, %v16451_v46  ;;  %v3986_v37 = vsel %vm1046_vm6, %v16465_v1, %v16464_v59  ;;  %5735 = vperm.xlu2 %6623, %v12721_v51   ;;  %v12728_v60 = vsel %vm1116_vm7, %v16469_v30, %v16468_v43  ;;  %v16471_v61 = vld [vmem:[#allocation180_spill] sm:$0xff] }
 0xe49   : > { %16458 = vst [vmem:[#allocation250_spill] sm:$0xff] %v12678_v9  ;;  %v12699_v9 = vsel %vm976_vm5, %v5579_v4, %v5563_v21  ;;  %v4169_v4 = vmul.f32 %v16466_v40, %v4122_v50  ;;  %v4052_v21 = vmul.f32 %v4036_v13, %v16450_v54  ;;  %v4053_v13 = vmul.f32 %v4037_v17, %v16451_v46  ;;  %v16473_v50 = vld [vmem:[#allocation159_spill] sm:$0xff] }
 0xe4a   : > { %16461 = vst [vmem:[#allocation270_spill] sm:$0xff] %v12690_v38  ;;  %v4168_v38 = vmul.f32 %v16466_v40, %v4114_v34  ;;  %v3994_v40 = vsel %vm1046_vm6, %v16464_v59, %v16465_v1  ;;  %v4040_v6 = vmul.f32 %v16471_v61, %v3986_v37  ;;  %v12742_v34 = vsel %vm1116_vm7, %v16468_v43, %v16469_v30  ;;  %v5571_v1 = vpop.permute.xlu2 %5570 }
 0xe4b   : > { %16463 = vst [vmem:[#allocation86_spill] sm:$0xff] %v12702_v3  ;;  %v4111_v3 = vsel %vm1116_vm7, %v16474_v62, %v16473_v50  ;;  %v4119_v17 = vsel %vm1116_vm7, %v16473_v50, %v16474_v62  ;;  %v12753_v59 = vmul.f32 %v4030_v44, %v16450_v54  ;;  %v12756_v37 = vmul.f32 %v4031_v2, %v16451_v46  ;;  %v5616_v50 = vpop.permute.xlu1 %5615  ;;  %v16477_v62 = vld [vmem:[#allocation36_spill] sm:$0xff] }
 0xe4c   : > { %16467 = vst [vmem:[#allocation312_spill] sm:$0xff] %v12721_v51  ;;  %v4041_v43 = vmul.f32 %v16471_v61, %v3994_v40  ;;  %v12762_v30 = vsel %vm976_vm5, %v12260_v8, %v5571_v1  ;;  %v12767_v47 = vsel %vm976_vm5, %v5571_v1, %v12260_v8  ;;  %v12770_v44 = vmul.f32 %v4168_v38, %v16477_v62  ;;  %v16481_v40 = vld [vmem:[#allocation181_spill] sm:$0xff]  ;;  %v16482_v61 = vld [vmem:[#allocation182_spill] sm:$0xff] }
 0xe4d   : > { %16470 = vst [vmem:[#allocation298_spill] sm:$0xff] %v12728_v60  ;;  %v12775_v2 = vadd.f32 %v4052_v21, %v3940_v63  ;;  %6624 = vset.pattern.permute.xlu0 %v16483_v48  ;;  %v12782_v51 = vadd.f32 %v4053_v13, %v3941_v45  ;;  %v12785_v8 = vmul.f32 %v4040_v6, %v16450_v54  ;;  %v16486_v63 = vld [vmem:[#allocation185_spill] sm:$0xff]  ;;  %v16488_v45 = vld [vmem:[#allocation199_spill] sm:$0xff]  ;;  %v16492_v60 = vld [vmem:[#allocation206_spill] sm:$0xff] }
 0xe4e   : > { %16472 = vst [vmem:[#allocation257_spill] sm:$0xff] %v12742_v34  ;;  %v4117_v38 = vsel %vm1116_vm7, %v16481_v40, %v16482_v61  ;;  %5087 = vperm.xlu0 %6624, %v12183_v31   ;;  %v5569_v1 = vpop.permute.xlu0 %5568  ;;  %v4162_v13 = vmul.f32 %v16488_v45, %v4111_v3  ;;  %v4163_v34 = vmul.f32 %v16488_v45, %v4119_v17  ;;  %v16496_v45 = vld [vmem:[#allocation90_spill] sm:$0xff] }
 0xe4f   : > { %16475 = vst [vmem:[#allocation66_spill] sm:$0xff] %v12753_v59  ;;  %v16479_v59 = vld [vmem:[#allocation49_spill] sm:$0xff]  ;;  %v5583_v6 = vsel %vm976_vm5, %v12459_v29, %v5569_v1 }
 0xe50   : > { %16476 = vst [vmem:[#allocation67_spill] sm:$0xff] %v12756_v37  ;;  %v12773_v53 = vmul.f32 %v4169_v4, %v16479_v59  ;;  %v4109_v37 = vsel %vm1116_vm7, %v16482_v61, %v16481_v40  ;;  %v16485_v4 = vld [vmem:[#allocation184_spill] sm:$0xff]  ;;  %v5591_v40 = vsel %vm976_vm5, %v5569_v1, %v12459_v29  ;;  %v12805_v61 = vmul.f32 %v4041_v43, %v16451_v46 }
 0xe51   : > { %16478 = vst [vmem:[#allocation278_spill] sm:$0xff] %v12770_v44  ;;  %v4112_v21 = vsel %vm1116_vm7, %v16486_v63, %v16485_v4  ;;  %v16490_v44 = vld [vmem:[#allocation165_spill] sm:$0xff]  ;;  %v5632_v31 = vmul.f32 %v5604_v5, %v5583_v6  ;;  %v5633_v54 = vmul.f32 %v5604_v5, %v5591_v40  ;;  %v4120_v3 = vsel %vm1116_vm7, %v16485_v4, %v16486_v63  ;;  %v16493_v29 = vld [vmem:[#allocation208_spill] sm:$0xff] }
 0xe52   : > { %16480 = vst [vmem:[#allocation279_spill] sm:$0xff] %v12773_v53  ;;  %v16487_v53 = vld [vmem:[#allocation192_spill] sm:$0xff]  ;;  %v4239_v43 = vsel %vm1186_vm8, %v16493_v29, %v16492_v60  ;;  %v16497_v6 = vld [vmem:[#allocation197_spill] sm:$0xff] }
 0xe53   : > { %16484 = vst [vmem:[#allocation273_spill] sm:$0xff] %v12785_v8  ;;  %v4164_v48 = vmul.f32 %v16487_v53, %v4112_v21  ;;  %v12808_v8 = vmul.f32 %v16490_v44, %v4109_v37  ;;  %v12811_v21 = vmul.f32 %v16490_v44, %v4117_v38  ;;  %v12825_v37 = vld [vmem:[%s14757_s12 + $0x60] sm:$0xff]  ;;  %v4165_v5 = vmul.f32 %v16487_v53, %v4120_v3  ;;  %v16495_v44 = vld [vmem:[#allocation214_spill] sm:$0xff]  ;;  %v12835_v63 = vld [vmem:[%s14757_s12 + $0x78] sm:$0xff] }
 0xe54   : > { %16489 = vst [vmem:[#allocation285_spill] sm:$0xff] %v12805_v61  ;;  %5743 = vperm.xlu2 %6623, %v12825_v37   ;;  %v4290_v38 = vmul.f32 %v16495_v44, %v4239_v43  ;;  %v5648_v4 = vmul.f32 %v5632_v31, %v16406_v39  ;;  %v5649_v17 = vmul.f32 %v5633_v54, %v16407_v11  ;;  %v16498_v53 = vld [vmem:[#allocation15_spill] sm:$0xff]  ;;  %v5577_v31 = vpop.permute.xlu2 %5576  ;;  %v16503_v61 = vld [vmem:[#allocation258_spill] sm:$0xff] }
 0xe55   : > { %16491 = vst [vmem:[#allocation308_spill] sm:$0xff] %v12811_v21  ;;  %5883 = vperm.xlu1 %6625, %v12835_v63   ;;  %v12839_v1 = vmul.f32 %v4164_v48, %v16477_v62  ;;  %v12843_v40 = vmul.f32 %v16497_v6, %v16496_v45  ;;  %v12847_v3 = vmul.f32 %v16497_v6, %v16498_v53  ;;  %v5624_v6 = vpop.permute.xlu1 %5623  ;;  %v16501_v53 = vld [vmem:[#allocation62_spill] sm:$0xff]  ;;  %v16507_v21 = vld [vmem:[#allocation287_spill] sm:$0xff] }
 0xe56   : > { %16494 = vst [vmem:[#allocation293_spill] sm:$0xff] %v12825_v37  ;;  %v4178_v54 = vmul.f32 %v4162_v13, %v16477_v62  ;;  %v12851_v43 = vadd.f32 %v5648_v4, %v12288_v35  ;;  %v12854_v37 = vadd.f32 %v5649_v17, %v12290_v57  ;;  %v12859_v48 = vsel %vm976_vm5, %v12319_v27, %v5577_v31 }
 0xe57   : > { %v12864_v45 = vsel %vm976_vm5, %v5577_v31, %v12319_v27  ;;  %v4179_v13 = vmul.f32 %v4163_v34, %v16479_v59  ;;  %v4247_v35 = vsel %vm1186_vm8, %v16492_v60, %v16493_v29  ;;  %v5642_v57 = vmul.f32 %v5624_v6, %v12695_v10  ;;  %5107 = vperm.xlu0 %6624, %v12173_v26   ;;  %v5575_v60 = vpop.permute.xlu0 %5574 }
 0xe58   : > { %16499 = vst [vmem:[#allocation61_spill] sm:$0xff] %v12851_v43  ;;  %v5643_v4 = vmul.f32 %v5624_v6, %v12699_v9  ;;  %v4291_v17 = vmul.f32 %v16495_v44, %v4247_v35  ;;  %v16502_v43 = vld [vmem:[#allocation264_spill] sm:$0xff]  ;;  %v5586_v29 = vsel %vm976_vm5, %v12551_v7, %v5575_v60  ;;  %v5594_v44 = vsel %vm976_vm5, %v5575_v60, %v12551_v7  ;;  %v16504_v6 = vld [vmem:[#allocation263_spill] sm:$0xff] }
 0xe59   : > { %16500 = vst [vmem:[#allocation311_spill] sm:$0xff] %v12854_v37  ;;  %v4306_v37 = vmul.f32 %v4290_v38, %v16501_v53  ;;  %v5072_v27 = vsel %vm696_vm1, %v16503_v61, %v16502_v43  ;;  %v5080_v34 = vsel %vm696_vm1, %v16502_v43, %v16503_v61  ;;  %v5658_v10 = vmul.f32 %v5642_v57, %v16406_v39  ;;  %v16508_v7 = vld [vmem:[#allocation271_spill] sm:$0xff] }
 0xe5a   : > { %v5659_v9 = vmul.f32 %v5643_v4, %v16407_v11  ;;  %v4181_v38 = vmul.f32 %v4165_v5, %v16479_v59  ;;  %v4194_v31 = vadd.f32 %v4178_v54, %v12705_v24  ;;  %v5638_v61 = vmul.f32 %v5616_v50, %v5586_v29 }
 0xe5b   : > { %v5639_v43 = vmul.f32 %v5616_v50, %v5594_v44  ;;  %v5122_v35 = vmul.f32 %v16504_v6, %v5080_v34  ;;  %v5123_v57 = vmul.f32 %v16504_v6, %v5072_v27  ;;  %v12897_v4 = vadd.f32 %v5658_v10, %v12413_v22  ;;  %v16510_v27 = vld [vmem:[#allocation216_spill] sm:$0xff] }
 0xe5c   : > { %v12900_v46 = vadd.f32 %v5659_v9, %v12415_v12  ;;  %5755 = vperm.xlu2 %6623, %v12835_v63   ;;  %v5200_v5 = vsel %vm766_vm2, %v16508_v7, %v16507_v21  ;;  %v5208_v24 = vsel %vm766_vm2, %v16507_v21, %v16508_v7  ;;  %v5654_v50 = vmul.f32 %v5638_v61, %v16406_v39  ;;  %v16509_v12 = vld [vmem:[#allocation48_spill] sm:$0xff]  ;;  %v5600_v29 = vpop.permute.xlu2 %5599 }
 0xe5d   : > { %16505 = vst [vmem:[#allocation280_spill] sm:$0xff] %v12897_v4  ;;  %v5655_v22 = vmul.f32 %v5639_v43, %v16407_v11  ;;  %5964 = vrot.lane.b32.xlu1 %v16440_v25, %s15613_s29  ;;  %v4307_v54 = vmul.f32 %v4291_v17, %v16509_v12  ;;  %v16511_v34 = vld [vmem:[#allocation176_spill] sm:$0xff]  ;;  %v4195_v10 = vadd.f32 %v4179_v13, %v12708_v55  ;;  %v12933_v6 = vpop.permute.xlu1 %5680 }
 0xe5e   : > { %16506 = vst [vmem:[#allocation272_spill] sm:$0xff] %v12900_v46  ;;  %v4240_v60 = vsel %vm1186_vm8, %v16511_v34, %v16510_v27  ;;  %v4322_v9 = vadd.f32 %v4306_v37, %v4194_v31  ;;  %v12922_v21 = vadd.f32 %v5654_v50, %v12166_v14  ;;  %v16513_v44 = vld [vmem:[#allocation96_spill] sm:$0xff]  ;;  %v12928_v43 = vmul.f32 %v5600_v29, %v12495_v33  ;;  %v16517_v37 = vld [vmem:[#allocation222_spill] sm:$0xff] }
 0xe5f   : > { %v12925_v61 = vadd.f32 %v5655_v22, %v16513_v44  ;;  %v12931_v17 = vmul.f32 %v5600_v29, %v12499_v36  ;;  %v4248_v55 = vsel %vm1186_vm8, %v16510_v27, %v16511_v34  ;;  %v16518_v14 = vld [vmem:[#allocation286_spill] sm:$0xff]  ;;  %v5138_v33 = vmul.f32 %v5122_v35, %v7454_v15  ;;  %v16519_v36 = vld [vmem:[#allocation301_spill] sm:$0xff]  ;;  %v16520_v22 = vld [vmem:[#allocation299_spill] sm:$0xff] }
 0xe60   : > { %16512 = vst [vmem:[#allocation295_spill] sm:$0xff] %v12922_v21  ;;  %v12940_v13 = vadd.f32 %v16517_v37, %v4322_v9  ;;  %v5250_v31 = vmul.f32 %v16518_v14, %v5208_v24  ;;  %v5251_v7 = vmul.f32 %v16518_v14, %v5200_v5  ;;  %v5139_v50 = vmul.f32 %v5123_v57, %v16185_v18  ;;  %v16521_v34 = vld [vmem:[#allocation226_spill] sm:$0xff]  ;;  %v5581_v24 = vpop.permute.xlu0 %5580  ;;  %v16522_v9 = vld [vmem:[#allocation317_spill] sm:$0xff] }
 0xe61   : > { %16514 = vst [vmem:[#allocation307_spill] sm:$0xff] %v12925_v61  ;;  %v5328_v29 = vsel %vm836_vm3, %v16520_v22, %v16519_v36  ;;  %v5336_v27 = vsel %vm836_vm3, %v16519_v36, %v16520_v22  ;;  %5808 = vrot.lane.b32.xlu0 %v16521_v34, %s15610_s26  ;;  %v12961_v57 = vsel %vm976_vm5, %v12650_v52, %v5581_v24  ;;  %v16523_v36 = vld [vmem:[#allocation223_spill] sm:$0xff]  ;;  %v16533_v61 = vld [vmem:[#allocation17_spill] sm:$0xff] }
 0xe62   : > { %16515 = vst [vmem:[#allocation303_spill] sm:$0xff] %v12928_v43  ;;  %v5378_v5 = vmul.f32 %v16522_v9, %v5336_v27  ;;  %v5379_v35 = vmul.f32 %v16522_v9, %v5328_v29  ;;  %v12966_v44 = vsel %vm976_vm5, %v5581_v24, %v12650_v52  ;;  %v4323_v14 = vadd.f32 %v4307_v54, %v4195_v10  ;;  %v16524_v29 = vld [vmem:[#allocation249_spill] sm:$0xff]  ;;  %v16526_v52 = vld [vmem:[#allocation39_spill] sm:$0xff] }
 0xe63   : > { %16516 = vst [vmem:[#allocation309_spill] sm:$0xff] %v12931_v17  ;;  %v4292_v22 = vmul.f32 %v16523_v36, %v4240_v60  ;;  %v4293_v34 = vmul.f32 %v16523_v36, %v4248_v55  ;;  %v4196_v27 = vadd.f32 %v12839_v1, %v12775_v2  ;;  %v5026_v9 = vmul.f32 %v16524_v29, %v16337_v23  ;;  %v16525_v17 = vld [vmem:[#allocation236_spill] sm:$0xff]  ;;  %v16527_v54 = vld [vmem:[#allocation201_spill] sm:$0xff] }
 0xe64   : > { %v5027_v43 = vmul.f32 %v16524_v29, %v16525_v17  ;;  %v5266_v46 = vmul.f32 %v5250_v31, %v16219_v28  ;;  %v5267_v4 = vmul.f32 %v5251_v7, %v16221_v41  ;;  %5810 = vrot.lane.b32.xlu2 %v16337_v23, %s15610_s26  ;;  %v3400_v60 = vmul.f32 %v16527_v54, %v16526_v52  ;;  %v5612_v29 = vpop.permute.xlu2 %5611 }
 0xe65   : > { %v12983_v10 = vadd.f32 %v16517_v37, %v4323_v14  ;;  %v12986_v2 = vmul.f32 0.70710677, %v12940_v13  ;;  %v4197_v1 = vadd.f32 %v4181_v38, %v12782_v51  ;;  %5946 = vrot.lane.b32.xlu1 %v16367_v16, %s15613_s29  ;;  %v16528_v55 = vmov 8   ;;  %v12998_v38 = vpop.permute.xlu1 %5686 }
 0xe66   : > { %6626 = vset.pattern.permute.xlu2 %v16528_v55  ;;  %v5154_v31 = vadd.f32 %v5138_v33, %v5026_v9  ;;  %v5155_v7 = vadd.f32 %v5139_v50, %v5027_v43  ;;  %v5394_v24 = vmul.f32 %v5378_v5, %v16208_v58  ;;  %v5395_v36 = vmul.f32 %v5379_v35, %v16210_v56  ;;  %v16529_v33 = vld [vmem:[#allocation95_spill] sm:$0xff]  ;;  %v16530_v50 = vld [vmem:[#allocation53_spill] sm:$0xff] }
 0xe67   : > { %v4308_v37 = vmul.f32 %v4292_v22, %v16501_v53  ;;  %v4309_v14 = vmul.f32 %v4293_v34, %v16509_v12  ;;  %v5636_v52 = vmul.f32 %v5612_v29, %v12599_v42  ;;  %v5637_v51 = vmul.f32 %v5612_v29, %v12603_v20  ;;  %v16531_v34 = vld [vmem:[#allocation229_spill] sm:$0xff] }
 0xe68   : > { %v5282_v16 = vadd.f32 %v5266_v46, %v5154_v31  ;;  %v5283_v23 = vadd.f32 %v5267_v4, %v5155_v7  ;;  %v5522_v43 = vmul.f32 %v16529_v33, %v16326_v49  ;;  %v5523_v5 = vmul.f32 %v16530_v50, %v16327_v32  ;;  %v5608_v46 = vpop.permute.xlu0 %5607 }
 0xe69   : > { %v13005_v35 = vmul.f32 0.70710677, %v12983_v10  ;;  %v13008_v22 = vand.u32 2147483647, %v12986_v2  ;;  %v5652_v42 = vmul.f32 %v5636_v52, %v16406_v39  ;;  %v5653_v20 = vmul.f32 %v5637_v51, %v16407_v11  ;;  %5814 = vrot.lane.b32.xlu0 %v16531_v34, %s15610_s26 }
 0xe6a   : > { %v5410_v4 = vadd.f32 %v5394_v24, %v5282_v16  ;;  %v5411_v9 = vadd.f32 %v5395_v36, %v5283_v23  ;;  %v5634_v31 = vmul.f32 %v5608_v46, %v12762_v30  ;;  %v5635_v7 = vmul.f32 %v5608_v46, %v12767_v47  ;;  %v16535_v23 = vld [vmem:[#allocation237_spill] sm:$0xff]  ;;  %v16536_v30 = vld [vmem:[#allocation40_spill] sm:$0xff]  ;;  %v16538_v24 = vld [vmem:[#allocation191_spill] sm:$0xff] }
 0xe6b   : > { %v4324_v29 = vadd.f32 %v4308_v37, %v4196_v27  ;;  %v4325_v33 = vadd.f32 %v4309_v14, %v4197_v1  ;;  %v13017_v50 = vadd.f32 %v5652_v42, %v12340_v0  ;;  %v13020_v21 = vadd.f32 %v5653_v20, %v16533_v61  ;;  %v16537_v1 = vld [vmem:[#allocation231_spill] sm:$0xff]  ;;  %v16539_v36 = vld [vmem:[#allocation150_spill] sm:$0xff] }
 0xe6c   : > { %v5538_v52 = vadd.f32 %v5522_v43, %v5410_v4  ;;  %v5539_v51 = vadd.f32 %v5523_v5, %v5411_v9  ;;  %v5650_v56 = vmul.f32 %v5634_v31, %v16406_v39  ;;  %v5651_v58 = vmul.f32 %v5635_v7, %v16407_v11  ;;  %5816 = vrot.lane.b32.xlu2 %v16535_v23, %s15610_s26  ;;  %v5620_v43 = vpop.permute.xlu2 %5619 }
 0xe6d   : > { %16532 = vst [vmem:[#allocation244_spill] sm:$0xff] %v13017_v50  ;;  %v3401_v47 = vmul.f32 %v16527_v54, %v16536_v30  ;;  %v13029_v27 = vand.u32 2147483647, %v13005_v35  ;;  %v4474_v0 = vmul.f32 0.3275911, %v13008_v22  ;;  %v13033_v61 = vadd.f32 %v16537_v1, %v4324_v29  ;;  %5875 = vperm.xlu1 %6625, %v12173_v26   ;;  %v13057_v4 = vpop.permute.xlu1 %5692  ;;  %v16612_v50 = vld [vmem:[#allocation209_spill] sm:$0xff] }
 0xe6e   : > { %16534 = vst [vmem:[#allocation267_spill] sm:$0xff] %v13020_v21  ;;  %v4110_v37 = vsel %vm1116_vm7, %v16539_v36, %v16538_v24  ;;  %v13041_v14 = vadd.f32 %v16537_v1, %v4325_v33  ;;  %v13043_v16 = vadd.f32 %v5650_v56, %v5538_v52  ;;  %v13045_v54 = vadd.f32 %v5651_v58, %v5539_v51  ;;  %v16546_v58 = vld [vmem:[#allocation308_spill] sm:$0xff]  ;;  %v16550_v33 = vld [vmem:[#allocation189_spill] sm:$0xff] }
 0xe6f   : > { %v3406_v5 = vmul.f32 %v12843_v40, %v7454_v15  ;;  %v3407_v42 = vmul.f32 %v12847_v3, %v16185_v18  ;;  %v13052_v20 = vmul.f32 %v5620_v43, %v12859_v48  ;;  %v13055_v46 = vmul.f32 %v5620_v43, %v12864_v45  ;;  %v16553_v1 = vld [vmem:[#allocation188_spill] sm:$0xff] }
 0xe70   : > { %16540 = vst [vmem:[#allocation252_spill] sm:$0xff] %v13041_v14  ;;  %v13061_v56 = vmul.f32 %v12808_v8, %v16477_v62  ;;  %v13065_v9 = vmul.f32 %v16546_v58, %v16479_v59  ;;  %v4118_v40 = vsel %vm1116_vm7, %v16538_v24, %v16539_v36  ;;  %v3416_v3 = vmul.f32 %v3400_v60, %v7454_v15  ;;  %v16549_v8 = vld [vmem:[#allocation232_spill] sm:$0xff]  ;;  %v5628_v29 = vpop.permute.xlu0 %5627  ;;  %v16554_v36 = vld [vmem:[#allocation315_spill] sm:$0xff] }
 0xe71   : > { %16541 = vst [vmem:[#allocation276_spill] sm:$0xff] %v13043_v16  ;;  %v3417_v48 = vmul.f32 %v3401_v47, %v16185_v18  ;;  %v4475_v45 = vmul.f32 0.3275911, %v13029_v27  ;;  %v4490_v31 = vadd.f32 1.0, %v4474_v0  ;;  %v13075_v7 = vmul.f32 0.70710677, %v13033_v61  ;;  %5820 = vrot.lane.b32.xlu0 %v16549_v8, %s15610_s26 }
 0xe72   : > { %16542 = vst [vmem:[#allocation282_spill] sm:$0xff] %v13045_v54  ;;  %v4160_v52 = vmul.f32 %v16550_v33, %v4110_v37  ;;  %v13081_v51 = vmul.f32 0.70710677, %v13041_v14  ;;  %v5644_v30 = vmul.f32 %v5628_v29, %v12961_v57  ;;  %v5645_v60 = vmul.f32 %v5628_v29, %v12966_v44  ;;  %v16552_v47 = vld [vmem:[#allocation186_spill] sm:$0xff]  ;;  %v16555_v58 = vld [vmem:[#allocation316_spill] sm:$0xff]  ;;  %v16558_v18 = vld [vmem:[#allocation75_spill] sm:$0xff] }
 0xe73   : > { %16543 = vst [vmem:[#allocation275_spill] sm:$0xff] %v13052_v20  ;;  %v4115_v0 = vsel %vm1116_vm7, %v16553_v1, %v16552_v47  ;;  %v4161_v24 = vmul.f32 %v16550_v33, %v4118_v40  ;;  %v3422_v43 = vadd.f32 %v3406_v5, %v16554_v36  ;;  %v4123_v37 = vsel %vm1116_vm7, %v16552_v47, %v16553_v1  ;;  %v16556_v14 = vld [vmem:[#allocation44_spill] sm:$0xff]  ;;  %v16557_v20 = vld [vmem:[#allocation239_spill] sm:$0xff]  ;;  %v16608_v16 = vld [vmem:[#allocation73_spill] sm:$0xff] }
 0xe74   : > { %16544 = vst [vmem:[#allocation118_spill] sm:$0xff] %v13055_v46  ;;  %v3423_v46 = vadd.f32 %v3407_v42, %v16555_v58  ;;  %v3432_v57 = vadd.f32 %v3416_v3, %v16556_v14  ;;  %v5660_v44 = vmul.f32 %v5644_v30, %v16406_v39  ;;  %v5661_v29 = vmul.f32 %v5645_v60, %v16407_v11  ;;  %v16559_v42 = vld [vmem:[#allocation238_spill] sm:$0xff]  ;;  %v16561_v3 = vld [vmem:[#allocation100_spill] sm:$0xff]  ;;  %v16563_v60 = vld [vmem:[#allocation97_spill] sm:$0xff] }
 0xe75   : > { %16545 = vst [vmem:[#allocation99_spill] sm:$0xff] %v13061_v56  ;;  %5822 = vrot.lane.b32.xlu2 %v16557_v20, %s15610_s26  ;;  %v3433_v40 = vadd.f32 %v3417_v48, %v16558_v18  ;;  %v4491_v33 = vadd.f32 1.0, %v4475_v45  ;;  %6671 = vrcp.f32 %v4490_v31  ;;  %v13103_v5 = vand.u32 2147483647, %v13075_v7  ;;  %5960 = vrot.lane.b32.xlu1 %v16559_v42, %s15613_s29  ;;  %v13119_v18 = vpop.permute.xlu2 %5678  ;;  %v16566_v45 = vld [vmem:[#allocation87_spill] sm:$0xff] }
 0xe76   : > { %16547 = vst [vmem:[#allocation291_spill] sm:$0xff] %v13065_v9  ;;  %v13108_v47 = vmul.f32 %v4160_v52, %v16477_v62  ;;  %v13111_v14 = vand.u32 2147483647, %v13081_v51  ;;  %v13114_v30 = vadd.f32 %v5660_v44, %v16561_v3  ;;  %v13117_v1 = vadd.f32 %v5661_v29, %v16563_v60  ;;  %6628 = vset.pattern.permute.xlu1 %v16528_v55  ;;  %v16567_v52 = vld [vmem:[#allocation16_spill] sm:$0xff]  ;;  %v16568_v58 = vld [vmem:[#allocation195_spill] sm:$0xff] }
 0xe77   : > { %16548 = vst [vmem:[#allocation119_spill] sm:$0xff] %v13075_v7  ;;  %v13123_v48 = vmul.f32 %v4161_v24, %v16479_v59  ;;  %v3550_v31 = vadd.f32 %v16566_v45, %v3422_v43  ;;  %v3551_v36 = vadd.f32 %v16567_v52, %v3423_v46  ;;  %v4171_v44 = vmul.f32 %v16568_v58, %v4123_v37  ;;  %v16569_v3 = vld [vmem:[#allocation80_spill] sm:$0xff]  ;;  %v16570_v60 = vld [vmem:[#allocation187_spill] sm:$0xff]  ;;  %v16572_v43 = vld [vmem:[#allocation13_spill] sm:$0xff] }
 0xe78   : > { %16551 = vst [vmem:[#allocation116_spill] sm:$0xff] %v13081_v51  ;;  %v13128_v51 = vpop.permute.xlu1 %5698  ;;  %v3560_v29 = vadd.f32 %v16569_v3, %v3432_v57  ;;  %v16571_v7 = vld [vmem:[#allocation200_spill] sm:$0xff]  ;;  %v3561_v46 = vadd.f32 %v16572_v43, %v3433_v40  ;;  %v16573_v45 = vld [vmem:[#allocation298_spill] sm:$0xff]  ;;  %6673 = vrcp.f32 %v4491_v33  ;;  %v4476_v37 = vmul.f32 0.3275911, %v13103_v5  ;;  %v16577_v40 = vld [vmem:[#allocation257_spill] sm:$0xff]  ;;  %v13157_v43 = vpop.permute.xlu0 %4005 }
 0xe79   : > { %16560 = vst [vmem:[#allocation218_spill] sm:$0xff] %v13108_v47  ;;  %v4170_v47 = vmul.f32 %v16568_v58, %v4115_v0  ;;  %v4241_v15 = vsel %vm1186_vm8, %v16571_v7, %v16570_v60  ;;  %v4249_v24 = vsel %vm1186_vm8, %v16570_v60, %v16571_v7  ;;  %v16574_v0 = vld [vmem:[#allocation196_spill] sm:$0xff]  ;;  %5826 = vrot.lane.b32.xlu0 %v16525_v17, %s15610_s26  ;;  %v16575_v57 = vld [vmem:[#allocation194_spill] sm:$0xff]  ;;  %v16576_v58 = vld [vmem:[#allocation153_spill] sm:$0xff]  ;;  %v4477_v33 = vmul.f32 0.3275911, %v13111_v14 }
 0xe7a   : > { %16562 = vst [vmem:[#allocation248_spill] sm:$0xff] %v13114_v30  ;;  %v4156_v52 = vmul.f32 %v16574_v0, %v16573_v45  ;;  %v4113_v3 = vsel %vm1116_vm7, %v16576_v58, %v16575_v57  ;;  %v4121_v7 = vsel %vm1116_vm7, %v16575_v57, %v16576_v58  ;;  %v4157_v60 = vmul.f32 %v16574_v0, %v16577_v40  ;;  %v16582_v11 = vld [vmem:[#allocation79_spill] sm:$0xff]  ;;  %v16587_v40 = vld [vmem:[#allocation198_spill] sm:$0xff] }
 0xe7b   : > { %16564 = vst [vmem:[#allocation113_spill] sm:$0xff] %v13117_v1  ;;  %v13159_v45 = vpop.eup %6671  ;;  %v16580_v1 = vld [vmem:[#allocation20_spill] sm:$0xff]  ;;  %v13167_v39 = vadd.f32 %v16582_v11, %v3551_v36  ;;  %v13170_v57 = vmul.f32 %v4170_v47, %v16477_v62  ;;  %v13173_v0 = vmul.f32 %v4171_v44, %v16479_v59  ;;  %v16586_v58 = vld [vmem:[#allocation183_spill] sm:$0xff]  ;;  %v16591_v36 = vld [vmem:[#allocation46_spill] sm:$0xff]  ;;  %v16620_v23 = vmov 7  }
 0xe7c   : > { %16565 = vst [vmem:[#allocation115_spill] sm:$0xff] %v13123_v48  ;;  %v16579_v48 = vld [vmem:[#allocation193_spill] sm:$0xff]  ;;  %v13164_v30 = vadd.f32 %v16580_v1, %v3550_v31  ;;  %v16588_v11 = vld [vmem:[#allocation240_spill] sm:$0xff]  ;;  %v13190_v47 = vmul.f32 %v4156_v52, %v16477_v62  ;;  %v4492_v1 = vadd.f32 1.0, %v4476_v37  ;;  %v13196_v44 = vadd.f32 %v16591_v36, %v3561_v46  ;;  %v16599_v37 = vld [vmem:[#allocation63_spill] sm:$0xff] }
 0xe7d   : > { %16578 = vst [vmem:[#allocation313_spill] sm:$0xff] %v13157_v43  ;;  %v4294_v9 = vmul.f32 %v16579_v48, %v4241_v15  ;;  %v4295_v56 = vmul.f32 %v16579_v48, %v4249_v24  ;;  %v13179_v43 = vsel %vm1186_vm8, %v16587_v40, %v16586_v58  ;;  %v13185_v15 = vsel %vm1186_vm8, %v16586_v58, %v16587_v40  ;;  %v16590_v48 = vld [vmem:[#allocation31_spill] sm:$0xff]  ;;  %v16594_v58 = vld [vmem:[#allocation202_spill] sm:$0xff] }
 0xe7e   : > { %16581 = vst [vmem:[#allocation314_spill] sm:$0xff] %v13164_v30  ;;  %5828 = vrot.lane.b32.xlu2 %v16588_v11, %s15610_s26  ;;  %v13193_v31 = vadd.f32 %v16590_v48, %v3560_v29  ;;  %6003 = vperm.xlu1 %6628, %v12173_v26   ;;  %v13200_v24 = vmul.f32 %v4157_v60, %v16479_v59  ;;  %v4522_v52 = vmul.f32 1.0614054, %v13159_v45  ;;  %v16600_v60 = vld [vmem:[#allocation242_spill] sm:$0xff]  ;;  %v16607_v30 = vld [vmem:[#allocation245_spill] sm:$0xff]  ;;  %6675 = vrcp.f32 %v4492_v1 }
 0xe7f   : > { %16583 = vst [vmem:[#allocation114_spill] sm:$0xff] %v13167_v39  ;;  %v4166_v40 = vmul.f32 %v16594_v58, %v4113_v3  ;;  %v13209_v29 = vmul.f32 %v4294_v9, %v16501_v53  ;;  %v13212_v46 = vmul.f32 %v4295_v56, %v16509_v12  ;;  %v4167_v26 = vmul.f32 %v16594_v58, %v4121_v7  ;;  %v16601_v3 = vld [vmem:[#allocation203_spill] sm:$0xff]  ;;  %v16605_v7 = vld [vmem:[#allocation173_spill] sm:$0xff]  ;;  %v16606_v39 = vld [vmem:[#allocation26_spill] sm:$0xff] }
 0xe80   : > { %16584 = vst [vmem:[#allocation104_spill] sm:$0xff] %v13170_v57  ;;  %v13203_v57 = vpop.permute.xlu2 %5684  ;;  %v3296_v48 = vmul.f32 %v16600_v60, %v16599_v37  ;;  %v13217_v36 = vpop.permute.xlu1 %5704  ;;  %v3306_v54 = vmul.f32 %v16607_v30, %v16606_v39  ;;  %v3307_v21 = vmul.f32 %v16607_v30, %v16608_v16  ;;  %v16614_v30 = vld [vmem:[#allocation34_spill] sm:$0xff]  ;;  %vm4426_vm0 = vcmp.ge.f32.partialorder %v12986_v2, 0.0 }
 0xe81   : > { %16585 = vst [vmem:[#allocation122_spill] sm:$0xff] %v13173_v0  ;;  %v4493_v0 = vadd.f32 1.0, %v4477_v33  ;;  %v16602_v33 = vld [vmem:[#allocation205_spill] sm:$0xff]  ;;  %5832 = vrot.lane.b32.xlu0 %v16559_v42, %s15610_s26  ;;  %vm4427_vm4 = vcmp.ge.f32.partialorder %v13005_v35, 0.0 }
 0xe82   : > { %16589 = vst [vmem:[#allocation121_spill] sm:$0xff] %v13190_v47  ;;  %v13206_v47 = vpop.eup %6673  ;;  %v4244_v9 = vsel %vm1186_vm8, %v16601_v3, %v16602_v33  ;;  %v3424_v1 = vadd.f32 %v16614_v30, %v3296_v48  ;;  %v16619_v42 = vld [vmem:[#allocation217_spill] sm:$0xff] }
 0xe83   : > { %16592 = vst [vmem:[#allocation102_spill] sm:$0xff] %v13196_v44  ;;  %6677 = vrcp.f32 %v4493_v0  ;;  %v16613_v44 = vld [vmem:[#allocation210_spill] sm:$0xff] }
 0xe84   : > { %16593 = vst [vmem:[#allocation124_spill] sm:$0xff] %v13200_v24  ;;  %v4236_v24 = vsel %vm1186_vm8, %v16602_v33, %v16601_v3  ;;  %v4523_v3 = vmul.f32 1.0614054, %v13206_v47  ;;  %v4538_v33 = vadd.f32 -1.4531521, %v4522_v52  ;;  %v4242_v16 = vsel %vm1186_vm8, %v16613_v44, %v16612_v50 }
 0xe85   : > { %16595 = vst [vmem:[#allocation127_spill] sm:$0xff] %v13203_v57  ;;  %v4250_v0 = vsel %vm1186_vm8, %v16612_v50, %v16613_v44  ;;  %v4296_v48 = vmul.f32 %v16619_v42, %v4242_v16  ;;  %v13271_v50 = vmul.f32 %v4167_v26, %v16479_v59  ;;  %v16622_v44 = vld [vmem:[#allocation94_spill] sm:$0xff]  ;;  %v16636_v59 = vld [vmem:[#allocation41_spill] sm:$0xff] }
 0xe86   : > { %16596 = vst [vmem:[#allocation134_spill] sm:$0xff] %v13206_v47  ;;  %5836 = vrot.lane.b32.xlu2 %v16440_v25, %s15610_s26  ;;  %v4297_v30 = vmul.f32 %v16619_v42, %v4250_v0  ;;  %6629 = vset.pattern.permute.xlu1 %v16620_v23  ;;  %v13278_v25 = vld [vmem:[%s14757_s12 + $0x58] sm:$0xff]  ;;  %v4554_v42 = vmul.f32 %v13159_v45, %v4538_v33 }
 0xe87   : > { %16597 = vst [vmem:[#allocation136_spill] sm:$0xff] %v13209_v29  ;;  %v16603_v29 = vld [vmem:[#allocation89_spill] sm:$0xff]  ;;  %5867 = vperm.xlu1 %6629, %v13278_v25  }
 0xe88   : > { %16598 = vst [vmem:[#allocation123_spill] sm:$0xff] %v13212_v46  ;;  %v3297_v56 = vmul.f32 %v16600_v60, %v16603_v29  ;;  %v16604_v46 = vld [vmem:[#allocation213_spill] sm:$0xff]  ;;  %v13244_v29 = vmul.f32 %v4166_v40, %v16477_v62  ;;  %v13246_v60 = vpop.permute.xlu0 %4025  ;;  %v16615_v40 = vld [vmem:[#allocation55_spill] sm:$0xff]  ;;  %v13295_v0 = vpop.permute.xlu1 %5727 }
 0xe89   : > { %v4237_v58 = vsel %vm1186_vm8, %v16605_v7, %v16604_v46  ;;  %v4245_v37 = vsel %vm1186_vm8, %v16604_v46, %v16605_v7  ;;  %16610 = vst [vmem:[#allocation143_spill] sm:$0xff] %v13246_v60  ;;  %v16611_v46 = vld [vmem:[#allocation190_spill] sm:$0xff]  ;;  %v16618_v60 = vld [vmem:[#allocation85_spill] sm:$0xff] }
 0xe8a   : > { %16609 = vst [vmem:[#allocation125_spill] sm:$0xff] %v13244_v29  ;;  %v4284_v7 = vmul.f32 %v16611_v46, %v4236_v24  ;;  %v4285_v39 = vmul.f32 %v16611_v46, %v4244_v9  ;;  %v3425_v62 = vadd.f32 %v16615_v40, %v3297_v56  ;;  %v16616_v29 = vld [vmem:[#allocation211_spill] sm:$0xff]  ;;  %v16617_v9 = vld [vmem:[#allocation18_spill] sm:$0xff]  ;;  %v3435_v57 = vadd.f32 %v16618_v60, %v3307_v21  ;;  %v13281_v21 = vpop.permute.xlu2 %5690  ;;  %v16628_v60 = vld [vmem:[#allocation52_spill] sm:$0xff] }
 0xe8b   : > { %v4286_v52 = vmul.f32 %v16616_v29, %v4237_v58  ;;  %v4287_v24 = vmul.f32 %v16616_v29, %v4245_v37  ;;  %v3434_v46 = vadd.f32 %v16617_v9, %v3306_v54  ;;  %16621 = vst [vmem:[#allocation142_spill] sm:$0xff] %v13271_v50  ;;  %v16623_v56 = vld [vmem:[#allocation251_spill] sm:$0xff]  ;;  %v4539_v54 = vadd.f32 -1.4531521, %v4523_v3  ;;  %v13284_v37 = vpop.eup %6675  ;;  %v16631_v9 = vld [vmem:[#allocation32_spill] sm:$0xff] }
 0xe8c   : > { %v3516_v58 = vmul.f32 %v16623_v56, %v16622_v44  ;;  %16624 = vst [vmem:[#allocation117_spill] sm:$0xff] %v13281_v21  ;;  %v13287_v26 = vmul.f32 %v4284_v7, %v16501_v53  ;;  %v13290_v29 = vmul.f32 %v4285_v39, %v16509_v12  ;;  %v13293_v16 = vadd.f32 %v16628_v60, %v3424_v1  ;;  %v13297_v40 = vpop.eup %6677  ;;  %v16635_v7 = vld [vmem:[#allocation21_spill] sm:$0xff]  ;;  %v16638_v1 = vld [vmem:[#allocation71_spill] sm:$0xff] }
 0xe8d   : > { %16625 = vst [vmem:[#allocation130_spill] sm:$0xff] %v13284_v37  ;;  %v13300_v44 = vadd.f32 %v16631_v9, %v3425_v62  ;;  %v13303_v3 = vmul.f32 %v4286_v52, %v16501_v53  ;;  %v13306_v33 = vmul.f32 %v4287_v24, %v16509_v12  ;;  %v3517_v39 = vmul.f32 %v16623_v56, %v16635_v7  ;;  %v16642_v52 = vld [vmem:[#allocation243_spill] sm:$0xff] }
 0xe8e   : > { %16626 = vst [vmem:[#allocation137_spill] sm:$0xff] %v13287_v26  ;;  %v13314_v60 = vadd.f32 %v16638_v1, %v3435_v57  ;;  %v13317_v26 = vmul.f32 %v4296_v48, %v16501_v53  ;;  %v13320_v62 = vmul.f32 %v4297_v30, %v16509_v12  ;;  %5834 = vrot.lane.b32.xlu0 %v16642_v52, %s15610_s26  ;;  %v4666_v24 = vsub.f32 0.0, %v13008_v22  ;;  %v16643_v1 = vld [vmem:[#allocation219_spill] sm:$0xff]  ;;  %s6264_s26 = sshll.u32 %s6261_s24, 4  ;;  %s6265_s26 = int_to_ptr.hbm [resolvable:$true] %s6264_s26 }
 0xe8f   : > { %16627 = vst [vmem:[#allocation139_spill] sm:$0xff] %v13290_v29  ;;  %v13311_v29 = vadd.f32 %v16636_v59, %v3434_v46  ;;  %v3532_v9 = vmul.f32 %v3516_v58, %v16219_v28  ;;  %v4555_v59 = vmul.f32 %v13206_v47, %v4539_v54  ;;  %v4570_v46 = vadd.f32 1.4214138, %v4554_v42  ;;  %v16644_v58 = vld [vmem:[#allocation179_spill] sm:$0xff]  ;;  %v16645_v42 = vld [vmem:[#allocation221_spill] sm:$0xff]  ;;  %5948 = vrot.lane.b32.xlu2 %v16549_v8, %s15613_s29  ;;  %s6779_s30 = sshra.s32 %s6265_s26, 4  ;;  %s6780_s30 = int_to_ptr.hbm [resolvable:$true] %s6779_s30 }
 0xe90   : > { %16629 = vst [vmem:[#allocation126_spill] sm:$0xff] %v13293_v16  ;;  %v5683_v56 = vpop.permute.xlu0 %5682  ;;  %v4524_v30 = vmul.f32 1.0614054, %v13284_v37  ;;  %v4525_v7 = vmul.f32 1.0614054, %v13297_v40  ;;  %v13343_v54 = vsel %vm1186_vm8, %v16644_v58, %v16643_v1  ;;  %v3533_v50 = vmul.f32 %v3517_v39, %v16221_v41  ;;  %v16648_v16 = vld [vmem:[#allocation91_spill] sm:$0xff]  ;;  %6632 = vset.pattern.permute.xlu1 %v16528_v55  ;;  %p6786_p0 = scmp.lt.s32.totalorder %s6780_s30, %s17000_s17 }
 0xe91   : > { %16630 = vst [vmem:[#allocation128_spill] sm:$0xff] %v13297_v40  ;;  %v13330_v57 = vsel %vm1046_vm6, %v5683_v56, %v13128_v51  ;;  %v13335_v48 = vsel %vm1046_vm6, %v13128_v51, %v5683_v56  ;;  %v4251_v51 = vsel %vm1186_vm8, %v16643_v1, %v16644_v58  ;;  %v4667_v56 = vsub.f32 0.0, %v13029_v27  ;;  %s6781_s28 = scalar_lea.hbm %s6780_s30, 64 }
 0xe92   : > { %16632 = vst [vmem:[#allocation140_spill] sm:$0xff] %v13300_v44  ;;  %v5697_v8 = vpop.permute.xlu2 %5696  ;;  %v4571_v21 = vadd.f32 1.4214138, %v4555_v59  ;;  %p6782_p11 = scmp.ne.s32.totalorder %s6780_s30, %s6781_s28  ;;  %p6787_p1 = scmp.lt.s32.totalorder %s6785_s3, %s6781_s28 }
 0xe93   : > { %16633 = vst [vmem:[#allocation146_spill] sm:$0xff] %v13303_v3  ;;  %v4289_v3 = vmul.f32 %v16645_v42, %v13185_v15  ;;  %v4682_v15 = vmul.f32 %v4666_v24, %v13008_v22  ;;  %v13369_v1 = vsel %vm1046_vm6, %v12933_v6, %v5697_v8  ;;  %v13376_v22 = vpop.permute.xlu1 %5739 }
 0xe94   : > { %16634 = vst [vmem:[#allocation145_spill] sm:$0xff] %v13306_v33  ;;  %v4288_v33 = vmul.f32 %v16645_v42, %v13179_v43  ;;  %v16649_v42 = vld [vmem:[#allocation77_spill] sm:$0xff]  ;;  %p6783_p12 = pnand %p6782_p11, %p6971_p5  ;;  %p6788_p2 = por %p6787_p1, %p6786_p0 }
 0xe95   : > { %16637 = vst [vmem:[#allocation120_spill] sm:$0xff] %v13311_v29  ;;  %v3548_v39 = vadd.f32 %v3532_v9, %v16649_v42  ;;  %v4586_v29 = vmul.f32 %v13159_v45, %v4570_v46  ;;  %v13383_v24 = vmul.f32 %v4289_v3, %v16509_v12  ;;  %v16653_v9 = vld [vmem:[#allocation25_spill] sm:$0xff]  ;;  %v4587_v42 = vmul.f32 %v13206_v47, %v4571_v21 }
 0xe96   : > { %16639 = vst [vmem:[#allocation131_spill] sm:$0xff] %v13314_v60  ;;  %v16650_v60 = vld [vmem:[#allocation215_spill] sm:$0xff]  ;;  %v3549_v59 = vadd.f32 %v3533_v50, %v16653_v9  ;;  %5942 = vrot.lane.b32.xlu0 %v16531_v34, %s15613_s29  ;;  %v13404_v34 = vmul.f32 0.5, %v12940_v13  ;;  %v15388_v21 = vmov -1.0   ;;  %p6784_p13 = pneg %p6783_p12 }
 0xe97   : > { %16640 = vst [vmem:[#allocation133_spill] sm:$0xff] %v13317_v26  ;;  %v16647_v26 = vld [vmem:[#allocation253_spill] sm:$0xff]  ;;  %5940 = vrot.lane.b32.xlu1 %v16650_v60, %s15613_s29  ;;  %v4541_v60 = vadd.f32 -1.4531521, %v4525_v7  ;;  %6011 = vperm.xlu2 %6626, %v12835_v63  }
 0xe98   : > { %16641 = vst [vmem:[#allocation154_spill] sm:$0xff] %v13320_v62  ;;  %v16646_v62 = vld [vmem:[#allocation74_spill] sm:$0xff]  ;;  %v3527_v43 = vmul.f32 %v16647_v26, %v16648_v16  ;;  %v4540_v16 = vadd.f32 -1.4531521, %v4524_v30  ;;  %v16654_v30 = vld [vmem:[#allocation33_spill] sm:$0xff]  ;;  %v5689_v3 = vpop.permute.xlu0 %5688  ;;  %p6789_p3 = pnand %p6788_p2, %p6784_p13 }
 0xe99   : > { %v3526_v44 = vmul.f32 %v16647_v26, %v16646_v62  ;;  %v13374_v26 = vsel %vm1046_vm6, %v5697_v8, %v12933_v6  ;;  %v13380_v62 = vmul.f32 %v4288_v33, %v16501_v53  ;;  %16652 = vst [vmem:[#allocation149_spill] sm:$0xff] %v13383_v24  ;;  %v4683_v6 = vmul.f32 %v4667_v56, %v13029_v27 }
 0xe9a   : > { %v3543_v58 = vmul.f32 %v3527_v43, %v16221_v41  ;;  %v4704_v33 = vmul.f32 1.442695, %v4682_v15  ;;  %v3676_v7 = vadd.f32 %v16654_v30, %v3548_v39  ;;  %v4602_v8 = vadd.f32 -0.28449672, %v4586_v29  ;;  %16655 = vst [vmem:[#allocation148_spill] sm:$0xff] %v13404_v34  ;;  %v16658_v15 = vld [vmem:[#allocation27_spill] sm:$0xff]  ;;  %v5703_v2 = vpop.permute.xlu2 %5702 }
 0xe9b   : > { %16651 = vst [vmem:[#allocation141_spill] sm:$0xff] %v13380_v62  ;;  %v3542_v46 = vmul.f32 %v3526_v44, %v16219_v28  ;;  %v5715_v50 = vsel %vm1046_vm6, %v5689_v3, %v13217_v36  ;;  %v5723_v27 = vsel %vm1046_vm6, %v13217_v36, %v5689_v3  ;;  %v4556_v44 = vmul.f32 %v13284_v37, %v4540_v16  ;;  %v16660_v16 = vld [vmem:[#allocation56_spill] sm:$0xff]  ;;  %v16704_v62 = vld [vmem:[#allocation281_spill] sm:$0xff] }
 0xe9c   : > { %v4557_v56 = vmul.f32 %v13297_v40, %v4541_v60  ;;  %v13407_v43 = vmul.f32 0.5, %v12983_v10  ;;  %v13412_v29 = vsel %vm4426_vm0, 1.0, %v15388_v21  ;;  %v3677_v39 = vadd.f32 %v16658_v15, %v3549_v59  ;;  %v16661_v10 = vld [vmem:[#allocation28_spill] sm:$0xff] }
 0xe9d   : > { %16657 = vst [vmem:[#allocation151_spill] sm:$0xff] %v13412_v29  ;;  %v13419_v36 = vsel %vm4427_vm4, 1.0, %v15388_v21  ;;  %v4706_v13 = vmul.f32 1.442695, %v4683_v6  ;;  %v3558_v60 = vadd.f32 %v3542_v46, %v16660_v16  ;;  %v3559_v9 = vadd.f32 %v3543_v58, %v16661_v10  ;;  %v16662_v30 = vld [vmem:[#allocation108_spill] sm:$0xff]  ;;  %v5748_v46 = vpop.permute.xlu1 %5747  ;;  %v16666_v16 = vld [vmem:[#allocation42_spill] sm:$0xff] }
 0xe9e   : > { %16656 = vst [vmem:[#allocation129_spill] sm:$0xff] %v13407_v43  ;;  %6679 = vpow2.f32 %v4704_v33  ;;  %v13424_v3 = vadd.f32 %v16662_v30, %v3676_v7  ;;  %v4603_v59 = vadd.f32 -0.28449672, %v4587_v42  ;;  %v4618_v63 = vmul.f32 %v13159_v45, %v4602_v8  ;;  %v16664_v7 = vld [vmem:[#allocation92_spill] sm:$0xff]  ;;  %v16670_v30 = vld [vmem:[#allocation58_spill] sm:$0xff]  ;;  %v16671_v43 = vld [vmem:[#allocation23_spill] sm:$0xff]  ;;  %5956 = vrot.lane.b32.xlu0 %v16588_v11, %s15613_s29 }
 0xe9f   : > { %16659 = vst [vmem:[#allocation168_spill] sm:$0xff] %v13419_v36  ;;  %5995 = vperm.xlu1 %6632, %v13278_v25   ;;  %v13431_v35 = vsel %vm1046_vm6, %v12998_v38, %v5703_v2  ;;  %v13436_v6 = vsel %vm1046_vm6, %v5703_v2, %v12998_v38  ;;  %v4572_v58 = vadd.f32 1.4214138, %v4556_v44  ;;  %v4573_v33 = vadd.f32 1.4214138, %v4557_v56  ;;  %v16665_v15 = vld [vmem:[#allocation24_spill] sm:$0xff]  ;;  %5962 = vrot.lane.b32.xlu2 %v16642_v52, %s15613_s29 }
 0xea0   : > { %16663 = vst [vmem:[#allocation135_spill] sm:$0xff] %v13424_v3  ;;  %v3784_v25 = vmul.f32 %v16665_v15, %v16664_v7  ;;  %v13441_v42 = vadd.f32 %v16666_v16, %v3677_v39  ;;  %v13443_v8 = vmul.f32 %v5748_v46, %v5715_v50  ;;  %v13445_v10 = vmul.f32 %v5748_v46, %v5723_v27  ;;  %v16672_v38 = vld [vmem:[#allocation225_spill] sm:$0xff]  ;;  %v5695_v50 = vpop.permute.xlu0 %5694 }
 0xea1   : > { %v3686_v21 = vadd.f32 %v16670_v30, %v3558_v60  ;;  %v3687_v34 = vadd.f32 %v16671_v43, %v3559_v9  ;;  %v4298_v2 = vmul.f32 %v16672_v38, %v13343_v54  ;;  %v4299_v44 = vmul.f32 %v16672_v38, %v4251_v51  ;;  %v16674_v9 = vld [vmem:[#allocation106_spill] sm:$0xff]  ;;  %6627 = vset.pattern.permute.xlu2 %v16620_v23  ;;  %v16701_v36 = vld [vmem:[#allocation269_spill] sm:$0xff] }
 0xea2   : > { %16667 = vst [vmem:[#allocation144_spill] sm:$0xff] %v13441_v42  ;;  %v4668_v56 = vsub.f32 0.0, %v13103_v5  ;;  %v4669_v39 = vsub.f32 0.0, %v13111_v14  ;;  %v4619_v27 = vmul.f32 %v13206_v47, %v4603_v59  ;;  %v4634_v46 = vadd.f32 0.2548296, %v4618_v63  ;;  %v5709_v52 = vpop.permute.xlu2 %5708  ;;  %v16712_v47 = vld [vmem:[#allocation29_spill] sm:$0xff] }
 0xea3   : > { %16668 = vst [vmem:[#allocation152_spill] sm:$0xff] %v13443_v8  ;;  %v5710_v43 = vsel %vm1046_vm6, %v13119_v18, %v5695_v50  ;;  %v5718_v54 = vsel %vm1046_vm6, %v5695_v50, %v13119_v18  ;;  %v4588_v51 = vmul.f32 %v13284_v37, %v4572_v58  ;;  %v4589_v11 = vmul.f32 %v13297_v40, %v4573_v33  ;;  %v16676_v33 = vld [vmem:[#allocation111_spill] sm:$0xff]  ;;  %v16687_v50 = vld [vmem:[#allocation241_spill] sm:$0xff]  ;;  %v16714_v40 = vld [vmem:[#allocation312_spill] sm:$0xff] }
 0xea4   : > { %16669 = vst [vmem:[#allocation166_spill] sm:$0xff] %v13445_v10  ;;  %v13465_v60 = vpop.eup %6679  ;;  %v3785_v7 = vmul.f32 %v16665_v15, %v16674_v9  ;;  %v3800_v59 = vmul.f32 %v3784_v25, %v16326_v49  ;;  %v13471_v63 = vmul.f32 %v13295_v0, %v5710_v43  ;;  %v13474_v16 = vmul.f32 %v13295_v0, %v5718_v54  ;;  %v16678_v0 = vld [vmem:[#allocation101_spill] sm:$0xff]  ;;  %v16689_v43 = vld [vmem:[#allocation246_spill] sm:$0xff]  ;;  %v16723_v8 = vld [vmem:[#allocation267_spill] sm:$0xff] }
 0xea5   : > { %16673 = vst [vmem:[#allocation132_spill] sm:$0xff] %v13465_v60  ;;  %6681 = vpow2.f32 %v4706_v13  ;;  %v13479_v18 = vmul.f32 %v4298_v2, %v16501_v53  ;;  %v13482_v58 = vmul.f32 %v4299_v44, %v16509_v12  ;;  %v13485_v15 = vadd.f32 %v16676_v33, %v3686_v21  ;;  %v4980_v13 = vld [vmem:[%s14758_s13 + $0x70] sm:$0xff]  ;;  %v13520_v44 = vpop.permute.xlu1 %5806  ;;  %v16691_v9 = vld [vmem:[#allocation238_spill] sm:$0xff]  ;;  %v16720_v37 = vld [vmem:[#allocation273_spill] sm:$0xff] }
 0xea6   : > { %16675 = vst [vmem:[#allocation157_spill] sm:$0xff] %v13474_v16  ;;  %v13489_v25 = vmul.f32 0.5, %v13033_v61  ;;  %v13492_v30 = vadd.f32 %v16678_v0, %v3687_v34  ;;  %v13499_v38 = vadd.f32 0.2548296, %v4619_v27  ;;  %v13502_v21 = vmul.f32 %v13159_v45, %v4634_v46  ;;  %6094 = vperm.xlu0 %6624, %v4980_v13   ;;  %v16695_v33 = vld [vmem:[#allocation262_spill] sm:$0xff]  ;;  %v16696_v0 = vld [vmem:[#allocation247_spill] sm:$0xff] }
 0xea7   : > { %5954 = vrot.lane.b32.xlu1 %v16525_v17, %s15613_s29  ;;  %v13505_v2 = vmul.f32 %v4668_v56, %v13103_v5  ;;  %v13508_v61 = vmul.f32 %v4669_v39, %v13111_v14  ;;  %v13513_v17 = vsel %vm1046_vm6, %v13057_v4, %v5709_v52  ;;  %v13518_v34 = vsel %vm1046_vm6, %v5709_v52, %v13057_v4  ;;  %v16686_v39 = vld [vmem:[#allocation212_spill] sm:$0xff]  ;;  %v16688_v4 = vld [vmem:[#allocation237_spill] sm:$0xff]  ;;  %v16702_v53 = vld [vmem:[#allocation127_spill] sm:$0xff] }
 0xea8   : > { %16677 = vst [vmem:[#allocation167_spill] sm:$0xff] %v13489_v25  ;;  %v3801_v45 = vmul.f32 %v3785_v7, %v16327_v32  ;;  %v3816_v5 = vadd.f32 %v3800_v59, %v13193_v31  ;;  %v13524_v56 = vadd.f32 -0.28449672, %v4588_v51  ;;  %v13526_v14 = vadd.f32 -0.28449672, %v4589_v11  ;;  %v16693_v31 = vld [vmem:[#allocation30_spill] sm:$0xff]  ;;  %v5701_v59 = vpop.permute.xlu0 %5700  ;;  %5944 = vrot.lane.b32.xlu2 %v16688_v4, %s15613_s29 }
 0xea9   : > { %16679 = vst [vmem:[#allocation164_spill] sm:$0xff] %v13499_v38  ;;  %v13530_v27 = vmul.f32 %v16687_v50, %v16686_v39  ;;  %v13534_v46 = vmul.f32 %v16687_v50, %v16557_v20  ;;  %v13538_v54 = vmul.f32 %v16689_v43, %v16688_v4  ;;  %v13542_v7 = vmul.f32 %v16689_v43, %v16691_v9  ;;  %v16694_v51 = vld [vmem:[#allocation296_spill] sm:$0xff]  ;;  %v16697_v25 = vld [vmem:[#allocation266_spill] sm:$0xff]  ;;  %v16698_v43 = vld [vmem:[#allocation259_spill] sm:$0xff] }
 0xeaa   : > { %16680 = vst [vmem:[#allocation233_spill] sm:$0xff] %v13502_v21  ;;  %v3658_v11 = vmul.f32 %v16694_v51, %v16693_v31  ;;  %v13550_v52 = vsel %vm696_vm1, %v16696_v0, %v16695_v33  ;;  %v13556_v50 = vsel %vm696_vm1, %v16695_v33, %v16696_v0  ;;  %v13562_v13 = vsel %vm696_vm1, %v16698_v43, %v16697_v25  ;;  %v16700_v31 = vld [vmem:[#allocation277_spill] sm:$0xff]  ;;  %v16703_v39 = vld [vmem:[#allocation102_spill] sm:$0xff] }
 0xeab   : > { %16681 = vst [vmem:[#allocation147_spill] sm:$0xff] %v13505_v2  ;;  %v13564_v9 = vpop.eup %6681  ;;  %v5198_v12 = vsel %vm766_vm2, %v16701_v36, %v16700_v31  ;;  %v5713_v29 = vsel %vm1046_vm6, %v16702_v53, %v5701_v59  ;;  %v5721_v33 = vsel %vm1046_vm6, %v5701_v59, %v16702_v53  ;;  %v13580_v0 = vsel %vm696_vm1, %v16697_v25, %v16698_v43  ;;  %v16705_v59 = vld [vmem:[#allocation290_spill] sm:$0xff]  ;;  %v16711_v43 = vld [vmem:[#allocation64_spill] sm:$0xff]  ;;  %v16716_v2 = vld [vmem:[#allocation83_spill] sm:$0xff] }
 0xeac   : > { %16682 = vst [vmem:[#allocation155_spill] sm:$0xff] %v13508_v61  ;;  %v3817_v24 = vadd.f32 %v3801_v45, %v16703_v39  ;;  %v5764_v60 = vmul.f32 %v13376_v22, %v5713_v29  ;;  %v5765_v21 = vmul.f32 %v13376_v22, %v5721_v33  ;;  %v5206_v53 = vsel %vm766_vm2, %v16700_v31, %v16701_v36  ;;  %v16706_v61 = vld [vmem:[#allocation274_spill] sm:$0xff]  ;;  %v16713_v36 = vld [vmem:[#allocation35_spill] sm:$0xff] }
 0xead   : > { %16683 = vst [vmem:[#allocation161_spill] sm:$0xff] %v13520_v44  ;;  %v13596_v25 = vsel %vm766_vm2, %v16706_v61, %v16705_v59  ;;  %v16707_v45 = vld [vmem:[#allocation22_spill] sm:$0xff]  ;;  %v3674_v33 = vmul.f32 %v3658_v11, %v16711_v43  ;;  %v16751_v44 = vld [vmem:[#allocation133_spill] sm:$0xff] }
 0xeae   : > { %16684 = vst [vmem:[#allocation163_spill] sm:$0xff] %v13524_v56  ;;  %v16709_v29 = vld [vmem:[#allocation50_spill] sm:$0xff]  ;;  %v5780_v38 = vmul.f32 %v5764_v60, %v16712_v47  ;;  %v5781_v31 = vmul.f32 %v5765_v21, %v16713_v36  ;;  %v16719_v60 = vld [vmem:[#allocation288_spill] sm:$0xff] }
 0xeaf   : > { %16685 = vst [vmem:[#allocation170_spill] sm:$0xff] %v13526_v14  ;;  %v16710_v39 = vld [vmem:[#allocation38_spill] sm:$0xff]  ;;  %5991 = vperm.xlu1 %6632, %v16714_v40   ;;  %v5736_v14 = vpop.permute.xlu2 %5735  ;;  %v3945_v21 = vadd.f32 %v16719_v60, %v3817_v24  ;;  %v16721_v56 = vld [vmem:[#allocation244_spill] sm:$0xff] }
 0xeb0   : > { %16690 = vst [vmem:[#allocation177_spill] sm:$0xff] %v13538_v54  ;;  %v3659_v4 = vmul.f32 %v16694_v51, %v16710_v39  ;;  %v4979_v42 = vld [vmem:[%s14758_s13 + $0x68] sm:$0xff]  ;;  %v5762_v51 = vmul.f32 %v5736_v14, %v13330_v57  ;;  %v5763_v11 = vmul.f32 %v5736_v14, %v13335_v48  ;;  %v13616_v39 = vpop.permute.xlu1 %5812  ;;  %v13621_v10 = vadd.f32 %v5780_v38, %v16721_v56  ;;  %v16725_v14 = vld [vmem:[#allocation65_spill] sm:$0xff]  ;;  %v16727_v38 = vld [vmem:[#allocation107_spill] sm:$0xff] }
 0xeb1   : > { %16692 = vst [vmem:[#allocation158_spill] sm:$0xff] %v13542_v7  ;;  %v13624_v7 = vadd.f32 %v5781_v31, %v16723_v8  ;;  %6089 = vperm.xlu0 %6624, %v4979_v42   ;;  %v16728_v56 = vld [vmem:[#allocation82_spill] sm:$0xff]  ;;  %v5707_v8 = vpop.permute.xlu0 %5706  ;;  %v16729_v31 = vld [vmem:[#allocation276_spill] sm:$0xff] }
 0xeb2   : > { %16699 = vst [vmem:[#allocation160_spill] sm:$0xff] %v13564_v9  ;;  %v3944_v9 = vadd.f32 %v16704_v62, %v3816_v5  ;;  %v16708_v62 = vld [vmem:[#allocation294_spill] sm:$0xff]  ;;  %v5778_v57 = vmul.f32 %v5762_v51, %v16712_v47  ;;  %v5779_v48 = vmul.f32 %v5763_v11, %v16713_v36  ;;  %v3675_v24 = vmul.f32 %v3659_v4, %v16725_v14  ;;  %v16734_v4 = vld [vmem:[#allocation81_spill] sm:$0xff] }
 0xeb3   : > { %v3648_v5 = vmul.f32 %v16708_v62, %v16707_v45  ;;  %v3649_v22 = vmul.f32 %v16708_v62, %v16709_v29  ;;  %v16715_v45 = vld [vmem:[#allocation292_spill] sm:$0xff]  ;;  %16718 = vst [vmem:[#allocation162_spill] sm:$0xff] %v13616_v39  ;;  %v3910_v60 = vmul.f32 %v16728_v56, %v16727_v38  ;;  %v16735_v11 = vld [vmem:[#allocation285_spill] sm:$0xff] }
 0xeb4   : > { %v5246_v3 = vmul.f32 %v16715_v45, %v5206_v53  ;;  %v16717_v62 = vld [vmem:[#allocation88_spill] sm:$0xff]  ;;  %v4072_v40 = vadd.f32 %v16720_v37, %v3944_v9  ;;  %16722 = vst [vmem:[#allocation178_spill] sm:$0xff] %v13621_v10  ;;  %v5247_v53 = vmul.f32 %v16715_v45, %v5198_v12  ;;  %v16731_v12 = vld [vmem:[#allocation282_spill] sm:$0xff]  ;;  %v16733_v45 = vld [vmem:[#allocation117_spill] sm:$0xff] }
 0xeb5   : > { %v3774_v29 = vmul.f32 %v16717_v62, %v16716_v2  ;;  %16724 = vst [vmem:[#allocation174_spill] sm:$0xff] %v13624_v7  ;;  %v3664_v2 = vmul.f32 %v3648_v5, %v16711_v43  ;;  %v3665_v39 = vmul.f32 %v3649_v22, %v16725_v14  ;;  %v16726_v37 = vld [vmem:[#allocation120_spill] sm:$0xff]  ;;  %v13636_v7 = vadd.f32 %v5778_v57, %v16729_v31  ;;  %v16737_v38 = vld [vmem:[#allocation293_spill] sm:$0xff] }
 0xeb6   : > { %v3690_v9 = vadd.f32 %v3674_v33, %v16726_v37  ;;  %v13639_v5 = vadd.f32 %v5779_v48, %v16731_v12  ;;  %v13644_v42 = vsel %vm1046_vm6, %v16733_v45, %v5707_v8  ;;  %v13649_v22 = vsel %vm1046_vm6, %v5707_v8, %v16733_v45  ;;  %v16736_v37 = vld [vmem:[#allocation278_spill] sm:$0xff]  ;;  %5871 = vperm.xlu2 %6627, %v16737_v38  }
 0xeb7   : > { %16730 = vst [vmem:[#allocation171_spill] sm:$0xff] %v13636_v7  ;;  %v3775_v33 = vmul.f32 %v16717_v62, %v16734_v4  ;;  %v3790_v51 = vmul.f32 %v3774_v29, %v16326_v49  ;;  %v4073_v57 = vadd.f32 %v16735_v11, %v3945_v21  ;;  %v4200_v48 = vadd.f32 %v16736_v37, %v4072_v40  ;;  %v16738_v62 = vld [vmem:[#allocation284_spill] sm:$0xff]  ;;  %v16739_v29 = vld [vmem:[#allocation143_spill] sm:$0xff]  ;;  %v16741_v40 = vld [vmem:[#allocation105_spill] sm:$0xff] }
 0xeb8   : > { %16732 = vst [vmem:[#allocation138_spill] sm:$0xff] %v13639_v5  ;;  %v13661_v31 = vsel %vm766_vm2, %v16705_v59, %v16706_v61  ;;  %v13664_v8 = vmul.f32 %v5246_v3, %v16219_v28  ;;  %v13667_v12 = vmul.f32 %v5247_v53, %v16221_v41  ;;  %v4042_v45 = vmul.f32 %v16739_v29, %v16738_v62  ;;  %v16740_v21 = vld [vmem:[#allocation131_spill] sm:$0xff]  ;;  %v16742_v37 = vld [vmem:[#allocation109_spill] sm:$0xff]  ;;  %v16743_v5 = vld [vmem:[#allocation68_spill] sm:$0xff]  ;;  %v5744_v3 = vpop.permute.xlu2 %5743 }
 0xeb9   : > { %v3691_v4 = vadd.f32 %v3675_v24, %v16740_v21  ;;  %v3818_v11 = vadd.f32 %v16741_v40, %v3690_v9  ;;  %v3911_v38 = vmul.f32 %v16728_v56, %v16742_v37  ;;  %v3926_v7 = vmul.f32 %v3910_v60, %v16743_v5  ;;  %v16744_v61 = vld [vmem:[#allocation227_spill] sm:$0xff]  ;;  %v16745_v59 = vld [vmem:[#allocation126_spill] sm:$0xff]  ;;  %v16746_v53 = vld [vmem:[#allocation140_spill] sm:$0xff]  ;;  %v13684_v21 = vpop.permute.xlu1 %5818  ;;  %6633 = vset.pattern.permute.xlu0 %v16620_v23 }
 0xeba   : > { %5952 = vrot.lane.b32.xlu1 %v16744_v61, %s15613_s29  ;;  %v3680_v10 = vadd.f32 %v3664_v2, %v16745_v59  ;;  %v13680_v54 = vadd.f32 %v3665_v39, %v16746_v53  ;;  %v5766_v62 = vmul.f32 %v5744_v3, %v13431_v35  ;;  %v5767_v24 = vmul.f32 %v5744_v3, %v13436_v6  ;;  %v16749_v60 = vld [vmem:[#allocation314_spill] sm:$0xff]  ;;  %v16750_v37 = vld [vmem:[#allocation279_spill] sm:$0xff]  ;;  %v16753_v3 = vld [vmem:[#allocation93_spill] sm:$0xff] }
 0xebb   : > { %16747 = vst [vmem:[#allocation169_spill] sm:$0xff] %v13684_v21  ;;  %v16748_v9 = vmov 0   ;;  %v3791_v56 = vmul.f32 %v3775_v33, %v16327_v32  ;;  %v3806_v40 = vadd.f32 %v3790_v51, %v16749_v60  ;;  %v4201_v61 = vadd.f32 %v16750_v37, %v4073_v57  ;;  %v16752_v2 = vld [vmem:[#allocation254_spill] sm:$0xff]  ;;  %v16754_v33 = vld [vmem:[#allocation69_spill] sm:$0xff]  ;;  %v16755_v57 = vld [vmem:[#allocation60_spill] sm:$0xff] }
 0xebc   : > { %6636 = vset.pattern.permute.xlu1 %v16748_v9  ;;  %v4328_v16 = vadd.f32 %v16751_v44, %v4200_v48  ;;  %v4043_v39 = vmul.f32 %v16739_v29, %v16752_v2  ;;  %v4058_v59 = vmul.f32 %v4042_v45, %v16712_v47  ;;  %v5782_v35 = vmul.f32 %v5766_v62, %v16712_v47  ;;  %v13704_v44 = vld [vmem:[%s14757_s12 + $0x70] sm:$0xff]  ;;  %v5732_v48 = vpop.permute.xlu0 %5731  ;;  %v16761_v37 = vld [vmem:[#allocation260_spill] sm:$0xff] }
 0xebd   : > { %v5783_v6 = vmul.f32 %v5767_v24, %v16713_v36  ;;  %v3819_v53 = vadd.f32 %v16753_v3, %v3691_v4  ;;  %v3927_v21 = vmul.f32 %v3911_v38, %v16754_v33  ;;  %v3942_v51 = vadd.f32 %v3926_v7, %v13485_v15  ;;  %5879 = vperm.xlu0 %6633, %v13704_v44   ;;  %v16756_v29 = vld [vmem:[#allocation295_spill] sm:$0xff]  ;;  %v4978_v7 = vld [vmem:[%s14758_s13 + $0x60] sm:$0xff]  ;;  %v16762_v3 = vld [vmem:[#allocation230_spill] sm:$0xff] }
 0xebe   : > { %v3946_v60 = vadd.f32 %v16755_v57, %v3818_v11  ;;  %v13708_v45 = vadd.f32 %v5782_v35, %v16756_v29  ;;  %v16758_v62 = vld [vmem:[#allocation307_spill] sm:$0xff]  ;;  %v5760_v4 = vmul.f32 %v5732_v48, %v13369_v1  ;;  %v5761_v15 = vmul.f32 %v5732_v48, %v13374_v26  ;;  %v16760_v11 = vld [vmem:[#allocation114_spill] sm:$0xff]  ;;  %5958 = vrot.lane.b32.xlu2 %v16762_v3, %s15613_s29  ;;  %v16763_v35 = vld [vmem:[#allocation224_spill] sm:$0xff] }
 0xebf   : > { %v13711_v24 = vadd.f32 %v5783_v6, %v16758_v62  ;;  %v3807_v38 = vadd.f32 %v3791_v56, %v16760_v11  ;;  %v3934_v2 = vadd.f32 %v16761_v37, %v3806_v40  ;;  %v13723_v57 = vadd.f32 %v16763_v35, %v4328_v16  ;;  %v16765_v6 = vld [vmem:[#allocation154_spill] sm:$0xff]  ;;  %6630 = vset.pattern.permute.xlu2 %v16748_v9  ;;  %v16766_v56 = vld [vmem:[#allocation43_spill] sm:$0xff] }
 0xec0   : > { %16757 = vst [vmem:[#allocation156_spill] sm:$0xff] %v13708_v45  ;;  %v4329_v29 = vadd.f32 %v16765_v6, %v4201_v61  ;;  %v4059_v1 = vmul.f32 %v4043_v39, %v16713_v36  ;;  %v4074_v62 = vadd.f32 %v4058_v59, %v3946_v60  ;;  %v5776_v26 = vmul.f32 %v5760_v4, %v16712_v47  ;;  %v16767_v37 = vld [vmem:[#allocation270_spill] sm:$0xff]  ;;  %v5756_v45 = vpop.permute.xlu2 %5755  ;;  %v16769_v61 = vld [vmem:[#allocation61_spill] sm:$0xff]  ;;  %v16771_v39 = vld [vmem:[#allocation311_spill] sm:$0xff] }
 0xec1   : > { %16759 = vst [vmem:[#allocation172_spill] sm:$0xff] %v13711_v24  ;;  %v5777_v48 = vmul.f32 %v5761_v15, %v16713_v36  ;;  %v3808_v11 = vadd.f32 %v16766_v56, %v3680_v10  ;;  %v3943_v40 = vadd.f32 %v3927_v21, %v13492_v30  ;;  %v4070_v3 = vadd.f32 %v16767_v37, %v3942_v51  ;;  %v16768_v24 = vld [vmem:[#allocation255_spill] sm:$0xff]  ;;  %v13742_v15 = vpop.permute.xlu1 %5824  ;;  %v16773_v10 = vld [vmem:[#allocation261_spill] sm:$0xff]  ;;  %v16774_v21 = vld [vmem:[#allocation66_spill] sm:$0xff] }
 0xec2   : > { %16764 = vst [vmem:[#allocation180_spill] sm:$0xff] %v13723_v57  ;;  %v3947_v16 = vadd.f32 %v16768_v24, %v3819_v53  ;;  %6084 = vperm.xlu1 %6636, %v4978_v7   ;;  %v13735_v6 = vadd.f32 %v5776_v26, %v16769_v61  ;;  %v5772_v60 = vmul.f32 %v5756_v45, %v13513_v17  ;;  %v13747_v53 = vmul.f32 0.70710677, %v13723_v57  ;;  %v16777_v26 = vld [vmem:[#allocation104_spill] sm:$0xff]  ;;  %v16779_v37 = vld [vmem:[#allocation86_spill] sm:$0xff] }
 0xec3   : > { %v13738_v59 = vadd.f32 %v5777_v48, %v16771_v39  ;;  %v5773_v4 = vmul.f32 %v5756_v45, %v13518_v34  ;;  %v3935_v30 = vadd.f32 %v16773_v10, %v3807_v38  ;;  %v4062_v51 = vadd.f32 %v16774_v21, %v3934_v2  ;;  %v4981_v34 = vld [vmem:[%s14758_s13 + $0x78] sm:$0xff]  ;;  %v16778_v45 = vld [vmem:[#allocation297_spill] sm:$0xff]  ;;  %v16786_v10 = vld [vmem:[#allocation99_spill] sm:$0xff] }
 0xec4   : > { %16770 = vst [vmem:[#allocation159_spill] sm:$0xff] %v13735_v6  ;;  %v13750_v24 = vadd.f32 %v16763_v35, %v4329_v29  ;;  %v4075_v7 = vadd.f32 %v4059_v1, %v3947_v16  ;;  %v4202_v48 = vadd.f32 %v16777_v26, %v4074_v62  ;;  %v5788_v56 = vmul.f32 %v5772_v60, %v16712_v47  ;;  %v16780_v29 = vld [vmem:[#allocation125_spill] sm:$0xff]  ;;  %v5752_v16 = vpop.permute.xlu0 %5751  ;;  %v16781_v61 = vld [vmem:[#allocation248_spill] sm:$0xff]  ;;  %v16826_v6 = vld [vmem:[#allocation235_spill] sm:$0xff] }
 0xec5   : > { %16772 = vst [vmem:[#allocation175_spill] sm:$0xff] %v13738_v59  ;;  %v5789_v17 = vmul.f32 %v5773_v4, %v16713_v36  ;;  %v5256_v38 = vmul.f32 %v16778_v45, %v13661_v31  ;;  %v5257_v2 = vmul.f32 %v16778_v45, %v13596_v25  ;;  %v4071_v35 = vadd.f32 %v16779_v37, %v3943_v40  ;;  %v13767_v62 = vld [vmem:[%s14757_s12 + $0x40] sm:$0xff]  ;;  %v16785_v4 = vld [vmem:[#allocation67_spill] sm:$0xff] }
 0xec6   : > { %16775 = vst [vmem:[#allocation181_spill] sm:$0xff] %v13747_v53  ;;  %v4198_v1 = vadd.f32 %v16780_v29, %v4070_v3  ;;  %5855 = vperm.xlu0 %6633, %v13767_v62   ;;  %v13771_v39 = vadd.f32 %v5788_v56, %v16781_v61  ;;  %v16783_v60 = vld [vmem:[#allocation113_spill] sm:$0xff]  ;;  %v5770_v25 = vmul.f32 %v5752_v16, %v13644_v42  ;;  %v13781_v26 = vand.u32 2147483647, %v13747_v53  ;;  %v16788_v56 = vld [vmem:[#allocation122_spill] sm:$0xff] }
 0xec7   : > { %16776 = vst [vmem:[#allocation182_spill] sm:$0xff] %v13750_v24  ;;  %v13774_v31 = vadd.f32 %v5789_v17, %v16783_v60  ;;  %v5771_v40 = vmul.f32 %v5752_v16, %v13649_v22  ;;  %v4063_v3 = vadd.f32 %v16785_v4, %v3935_v30  ;;  %v4190_v21 = vadd.f32 %v16786_v10, %v4062_v51  ;;  %v16789_v22 = vld [vmem:[#allocation78_spill] sm:$0xff]  ;;  %v16790_v16 = vld [vmem:[#allocation268_spill] sm:$0xff] }
 0xec8   : > { %16782 = vst [vmem:[#allocation184_spill] sm:$0xff] %v13771_v39  ;;  %6099 = vperm.xlu2 %6630, %v4981_v34   ;;  %v13784_v45 = vmul.f32 0.70710677, %v13750_v24  ;;  %v4203_v37 = vadd.f32 %v16788_v56, %v4075_v7  ;;  %v4330_v17 = vadd.f32 %v13479_v18, %v4202_v48  ;;  %v5786_v29 = vmul.f32 %v5770_v25, %v16712_v47  ;;  %v13805_v18 = vpop.permute.xlu2 %5810  ;;  %v16791_v7 = vld [vmem:[#allocation142_spill] sm:$0xff]  ;;  %v16792_v60 = vld [vmem:[#allocation280_spill] sm:$0xff] }
 0xec9   : > { %16784 = vst [vmem:[#allocation185_spill] sm:$0xff] %v13774_v31  ;;  %v5787_v42 = vmul.f32 %v5771_v40, %v16713_v36  ;;  %v13792_v30 = vadd.f32 %v16789_v22, %v13680_v54  ;;  %v13795_v51 = vmul.f32 %v5256_v38, %v16219_v28  ;;  %v13798_v34 = vmul.f32 %v5257_v2, %v16221_v41  ;;  %v16794_v54 = vld [vmem:[#allocation272_spill] sm:$0xff]  ;;  %v13814_v28 = vpop.permute.xlu1 %5830  ;;  %v16797_v2 = vld [vmem:[#allocation305_spill] sm:$0xff]  ;;  %v16800_v56 = vld [vmem:[#allocation146_spill] sm:$0xff] }
 0xeca   : > { %16787 = vst [vmem:[#allocation192_spill] sm:$0xff] %v13784_v45  ;;  %v13801_v61 = vadd.f32 %v16790_v16, %v3808_v11  ;;  %5950 = vrot.lane.b32.xlu1 %v16557_v20, %s15613_s29  ;;  %v4199_v48 = vadd.f32 %v16791_v7, %v4071_v35  ;;  %v13809_v25 = vadd.f32 %v5786_v29, %v16792_v60  ;;  %v16796_v41 = vld [vmem:[#allocation136_spill] sm:$0xff]  ;;  %v16799_v35 = vld [vmem:[#allocation291_spill] sm:$0xff]  ;;  %v16801_v22 = vld [vmem:[#allocation234_spill] sm:$0xff]  ;;  %v13833_v7 = vand.u32 2147483647, %v13784_v45 }
 0xecb   : > { %v13812_v40 = vadd.f32 %v5787_v42, %v16794_v54  ;;  %v4326_v38 = vadd.f32 %v16796_v41, %v4198_v1  ;;  %v16798_v11 = vld [vmem:[#allocation300_spill] sm:$0xff]  ;;  %v4191_v10 = vadd.f32 %v16799_v35, %v4063_v3  ;;  %v4318_v29 = vadd.f32 %v16800_v56, %v4190_v21  ;;  %v16803_v60 = vld [vmem:[#allocation306_spill] sm:$0xff]  ;;  %v16808_v56 = vld [vmem:[#allocation207_spill] sm:$0xff] }
 0xecc   : > { %16793 = vst [vmem:[#allocation199_spill] sm:$0xff] %v13809_v25  ;;  %v5326_v4 = vsel %vm836_vm3, %v16798_v11, %v16797_v2  ;;  %v5334_v20 = vsel %vm836_vm3, %v16797_v2, %v16798_v11  ;;  %v4331_v42 = vadd.f32 %v13482_v58, %v4203_v37  ;;  %v13829_v16 = vadd.f32 %v16801_v22, %v4330_v17  ;;  %v16805_v2 = vld [vmem:[#allocation302_spill] sm:$0xff]  ;;  %v5088_v11 = vpop.permute.xlu0 %5087  ;;  %v6762_v25 = vld [vmem:[%s14757_s12 + $0x50] sm:$0xff]  ;;  %v16881_v31 = vld [vmem:[#allocation124_spill] sm:$0xff] }
 0xecd   : > { %16795 = vst [vmem:[#allocation165_spill] sm:$0xff] %v13812_v40  ;;  %v4480_v1 = vmul.f32 0.3275911, %v13781_v26  ;;  %v5374_v54 = vmul.f32 %v16803_v60, %v5334_v20  ;;  %v5375_v41 = vmul.f32 %v16803_v60, %v5326_v4  ;;  %v16804_v40 = vld [vmem:[#allocation304_spill] sm:$0xff]  ;;  %v16806_v21 = vld [vmem:[#allocation310_spill] sm:$0xff]  ;;  %v4976_v4 = vld [vmem:[%s14758_s13 + $0x50] sm:$0xff]  ;;  %v13854_v60 = vadd.f32 %v16808_v56, %v4326_v38 }
 0xece   : > { %16802 = vst [vmem:[#allocation206_spill] sm:$0xff] %v13829_v16  ;;  %v5331_v3 = vsel %vm836_vm3, %v16805_v2, %v16804_v40  ;;  %v5339_v58 = vsel %vm836_vm3, %v16804_v40, %v16805_v2  ;;  %6634 = vset.pattern.permute.xlu0 %v16528_v55  ;;  %v16807_v20 = vld [vmem:[#allocation123_spill] sm:$0xff]  ;;  %v5118_v40 = vmul.f32 %v5088_v11, %v13556_v50  ;;  %v13870_v38 = vmul.f32 0.70710677, %v13829_v16 }
 0xecf   : > { %v5384_v37 = vmul.f32 %v16806_v21, %v5339_v58  ;;  %v5385_v17 = vmul.f32 %v16806_v21, %v5331_v3  ;;  %6007 = vperm.xlu0 %6634, %v13704_v44   ;;  %v4327_v35 = vadd.f32 %v16807_v20, %v4199_v48  ;;  %16809 = vst [vmem:[#allocation208_spill] sm:$0xff] %v13854_v60  ;;  %v16810_v58 = vld [vmem:[#allocation145_spill] sm:$0xff]  ;;  %v16811_v21 = vld [vmem:[#allocation220_spill] sm:$0xff]  ;;  %v4496_v50 = vadd.f32 1.0, %v4480_v1  ;;  %v16815_v20 = vld [vmem:[#allocation59_spill] sm:$0xff] }
 0xed0   : > { %v5119_v2 = vmul.f32 %v5088_v11, %v13550_v52  ;;  %6631 = vset.pattern.permute.xlu2 %v16620_v23  ;;  %v4319_v3 = vadd.f32 %v16810_v58, %v4191_v10  ;;  %v13861_v44 = vadd.f32 %v16811_v21, %v4318_v29  ;;  %v13867_v48 = vadd.f32 %v16801_v22, %v4331_v42  ;;  %v16814_v29 = vld [vmem:[#allocation57_spill] sm:$0xff]  ;;  %v13877_v59 = vpop.permute.xlu2 %5816 }
 0xed1   : > { %5863 = vperm.xlu2 %6631, %v6762_v25   ;;  %v4481_v52 = vmul.f32 0.3275911, %v13833_v7  ;;  %v5390_v23 = vmul.f32 %v5374_v54, %v16711_v43  ;;  %v5391_v10 = vmul.f32 %v5375_v41, %v16725_v14  ;;  %v5134_v11 = vmul.f32 %v5118_v40, %v16814_v29  ;;  %v13885_v22 = vpop.permute.xlu1 %5883 }
 0xed2   : > { %16812 = vst [vmem:[#allocation214_spill] sm:$0xff] %v13861_v44  ;;  %v5135_v58 = vmul.f32 %v5119_v2, %v16815_v20  ;;  %6074 = vperm.xlu1 %6636, %v4976_v4   ;;  %v13880_v25 = vmul.f32 %v5384_v37, %v16711_v43  ;;  %v13883_v42 = vmul.f32 %v5385_v17, %v16725_v14  ;;  %v13891_v54 = vmul.f32 0.70710677, %v13854_v60 }
 0xed3   : > { %16813 = vst [vmem:[#allocation90_spill] sm:$0xff] %v13867_v48  ;;  %v13888_v1 = vadd.f32 %v16808_v56, %v4327_v35  ;;  %v5150_v41 = vadd.f32 %v5134_v11, %v13530_v27  ;;  %v13896_v40 = vadd.f32 %v16811_v21, %v4319_v3  ;;  %v13899_v43 = vmul.f32 0.70710677, %v13861_v44  ;;  %v16820_v35 = vld [vmem:[#allocation37_spill] sm:$0xff]  ;;  %v16822_v21 = vld [vmem:[#allocation19_spill] sm:$0xff] }
 0xed4   : > { %16816 = vst [vmem:[#allocation197_spill] sm:$0xff] %v13885_v22  ;;  %v5151_v4 = vadd.f32 %v5135_v58, %v13534_v46  ;;  %v13902_v14 = vmul.f32 0.70710677, %v13867_v48  ;;  %v13905_v37 = vand.u32 2147483647, %v13870_v38  ;;  %6683 = vrcp.f32 %v4496_v50  ;;  %v16821_v46 = vld [vmem:[#allocation103_spill] sm:$0xff] }
 0xed5   : > { %16817 = vst [vmem:[#allocation15_spill] sm:$0xff] %v13888_v1  ;;  %v13907_v17 = vadd.f32 1.0, %v4481_v52  ;;  %v5518_v27 = vmul.f32 %v16820_v35, %v16326_v49  ;;  %v5519_v56 = vmul.f32 %v16821_v46, %v16327_v32  ;;  %v5278_v2 = vadd.f32 %v13664_v8, %v5150_v41  ;;  %v16823_v58 = vld [vmem:[#allocation45_spill] sm:$0xff]  ;;  %v5108_v52 = vpop.permute.xlu0 %5107  ;;  %v16824_v46 = vld [vmem:[#allocation303_spill] sm:$0xff] }
 0xed6   : > { %16818 = vst [vmem:[#allocation264_spill] sm:$0xff] %v13896_v40  ;;  %v5279_v3 = vadd.f32 %v13667_v12, %v5151_v4  ;;  %v13917_v11 = vmul.f32 %v16822_v21, %v16326_v49  ;;  %v13921_v44 = vmul.f32 %v16823_v58, %v16327_v32  ;;  %v6763_v50 = vld [vmem:[%s14757_s12 + $0x60] sm:$0xff]  ;;  %v13930_v12 = vmul.f32 0.70710677, %v13888_v1 }
 0xed7   : > { %16819 = vst [vmem:[#allocation258_spill] sm:$0xff] %v13899_v43  ;;  %5999 = vperm.xlu0 %6634, %v6763_v50   ;;  %v4974_v8 = vld [vmem:[%s14758_s13 + $0x40] sm:$0xff]  ;;  %v13933_v49 = vand.u32 2147483647, %v13891_v54  ;;  %v5406_v41 = vadd.f32 %v5390_v23, %v5278_v2  ;;  %v5128_v32 = vmul.f32 %v5108_v52, %v13580_v0  ;;  %v5129_v35 = vmul.f32 %v5108_v52, %v13562_v13 }
 0xed8   : > { %v5407_v4 = vadd.f32 %v5391_v10, %v5279_v3  ;;  %v5646_v21 = vmul.f32 %v16824_v46, %v16743_v5  ;;  %v16825_v58 = vld [vmem:[#allocation309_spill] sm:$0xff]  ;;  %v13944_v24 = vand.u32 2147483647, %v13902_v14  ;;  %v4482_v57 = vmul.f32 0.3275911, %v13905_v37  ;;  %v5823_v10 = vpop.permute.xlu2 %5822 }
 0xed9   : > { %v5647_v50 = vmul.f32 %v16825_v58, %v16754_v33  ;;  %5938 = vrot.lane.b32.xlu2 %v16826_v6, %s15613_s29  ;;  %v5144_v23 = vmul.f32 %v5128_v32, %v16814_v29  ;;  %v5145_v0 = vmul.f32 %v5129_v35, %v16815_v20  ;;  %v5534_v13 = vadd.f32 %v5518_v27, %v5406_v41  ;;  %v16827_v6 = vld [vmem:[#allocation157_spill] sm:$0xff]  ;;  %v13965_v20 = vpop.permute.xlu1 %5964 }
 0xeda   : > { %6064 = vperm.xlu1 %6636, %v4974_v8   ;;  %v5535_v2 = vadd.f32 %v5519_v56, %v5407_v4  ;;  %v13949_v3 = vpop.eup %6683  ;;  %v5774_v52 = vmul.f32 %v13471_v63, %v16712_v47  ;;  %v5775_v46 = vmul.f32 %v16827_v6, %v16713_v36  ;;  %v16828_v58 = vld [vmem:[#allocation161_spill] sm:$0xff]  ;;  %16831 = vst [vmem:[#allocation271_spill] sm:$0xff] %v13965_v20  ;;  %v16833_v8 = vld [vmem:[#allocation158_spill] sm:$0xff]  ;;  %v4483_v53 = vmul.f32 0.3275911, %v13944_v24 }
 0xedb   : > { %v13958_v45 = vsel %vm1116_vm7, %v16828_v58, %v5823_v10  ;;  %v13963_v29 = vsel %vm1116_vm7, %v5823_v10, %v16828_v58  ;;  %v16832_v27 = vld [vmem:[#allocation177_spill] sm:$0xff]  ;;  %v5161_v41 = vadd.f32 %v5145_v0, %v16833_v8  ;;  %v5662_v63 = vadd.f32 %v5646_v21, %v5534_v13  ;;  %v16838_v21 = vld [vmem:[#allocation119_spill] sm:$0xff]  ;;  %v16840_v0 = vld [vmem:[#allocation98_spill] sm:$0xff] }
 0xedc   : > { %16829 = vst [vmem:[#allocation263_spill] sm:$0xff] %v13958_v45  ;;  %v5160_v56 = vadd.f32 %v5144_v23, %v16832_v27  ;;  %v5663_v4 = vadd.f32 %v5647_v50, %v5535_v2  ;;  %v16834_v32 = vld [vmem:[#allocation289_spill] sm:$0xff]  ;;  %v13973_v45 = vand.u32 2147483647, %v13930_v12  ;;  %v4478_v1 = vmul.f32 0.3275911, %v13933_v49 }
 0xedd   : > { %16830 = vst [vmem:[#allocation287_spill] sm:$0xff] %v13963_v29  ;;  %v16835_v35 = vld [vmem:[#allocation313_spill] sm:$0xff]  ;;  %v5289_v58 = vadd.f32 %v13798_v34, %v5161_v41  ;;  %v13978_v29 = vadd.f32 %v5774_v52, %v5662_v63  ;;  %vm4428_vm1 = vcmp.ge.f32.partialorder %v16838_v21, 0.0  ;;  %v16839_v50 = vld [vmem:[#allocation110_spill] sm:$0xff]  ;;  %v16841_v2 = vld [vmem:[#allocation112_spill] sm:$0xff]  ;;  %v4498_v52 = vadd.f32 1.0, %v4482_v57 }
 0xede   : > { %v4032_v6 = vmul.f32 %v16835_v35, %v16834_v32  ;;  %v5288_v10 = vadd.f32 %v13795_v51, %v5160_v56  ;;  %v13980_v23 = vadd.f32 %v5775_v46, %v5663_v4  ;;  %v3900_v13 = vmul.f32 %v16840_v0, %v16839_v50  ;;  %v16842_v8 = vld [vmem:[#allocation265_spill] sm:$0xff]  ;;  %v5809_v51 = vpop.permute.xlu0 %5808  ;;  %v6140_v34 = vld [vmem:[%s14760_s15 + $0x10] sm:$0xff]  ;;  %v16843_v46 = vld [vmem:[#allocation116_spill] sm:$0xff] }
 0xedf   : > { %16836 = vst [vmem:[#allocation216_spill] sm:$0xff] %v13978_v29  ;;  %v3901_v27 = vmul.f32 %v16840_v0, %v16841_v2  ;;  %v4033_v32 = vmul.f32 %v16835_v35, %v16842_v8  ;;  %5983 = vperm.xlu0 %6634, %v13767_v62   ;;  %vm4429_vm2 = vcmp.ge.f32.partialorder %v16843_v46, 0.0  ;;  %v5417_v41 = vadd.f32 %v13883_v42, %v5289_v58  ;;  %v16846_v4 = vld [vmem:[#allocation275_spill] sm:$0xff]  ;;  %v14011_v57 = vld [vmem:[%s14757_s12 + $0x48] sm:$0xff] }
 0xee0   : > { %16837 = vst [vmem:[#allocation176_spill] sm:$0xff] %v13980_v23  ;;  %v5416_v56 = vadd.f32 %v13880_v25, %v5288_v10  ;;  %v13999_v63 = vsel %vm1116_vm7, %v5809_v51, %v13742_v15  ;;  %v14004_v62 = vsel %vm1116_vm7, %v13742_v15, %v5809_v51  ;;  %v5656_v35 = vmul.f32 %v16846_v4, %v16743_v5  ;;  %v16847_v58 = vld [vmem:[#allocation118_spill] sm:$0xff]  ;;  %v5829_v0 = vpop.permute.xlu2 %5828  ;;  %v16868_v21 = vld [vmem:[#allocation155_spill] sm:$0xff] }
 0xee1   : > { %16844 = vst [vmem:[#allocation96_spill] sm:$0xff] %v13999_v63  ;;  %5859 = vperm.xlu2 %6631, %v14011_v57   ;;  %v4499_v25 = vadd.f32 1.0, %v4483_v53  ;;  %v4479_v42 = vmul.f32 0.3275911, %v13973_v45  ;;  %v4494_v10 = vadd.f32 1.0, %v4478_v1  ;;  %v5657_v50 = vmul.f32 %v16847_v58, %v16754_v33  ;;  %v16848_v4 = vld [vmem:[#allocation162_spill] sm:$0xff]  ;;  %v14031_v58 = vpop.permute.xlu1 %5946 }
 0xee2   : > { %16845 = vst [vmem:[#allocation222_spill] sm:$0xff] %v14004_v62  ;;  %v4048_v15 = vmul.f32 %v4032_v6, %v16712_v47  ;;  %6154 = vperm.xlu1 %6636, %v6140_v34   ;;  %v5544_v2 = vadd.f32 %v13917_v11, %v5416_v56  ;;  %v5545_v8 = vadd.f32 %v13921_v44, %v5417_v41  ;;  %6685 = vrcp.f32 %v4498_v52  ;;  %v16850_v6 = vld [vmem:[#allocation152_spill] sm:$0xff]  ;;  %v16851_v44 = vld [vmem:[#allocation166_spill] sm:$0xff] }
 0xee3   : > { %v4049_v51 = vmul.f32 %v4033_v32, %v16713_v36  ;;  %v14024_v53 = vsel %vm1116_vm7, %v16848_v4, %v5829_v0  ;;  %v14029_v1 = vsel %vm1116_vm7, %v5829_v0, %v16848_v4  ;;  %16849 = vst [vmem:[#allocation286_spill] sm:$0xff] %v14031_v58  ;;  %v5784_v11 = vmul.f32 %v16850_v6, %v16712_v47  ;;  %v16852_v0 = vld [vmem:[#allocation283_spill] sm:$0xff]  ;;  %v16854_v47 = vld [vmem:[#allocation130_spill] sm:$0xff] }
 0xee4   : > { %v5785_v34 = vmul.f32 %v16851_v44, %v16713_v36  ;;  %v5672_v32 = vadd.f32 %v5656_v35, %v5544_v2  ;;  %v5673_v56 = vadd.f32 %v5657_v50, %v5545_v8  ;;  %v3916_v41 = vmul.f32 %v3900_v13, %v16743_v5  ;;  %v16853_v58 = vld [vmem:[#allocation163_spill] sm:$0xff]  ;;  %v16860_v8 = vld [vmem:[#allocation226_spill] sm:$0xff] }
 0xee5   : > { %v3917_v23 = vmul.f32 %v3901_v27, %v16754_v33  ;;  %6687 = vrcp.f32 %v4499_v25  ;;  %v4495_v29 = vadd.f32 1.0, %v4479_v42  ;;  %v3937_v4 = vadd.f32 %v16852_v0, %v13792_v30  ;;  %v16857_v25 = vld [vmem:[#allocation147_spill] sm:$0xff]  ;;  %v16864_v44 = vld [vmem:[#allocation170_spill] sm:$0xff] }
 0xee6   : > { %v14041_v62 = vadd.f32 %v5784_v11, %v5672_v32  ;;  %v14043_v52 = vadd.f32 %v5785_v34, %v5673_v56  ;;  %v4620_v6 = vmul.f32 %v16854_v47, %v16853_v58  ;;  %v4064_v36 = vadd.f32 %v4048_v15, %v13801_v61  ;;  %v5815_v35 = vpop.permute.xlu0 %5814  ;;  %v16859_v15 = vld [vmem:[#allocation144_spill] sm:$0xff]  ;;  %v16867_v56 = vld [vmem:[#allocation134_spill] sm:$0xff] }
 0xee7   : > { %6689 = vrcp.f32 %v4494_v10  ;;  %v14049_v5 = vmul.f32 0.70710677, %v13896_v40  ;;  %v14052_v33 = vand.u32 2147483647, %v13899_v43  ;;  %6638 = vset.pattern.permute.xlu0 %v16748_v9  ;;  %v4065_v30 = vadd.f32 %v4049_v51, %v3937_v4  ;;  %v16858_v10 = vld [vmem:[#allocation135_spill] sm:$0xff]  ;;  %v16861_v51 = vld [vmem:[#allocation252_spill] sm:$0xff] }
 0xee8   : > { %v14058_v13 = vsel %vm1116_vm7, %v5815_v35, %v13814_v28  ;;  %v14063_v61 = vsel %vm1116_vm7, %v13814_v28, %v5815_v35  ;;  %6691 = vrcp.f32 %v13907_v17  ;;  %v14066_v27 = vpop.eup %6685  ;;  %v4708_v42 = vmul.f32 1.442695, %v16857_v25  ;;  %v14081_v17 = vpop.permute.xlu2 %5836  ;;  %v16865_v34 = vld [vmem:[#allocation128_spill] sm:$0xff]  ;;  %v16869_v35 = vld [vmem:[#allocation218_spill] sm:$0xff] }
 0xee9   : > { %16855 = vst [vmem:[#allocation301_spill] sm:$0xff] %v14049_v5  ;;  %v3932_v50 = vadd.f32 %v3916_v41, %v16858_v10  ;;  %v3933_v2 = vadd.f32 %v3917_v23, %v16859_v15  ;;  %5936 = vrot.lane.b32.xlu2 %v16860_v8, %s15613_s29  ;;  %6693 = vrcp.f32 %v4495_v29  ;;  %v14074_v58 = vmul.f32 0.5, %v16861_v51  ;;  %v16866_v23 = vld [vmem:[#allocation164_spill] sm:$0xff]  ;;  %v14097_v10 = vpop.permute.xlu1 %5875  ;;  %v16870_v15 = vld [vmem:[#allocation115_spill] sm:$0xff] }
 0xeea   : > { %16856 = vst [vmem:[#allocation299_spill] sm:$0xff] %v14052_v33  ;;  %v16863_v11 = vmov -1.0   ;;  %6635 = vset.pattern.permute.xlu2 %v16528_v55  ;;  %v4621_v32 = vmul.f32 %v16865_v34, %v16864_v44  ;;  %v4651_v41 = vmul.f32 %v16867_v56, %v16866_v23  ;;  %v4710_v4 = vmul.f32 1.442695, %v16868_v21  ;;  %v16871_v44 = vld [vmem:[#allocation233_spill] sm:$0xff]  ;;  %v16872_v23 = vld [vmem:[#allocation132_spill] sm:$0xff] }
 0xeeb   : > { %16862 = vst [vmem:[#allocation317_spill] sm:$0xff] %v14074_v58  ;;  %v14079_v28 = vsel %vm4428_vm1, 1.0, %v16863_v11  ;;  %v14088_v0 = vpop.eup %6687  ;;  %v14093_v29 = vsel %vm4429_vm2, 1.0, %v16863_v11  ;;  %v4192_v25 = vadd.f32 %v16869_v35, %v4064_v36  ;;  %v4470_v55 = vmul.f32 0.3275911, %v14052_v33  ;;  %v16874_v21 = vld [vmem:[#allocation256_spill] sm:$0xff] }
 0xeec   : > { %v4193_v8 = vadd.f32 %v16870_v15, %v4065_v30  ;;  %v4636_v51 = vadd.f32 0.2548296, %v4620_v6  ;;  %v14103_v56 = vmul.f32 %v16872_v23, %v16871_v44  ;;  %v14106_v40 = vand.u32 2147483647, %v14049_v5  ;;  %v16875_v36 = vld [vmem:[#allocation250_spill] sm:$0xff]  ;;  %v16876_v44 = vld [vmem:[#allocation160_spill] sm:$0xff] }
 0xeed   : > { %v14108_v46 = vpop.eup %6689  ;;  %6695 = vpow2.f32 %v4708_v42  ;;  %v4060_v43 = vadd.f32 %v16874_v21, %v3932_v50  ;;  %v4061_v35 = vadd.f32 %v16875_v36, %v3933_v2  ;;  %v4528_v58 = vmul.f32 1.0614054, %v13949_v3  ;;  %v16878_v42 = vld [vmem:[#allocation141_spill] sm:$0xff] }
 0xeee   : > { %16873 = vst [vmem:[#allocation223_spill] sm:$0xff] %v14106_v40  ;;  %v14113_v63 = vpop.eup %6691  ;;  %v4530_v6 = vmul.f32 1.0614054, %v14066_v27  ;;  %v4531_v30 = vmul.f32 1.0614054, %v14088_v0  ;;  %v14118_v23 = vmul.f32 %v16876_v44, %v4651_v41  ;;  %6697 = vpow2.f32 %v4710_v4  ;;  %v14123_v50 = vpop.permute.xlu0 %5820  ;;  %v16879_v36 = vld [vmem:[#allocation149_spill] sm:$0xff] }
 0xeef   : > { %v4637_v15 = vadd.f32 0.2548296, %v4621_v32  ;;  %v14120_v5 = vpop.eup %6693  ;;  %v4320_v33 = vadd.f32 %v16878_v42, %v4192_v25  ;;  %v4672_v2 = vsub.f32 0.0, %v13781_v26  ;;  %v4486_v21 = vadd.f32 1.0, %v4470_v55  ;;  %v16880_v41 = vld [vmem:[#allocation121_spill] sm:$0xff] }
 0xef0   : > { %16877 = vst [vmem:[#allocation249_spill] sm:$0xff] %v14118_v23  ;;  %v4321_v60 = vadd.f32 %v16879_v36, %v4193_v8  ;;  %v4526_v48 = vmul.f32 1.0614054, %v14108_v46  ;;  %v4652_v16 = vmul.f32 %v16854_v47, %v4636_v51  ;;  %v4471_v32 = vmul.f32 0.3275911, %v14106_v40  ;;  %v14134_v42 = vpop.permute.xlu2 %5948  ;;  %v16884_v40 = vld [vmem:[#allocation228_spill] sm:$0xff] }
 0xef1   : > { %v4188_v44 = vadd.f32 %v16880_v41, %v4060_v43  ;;  %v4189_v39 = vadd.f32 %v16881_v31, %v4061_v35  ;;  %5987 = vperm.xlu2 %6635, %v14011_v57   ;;  %v4544_v4 = vadd.f32 -1.4531521, %v4528_v58  ;;  %v4529_v25 = vmul.f32 1.0614054, %v14113_v63  ;;  %16882 = vst [vmem:[#allocation236_spill] sm:$0xff] %v14134_v42  ;;  %v14138_v51 = vpop.permute.xlu1 %5960 }
 0xef2   : > { %v4546_v55 = vadd.f32 -1.4531521, %v4530_v6  ;;  %v4547_v11 = vadd.f32 -1.4531521, %v4531_v30  ;;  %v4527_v8 = vmul.f32 1.0614054, %v14120_v5  ;;  %v4653_v36 = vmul.f32 %v16865_v34, %v4637_v15 }
 0xef3   : > { %v6696_v47 = vpop.eup %6695  ;;  %16883 = vst [vmem:[#allocation39_spill] sm:$0xff] %v14138_v51  ;;  %v14141_v43 = vadd.f32 %v16884_v40, %v4320_v33  ;;  %v4688_v31 = vmul.f32 %v4672_v2, %v13781_v26  ;;  %v4673_v57 = vsub.f32 0.0, %v13833_v7  ;;  %6699 = vrcp.f32 %v4486_v21  ;;  %v16887_v15 = vld [vmem:[#allocation137_spill] sm:$0xff]  ;;  %v16888_v51 = vld [vmem:[#allocation139_spill] sm:$0xff] }
 0xef4   : > { %v4542_v58 = vadd.f32 -1.4531521, %v4526_v48  ;;  %v14146_v35 = vadd.f32 %v16884_v40, %v4321_v60  ;;  %v14148_v6 = vmul.f32 %v6696_v47, %v4652_v16  ;;  %v6698_v34 = vpop.eup %6697  ;;  %v4316_v41 = vadd.f32 %v16887_v15, %v4188_v44 }
 0xef5   : > { %16885 = vst [vmem:[#allocation201_spill] sm:$0xff] %v14141_v43  ;;  %v4317_v42 = vadd.f32 %v16888_v51, %v4189_v39  ;;  %v4560_v33 = vmul.f32 %v13949_v3, %v4544_v4  ;;  %v4545_v20 = vadd.f32 -1.4531521, %v4529_v25  ;;  %v4562_v26 = vmul.f32 %v14066_v27, %v4546_v55 }
 0xef6   : > { %16886 = vst [vmem:[#allocation95_spill] sm:$0xff] %v14146_v35  ;;  %v4563_v2 = vmul.f32 %v14088_v0, %v4547_v11  ;;  %v4543_v48 = vadd.f32 -1.4531521, %v4527_v8  ;;  %v14156_v21 = vmul.f32 %v6698_v34, %v4653_v36  ;;  %v5827_v60 = vpop.permute.xlu0 %5826  ;;  %v14159_v16 = vmul.f32 0.70710677, %v14141_v43  ;;  %v16894_v36 = vld [vmem:[#allocation204_spill] sm:$0xff] }
 0xef7   : > { %v4716_v40 = vmul.f32 1.442695, %v4688_v31  ;;  %v4689_v47 = vmul.f32 %v4673_v57, %v13833_v7  ;;  %v4487_v44 = vadd.f32 1.0, %v4471_v32  ;;  %v14165_v39 = vsel %vm1116_vm7, %v13805_v18, %v5827_v60  ;;  %v16893_v7 = vld [vmem:[#allocation212_spill] sm:$0xff] }
 0xef8   : > { %16889 = vst [vmem:[#allocation53_spill] sm:$0xff] %v14159_v16  ;;  %v14170_v11 = vsel %vm1116_vm7, %v5827_v60, %v13805_v18  ;;  %v4558_v4 = vmul.f32 %v14108_v46, %v4542_v58  ;;  %v14174_v25 = vmul.f32 0.70710677, %v14146_v35  ;;  %v4576_v32 = vadd.f32 1.4214138, %v4560_v33  ;;  %v14187_v18 = vpop.permute.xlu2 %6011 }
 0xef9   : > { %16890 = vst [vmem:[#allocation229_spill] sm:$0xff] %v14165_v39  ;;  %v14176_v55 = vpop.eup %6699  ;;  %5934 = vrot.lane.b32.xlu2 %v16893_v7, %s15613_s29  ;;  %v4561_v8 = vmul.f32 %v14113_v63, %v4545_v20  ;;  %v14182_v51 = vadd.f32 %v16894_v36, %v4316_v41  ;;  %v14185_v31 = vadd.f32 %v16894_v36, %v4317_v42  ;;  %v4578_v57 = vadd.f32 1.4214138, %v4562_v26  ;;  %v14192_v60 = vpop.permute.xlu1 %6003  ;;  %s512_s29 = sand.u32 1, %s6819_s22  }
 0xefa   : > { %16891 = vst [vmem:[#allocation17_spill] sm:$0xff] %v14170_v11  ;;  %6637 = vset.pattern.permute.xlu2 %v16748_v9  ;;  %v4579_v58 = vadd.f32 1.4214138, %v4563_v2  ;;  %v4559_v34 = vmul.f32 %v14120_v5, %v4543_v48  ;;  %v14195_v20 = vand.u32 2147483647, %v14159_v16  ;;  %6701 = vrcp.f32 %v4487_v44  ;;  %v4977_v44 = vld [vmem:[%s14758_s13 + $0x58] sm:$0xff] }
 0xefb   : > { %16892 = vst [vmem:[#allocation40_spill] sm:$0xff] %v14174_v25  ;;  %v14197_v41 = vmul.f32 1.442695, %v4689_v47  ;;  %v4574_v33 = vadd.f32 1.4214138, %v4558_v4  ;;  %6703 = vpow2.f32 %v4716_v40  ;;  %v4592_v26 = vmul.f32 %v13949_v3, %v4576_v32  ;;  %s6331_s27 = sshll.u32 %s512_s29, 6 }
 0xefc   : > { %16895 = vst [vmem:[#allocation231_spill] sm:$0xff] %v14182_v51  ;;  %v14201_v7 = vand.u32 2147483647, %v14174_v25  ;;  %v14204_v9 = vmul.f32 1.0614054, %v14176_v55  ;;  %v4594_v4 = vmul.f32 %v14066_v27, %v4578_v57  ;;  %v4595_v40 = vmul.f32 %v14088_v0, %v4579_v58  ;;  %s14694_s5 = scalar_lea.vmem [#allocation2], %s6331_s27 }
 0xefd   : > { %16896 = vst [vmem:[#allocation191_spill] sm:$0xff] %v14185_v31  ;;  %v4577_v2 = vadd.f32 1.4214138, %v4561_v8  ;;  %v14208_v48 = vmul.f32 0.70710677, %v14182_v51  ;;  %v4674_v36 = vsub.f32 0.0, %v13905_v37  ;;  %v4590_v58 = vmul.f32 %v14108_v46, %v4574_v33 }
 0xefe   : > { %16897 = vst [vmem:[#allocation150_spill] sm:$0xff] %v14187_v18  ;;  %v14211_v47 = vmul.f32 0.70710677, %v14185_v31  ;;  %v4575_v42 = vadd.f32 1.4214138, %v4559_v34  ;;  %v5833_v15 = vpop.permute.xlu0 %5832  ;;  %v4675_v32 = vsub.f32 0.0, %v13944_v24 }
 0xeff   : > { %16898 = vst [vmem:[#allocation308_spill] sm:$0xff] %v14192_v60  ;;  %v4670_v8 = vsub.f32 0.0, %v13933_v49  ;;  %v4671_v30 = vsub.f32 0.0, %v13973_v45  ;;  %v4472_v31 = vmul.f32 0.3275911, %v14195_v20  ;;  %v5843_v51 = vsel %vm1116_vm7, %v13877_v59, %v5833_v15  ;;  %s6262_s1 = sshll.u32 %s14694_s5, 4  ;;  %s6263_s1 = int_to_ptr.vmem [resolvable:$true] %s6262_s1 }
 0xf00   : > { %16899 = vst [vmem:[#allocation232_spill] sm:$0xff] %v14195_v20  ;;  %v5851_v57 = vsel %vm1116_vm7, %v5833_v15, %v13877_v59  ;;  %v4473_v34 = vmul.f32 0.3275911, %v14201_v7  ;;  %v14231_v35 = vpop.eup %6701  ;;  %v5896_v43 = vmul.f32 %v14097_v10, %v5843_v51  ;;  %v14236_v16 = vand.u32 2147483647, %v14208_v48  ;;  %v14243_v59 = vpop.permute.xlu2 %5962  ;;  %v16905_v51 = vld [vmem:[#allocation36_spill] sm:$0xff] }
 0xf01   : > { %16900 = vst [vmem:[#allocation189_spill] sm:$0xff] %v14201_v7  ;;  %v5897_v25 = vmul.f32 %v14097_v10, %v5851_v57  ;;  %6079 = vperm.xlu2 %6637, %v4977_v44   ;;  %v14239_v11 = vand.u32 2147483647, %v14211_v47  ;;  %v14241_v39 = vpop.eup %6703  ;;  %v4610_v15 = vadd.f32 -0.28449672, %v4594_v4  ;;  %v4690_v7 = vmul.f32 %v4674_v36, %v13905_v37  ;;  %v16906_v10 = vld [vmem:[#allocation49_spill] sm:$0xff]  ;;  %v5868_v18 = vpop.permute.xlu1 %5867 }
 0xf02   : > { %16901 = vst [vmem:[#allocation186_spill] sm:$0xff] %v14208_v48  ;;  %v4611_v33 = vadd.f32 -0.28449672, %v4595_v40  ;;  %v4591_v20 = vmul.f32 %v14120_v5, %v4575_v42  ;;  %v5912_v60 = vmul.f32 %v5896_v43, %v16905_v51  ;;  %v4691_v57 = vmul.f32 %v4675_v32, %v13944_v24  ;;  %v4975_v24 = vld [vmem:[%s14758_s13 + $0x48] sm:$0xff]  ;;  %s6250_s19 = scalar_lea.sflag [#allocation3], %s512_s29 }
 0xf03   : > { %16902 = vst [vmem:[#allocation188_spill] sm:$0xff] %v14211_v47  ;;  %v5913_v44 = vmul.f32 %v5897_v25, %v16906_v10  ;;  %v4488_v48 = vadd.f32 1.0, %v4472_v31  ;;  %v4606_v47 = vadd.f32 -0.28449672, %v4590_v58  ;;  %v4686_v22 = vmul.f32 %v4670_v8, %v13933_v49  ;;  %v16909_v32 = vld [vmem:[#allocation174_spill] sm:$0xff] }
 0xf04   : > { %16903 = vst [vmem:[#allocation315_spill] sm:$0xff] %v14241_v39  ;;  %v4687_v39 = vmul.f32 %v4671_v30, %v13973_v45  ;;  %v5892_v4 = vmul.f32 %v5868_v18, %v14024_v53  ;;  %v5893_v37 = vmul.f32 %v5868_v18, %v14029_v1  ;;  %v14255_v42 = vadd.f32 %v5912_v60, %v14041_v62 }
 0xf05   : > { %16904 = vst [vmem:[#allocation316_spill] sm:$0xff] %v14243_v59  ;;  %v4489_v59 = vadd.f32 1.0, %v4473_v34  ;;  %v14258_v43 = vadd.f32 %v5913_v44, %v14043_v52  ;;  %v4626_v25 = vmul.f32 %v14066_v27, %v4610_v15  ;;  %v4627_v49 = vmul.f32 %v14088_v0, %v4611_v33 }
 0xf06   : > { %v4720_v45 = vmul.f32 1.442695, %v4690_v7  ;;  %v4607_v30 = vadd.f32 -0.28449672, %v4591_v20  ;;  %v5908_v53 = vmul.f32 %v5892_v4, %v16905_v51  ;;  %v5909_v1 = vmul.f32 %v5893_v37, %v16906_v10  ;;  %v14267_v31 = vpop.permute.xlu0 %5834  ;;  %v16907_v7 = vld [vmem:[#allocation178_spill] sm:$0xff]  ;;  %v16912_v37 = vld [vmem:[#allocation151_spill] sm:$0xff] }
 0xf07   : > { %v4722_v62 = vmul.f32 1.442695, %v4691_v57  ;;  %6705 = vrcp.f32 %v4488_v48  ;;  %v4608_v52 = vadd.f32 -0.28449672, %v4592_v26  ;;  %v4593_v18 = vmul.f32 %v14113_v63, %v4577_v2 }
 0xf08   : > { %6707 = vrcp.f32 %v4489_v59  ;;  %v4468_v60 = vmul.f32 0.3275911, %v14236_v16  ;;  %v4622_v40 = vmul.f32 %v14108_v46, %v4606_v47  ;;  %v4712_v36 = vmul.f32 1.442695, %v4686_v22  ;;  %v14278_v58 = vpop.permute.xlu2 %5944 }
 0xf09   : > { %6069 = vperm.xlu2 %6637, %v4975_v24   ;;  %v14273_v20 = vadd.f32 %v5908_v53, %v16907_v7  ;;  %v14276_v8 = vadd.f32 %v5909_v1, %v16909_v32  ;;  %v4642_v34 = vadd.f32 0.2548296, %v4626_v25  ;;  %v4643_v48 = vadd.f32 0.2548296, %v4627_v49  ;;  %v14283_v22 = vpop.permute.xlu1 %5940 }
 0xf0a   : > { %6709 = vpow2.f32 %v4720_v45  ;;  %v4623_v26 = vmul.f32 %v14120_v5, %v4607_v30  ;;  %v4714_v2 = vmul.f32 1.442695, %v4687_v39  ;;  %v4519_v59 = vmul.f32 1.0614054, %v14231_v35  ;;  %16911 = vst [vmem:[#allocation75_spill] sm:$0xff] %v14283_v22  ;;  %v6139_v45 = vld [vmem:[%s14760_s15 + $0x8] sm:$0xff] }
 0xf0b   : > { %16908 = vst [vmem:[#allocation44_spill] sm:$0xff] %v14273_v20  ;;  %6711 = vpow2.f32 %v4722_v62  ;;  %v4469_v47 = vmul.f32 0.3275911, %v14239_v11  ;;  %v4624_v15 = vmul.f32 %v13949_v3, %v4608_v52  ;;  %v4609_v33 = vadd.f32 -0.28449672, %v4593_v18  ;;  %v16933_v20 = vld [vmem:[#allocation184_spill] sm:$0xff] }
 0xf0c   : > { %16910 = vst [vmem:[#allocation239_spill] sm:$0xff] %v14276_v8  ;;  %6713 = vpow2.f32 %v14197_v41  ;;  %v4534_v44 = vadd.f32 -1.4531521, %v14204_v9  ;;  %v16913_v39 = vsub.f32 1.0, %v14103_v56  ;;  %v4484_v25 = vadd.f32 1.0, %v4468_v60 }
 0xf0d   : > { %v14288_v57 = vpop.eup %6705  ;;  %6715 = vpow2.f32 %v4712_v36  ;;  %v4658_v41 = vmul.f32 %v14066_v27, %v4642_v34  ;;  %v4659_v9 = vmul.f32 %v14088_v0, %v4643_v48  ;;  %v4638_v30 = vadd.f32 0.2548296, %v4622_v40 }
 0xf0e   : > { %v14294_v24 = vmul.f32 %v16913_v39, %v16912_v37  ;;  %v14296_v49 = vpop.eup %6707  ;;  %v4639_v53 = vadd.f32 0.2548296, %v4623_v26  ;;  %v14303_v1 = vpop.permute.xlu0 %5942  ;;  %6717 = vpow2.f32 %v4714_v2  ;;  %v16915_v56 = vsub.f32 1.0, %v14148_v6 }
 0xf0f   : > { %v16916_v52 = vsub.f32 1.0, %v14156_v21  ;;  %v4485_v60 = vadd.f32 1.0, %v4469_v47  ;;  %v14315_v27 = vadd.f32 0.2548296, %v4624_v15  ;;  %v4625_v0 = vmul.f32 %v14113_v63, %v4609_v33 }
 0xf10   : > { %16914 = vst [vmem:[#allocation100_spill] sm:$0xff] %v14294_v24  ;;  %v14308_v62 = vmul.f32 %v16915_v56, %v14079_v28  ;;  %v6710_v36 = vpop.eup %6709  ;;  %v14318_v40 = vadd.f32 -1.4531521, %v4519_v59  ;;  %v14321_v7 = vmul.f32 %v14176_v55, %v4534_v44  ;;  %vm4430_vm3 = vcmp.ge.f32.partialorder %v13891_v54, 0.0  ;;  %v5872_v21 = vpop.permute.xlu2 %5871  ;;  %v16940_v24 = vld [vmem:[#allocation15_spill] sm:$0xff] }
 0xf11   : > { %v14313_v18 = vmul.f32 %v16916_v52, %v14093_v29  ;;  %v6712_v32 = vpop.eup %6711  ;;  %6149 = vperm.xlu2 %6637, %v6139_v45   ;;  %v4520_v28 = vmul.f32 1.0614054, %v14288_v57  ;;  %v4521_v29 = vmul.f32 1.0614054, %v14296_v49  ;;  %6719 = vrcp.f32 %v4484_v25  ;;  %v14341_v44 = vpop.permute.xlu1 %5995  ;;  %v6141_v25 = vld [vmem:[%s14760_s15 + $0x18] sm:$0xff] }
 0xf12   : > { %v14326_v6 = vpop.eup %6713  ;;  %v4738_v34 = vmul.f32 %v6710_v36, %v4658_v41  ;;  %v4739_v48 = vmul.f32 %v6712_v32, %v4659_v9  ;;  %v4654_v26 = vmul.f32 %v14108_v46, %v4638_v30  ;;  %v4655_v2 = vmul.f32 %v14120_v5, %v4639_v53  ;;  %16918 = vst [vmem:[#allocation87_spill] sm:$0xff] %v14341_v44  ;;  %v16919_v30 = vld [vmem:[#allocation197_spill] sm:$0xff]  ;;  %v16920_v52 = vld [vmem:[#allocation156_spill] sm:$0xff] }
 0xf13   : > { %16917 = vst [vmem:[#allocation97_spill] sm:$0xff] %v14313_v18  ;;  %v6716_v59 = vpop.eup %6715  ;;  %v5894_v47 = vmul.f32 %v5872_v21, %v14058_v13  ;;  %v5895_v15 = vmul.f32 %v5872_v21, %v14063_v61  ;;  %vm4431_vm5 = vcmp.ge.f32.partialorder %v13930_v12, 0.0  ;;  %6721 = vrcp.f32 %v4485_v60  ;;  %v16922_v36 = vld [vmem:[#allocation172_spill] sm:$0xff] }
 0xf14   : > { %v5845_v33 = vsel %vm1116_vm7, %v14123_v50, %v14081_v17  ;;  %v5853_v46 = vsel %vm1116_vm7, %v14081_v17, %v14123_v50  ;;  %vm4434_vm6 = vcmp.ge.f32.partialorder %v13870_v38, 0.0  ;;  %vm4435_vm12 = vcmp.ge.f32.partialorder %v13902_v14, 0.0  ;;  %v6718_v5 = vpop.eup %6717  ;;  %v16926_v21 = vld [vmem:[#allocation236_spill] sm:$0xff] }
 0xf15   : > { %v5910_v13 = vmul.f32 %v5894_v47, %v16905_v51  ;;  %v5911_v61 = vmul.f32 %v5895_v15, %v16906_v10  ;;  %v4536_v37 = vadd.f32 -1.4531521, %v4520_v28  ;;  %v4537_v39 = vadd.f32 -1.4531521, %v4521_v29  ;;  %v16925_v29 = vld [vmem:[#allocation271_spill] sm:$0xff]  ;;  %v16928_v15 = vld [vmem:[#allocation150_spill] sm:$0xff] }
 0xf16   : > { %v4754_v45 = vsub.f32 1.0, %v4738_v34  ;;  %v4755_v41 = vsub.f32 1.0, %v4739_v48  ;;  %v4734_v17 = vmul.f32 %v6716_v59, %v4654_v26  ;;  %v4735_v50 = vmul.f32 %v6718_v5, %v4655_v2  ;;  %v14360_v28 = vpop.permute.xlu0 %5956 }
 0xf17   : > { %v14350_v9 = vpop.eup %6719  ;;  %v5900_v53 = vmul.f32 %v16919_v30, %v5845_v33  ;;  %v5901_v56 = vmul.f32 %v16919_v30, %v5853_v46  ;;  %v14355_v60 = vadd.f32 %v5910_v13, %v16920_v52  ;;  %v14358_v32 = vadd.f32 %v5911_v61, %v16922_v36  ;;  %16924 = vst [vmem:[#allocation80_spill] sm:$0xff] %v14360_v28  ;;  %v16937_v28 = vld [vmem:[#allocation232_spill] sm:$0xff] }
 0xf18   : > { %v5973_v34 = vsel %vm1186_vm8, %v16926_v21, %v16925_v29  ;;  %v5981_v48 = vsel %vm1186_vm8, %v16925_v29, %v16926_v21  ;;  %v16927_v26 = vmov -1.0   ;;  %v4552_v5 = vmul.f32 %v14288_v57, %v4536_v37  ;;  %v14382_v61 = vpop.permute.xlu2 %5958  ;;  %v16929_v21 = vld [vmem:[#allocation39_spill] sm:$0xff] }
 0xf19   : > { %16921 = vst [vmem:[#allocation16_spill] sm:$0xff] %v14355_v60  ;;  %v4450_v2 = vsel %vm4434_vm6, 1.0, %v16927_v26  ;;  %v4451_v59 = vsel %vm4435_vm12, 1.0, %v16927_v26  ;;  %v14376_v47 = vpop.eup %6721  ;;  %v6028_v33 = vmul.f32 %v16928_v15, %v5973_v34  ;;  %v6029_v46 = vmul.f32 %v16928_v15, %v5981_v48  ;;  %6159 = vperm.xlu2 %6637, %v6141_v25   ;;  %v16931_v34 = vld [vmem:[#allocation48_spill] sm:$0xff] }
 0xf1a   : > { %16923 = vst [vmem:[#allocation195_spill] sm:$0xff] %v14358_v32  ;;  %v4553_v13 = vmul.f32 %v14296_v49, %v4537_v39  ;;  %v4770_v30 = vmul.f32 %v4754_v45, %v4450_v2  ;;  %v4771_v38 = vmul.f32 %v4755_v41, %v4451_v59  ;;  %v4750_v52 = vsub.f32 1.0, %v4734_v17  ;;  %v14396_v39 = vpop.permute.xlu1 %5954  ;;  %v16932_v59 = vld [vmem:[#allocation308_spill] sm:$0xff] }
 0xf1b   : > { %v14384_v36 = vadd.f32 0.2548296, %v4625_v0  ;;  %v5916_v14 = vmul.f32 %v5900_v53, %v16905_v51  ;;  %v5917_v29 = vmul.f32 %v5901_v56, %v16906_v10  ;;  %v5971_v25 = vsel %vm1186_vm8, %v14278_v58, %v16929_v21  ;;  %v16930_v53 = vld [vmem:[#allocation62_spill] sm:$0xff] }
 0xf1c   : > { %v5979_v37 = vsel %vm1186_vm8, %v16929_v21, %v14278_v58  ;;  %v4446_v0 = vsel %vm4430_vm3, 1.0, %v16927_v26  ;;  %v4447_v45 = vsel %vm4431_vm5, 1.0, %v16927_v26  ;;  %v4751_v41 = vsub.f32 1.0, %v4735_v50 }
 0xf1d   : > { %v4656_v17 = vmul.f32 %v13949_v3, %v14315_v27  ;;  %v6044_v56 = vmul.f32 %v6028_v33, %v16930_v53  ;;  %v6045_v48 = vmul.f32 %v6029_v46, %v16931_v34  ;;  %v4568_v2 = vadd.f32 1.4214138, %v4552_v5  ;;  %v16934_v3 = vld [vmem:[#allocation185_spill] sm:$0xff]  ;;  %v16935_v33 = vld [vmem:[#allocation206_spill] sm:$0xff] }
 0xf1e   : > { %v4569_v58 = vadd.f32 1.4214138, %v4553_v13  ;;  %v6024_v15 = vmul.f32 %v16932_v59, %v5971_v25  ;;  %v6025_v21 = vmul.f32 %v16932_v59, %v5979_v37  ;;  %v4766_v54 = vmul.f32 %v4750_v52, %v4446_v0  ;;  %v14411_v8 = vpop.permute.xlu0 %6094  ;;  %v16936_v46 = vld [vmem:[#allocation90_spill] sm:$0xff] }
 0xf1f   : > { %v4516_v4 = vmul.f32 1.0614054, %v14350_v9  ;;  %v4786_v12 = vadd.f32 1.0, %v4770_v30  ;;  %v4787_v50 = vadd.f32 1.0, %v4771_v38  ;;  %v5932_v44 = vadd.f32 %v5916_v14, %v16933_v20  ;;  %v16938_v14 = vld [vmem:[#allocation189_spill] sm:$0xff] }
 0xf20   : > { %v5933_v27 = vadd.f32 %v5917_v29, %v16934_v3  ;;  %v4402_v22 = vmul.f32 0.5, %v16935_v33  ;;  %v4403_v5 = vmul.f32 0.5, %v16936_v46  ;;  %v4767_v13 = vmul.f32 %v4751_v41, %v4447_v45 }
 0xf21   : > { %v4664_v25 = vsub.f32 0.0, %v16937_v28  ;;  %v6060_v32 = vadd.f32 %v6044_v56, %v5932_v44  ;;  %v4584_v52 = vmul.f32 %v14288_v57, %v4568_v2  ;;  %v4585_v0 = vmul.f32 %v14296_v49, %v4569_v58  ;;  %v16939_v44 = vld [vmem:[#allocation208_spill] sm:$0xff] }
 0xf22   : > { %v6061_v37 = vadd.f32 %v6045_v48, %v5933_v27  ;;  %v6040_v30 = vmul.f32 %v6024_v15, %v16930_v53  ;;  %v6041_v38 = vmul.f32 %v6025_v21, %v16931_v34  ;;  %v6100_v20 = vpop.permute.xlu2 %6099  ;;  %v4665_v29 = vsub.f32 0.0, %v16938_v14  ;;  %v14424_v46 = vpop.permute.xlu1 %5991 }
 0xf23   : > { %v4517_v59 = vmul.f32 1.0614054, %v14376_v47  ;;  %v4802_v3 = vmul.f32 %v4786_v12, %v4402_v22  ;;  %v4803_v33 = vmul.f32 %v4787_v50, %v4403_v5  ;;  %v6116_v45 = vadd.f32 %v6100_v20, %v6060_v32 }
 0xf24   : > { %v6117_v41 = vadd.f32 %v6100_v20, %v6061_v37  ;;  %v4398_v56 = vmul.f32 0.5, %v16939_v44  ;;  %v4782_v48 = vadd.f32 1.0, %v4766_v54  ;;  %v4783_v2 = vadd.f32 1.0, %v4767_v13 }
 0xf25   : > { %v4680_v58 = vmul.f32 %v4664_v25, %v16937_v28  ;;  %v6136_v15 = vmul.f32 %v6116_v45, %v4802_v3  ;;  %v4600_v21 = vadd.f32 -0.28449672, %v4584_v52  ;;  %v4601_v60 = vadd.f32 -0.28449672, %v4585_v0  ;;  %v16944_v3 = vld [vmem:[#allocation17_spill] sm:$0xff] }
 0xf26   : > { %v6137_v27 = vmul.f32 %v6117_v41, %v4803_v33  ;;  %v4399_v23 = vmul.f32 0.5, %v16940_v24  ;;  %v6056_v18 = vadd.f32 %v6040_v30, %v14255_v42  ;;  %v6057_v22 = vadd.f32 %v6041_v38, %v14258_v43  ;;  %v6090_v12 = vpop.permute.xlu0 %6089 }
 0xf27   : > { %v4681_v32 = vmul.f32 %v4665_v29, %v16938_v14  ;;  %6183 = vmatpush.msra.mxu0 %v6136_v15  ;;  %v4551_v54 = vmul.f32 %v14231_v35, %v14318_v40  ;;  %v4566_v28 = vadd.f32 1.4214138, %v14321_v7  ;;  %v4532_v50 = vadd.f32 -1.4531521, %v4516_v4  ;;  %v16941_v7 = vld [vmem:[#allocation315_spill] sm:$0xff]  ;;  %v16942_v14 = vld [vmem:[#allocation181_spill] sm:$0xff] }
 0xf28   : > { %6212 = vmatpush.msra.mxu1 %v6137_v27  ;;  %v4533_v5 = vadd.f32 -1.4531521, %v4517_v59  ;;  %v4798_v13 = vmul.f32 %v4782_v48, %v4398_v56  ;;  %v4799_v25 = vmul.f32 %v4783_v2, %v4399_v23  ;;  %v6112_v37 = vadd.f32 %v6090_v12, %v6056_v18  ;;  %v16946_v27 = vld [vmem:[#allocation223_spill] sm:$0xff] }
 0xf29   : > { %v6113_v24 = vadd.f32 %v6090_v12, %v6057_v22  ;;  %v4616_v42 = vmul.f32 %v14288_v57, %v4600_v21  ;;  %v4617_v43 = vmul.f32 %v14296_v49, %v4601_v60  ;;  %v4700_v52 = vmul.f32 1.442695, %v4680_v58  ;;  %v16943_v60 = vld [vmem:[#allocation229_spill] sm:$0xff]  ;;  %v16945_v58 = vld [vmem:[#allocation299_spill] sm:$0xff] }
 0xf2a   : > { %v4657_v0 = vmul.f32 %v14113_v63, %v14384_v36  ;;  %v14439_v30 = vmul.f32 %v6112_v37, %v4798_v13  ;;  %v4702_v40 = vmul.f32 1.442695, %v4681_v32  ;;  %v4736_v4 = vmul.f32 %v16941_v7, %v4656_v17 }
 0xf2b   : > { %v14441_v38 = vmul.f32 %v6113_v24, %v4799_v25  ;;  %v5864_v20 = vpop.permute.xlu2 %5863  ;;  %vm4432_vm13 = vcmp.ge.f32.partialorder %v16942_v14, 0.0  ;;  %v4567_v23 = vadd.f32 1.4214138, %v4551_v54  ;;  %v4582_v18 = vmul.f32 %v14176_v55, %v4566_v28  ;;  %v16947_v54 = vld [vmem:[#allocation171_spill] sm:$0xff] }
 0xf2c   : > { %v4660_v29 = vsub.f32 0.0, %v14236_v16  ;;  %v5890_v59 = vmul.f32 %v5864_v20, %v16943_v60  ;;  %v5891_v33 = vmul.f32 %v5864_v20, %v16944_v3  ;;  %v14449_v63 = vpop.permute.xlu1 %5952  ;;  %v4548_v36 = vmul.f32 %v14350_v9, %v4532_v50  ;;  %v16948_v50 = vld [vmem:[#allocation138_spill] sm:$0xff] }
 0xf2d   : > { %v4549_v45 = vmul.f32 %v14376_v47, %v4533_v5  ;;  %v4632_v41 = vadd.f32 0.2548296, %v4616_v42  ;;  %v4633_v17 = vadd.f32 0.2548296, %v4617_v43  ;;  %6723 = vpow2.f32 %v4700_v52 }
 0xf2e   : > { %v4737_v44 = vmul.f32 %v14326_v6, %v4657_v0  ;;  %v5906_v56 = vmul.f32 %v5890_v59, %v16905_v51  ;;  %v5907_v48 = vmul.f32 %v5891_v33, %v16906_v10  ;;  %6725 = vpow2.f32 %v4702_v40  ;;  %v16951_v59 = vld [vmem:[#allocation182_spill] sm:$0xff] }
 0xf2f   : > { %v4752_v2 = vsub.f32 1.0, %v4736_v4  ;;  %v4662_v15 = vsub.f32 0.0, %v16945_v58  ;;  %v4663_v21 = vsub.f32 0.0, %v16946_v27  ;;  %v4676_v22 = vmul.f32 %v4660_v29, %v14236_v16  ;;  %v5880_v12 = vpop.permute.xlu0 %5879  ;;  %v16949_v16 = vld [vmem:[#allocation192_spill] sm:$0xff] }
 0xf30   : > { %v4661_v32 = vsub.f32 0.0, %v14239_v11  ;;  %v14461_v28 = vadd.f32 %v5906_v56, %v16947_v54  ;;  %v14464_v6 = vadd.f32 %v5907_v48, %v16948_v50  ;;  %v4564_v5 = vadd.f32 1.4214138, %v4548_v36  ;;  %v16950_v4 = vld [vmem:[#allocation180_spill] sm:$0xff]  ;;  %v16952_v48 = vld [vmem:[#allocation53_spill] sm:$0xff]  ;;  %v16954_v54 = vld [vmem:[#allocation263_spill] sm:$0xff] }
 0xf31   : > { %v4565_v13 = vadd.f32 1.4214138, %v4549_v45  ;;  %v4648_v25 = vmul.f32 %v14288_v57, %v4632_v41  ;;  %v4649_v37 = vmul.f32 %v14296_v49, %v4633_v17  ;;  %v4448_v24 = vsel %vm4432_vm13, 1.0, %v16927_v26 }
 0xf32   : > { %vm4433_vm14 = vcmp.ge.f32.partialorder %v16949_v16, 0.0  ;;  %v4768_v42 = vmul.f32 %v4752_v2, %v4448_v24  ;;  %v4753_v43 = vsub.f32 1.0, %v4737_v44  ;;  %v4583_v52 = vmul.f32 %v14231_v35, %v4567_v23  ;;  %v16953_v2 = vld [vmem:[#allocation40_spill] sm:$0xff]  ;;  %v16956_v24 = vld [vmem:[#allocation169_spill] sm:$0xff] }
 0xf33   : > { %v4598_v0 = vadd.f32 -0.28449672, %v4582_v18  ;;  %v6724_v40 = vpop.eup %6723  ;;  %v5939_v7 = vpop.permute.xlu2 %5938  ;;  %v14474_v20 = vmul.f32 0.5, %v16950_v4  ;;  %v14477_v57 = vadd.f32 1.0, %v14308_v62  ;;  %v4692_v49 = vmul.f32 1.442695, %v4676_v22 }
 0xf34   : > { %v4677_v29 = vmul.f32 %v4661_v32, %v14239_v11  ;;  %v6726_v14 = vpop.eup %6725  ;;  %v14480_v60 = vpop.permute.xlu1 %6084  ;;  %v14483_v3 = vmul.f32 0.5, %v16951_v59  ;;  %v14486_v23 = vmul.f32 %v4662_v15, %v16945_v58  ;;  %v4580_v18 = vmul.f32 %v14350_v9, %v4564_v5  ;;  %v16955_v5 = vld [vmem:[#allocation287_spill] sm:$0xff] }
 0xf35   : > { %v4581_v33 = vmul.f32 %v14376_v47, %v4565_v13  ;;  %v4728_v36 = vmul.f32 %v6724_v40, %v4648_v25  ;;  %v4729_v45 = vmul.f32 %v6726_v14, %v4649_v37  ;;  %v4449_v62 = vsel %vm4433_vm14, 1.0, %v16927_v26  ;;  %v16957_v14 = vld [vmem:[#allocation96_spill] sm:$0xff] }
 0xf36   : > { %v14494_v11 = vmul.f32 %v4663_v21, %v16946_v27  ;;  %v14496_v41 = vadd.f32 1.0, %v4768_v42  ;;  %v4769_v17 = vmul.f32 %v4753_v43, %v4449_v62  ;;  %v14498_v44 = vadd.f32 -0.28449672, %v4583_v52 }
 0xf37   : > { %v14501_v56 = vmul.f32 %v14176_v55, %v4598_v0  ;;  %vm4424_vm15 = vcmp.ge.f32.partialorder %v16952_v48, 0.0  ;;  %vm4425_vm9 = vcmp.ge.f32.partialorder %v16953_v2, 0.0  ;;  %6727 = vpow2.f32 %v4692_v49  ;;  %v16960_v48 = vld [vmem:[#allocation176_spill] sm:$0xff] }
 0xf38   : > { %v4694_v58 = vmul.f32 1.442695, %v4677_v29  ;;  %v5968_v15 = vsel %vm1186_vm8, %v5939_v7, %v14396_v39  ;;  %v5976_v27 = vsel %vm1186_vm8, %v14396_v39, %v5939_v7  ;;  %v5856_v21 = vpop.permute.xlu0 %5855  ;;  %v4596_v22 = vadd.f32 -0.28449672, %v4580_v18  ;;  %v16958_v18 = vld [vmem:[#allocation222_spill] sm:$0xff] }
 0xf39   : > { %v4597_v32 = vadd.f32 -0.28449672, %v4581_v33  ;;  %v5886_v50 = vmul.f32 %v5856_v21, %v16954_v54  ;;  %v5887_v13 = vmul.f32 %v5856_v21, %v16955_v5  ;;  %v4744_v25 = vsub.f32 1.0, %v4728_v36 }
 0xf3a   : > { %v4745_v37 = vsub.f32 1.0, %v4729_v45  ;;  %v5844_v16 = vsel %vm1116_vm7, %v16956_v24, %v14267_v31  ;;  %v5852_v42 = vsel %vm1116_vm7, %v14267_v31, %v16956_v24  ;;  %v4440_v39 = vsel %vm4424_vm15, 1.0, %v16927_v26  ;;  %v16959_v45 = vld [vmem:[#allocation216_spill] sm:$0xff] }
 0xf3b   : > { %v4441_v43 = vsel %vm4425_vm9, 1.0, %v16927_v26  ;;  %v6018_v52 = vmul.f32 %v14424_v46, %v5968_v15  ;;  %v6019_v0 = vmul.f32 %v14424_v46, %v5976_v27  ;;  %v5902_v40 = vmul.f32 %v5886_v50, %v16905_v51  ;;  %v5860_v4 = vpop.permute.xlu2 %5859 }
 0xf3c   : > { %v5903_v7 = vmul.f32 %v5887_v13, %v16906_v10  ;;  %v5898_v49 = vmul.f32 %v5880_v12, %v5844_v16  ;;  %v5899_v29 = vmul.f32 %v5880_v12, %v5852_v42  ;;  %v5888_v59 = vmul.f32 %v5860_v4, %v16957_v14  ;;  %v14529_v31 = vpop.permute.xlu1 %5950  ;;  %v16962_v42 = vld [vmem:[#allocation175_spill] sm:$0xff] }
 0xf3d   : > { %v5889_v33 = vmul.f32 %v5860_v4, %v16958_v18  ;;  %v14531_v36 = vpop.eup %6727  ;;  %v14534_v62 = vadd.f32 %v5902_v40, %v16959_v45  ;;  %v4760_v2 = vmul.f32 %v4744_v25, %v4440_v39  ;;  %v4761_v15 = vmul.f32 %v4745_v37, %v4441_v43  ;;  %v16961_v25 = vld [vmem:[#allocation159_spill] sm:$0xff]  ;;  %v16963_v43 = vld [vmem:[#allocation316_spill] sm:$0xff] }
 0xf3e   : > { %v14537_v46 = vadd.f32 %v5903_v7, %v16960_v48  ;;  %v5904_v27 = vmul.f32 %v5888_v59, %v16905_v51  ;;  %v4612_v21 = vmul.f32 %v14350_v9, %v4596_v22  ;;  %v4613_v54 = vmul.f32 %v14376_v47, %v4597_v32  ;;  %v16964_v22 = vld [vmem:[#allocation286_spill] sm:$0xff]  ;;  %v16966_v14 = vld [vmem:[#allocation95_spill] sm:$0xff] }
 0xf3f   : > { %v5905_v12 = vmul.f32 %v5889_v33, %v16906_v10  ;;  %v6034_v50 = vmul.f32 %v6018_v52, %v16930_v53  ;;  %v6035_v5 = vmul.f32 %v6019_v0, %v16931_v34  ;;  %v4785_v13 = vadd.f32 1.0, %v4769_v17  ;;  %v16967_v45 = vld [vmem:[#allocation199_spill] sm:$0xff] }
 0xf40   : > { %6729 = vpow2.f32 %v4694_v58  ;;  %v5914_v24 = vmul.f32 %v5898_v49, %v16905_v51  ;;  %v5915_v16 = vmul.f32 %v5899_v29, %v16906_v10  ;;  %v14548_v37 = vadd.f32 %v5904_v27, %v16961_v25  ;;  %v16965_v49 = vld [vmem:[#allocation201_spill] sm:$0xff] }
 0xf41   : > { %v14551_v39 = vadd.f32 %v5905_v12, %v16962_v42  ;;  %v5972_v32 = vsel %vm1186_vm8, %v16964_v22, %v16963_v43  ;;  %v5980_v17 = vsel %vm1186_vm8, %v16963_v43, %v16964_v22  ;;  %v6008_v58 = vpop.permute.xlu0 %6007  ;;  %v4776_v51 = vadd.f32 1.0, %v4760_v2  ;;  %v16968_v27 = vld [vmem:[#allocation165_spill] sm:$0xff] }
 0xf42   : > { %v4777_v52 = vadd.f32 1.0, %v4761_v15  ;;  %v6026_v10 = vmul.f32 %v6008_v58, %v5972_v32  ;;  %v6027_v0 = vmul.f32 %v6008_v58, %v5980_v17  ;;  %v4628_v40 = vadd.f32 0.2548296, %v4612_v21 }
 0xf43   : > { %v4629_v7 = vadd.f32 0.2548296, %v4613_v54  ;;  %v14561_v4 = vpop.permute.xlu2 %5936  ;;  %v4392_v29 = vmul.f32 0.5, %v16965_v49  ;;  %v4393_v59 = vmul.f32 0.5, %v16966_v14  ;;  %v6050_v18 = vadd.f32 %v6034_v50, %v14461_v28  ;;  %v16970_v49 = vld [vmem:[#allocation168_spill] sm:$0xff] }
 0xf44   : > { %v6051_v33 = vadd.f32 %v6035_v5, %v14464_v6  ;;  %v5930_v48 = vadd.f32 %v5914_v24, %v16967_v45  ;;  %v5931_v12 = vadd.f32 %v5915_v16, %v16968_v27  ;;  %v6042_v2 = vmul.f32 %v6026_v10, %v16930_v53  ;;  %v6075_v21 = vpop.permute.xlu1 %6074 }
 0xf45   : > { %v6043_v15 = vmul.f32 %v6027_v0, %v16931_v34  ;;  %v4792_v25 = vmul.f32 %v4776_v51, %v4392_v29  ;;  %v4793_v42 = vmul.f32 %v4777_v52, %v4393_v59  ;;  %v6106_v43 = vadd.f32 %v6075_v21, %v6050_v18  ;;  %v16971_v29 = vld [vmem:[#allocation249_spill] sm:$0xff] }
 0xf46   : > { %v6730_v54 = vpop.eup %6729  ;;  %v6107_v22 = vadd.f32 %v6075_v21, %v6051_v33  ;;  %v6058_v32 = vadd.f32 %v6042_v2, %v5930_v48  ;;  %v4615_v28 = vmul.f32 %v14231_v35, %v14498_v44  ;;  %v4696_v6 = vmul.f32 1.442695, %v14486_v23  ;;  %v16973_v33 = vld [vmem:[#allocation167_spill] sm:$0xff]  ;;  %v16974_v48 = vld [vmem:[#allocation100_spill] sm:$0xff] }
 0xf47   : > { %v6059_v17 = vadd.f32 %v6043_v15, %v5931_v12  ;;  %v14574_v50 = vmul.f32 %v6106_v43, %v4792_v25  ;;  %v4644_v24 = vmul.f32 %v14350_v9, %v4628_v40  ;;  %v4645_v16 = vmul.f32 %v14376_v47, %v4629_v7  ;;  %v16969_v40 = vld [vmem:[#allocation97_spill] sm:$0xff]  ;;  %v16975_v2 = vld [vmem:[#allocation16_spill] sm:$0xff]  ;;  %v16980_v43 = vld [vmem:[#allocation75_spill] sm:$0xff] }
 0xf48   : > { %v14576_v5 = vmul.f32 %v6107_v22, %v4793_v42  ;;  %v4800_v58 = vmul.f32 %v14496_v41, %v14474_v20  ;;  %v6114_v51 = vadd.f32 %v14411_v8, %v6058_v32  ;;  %v4801_v52 = vmul.f32 %v4785_v13, %v14483_v3  ;;  %v16978_v25 = vld [vmem:[#allocation188_spill] sm:$0xff] }
 0xf49   : > { %v6115_v10 = vadd.f32 %v14411_v8, %v6059_v17  ;;  %v5970_v23 = vsel %vm1186_vm8, %v14303_v1, %v14382_v61  ;;  %v5978_v9 = vsel %vm1186_vm8, %v14382_v61, %v14303_v1  ;;  %v6000_v47 = vpop.permute.xlu0 %5999  ;;  %v4630_v44 = vadd.f32 0.2548296, %v14501_v56  ;;  %v16979_v42 = vld [vmem:[#allocation80_spill] sm:$0xff]  ;;  %v16981_v17 = vld [vmem:[#allocation317_spill] sm:$0xff] }
 0xf4a   : > { %v4698_v20 = vmul.f32 1.442695, %v14494_v11  ;;  %v6022_v41 = vmul.f32 %v6000_v47, %v5970_v23  ;;  %v6023_v0 = vmul.f32 %v6000_v47, %v5978_v9  ;;  %v6134_v3 = vmul.f32 %v6114_v51, %v4800_v58  ;;  %v16982_v58 = vld [vmem:[#allocation258_spill] sm:$0xff]  ;;  %v16983_v23 = vld [vmem:[#allocation87_spill] sm:$0xff] }
 0xf4b   : > { %v6135_v13 = vmul.f32 %v6115_v10, %v4801_v52  ;;  %v14595_v8 = vpop.permute.xlu2 %5987  ;;  %v4781_v7 = vadd.f32 1.0, %v16969_v40  ;;  %v16972_v14 = vsub.f32 1.0, %v16971_v29  ;;  %v4724_v18 = vmul.f32 %v14531_v36, %v4644_v24  ;;  %v16976_v36 = vld [vmem:[#allocation195_spill] sm:$0xff] }
 0xf4c   : > { %v4725_v1 = vmul.f32 %v6730_v54, %v4645_v16  ;;  %v6038_v61 = vmul.f32 %v6022_v41, %v16930_v53  ;;  %v6039_v56 = vmul.f32 %v6023_v0, %v16931_v34  ;;  %6184 = vmatpush.msra.mxu0 %v6134_v3  ;;  %v4631_v11 = vadd.f32 0.2548296, %v4615_v28  ;;  %v16977_v54 = vld [vmem:[#allocation186_spill] sm:$0xff]  ;;  %v16984_v0 = vld [vmem:[#allocation301_spill] sm:$0xff] }
 0xf4d   : > { %v4763_v59 = vmul.f32 %v16972_v14, %v16970_v49  ;;  %6731 = vpow2.f32 %v4696_v6  ;;  %6213 = vmatpush.msra.mxu1 %v6135_v13  ;;  %v4796_v45 = vmul.f32 %v14477_v57, %v16973_v33  ;;  %v4778_v27 = vadd.f32 1.0, %v16974_v48  ;;  %v6138_v13 = vld [vmem:[%s14760_s15] sm:$0xff] }
 0xf4e   : > { %v4646_v12 = vmul.f32 %v14176_v55, %v4630_v44  ;;  %6733 = vpow2.f32 %v4698_v20  ;;  %v6054_v15 = vadd.f32 %v6038_v61, %v16975_v2  ;;  %v6055_v21 = vadd.f32 %v6039_v56, %v16976_v36  ;;  %6185 = vmatpush.msra.mxu0 %v14439_v30  ;;  %v16986_v61 = vld [vmem:[#allocation129_spill] sm:$0xff]  ;;  %6144 = vperm.xlu0 %6638, %v6138_v13  }
 0xf4f   : > { %vm4420_vm7 = vcmp.ge.f32.partialorder %v16977_v54, 0.0  ;;  %vm4421_vm10 = vcmp.ge.f32.partialorder %v16978_v25, 0.0  ;;  %v5969_v57 = vsel %vm1186_vm8, %v16980_v43, %v16979_v42  ;;  %v5977_v55 = vsel %vm1186_vm8, %v16979_v42, %v16980_v43  ;;  %6214 = vmatpush.msra.mxu1 %v14441_v38  ;;  %v16988_v25 = vld [vmem:[#allocation191_spill] sm:$0xff] }
 0xf50   : > { %v4740_v22 = vsub.f32 1.0, %v4724_v18  ;;  %v4741_v32 = vsub.f32 1.0, %v4725_v1  ;;  %v6110_v30 = vadd.f32 %v14480_v60, %v6054_v15  ;;  %v4797_v28 = vmul.f32 %v4781_v7, %v16981_v17  ;;  %v16985_v18 = vld [vmem:[#allocation148_spill] sm:$0xff] }
 0xf51   : > { %v6111_v6 = vadd.f32 %v14480_v60, %v6055_v21  ;;  %v4647_v24 = vmul.f32 %v14231_v35, %v4631_v11  ;;  %v4779_v16 = vadd.f32 1.0, %v4763_v59  ;;  %vm4422_vm11 = vcmp.ge.f32.partialorder %v16982_v58, 0.0  ;;  %v5984_v40 = vpop.permute.xlu0 %5983  ;;  %v16987_v21 = vld [vmem:[#allocation231_spill] sm:$0xff]  ;;  %v16989_v17 = vld [vmem:[#allocation44_spill] sm:$0xff] }
 0xf52   : > { %v4436_v51 = vsel %vm4420_vm7, 1.0, %v16927_v26  ;;  %v4437_v52 = vsel %vm4421_vm10, 1.0, %v16927_v26  ;;  %v6020_v38 = vmul.f32 %v16983_v23, %v5969_v57  ;;  %v6021_v9 = vmul.f32 %v16983_v23, %v5977_v55 }
 0xf53   : > { %v6732_v10 = vpop.eup %6731  ;;  %v6130_v47 = vmul.f32 %v6110_v30, %v4796_v45  ;;  %v6131_v44 = vmul.f32 %v6111_v6, %v4797_v28  ;;  %v5935_v41 = vpop.permute.xlu2 %5934  ;;  %vm4423_vm0 = vcmp.ge.f32.partialorder %v16984_v0, 0.0  ;;  %v4756_v35 = vmul.f32 %v4740_v22, %v4436_v51  ;;  %v16990_v6 = vld [vmem:[#allocation239_spill] sm:$0xff] }
 0xf54   : > { %v6734_v20 = vpop.eup %6733  ;;  %v4726_v60 = vmul.f32 %v6732_v10, %v4646_v12  ;;  %v4757_v3 = vmul.f32 %v4741_v32, %v4437_v52  ;;  %v5966_v7 = vsel %vm1186_vm8, %v5935_v41, %v14529_v31  ;;  %v5974_v49 = vsel %vm1186_vm8, %v14529_v31, %v5935_v41  ;;  %v6065_v30 = vpop.permute.xlu1 %6064  ;;  %v16991_v41 = vld [vmem:[#allocation214_spill] sm:$0xff] }
 0xf55   : > { %6186 = vmatpush.msra.mxu0 %v6130_v47  ;;  %6215 = vmatpush.msra.mxu1 %v6131_v44  ;;  %v4727_v29 = vmul.f32 %v6734_v20, %v4647_v24  ;;  %v6014_v14 = vmul.f32 %v5984_v40, %v5966_v7  ;;  %v6015_v59 = vmul.f32 %v5984_v40, %v5974_v49  ;;  %v4438_v45 = vsel %vm4422_vm11, 1.0, %v16927_v26 }
 0xf56   : > { %v4794_v1 = vmul.f32 %v4778_v27, %v16985_v18  ;;  %v4795_v56 = vmul.f32 %v4779_v16, %v16986_v61  ;;  %v6036_v11 = vmul.f32 %v6020_v38, %v16930_v53  ;;  %v6037_v33 = vmul.f32 %v6021_v9, %v16931_v34 }
 0xf57   : > { %v4439_v31 = vsel %vm4423_vm0, 1.0, %v16927_v26  ;;  %v6030_v48 = vmul.f32 %v6014_v14, %v16930_v53  ;;  %v6031_v12 = vmul.f32 %v6015_v59, %v16931_v34  ;;  %v4772_v27 = vadd.f32 1.0, %v4756_v35 }
 0xf58   : > { %v4773_v2 = vadd.f32 1.0, %v4757_v3  ;;  %v4742_v15 = vsub.f32 1.0, %v4726_v60  ;;  %v4743_v36 = vsub.f32 1.0, %v4727_v29  ;;  %v4388_v54 = vmul.f32 0.5, %v16987_v21  ;;  %v16992_v60 = vld [vmem:[#allocation264_spill] sm:$0xff] }
 0xf59   : > { %v4389_v42 = vmul.f32 0.5, %v16988_v25  ;;  %v5967_v43 = vsel %vm1186_vm8, %v14561_v4, %v14449_v63  ;;  %v5975_v26 = vsel %vm1186_vm8, %v14449_v63, %v14561_v4  ;;  %v6046_v57 = vadd.f32 %v6030_v48, %v14534_v62 }
 0xf5a   : > { %v6047_v55 = vadd.f32 %v6031_v12, %v14537_v46  ;;  %v6016_v22 = vmul.f32 %v14595_v8, %v5967_v43  ;;  %v6017_v32 = vmul.f32 %v14595_v8, %v5975_v26  ;;  %v6052_v28 = vadd.f32 %v6036_v11, %v16989_v17  ;;  %v16993_v11 = vld [vmem:[#allocation54_spill] sm:$0xff] }
 0xf5b   : > { %v6053_v24 = vadd.f32 %v6037_v33, %v16990_v6  ;;  %v6080_v16 = vpop.permute.xlu2 %6079  ;;  %v4788_v58 = vmul.f32 %v4772_v27, %v4388_v54  ;;  %v6102_v51 = vadd.f32 %v6065_v30, %v6046_v57  ;;  %v4789_v52 = vmul.f32 %v4773_v2, %v4389_v42  ;;  %v16997_v54 = vld [vmem:[#allocation51_spill] sm:$0xff] }
 0xf5c   : > { %v6103_v10 = vadd.f32 %v6065_v30, %v6047_v55  ;;  %v6108_v19 = vadd.f32 %v6080_v16, %v6052_v28  ;;  %v4758_v4 = vmul.f32 %v4742_v15, %v4438_v45  ;;  %v4759_v62 = vmul.f32 %v4743_v36, %v4439_v31  ;;  %v16994_v45 = vld [vmem:[#allocation76_spill] sm:$0xff]  ;;  %v16996_v36 = vld [vmem:[#allocation14_spill] sm:$0xff]  ;;  %v6155_v42 = vpop.permute.xlu1 %6154  ;;  %v16999_v30 = vld [vmem:[#allocation47_spill] sm:$0xff] }
 0xf5d   : > { %v6109_v63 = vadd.f32 %v6080_v16, %v6053_v24  ;;  %v6122_v23 = vmul.f32 %v6102_v51, %v4788_v58  ;;  %v6032_v38 = vmul.f32 %v6016_v22, %v16930_v53  ;;  %v6033_v8 = vmul.f32 %v6017_v32, %v16931_v34  ;;  %v16998_v22 = vld [vmem:[#allocation72_spill] sm:$0xff] }
 0xf5e   : > { %v6123_v46 = vmul.f32 %v6103_v10, %v4789_v52  ;;  %v6128_v9 = vmul.f32 %v6108_v19, %v4794_v1  ;;  %v4774_v44 = vadd.f32 1.0, %v4758_v4  ;;  %v4775_v20 = vadd.f32 1.0, %v4759_v62  ;;  %v17002_v51 = vld [vmem:[#allocation84_spill] sm:$0xff]  ;;  %v17003_v10 = vld [vmem:[#allocation70_spill] sm:$0xff] }
 0xf5f   : > { %v6129_v47 = vmul.f32 %v6109_v63, %v4795_v56  ;;  %v4390_v0 = vmul.f32 0.5, %v16991_v41  ;;  %v4391_v35 = vmul.f32 0.5, %v16992_v60  ;;  %v6048_v3 = vadd.f32 %v6032_v38, %v14548_v37  ;;  %v6119_v37 = vld [vmem:[%s14759_s14 + $0x8] sm:$0xff] }
 0xf60   : > { %6187 = vmatpush.msra.mxu0 %v6128_v9  ;;  %v6049_v53 = vadd.f32 %v6033_v8, %v14551_v39  ;;  %vm6162_vm8 = vcmask 523264   ;;  %v6120_v39 = vld [vmem:[%s14759_s14 + $0x10] sm:$0xff] }
 0xf61   : > { %6216 = vmatpush.msra.mxu1 %v6129_v47  ;;  %v4790_v34 = vmul.f32 %v4774_v44, %v4390_v0  ;;  %v4791_v40 = vmul.f32 %v4775_v20, %v4391_v35 }
 0xf62   : > { %6188 = vmatpush.msra.mxu0 %v14574_v50  ;;  %v6118_v50 = vld [vmem:[%s14759_s14] sm:$0xff] }
 0xf63   : > { %6217 = vmatpush.msra.mxu1 %v14576_v5  ;;  %v6070_v13 = vpop.permute.xlu2 %6069  ;;  %v6121_v5 = vld [vmem:[%s14759_s14 + $0x18] sm:$0xff] }
 0xf64   : > { %v6104_v7 = vadd.f32 %v6070_v13, %v6048_v3  ;;  %v6105_v49 = vadd.f32 %v6070_v13, %v6049_v53 }
 0xf66   : > { %v6124_v29 = vmul.f32 %v6104_v7, %v4790_v34  ;;  %v6125_v14 = vmul.f32 %v6105_v49, %v4791_v40 }
 0xf68   : > { %6189 = vmatpush.msra.mxu0 %v6124_v29  ;;  %6218 = vmatpush.msra.mxu1 %v6125_v14 }
 0xf6a   : > { %6190 = vmatpush.msra.mxu0 %v6122_v23  ;;  %6219 = vmatpush.msra.mxu1 %v6123_v46 }
 0xf6b   : > { %6413 = vmatmul.msk.f32.vlgmr.msra.gmra.mxu0 %vm6162_vm8, %v6118_v50  ;;  %6417 = vmatmul.msk.f32.vlgmr.msra.gmra.mxu1 %vm6162_vm8, %v6118_v50  ;;  %v6150_v48 = vpop.permute.xlu2 %6149 }
 0xf73   : > { %6414 = vmatmul.msk.f32.gmra.mxu0 %vm6162_vm8, %v6119_v37  ;;  %6418 = vmatmul.msk.f32.gmra.mxu1 %vm6162_vm8, %v6119_v37  ;;  %v6160_v28 = vpop.permute.xlu2 %6159 }
 0xf7b   : > { %6415 = vmatmul.msk.f32.gmra.mxu0 %vm6162_vm8, %v6120_v39  ;;  %6419 = vmatmul.msk.f32.gmra.mxu1 %vm6162_vm8, %v6120_v39 }
 0xf83   : > { %6416 = vmatmul.msk.f32.gmra.mxu0 %vm6162_vm8, %v6121_v5  ;;  %6420 = vmatmul.msk.f32.gmra.mxu1 %vm6162_vm8, %v6121_v5 }
 0xfc0   : > { %v6145_v59 = vpop.permute.xlu0 %6144 }
 0xfe8   : > { %v6192_v18 = vpop.f32.mrf.mxu0  ;;  %v6221_v1 = vpop.f32.mrf.mxu1 }
 0xfe9   : > { %v6193_v61 = vadd.f32 %v6192_v18, %v6145_v59  ;;  %v6222_v56 = vadd.f32 %v6221_v1, %v6145_v59 }
 0xfeb   : > { %v6233_v33 = vadd.f32 %v6193_v61, %v16993_v11  ;;  %v6234_v31 = vadd.f32 %v6222_v56, %v16994_v45 }
 0xfed   : > { %6241 = vst [vmem:[%s14694_s5] sm:$0xff] %v6233_v33 }
 0xfee   : > { %6242 = vst [vmem:[%s14694_s5 + $0x8] sm:$0xff] %v6234_v31 }
 0xff0   : > { %v6195_v12 = vpop.f32.mrf.mxu0  ;;  %v6224_v27 = vpop.f32.mrf.mxu1 }
 0xff1   : > { %v6196_v2 = vadd.f32 %v6195_v12, %v6150_v48  ;;  %v6225_v15 = vadd.f32 %v6224_v27, %v6150_v48 }
 0xff3   : > { %v6235_v21 = vadd.f32 %v6196_v2, %v16996_v36  ;;  %v6236_v25 = vadd.f32 %v6225_v15, %v16997_v54 }
 0xff5   : > { %6243 = vst [vmem:[%s14694_s5 + $0x10] sm:$0xff] %v6235_v21 }
 0xff6   : > { %6244 = vst [vmem:[%s14694_s5 + $0x18] sm:$0xff] %v6236_v25 }
 0xff8   : > { %v6198_v43 = vpop.f32.mrf.mxu0  ;;  %v6227_v26 = vpop.f32.mrf.mxu1 }
 0xff9   : > { %v6199_v57 = vadd.f32 %v6198_v43, %v6155_v42  ;;  %v6228_v55 = vadd.f32 %v6227_v26, %v6155_v42 }
 0xffb   : > { %v6237_v32 = vadd.f32 %v6199_v57, %v16998_v22  ;;  %v6238_v17 = vadd.f32 %v6228_v55, %v16999_v30 }
 0xffd   : > { %6245 = vst [vmem:[%s14694_s5 + $0x20] sm:$0xff] %v6237_v32 }
 0xffe   : > { %6246 = vst [vmem:[%s14694_s5 + $0x28] sm:$0xff] %v6238_v17 }
0x1000   : > { %v6201_v6 = vpop.f32.mrf.mxu0  ;;  %v6230_v24 = vpop.f32.mrf.mxu1 }
0x1001   : > { %v6202_v16 = vadd.f32 %v6201_v6, %v6160_v28  ;;  %v6231_v58 = vadd.f32 %v6230_v24, %v6160_v28 }
0x1003   : > { %v6239_v52 = vadd.f32 %v6202_v16, %v17002_v51  ;;  %v6240_v19 = vadd.f32 %v6231_v58, %v17003_v10 }
0x1005   : > { %6247 = vst [vmem:[%s14694_s5 + $0x30] sm:$0xff] %v6239_v52 }
0x1006   : > { %6248 = vst [vmem:[%s14694_s5 + $0x38] sm:$0xff] %v6240_v19 }
0x1007   : > { %6792 = shalt.err (!%p6789_p3)
}
0x1008   : > { %s6847_s29 = smov 256  }
0x1009   : > { %6436 = dma.vmem_to_hbm [thread:$0]  (%p6971_p5), %s6263_s1, 1024, %s6265_s26, %s6250_s19, %s6847_s29, %s6847_s29, %s15595_s18  }
0x100a PF: > { %s17004_s5 = sld [smem:[#allocation7_spill]] }
0x100b   : > { %s17005_s0 = sld [smem:[#allocation5_spill]] }
0x1010   : > { %p6442_p4 = scmp.ge.s32.totalorder %s17004_s5, 2 }
0x1011   : > { %s6279_s21 = sand.u32 1, %s17005_s0  }
0x1012   : > { %p6439_p7 = pnand %p6442_p4, %p6975_p6  ;;  %s6280_s24 = scalar_lea.sflag [#allocation3], %s6279_s21 }
0x1014   : > { %p6440_p8 = pneg %p6439_p7 }
0x1016   : > { %6810 = dma.done.wait (%p6440_p8), %s6280_s24, 1024  }
0x1017   : > { %6812 = vsyncadd (%p6440_p8), %s6280_s24, 4294966272  ;;  %s17007_s24 = sld [smem:[#allocation9_spill]]  ;;  %s17010_s21 = smov %s6819_s22 }
0x1018   : > { %s17008_s30 = sld [smem:[#allocation6_spill]] }
0x1019   : > { %s17009_s23 = sld [smem:[#allocation10_spill]] }
0x101d   : > { %p26_p9 = scmp.ge.s32.totalorder %s17007_s24, 4  }
0x101e   : > { %s17011_s22 = smov %s17008_s30 }
0x101f   :  { %28 = sbr.rel (!%p26_p9) target bundleno = 10 (0xa), region = 126 }
0x1024   :  { %6286 = vsyncpa [#allocation3], 1 }
0x1025   :  { %6288 = vsyncpa [#allocation3 + $0x1], 1 }

</bundles_post_ra>
